<compile_context>
chip_gen: v6e
topology: v6e:2x2x1
jax: 0.10.0
libtpu: 0.0.40
codegen_flags: <defaults>
</compile_context>

<pallas_src>
import jax
import jax.numpy as jnp
from jax import lax
from jax.experimental import pallas as pl
from jax.experimental.pallas import tpu as pltpu

EPS = 1e-5


def _round_up(a, b):
    return (a + b - 1) // b * b


def resnet_block_forward(x, w1, w2):
    """x: (N, C, D, H, W) float32 (PyTorch NCDHW).
    w1, w2: (Cout, Cin, 3, 3, 3) float32 (PyTorch Conv3d layout), Cout == Cin == C.
    Returns x + conv_block(x), NCDHW."""
    N, C, D, H, W = x.shape
    assert w1.shape == (C, C, 3, 3, 3) and w2.shape == (C, C, 3, 3, 3), \
        "residual add requires dim_in == dim_out (and 3x3x3 kernels)"

    Dp, Hp, Wp = D + 2, H + 2, W + 2
    Sp = Dp * Hp * Wp                      # flattened padded spatial length
    S = D * H * W                          # number of real output voxels
    maxoff = Hp * Wp + Wp + 1              # largest |tap offset| on the flat axis
    LEAD = _round_up(maxoff, 128)          # front/back margins (lane aligned)
    Swin = _round_up(Sp, 128)              # lane-dense compute window
    L = LEAD + Swin + LEAD                 # total flat length per (n, c)

    # Channel-major, spatially zero-padded, flattened to a lane-dense axis with
    # LEAD/TRAIL margins so every 3x3x3 tap is one contiguous lane slice.
    xpad = jnp.pad(x, ((0, 0), (0, 0), (1, 1), (1, 1), (1, 1))).reshape(N, C, Sp)
    xflat = jnp.pad(xpad, ((0, 0), (0, 0), (LEAD, L - LEAD - Sp)))

    # Interior mask: 1.0 at lanes that correspond to real output voxels.
    m3 = jnp.zeros((Dp, Hp, Wp), jnp.float32).at[1:-1, 1:-1, 1:-1].set(1.0)
    mask = jnp.pad(m3.reshape(1, Sp), ((0, 0), (0, Swin - Sp)))

    # Per-tap (Cout, Cin) weights, tap-major: t = kd*9 + kh*3 + kw.
    w1t = jnp.transpose(w1, (2, 3, 4, 0, 1)).reshape(27, C, C)
    w2t = jnp.transpose(w2, (2, 3, 4, 0, 1)).reshape(27, C, C)

    taps = [(kd, kh, kw) for kd in range(3) for kh in range(3) for kw in range(3)]

    def kernel(mask_ref, x_ref, w1_ref, w2_ref, o_ref, h_ref):
        # mask_ref: (1, Swin)   x_ref/h_ref: (C, L)   w*_ref: (27, C, C)
        # o_ref:    (C, Swin)
        msk = mask_ref[...]
        inv_n = jnp.float32(1.0 / S)

        def conv_instnorm(src_ref, w_ref):
            # 27 accumulating MXU matmuls; each tap is a contiguous lane slice
            # read straight from the ref (no im2col matrix is ever built).
            acc = None
            for t, (kd, kh, kw) in enumerate(taps):
                off = (kd - 1) * Hp * Wp + (kh - 1) * Wp + (kw - 1)
                lo = LEAD + off
                tap = src_ref[:, lo:lo + Swin].astype(jnp.float32)          # (C, Swin)
                part = jnp.dot(w_ref[t].astype(jnp.float32), tap,
                               preferred_element_type=jnp.float32)          # (C, Swin)
                acc = part if acc is None else acc + part
            # InstanceNorm3d: biased variance over the interior lanes only,
            # eps=1e-5, no affine.  Single pass with var clamped >= 0.
            mean = jnp.sum(acc * msk, axis=1, keepdims=True) * inv_n
            ex2 = jnp.sum(acc * acc * msk, axis=1, keepdims=True) * inv_n
            var = jnp.maximum(ex2 - mean * mean, 0.0)
            return (acc - mean) * lax.rsqrt(var + EPS)

        # Stage 1: conv -> InstanceNorm -> ReLU.  The mask multiply zeroes every
        # non-interior lane, which IS the zero padding stage 2 relies on.
        h = jnp.maximum(conv_instnorm(x_ref, w1_ref), 0.0) * msk

        # Margins are never read when producing interior outputs, but keep them
        # finite (zero) so the masked stage-2 statistics cannot absorb NaNs from
        # stale VMEM.  Only 2 x (C, 128) strips; the interior window is fully
        # overwritten every step, so no cross-step scratch state exists.
        h_ref[:, 0:LEAD] = jnp.zeros((C, LEAD), jnp.float32)
        h_ref[:, LEAD + Swin:L] = jnp.zeros((C, L - LEAD - Swin), jnp.float32)
        h_ref[:, LEAD:LEAD + Swin] = h

        # Stage 2: conv -> InstanceNorm, residual read from the resident x block.
        y = conv_instnorm(h_ref, w2_ref)
        res = x_ref[:, LEAD:LEAD + Swin].astype(jnp.float32)
        o_ref[...] = (res + y).astype(o_ref.dtype)

    out = pl.pallas_call(
        kernel,
        out_shape=jax.ShapeDtypeStruct((N, C, Swin), x.dtype),
        grid_spec=pltpu.PrefetchScalarGridSpec(
            num_scalar_prefetch=0,
            grid=(N,),
            in_specs=[
                pl.BlockSpec((1, Swin), lambda n: (0, 0)),         # mask (grid-invariant)
                pl.BlockSpec((None, C, L), lambda n: (n, 0, 0)),   # x, squeezed to (C, L)
                pl.BlockSpec((27, C, C), lambda n: (0, 0, 0)),     # w1 (grid-invariant)
                pl.BlockSpec((27, C, C), lambda n: (0, 0, 0)),     # w2 (grid-invariant)
            ],
            out_specs=pl.BlockSpec((None, C, Swin), lambda n: (n, 0, 0)),
            scratch_shapes=[pltpu.VMEM((C, L), jnp.float32)],
        ),
        compiler_params=pltpu.CompilerParams(
            dimension_semantics=("parallel",),        # shard N across TCs (v7x)
            # Per-step footprint is well under 1 MiB at these shapes; 48 MiB works
            # on every chip and still leaves headroom on v7x's 64 MiB physical VMEM
            # (raise toward ~96-110 MiB on v5e/v6e if blocks are ever enlarged).
            vmem_limit_bytes=48 * 1024 * 1024),
    )(mask, xflat, w1t, w2t)

    # Lane-dense (N, C, Swin) slab -> interior NCDHW volume (pure layout, in XLA).
    out = out[:, :, :Sp].reshape(N, C, Dp, Hp, Wp)[:, :, 1:-1, 1:-1, 1:-1]
    return out


def _reference(x, w1, w2):
    """Pure-JAX reference in NCDHW / OIDHW."""
    dn = ("NCDHW", "OIDHW", "NCDHW")

    def conv(inp, w):
        return lax.conv_general_dilated(
            inp, w, window_strides=(1, 1, 1),
            padding=((1, 1), (1, 1), (1, 1)), dimension_numbers=dn)

    def instnorm(y):
        mean = jnp.mean(y, axis=(2, 3, 4), keepdims=True)
        var = jnp.mean((y - mean) ** 2, axis=(2, 3, 4), keepdims=True)
        return (y - mean) * lax.rsqrt(var + EPS)

    h = jnp.maximum(instnorm(conv(x, w1)), 0.0)
    return x + instnorm(conv(h, w2))


if __name__ == "__main__":
    key = jax.random.PRNGKey(0)
    k1, k2, kx = jax.random.split(key, 3)

    N, C, D, H, W = 2, 4, 8, 8, 8   # small shapes; dim_in == dim_out == C

    # PyTorch Conv3d weight layout: (O, I, kD, kH, kW); input in NCDHW.
    w1 = jax.random.normal(k1, (C, C, 3, 3, 3), jnp.float32) * 0.1
    w2 = jax.random.normal(k2, (C, C, 3, 3, 3), jnp.float32) * 0.1
    x = jax.random.normal(kx, (N, C, D, H, W), jnp.float32)

    fwd = jax.jit(resnet_block_forward)
    out = jax.block_until_ready(fwd(x, w1, w2))

    ref = _reference(x, w1, w2)
    assert out.shape == ref.shape
    err = float(jnp.max(jnp.abs(out - ref)))
    assert jnp.allclose(out, ref, atol=2e-3, rtol=2e-3), f"max abs err {err}"

    print("KERNEL_OK")
</pallas_src>

<mosaic_0001>
module attributes {stable_mosaic.version = 11 : i64} {
  func.func @kernel(%arg0: i32, %arg1: memref<1x1024xf32, #tpu.memory_space<vmem>>, %arg2: memref<1x4x1280xf32, #tpu.memory_space<vmem>>, %arg3: memref<27x4x4xf32, #tpu.memory_space<vmem>>, %arg4: memref<27x4x4xf32, #tpu.memory_space<vmem>>, %arg5: memref<1x4x1024xf32, #tpu.memory_space<vmem>>, %arg6: memref<4x1280xf32, #tpu.memory_space<vmem>>) attributes {dimension_semantics = [#tpu.dimension_semantics<parallel>], iteration_bounds = array<i64: 2>, scalar_prefetch = 0 : i64, scratch_operands = 1 : i64, tpu.core_type = #tpu.core_type<tc>, window_params = [{pipeline_mode = #tpu.pipeline_mode<synchronous>, transform_indices = @transform_0, window_bounds = array<i64: 1, 1024>}, {transform_indices = @transform_1, window_bounds = array<i64: 1, 4, 1280>}, {pipeline_mode = #tpu.pipeline_mode<synchronous>, transform_indices = @transform_2, window_bounds = array<i64: 27, 4, 4>}, {pipeline_mode = #tpu.pipeline_mode<synchronous>, transform_indices = @transform_3, window_bounds = array<i64: 27, 4, 4>}, {transform_indices = @transform_4, window_bounds = array<i64: 1, 4, 1024>}]} {
    %c0 = arith.constant 0 : index
    %c0_0 = arith.constant 0 : index
    %0 = vector.load %arg1[%c0, %c0_0] : memref<1x1024xf32, #tpu.memory_space<vmem>>, vector<1x1024xf32>
    %c0_1 = arith.constant 0 : index
    %c0_2 = arith.constant 0 : index
    %c17 = arith.constant 17 : index
    %1 = vector.load %arg2[%c0_1, %c0_2, %c17] : memref<1x4x1280xf32, #tpu.memory_space<vmem>>, vector<1x4x1024xf32>
    %2 = vector.shape_cast %1 : vector<1x4x1024xf32> to vector<4x1024xf32>
    %c0_3 = arith.constant 0 : index
    %c0_4 = arith.constant 0 : index
    %c0_5 = arith.constant 0 : index
    %3 = vector.load %arg3[%c0_3, %c0_4, %c0_5] : memref<27x4x4xf32, #tpu.memory_space<vmem>>, vector<1x4x4xf32>
    %4 = vector.shape_cast %3 : vector<1x4x4xf32> to vector<4x4xf32>
    %cst = arith.constant dense<0.000000e+00> : vector<4x1024xf32>
    %5 = tpu.matmul %4, %2, %cst {dimension_numbers = #tpu.dot_dimension_numbers<[1], [0], [0], [1], [0, 0, 1, 1], [], []>} : vector<4x4xf32>, vector<4x1024xf32>, vector<4x1024xf32> -> vector<4x1024xf32>
    %c0_6 = arith.constant 0 : index
    %c0_7 = arith.constant 0 : index
    %c18 = arith.constant 18 : index
    %6 = vector.load %arg2[%c0_6, %c0_7, %c18] : memref<1x4x1280xf32, #tpu.memory_space<vmem>>, vector<1x4x1024xf32>
    %7 = vector.shape_cast %6 : vector<1x4x1024xf32> to vector<4x1024xf32>
    %c1 = arith.constant 1 : index
    %c0_8 = arith.constant 0 : index
    %c0_9 = arith.constant 0 : index
    %8 = vector.load %arg3[%c1, %c0_8, %c0_9] : memref<27x4x4xf32, #tpu.memory_space<vmem>>, vector<1x4x4xf32>
    %9 = vector.shape_cast %8 : vector<1x4x4xf32> to vector<4x4xf32>
    %cst_10 = arith.constant dense<0.000000e+00> : vector<4x1024xf32>
    %10 = tpu.matmul %9, %7, %cst_10 {dimension_numbers = #tpu.dot_dimension_numbers<[1], [0], [0], [1], [0, 0, 1, 1], [], []>} : vector<4x4xf32>, vector<4x1024xf32>, vector<4x1024xf32> -> vector<4x1024xf32>
    %11 = arith.addf %5, %10 : vector<4x1024xf32>
    %c0_11 = arith.constant 0 : index
    %c0_12 = arith.constant 0 : index
    %c19 = arith.constant 19 : index
    %12 = vector.load %arg2[%c0_11, %c0_12, %c19] : memref<1x4x1280xf32, #tpu.memory_space<vmem>>, vector<1x4x1024xf32>
    %13 = vector.shape_cast %12 : vector<1x4x1024xf32> to vector<4x1024xf32>
    %c2 = arith.constant 2 : index
    %c0_13 = arith.constant 0 : index
    %c0_14 = arith.constant 0 : index
    %14 = vector.load %arg3[%c2, %c0_13, %c0_14] : memref<27x4x4xf32, #tpu.memory_space<vmem>>, vector<1x4x4xf32>
    %15 = vector.shape_cast %14 : vector<1x4x4xf32> to vector<4x4xf32>
    %cst_15 = arith.constant dense<0.000000e+00> : vector<4x1024xf32>
    %16 = tpu.matmul %15, %13, %cst_15 {dimension_numbers = #tpu.dot_dimension_numbers<[1], [0], [0], [1], [0, 0, 1, 1], [], []>} : vector<4x4xf32>, vector<4x1024xf32>, vector<4x1024xf32> -> vector<4x1024xf32>
    %17 = arith.addf %11, %16 : vector<4x1024xf32>
    %c0_16 = arith.constant 0 : index
    %c0_17 = arith.constant 0 : index
    %c27 = arith.constant 27 : index
    %18 = vector.load %arg2[%c0_16, %c0_17, %c27] : memref<1x4x1280xf32, #tpu.memory_space<vmem>>, vector<1x4x1024xf32>
    %19 = vector.shape_cast %18 : vector<1x4x1024xf32> to vector<4x1024xf32>
    %c3 = arith.constant 3 : index
    %c0_18 = arith.constant 0 : index
    %c0_19 = arith.constant 0 : index
    %20 = vector.load %arg3[%c3, %c0_18, %c0_19] : memref<27x4x4xf32, #tpu.memory_space<vmem>>, vector<1x4x4xf32>
    %21 = vector.shape_cast %20 : vector<1x4x4xf32> to vector<4x4xf32>
    %cst_20 = arith.constant dense<0.000000e+00> : vector<4x1024xf32>
    %22 = tpu.matmul %21, %19, %cst_20 {dimension_numbers = #tpu.dot_dimension_numbers<[1], [0], [0], [1], [0, 0, 1, 1], [], []>} : vector<4x4xf32>, vector<4x1024xf32>, vector<4x1024xf32> -> vector<4x1024xf32>
    %23 = arith.addf %17, %22 : vector<4x1024xf32>
    %c0_21 = arith.constant 0 : index
    %c0_22 = arith.constant 0 : index
    %c28 = arith.constant 28 : index
    %24 = vector.load %arg2[%c0_21, %c0_22, %c28] : memref<1x4x1280xf32, #tpu.memory_space<vmem>>, vector<1x4x1024xf32>
    %25 = vector.shape_cast %24 : vector<1x4x1024xf32> to vector<4x1024xf32>
    %c4 = arith.constant 4 : index
    %c0_23 = arith.constant 0 : index
    %c0_24 = arith.constant 0 : index
    %26 = vector.load %arg3[%c4, %c0_23, %c0_24] : memref<27x4x4xf32, #tpu.memory_space<vmem>>, vector<1x4x4xf32>
    %27 = vector.shape_cast %26 : vector<1x4x4xf32> to vector<4x4xf32>
    %cst_25 = arith.constant dense<0.000000e+00> : vector<4x1024xf32>
    %28 = tpu.matmul %27, %25, %cst_25 {dimension_numbers = #tpu.dot_dimension_numbers<[1], [0], [0], [1], [0, 0, 1, 1], [], []>} : vector<4x4xf32>, vector<4x1024xf32>, vector<4x1024xf32> -> vector<4x1024xf32>
    %29 = arith.addf %23, %28 : vector<4x1024xf32>
    %c0_26 = arith.constant 0 : index
    %c0_27 = arith.constant 0 : index
    %c29 = arith.constant 29 : index
    %30 = vector.load %arg2[%c0_26, %c0_27, %c29] : memref<1x4x1280xf32, #tpu.memory_space<vmem>>, vector<1x4x1024xf32>
    %31 = vector.shape_cast %30 : vector<1x4x1024xf32> to vector<4x1024xf32>
    %c5 = arith.constant 5 : index
    %c0_28 = arith.constant 0 : index
    %c0_29 = arith.constant 0 : index
    %32 = vector.load %arg3[%c5, %c0_28, %c0_29] : memref<27x4x4xf32, #tpu.memory_space<vmem>>, vector<1x4x4xf32>
    %33 = vector.shape_cast %32 : vector<1x4x4xf32> to vector<4x4xf32>
    %cst_30 = arith.constant dense<0.000000e+00> : vector<4x1024xf32>
    %34 = tpu.matmul %33, %31, %cst_30 {dimension_numbers = #tpu.dot_dimension_numbers<[1], [0], [0], [1], [0, 0, 1, 1], [], []>} : vector<4x4xf32>, vector<4x1024xf32>, vector<4x1024xf32> -> vector<4x1024xf32>
    %35 = arith.addf %29, %34 : vector<4x1024xf32>
    %c0_31 = arith.constant 0 : index
    %c0_32 = arith.constant 0 : index
    %c37 = arith.constant 37 : index
    %36 = vector.load %arg2[%c0_31, %c0_32, %c37] : memref<1x4x1280xf32, #tpu.memory_space<vmem>>, vector<1x4x1024xf32>
    %37 = vector.shape_cast %36 : vector<1x4x1024xf32> to vector<4x1024xf32>
    %c6 = arith.constant 6 : index
    %c0_33 = arith.constant 0 : index
    %c0_34 = arith.constant 0 : index
    %38 = vector.load %arg3[%c6, %c0_33, %c0_34] : memref<27x4x4xf32, #tpu.memory_space<vmem>>, vector<1x4x4xf32>
    %39 = vector.shape_cast %38 : vector<1x4x4xf32> to vector<4x4xf32>
    %cst_35 = arith.constant dense<0.000000e+00> : vector<4x1024xf32>
    %40 = tpu.matmul %39, %37, %cst_35 {dimension_numbers = #tpu.dot_dimension_numbers<[1], [0], [0], [1], [0, 0, 1, 1], [], []>} : vector<4x4xf32>, vector<4x1024xf32>, vector<4x1024xf32> -> vector<4x1024xf32>
    %41 = arith.addf %35, %40 : vector<4x1024xf32>
    %c0_36 = arith.constant 0 : index
    %c0_37 = arith.constant 0 : index
    %c38 = arith.constant 38 : index
    %42 = vector.load %arg2[%c0_36, %c0_37, %c38] : memref<1x4x1280xf32, #tpu.memory_space<vmem>>, vector<1x4x1024xf32>
    %43 = vector.shape_cast %42 : vector<1x4x1024xf32> to vector<4x1024xf32>
    %c7 = arith.constant 7 : index
    %c0_38 = arith.constant 0 : index
    %c0_39 = arith.constant 0 : index
    %44 = vector.load %arg3[%c7, %c0_38, %c0_39] : memref<27x4x4xf32, #tpu.memory_space<vmem>>, vector<1x4x4xf32>
    %45 = vector.shape_cast %44 : vector<1x4x4xf32> to vector<4x4xf32>
    %cst_40 = arith.constant dense<0.000000e+00> : vector<4x1024xf32>
    %46 = tpu.matmul %45, %43, %cst_40 {dimension_numbers = #tpu.dot_dimension_numbers<[1], [0], [0], [1], [0, 0, 1, 1], [], []>} : vector<4x4xf32>, vector<4x1024xf32>, vector<4x1024xf32> -> vector<4x1024xf32>
    %47 = arith.addf %41, %46 : vector<4x1024xf32>
    %c0_41 = arith.constant 0 : index
    %c0_42 = arith.constant 0 : index
    %c39 = arith.constant 39 : index
    %48 = vector.load %arg2[%c0_41, %c0_42, %c39] : memref<1x4x1280xf32, #tpu.memory_space<vmem>>, vector<1x4x1024xf32>
    %49 = vector.shape_cast %48 : vector<1x4x1024xf32> to vector<4x1024xf32>
    %c8 = arith.constant 8 : index
    %c0_43 = arith.constant 0 : index
    %c0_44 = arith.constant 0 : index
    %50 = vector.load %arg3[%c8, %c0_43, %c0_44] : memref<27x4x4xf32, #tpu.memory_space<vmem>>, vector<1x4x4xf32>
    %51 = vector.shape_cast %50 : vector<1x4x4xf32> to vector<4x4xf32>
    %cst_45 = arith.constant dense<0.000000e+00> : vector<4x1024xf32>
    %52 = tpu.matmul %51, %49, %cst_45 {dimension_numbers = #tpu.dot_dimension_numbers<[1], [0], [0], [1], [0, 0, 1, 1], [], []>} : vector<4x4xf32>, vector<4x1024xf32>, vector<4x1024xf32> -> vector<4x1024xf32>
    %53 = arith.addf %47, %52 : vector<4x1024xf32>
    %c0_46 = arith.constant 0 : index
    %c0_47 = arith.constant 0 : index
    %c117 = arith.constant 117 : index
    %54 = vector.load %arg2[%c0_46, %c0_47, %c117] : memref<1x4x1280xf32, #tpu.memory_space<vmem>>, vector<1x4x1024xf32>
    %55 = vector.shape_cast %54 : vector<1x4x1024xf32> to vector<4x1024xf32>
    %c9 = arith.constant 9 : index
    %c0_48 = arith.constant 0 : index
    %c0_49 = arith.constant 0 : index
    %56 = vector.load %arg3[%c9, %c0_48, %c0_49] : memref<27x4x4xf32, #tpu.memory_space<vmem>>, vector<1x4x4xf32>
    %57 = vector.shape_cast %56 : vector<1x4x4xf32> to vector<4x4xf32>
    %cst_50 = arith.constant dense<0.000000e+00> : vector<4x1024xf32>
    %58 = tpu.matmul %57, %55, %cst_50 {dimension_numbers = #tpu.dot_dimension_numbers<[1], [0], [0], [1], [0, 0, 1, 1], [], []>} : vector<4x4xf32>, vector<4x1024xf32>, vector<4x1024xf32> -> vector<4x1024xf32>
    %59 = arith.addf %53, %58 : vector<4x1024xf32>
    %c0_51 = arith.constant 0 : index
    %c0_52 = arith.constant 0 : index
    %c118 = arith.constant 118 : index
    %60 = vector.load %arg2[%c0_51, %c0_52, %c118] : memref<1x4x1280xf32, #tpu.memory_space<vmem>>, vector<1x4x1024xf32>
    %61 = vector.shape_cast %60 : vector<1x4x1024xf32> to vector<4x1024xf32>
    %c10 = arith.constant 10 : index
    %c0_53 = arith.constant 0 : index
    %c0_54 = arith.constant 0 : index
    %62 = vector.load %arg3[%c10, %c0_53, %c0_54] : memref<27x4x4xf32, #tpu.memory_space<vmem>>, vector<1x4x4xf32>
    %63 = vector.shape_cast %62 : vector<1x4x4xf32> to vector<4x4xf32>
    %cst_55 = arith.constant dense<0.000000e+00> : vector<4x1024xf32>
    %64 = tpu.matmul %63, %61, %cst_55 {dimension_numbers = #tpu.dot_dimension_numbers<[1], [0], [0], [1], [0, 0, 1, 1], [], []>} : vector<4x4xf32>, vector<4x1024xf32>, vector<4x1024xf32> -> vector<4x1024xf32>
    %65 = arith.addf %59, %64 : vector<4x1024xf32>
    %c0_56 = arith.constant 0 : index
    %c0_57 = arith.constant 0 : index
    %c119 = arith.constant 119 : index
    %66 = vector.load %arg2[%c0_56, %c0_57, %c119] : memref<1x4x1280xf32, #tpu.memory_space<vmem>>, vector<1x4x1024xf32>
    %67 = vector.shape_cast %66 : vector<1x4x1024xf32> to vector<4x1024xf32>
    %c11 = arith.constant 11 : index
    %c0_58 = arith.constant 0 : index
    %c0_59 = arith.constant 0 : index
    %68 = vector.load %arg3[%c11, %c0_58, %c0_59] : memref<27x4x4xf32, #tpu.memory_space<vmem>>, vector<1x4x4xf32>
    %69 = vector.shape_cast %68 : vector<1x4x4xf32> to vector<4x4xf32>
    %cst_60 = arith.constant dense<0.000000e+00> : vector<4x1024xf32>
    %70 = tpu.matmul %69, %67, %cst_60 {dimension_numbers = #tpu.dot_dimension_numbers<[1], [0], [0], [1], [0, 0, 1, 1], [], []>} : vector<4x4xf32>, vector<4x1024xf32>, vector<4x1024xf32> -> vector<4x1024xf32>
    %71 = arith.addf %65, %70 : vector<4x1024xf32>
    %c0_61 = arith.constant 0 : index
    %c0_62 = arith.constant 0 : index
    %c127 = arith.constant 127 : index
    %72 = vector.load %arg2[%c0_61, %c0_62, %c127] : memref<1x4x1280xf32, #tpu.memory_space<vmem>>, vector<1x4x1024xf32>
    %73 = vector.shape_cast %72 : vector<1x4x1024xf32> to vector<4x1024xf32>
    %c12 = arith.constant 12 : index
    %c0_63 = arith.constant 0 : index
    %c0_64 = arith.constant 0 : index
    %74 = vector.load %arg3[%c12, %c0_63, %c0_64] : memref<27x4x4xf32, #tpu.memory_space<vmem>>, vector<1x4x4xf32>
    %75 = vector.shape_cast %74 : vector<1x4x4xf32> to vector<4x4xf32>
    %cst_65 = arith.constant dense<0.000000e+00> : vector<4x1024xf32>
    %76 = tpu.matmul %75, %73, %cst_65 {dimension_numbers = #tpu.dot_dimension_numbers<[1], [0], [0], [1], [0, 0, 1, 1], [], []>} : vector<4x4xf32>, vector<4x1024xf32>, vector<4x1024xf32> -> vector<4x1024xf32>
    %77 = arith.addf %71, %76 : vector<4x1024xf32>
    %c0_66 = arith.constant 0 : index
    %c0_67 = arith.constant 0 : index
    %c128 = arith.constant 128 : index
    %78 = vector.load %arg2[%c0_66, %c0_67, %c128] : memref<1x4x1280xf32, #tpu.memory_space<vmem>>, vector<1x4x1024xf32>
    %79 = vector.shape_cast %78 : vector<1x4x1024xf32> to vector<4x1024xf32>
    %c13 = arith.constant 13 : index
    %c0_68 = arith.constant 0 : index
    %c0_69 = arith.constant 0 : index
    %80 = vector.load %arg3[%c13, %c0_68, %c0_69] : memref<27x4x4xf32, #tpu.memory_space<vmem>>, vector<1x4x4xf32>
    %81 = vector.shape_cast %80 : vector<1x4x4xf32> to vector<4x4xf32>
    %cst_70 = arith.constant dense<0.000000e+00> : vector<4x1024xf32>
    %82 = tpu.matmul %81, %79, %cst_70 {dimension_numbers = #tpu.dot_dimension_numbers<[1], [0], [0], [1], [0, 0, 1, 1], [], []>} : vector<4x4xf32>, vector<4x1024xf32>, vector<4x1024xf32> -> vector<4x1024xf32>
    %83 = arith.addf %77, %82 : vector<4x1024xf32>
    %c0_71 = arith.constant 0 : index
    %c0_72 = arith.constant 0 : index
    %c129 = arith.constant 129 : index
    %84 = vector.load %arg2[%c0_71, %c0_72, %c129] : memref<1x4x1280xf32, #tpu.memory_space<vmem>>, vector<1x4x1024xf32>
    %85 = vector.shape_cast %84 : vector<1x4x1024xf32> to vector<4x1024xf32>
    %c14 = arith.constant 14 : index
    %c0_73 = arith.constant 0 : index
    %c0_74 = arith.constant 0 : index
    %86 = vector.load %arg3[%c14, %c0_73, %c0_74] : memref<27x4x4xf32, #tpu.memory_space<vmem>>, vector<1x4x4xf32>
    %87 = vector.shape_cast %86 : vector<1x4x4xf32> to vector<4x4xf32>
    %cst_75 = arith.constant dense<0.000000e+00> : vector<4x1024xf32>
    %88 = tpu.matmul %87, %85, %cst_75 {dimension_numbers = #tpu.dot_dimension_numbers<[1], [0], [0], [1], [0, 0, 1, 1], [], []>} : vector<4x4xf32>, vector<4x1024xf32>, vector<4x1024xf32> -> vector<4x1024xf32>
    %89 = arith.addf %83, %88 : vector<4x1024xf32>
    %c0_76 = arith.constant 0 : index
    %c0_77 = arith.constant 0 : index
    %c137 = arith.constant 137 : index
    %90 = vector.load %arg2[%c0_76, %c0_77, %c137] : memref<1x4x1280xf32, #tpu.memory_space<vmem>>, vector<1x4x1024xf32>
    %91 = vector.shape_cast %90 : vector<1x4x1024xf32> to vector<4x1024xf32>
    %c15 = arith.constant 15 : index
    %c0_78 = arith.constant 0 : index
    %c0_79 = arith.constant 0 : index
    %92 = vector.load %arg3[%c15, %c0_78, %c0_79] : memref<27x4x4xf32, #tpu.memory_space<vmem>>, vector<1x4x4xf32>
    %93 = vector.shape_cast %92 : vector<1x4x4xf32> to vector<4x4xf32>
    %cst_80 = arith.constant dense<0.000000e+00> : vector<4x1024xf32>
    %94 = tpu.matmul %93, %91, %cst_80 {dimension_numbers = #tpu.dot_dimension_numbers<[1], [0], [0], [1], [0, 0, 1, 1], [], []>} : vector<4x4xf32>, vector<4x1024xf32>, vector<4x1024xf32> -> vector<4x1024xf32>
    %95 = arith.addf %89, %94 : vector<4x1024xf32>
    %c0_81 = arith.constant 0 : index
    %c0_82 = arith.constant 0 : index
    %c138 = arith.constant 138 : index
    %96 = vector.load %arg2[%c0_81, %c0_82, %c138] : memref<1x4x1280xf32, #tpu.memory_space<vmem>>, vector<1x4x1024xf32>
    %97 = vector.shape_cast %96 : vector<1x4x1024xf32> to vector<4x1024xf32>
    %c16 = arith.constant 16 : index
    %c0_83 = arith.constant 0 : index
    %c0_84 = arith.constant 0 : index
    %98 = vector.load %arg3[%c16, %c0_83, %c0_84] : memref<27x4x4xf32, #tpu.memory_space<vmem>>, vector<1x4x4xf32>
    %99 = vector.shape_cast %98 : vector<1x4x4xf32> to vector<4x4xf32>
    %cst_85 = arith.constant dense<0.000000e+00> : vector<4x1024xf32>
    %100 = tpu.matmul %99, %97, %cst_85 {dimension_numbers = #tpu.dot_dimension_numbers<[1], [0], [0], [1], [0, 0, 1, 1], [], []>} : vector<4x4xf32>, vector<4x1024xf32>, vector<4x1024xf32> -> vector<4x1024xf32>
    %101 = arith.addf %95, %100 : vector<4x1024xf32>
    %c0_86 = arith.constant 0 : index
    %c0_87 = arith.constant 0 : index
    %c139 = arith.constant 139 : index
    %102 = vector.load %arg2[%c0_86, %c0_87, %c139] : memref<1x4x1280xf32, #tpu.memory_space<vmem>>, vector<1x4x1024xf32>
    %103 = vector.shape_cast %102 : vector<1x4x1024xf32> to vector<4x1024xf32>
    %c17_88 = arith.constant 17 : index
    %c0_89 = arith.constant 0 : index
    %c0_90 = arith.constant 0 : index
    %104 = vector.load %arg3[%c17_88, %c0_89, %c0_90] : memref<27x4x4xf32, #tpu.memory_space<vmem>>, vector<1x4x4xf32>
    %105 = vector.shape_cast %104 : vector<1x4x4xf32> to vector<4x4xf32>
    %cst_91 = arith.constant dense<0.000000e+00> : vector<4x1024xf32>
    %106 = tpu.matmul %105, %103, %cst_91 {dimension_numbers = #tpu.dot_dimension_numbers<[1], [0], [0], [1], [0, 0, 1, 1], [], []>} : vector<4x4xf32>, vector<4x1024xf32>, vector<4x1024xf32> -> vector<4x1024xf32>
    %107 = arith.addf %101, %106 : vector<4x1024xf32>
    %c0_92 = arith.constant 0 : index
    %c0_93 = arith.constant 0 : index
    %c217 = arith.constant 217 : index
    %108 = vector.load %arg2[%c0_92, %c0_93, %c217] : memref<1x4x1280xf32, #tpu.memory_space<vmem>>, vector<1x4x1024xf32>
    %109 = vector.shape_cast %108 : vector<1x4x1024xf32> to vector<4x1024xf32>
    %c18_94 = arith.constant 18 : index
    %c0_95 = arith.constant 0 : index
    %c0_96 = arith.constant 0 : index
    %110 = vector.load %arg3[%c18_94, %c0_95, %c0_96] : memref<27x4x4xf32, #tpu.memory_space<vmem>>, vector<1x4x4xf32>
    %111 = vector.shape_cast %110 : vector<1x4x4xf32> to vector<4x4xf32>
    %cst_97 = arith.constant dense<0.000000e+00> : vector<4x1024xf32>
    %112 = tpu.matmul %111, %109, %cst_97 {dimension_numbers = #tpu.dot_dimension_numbers<[1], [0], [0], [1], [0, 0, 1, 1], [], []>} : vector<4x4xf32>, vector<4x1024xf32>, vector<4x1024xf32> -> vector<4x1024xf32>
    %113 = arith.addf %107, %112 : vector<4x1024xf32>
    %c0_98 = arith.constant 0 : index
    %c0_99 = arith.constant 0 : index
    %c218 = arith.constant 218 : index
    %114 = vector.load %arg2[%c0_98, %c0_99, %c218] : memref<1x4x1280xf32, #tpu.memory_space<vmem>>, vector<1x4x1024xf32>
    %115 = vector.shape_cast %114 : vector<1x4x1024xf32> to vector<4x1024xf32>
    %c19_100 = arith.constant 19 : index
    %c0_101 = arith.constant 0 : index
    %c0_102 = arith.constant 0 : index
    %116 = vector.load %arg3[%c19_100, %c0_101, %c0_102] : memref<27x4x4xf32, #tpu.memory_space<vmem>>, vector<1x4x4xf32>
    %117 = vector.shape_cast %116 : vector<1x4x4xf32> to vector<4x4xf32>
    %cst_103 = arith.constant dense<0.000000e+00> : vector<4x1024xf32>
    %118 = tpu.matmul %117, %115, %cst_103 {dimension_numbers = #tpu.dot_dimension_numbers<[1], [0], [0], [1], [0, 0, 1, 1], [], []>} : vector<4x4xf32>, vector<4x1024xf32>, vector<4x1024xf32> -> vector<4x1024xf32>
    %119 = arith.addf %113, %118 : vector<4x1024xf32>
    %c0_104 = arith.constant 0 : index
    %c0_105 = arith.constant 0 : index
    %c219 = arith.constant 219 : index
    %120 = vector.load %arg2[%c0_104, %c0_105, %c219] : memref<1x4x1280xf32, #tpu.memory_space<vmem>>, vector<1x4x1024xf32>
    %121 = vector.shape_cast %120 : vector<1x4x1024xf32> to vector<4x1024xf32>
    %c20 = arith.constant 20 : index
    %c0_106 = arith.constant 0 : index
    %c0_107 = arith.constant 0 : index
    %122 = vector.load %arg3[%c20, %c0_106, %c0_107] : memref<27x4x4xf32, #tpu.memory_space<vmem>>, vector<1x4x4xf32>
    %123 = vector.shape_cast %122 : vector<1x4x4xf32> to vector<4x4xf32>
    %cst_108 = arith.constant dense<0.000000e+00> : vector<4x1024xf32>
    %124 = tpu.matmul %123, %121, %cst_108 {dimension_numbers = #tpu.dot_dimension_numbers<[1], [0], [0], [1], [0, 0, 1, 1], [], []>} : vector<4x4xf32>, vector<4x1024xf32>, vector<4x1024xf32> -> vector<4x1024xf32>
    %125 = arith.addf %119, %124 : vector<4x1024xf32>
    %c0_109 = arith.constant 0 : index
    %c0_110 = arith.constant 0 : index
    %c227 = arith.constant 227 : index
    %126 = vector.load %arg2[%c0_109, %c0_110, %c227] : memref<1x4x1280xf32, #tpu.memory_space<vmem>>, vector<1x4x1024xf32>
    %127 = vector.shape_cast %126 : vector<1x4x1024xf32> to vector<4x1024xf32>
    %c21 = arith.constant 21 : index
    %c0_111 = arith.constant 0 : index
    %c0_112 = arith.constant 0 : index
    %128 = vector.load %arg3[%c21, %c0_111, %c0_112] : memref<27x4x4xf32, #tpu.memory_space<vmem>>, vector<1x4x4xf32>
    %129 = vector.shape_cast %128 : vector<1x4x4xf32> to vector<4x4xf32>
    %cst_113 = arith.constant dense<0.000000e+00> : vector<4x1024xf32>
    %130 = tpu.matmul %129, %127, %cst_113 {dimension_numbers = #tpu.dot_dimension_numbers<[1], [0], [0], [1], [0, 0, 1, 1], [], []>} : vector<4x4xf32>, vector<4x1024xf32>, vector<4x1024xf32> -> vector<4x1024xf32>
    %131 = arith.addf %125, %130 : vector<4x1024xf32>
    %c0_114 = arith.constant 0 : index
    %c0_115 = arith.constant 0 : index
    %c228 = arith.constant 228 : index
    %132 = vector.load %arg2[%c0_114, %c0_115, %c228] : memref<1x4x1280xf32, #tpu.memory_space<vmem>>, vector<1x4x1024xf32>
    %133 = vector.shape_cast %132 : vector<1x4x1024xf32> to vector<4x1024xf32>
    %c22 = arith.constant 22 : index
    %c0_116 = arith.constant 0 : index
    %c0_117 = arith.constant 0 : index
    %134 = vector.load %arg3[%c22, %c0_116, %c0_117] : memref<27x4x4xf32, #tpu.memory_space<vmem>>, vector<1x4x4xf32>
    %135 = vector.shape_cast %134 : vector<1x4x4xf32> to vector<4x4xf32>
    %cst_118 = arith.constant dense<0.000000e+00> : vector<4x1024xf32>
    %136 = tpu.matmul %135, %133, %cst_118 {dimension_numbers = #tpu.dot_dimension_numbers<[1], [0], [0], [1], [0, 0, 1, 1], [], []>} : vector<4x4xf32>, vector<4x1024xf32>, vector<4x1024xf32> -> vector<4x1024xf32>
    %137 = arith.addf %131, %136 : vector<4x1024xf32>
    %c0_119 = arith.constant 0 : index
    %c0_120 = arith.constant 0 : index
    %c229 = arith.constant 229 : index
    %138 = vector.load %arg2[%c0_119, %c0_120, %c229] : memref<1x4x1280xf32, #tpu.memory_space<vmem>>, vector<1x4x1024xf32>
    %139 = vector.shape_cast %138 : vector<1x4x1024xf32> to vector<4x1024xf32>
    %c23 = arith.constant 23 : index
    %c0_121 = arith.constant 0 : index
    %c0_122 = arith.constant 0 : index
    %140 = vector.load %arg3[%c23, %c0_121, %c0_122] : memref<27x4x4xf32, #tpu.memory_space<vmem>>, vector<1x4x4xf32>
    %141 = vector.shape_cast %140 : vector<1x4x4xf32> to vector<4x4xf32>
    %cst_123 = arith.constant dense<0.000000e+00> : vector<4x1024xf32>
    %142 = tpu.matmul %141, %139, %cst_123 {dimension_numbers = #tpu.dot_dimension_numbers<[1], [0], [0], [1], [0, 0, 1, 1], [], []>} : vector<4x4xf32>, vector<4x1024xf32>, vector<4x1024xf32> -> vector<4x1024xf32>
    %143 = arith.addf %137, %142 : vector<4x1024xf32>
    %c0_124 = arith.constant 0 : index
    %c0_125 = arith.constant 0 : index
    %c237 = arith.constant 237 : index
    %144 = vector.load %arg2[%c0_124, %c0_125, %c237] : memref<1x4x1280xf32, #tpu.memory_space<vmem>>, vector<1x4x1024xf32>
    %145 = vector.shape_cast %144 : vector<1x4x1024xf32> to vector<4x1024xf32>
    %c24 = arith.constant 24 : index
    %c0_126 = arith.constant 0 : index
    %c0_127 = arith.constant 0 : index
    %146 = vector.load %arg3[%c24, %c0_126, %c0_127] : memref<27x4x4xf32, #tpu.memory_space<vmem>>, vector<1x4x4xf32>
    %147 = vector.shape_cast %146 : vector<1x4x4xf32> to vector<4x4xf32>
    %cst_128 = arith.constant dense<0.000000e+00> : vector<4x1024xf32>
    %148 = tpu.matmul %147, %145, %cst_128 {dimension_numbers = #tpu.dot_dimension_numbers<[1], [0], [0], [1], [0, 0, 1, 1], [], []>} : vector<4x4xf32>, vector<4x1024xf32>, vector<4x1024xf32> -> vector<4x1024xf32>
    %149 = arith.addf %143, %148 : vector<4x1024xf32>
    %c0_129 = arith.constant 0 : index
    %c0_130 = arith.constant 0 : index
    %c238 = arith.constant 238 : index
    %150 = vector.load %arg2[%c0_129, %c0_130, %c238] : memref<1x4x1280xf32, #tpu.memory_space<vmem>>, vector<1x4x1024xf32>
    %151 = vector.shape_cast %150 : vector<1x4x1024xf32> to vector<4x1024xf32>
    %c25 = arith.constant 25 : index
    %c0_131 = arith.constant 0 : index
    %c0_132 = arith.constant 0 : index
    %152 = vector.load %arg3[%c25, %c0_131, %c0_132] : memref<27x4x4xf32, #tpu.memory_space<vmem>>, vector<1x4x4xf32>
    %153 = vector.shape_cast %152 : vector<1x4x4xf32> to vector<4x4xf32>
    %cst_133 = arith.constant dense<0.000000e+00> : vector<4x1024xf32>
    %154 = tpu.matmul %153, %151, %cst_133 {dimension_numbers = #tpu.dot_dimension_numbers<[1], [0], [0], [1], [0, 0, 1, 1], [], []>} : vector<4x4xf32>, vector<4x1024xf32>, vector<4x1024xf32> -> vector<4x1024xf32>
    %155 = arith.addf %149, %154 : vector<4x1024xf32>
    %c0_134 = arith.constant 0 : index
    %c0_135 = arith.constant 0 : index
    %c239 = arith.constant 239 : index
    %156 = vector.load %arg2[%c0_134, %c0_135, %c239] : memref<1x4x1280xf32, #tpu.memory_space<vmem>>, vector<1x4x1024xf32>
    %157 = vector.shape_cast %156 : vector<1x4x1024xf32> to vector<4x1024xf32>
    %c26 = arith.constant 26 : index
    %c0_136 = arith.constant 0 : index
    %c0_137 = arith.constant 0 : index
    %158 = vector.load %arg3[%c26, %c0_136, %c0_137] : memref<27x4x4xf32, #tpu.memory_space<vmem>>, vector<1x4x4xf32>
    %159 = vector.shape_cast %158 : vector<1x4x4xf32> to vector<4x4xf32>
    %cst_138 = arith.constant dense<0.000000e+00> : vector<4x1024xf32>
    %160 = tpu.matmul %159, %157, %cst_138 {dimension_numbers = #tpu.dot_dimension_numbers<[1], [0], [0], [1], [0, 0, 1, 1], [], []>} : vector<4x4xf32>, vector<4x1024xf32>, vector<4x1024xf32> -> vector<4x1024xf32>
    %161 = arith.addf %155, %160 : vector<4x1024xf32>
    %162 = vector.broadcast %0 : vector<1x1024xf32> to vector<4x1024xf32>
    %163 = arith.mulf %161, %162 : vector<4x1024xf32>
    %cst_139 = arith.constant dense<0.000000e+00> : vector<4xf32>
    %164 = vector.multi_reduction <add>, %163, %cst_139 [1] : vector<4x1024xf32> to vector<4xf32>
    %165 = vector.shape_cast %164 : vector<4xf32> to vector<4x1xf32>
    %cst_140 = arith.constant 0.001953125 : f32
    %166 = vector.broadcast %cst_140 : f32 to vector<4x1xf32>
    %167 = arith.mulf %165, %166 : vector<4x1xf32>
    %168 = arith.mulf %161, %161 : vector<4x1024xf32>
    %169 = vector.broadcast %0 : vector<1x1024xf32> to vector<4x1024xf32>
    %170 = arith.mulf %168, %169 : vector<4x1024xf32>
    %cst_141 = arith.constant dense<0.000000e+00> : vector<4xf32>
    %171 = vector.multi_reduction <add>, %170, %cst_141 [1] : vector<4x1024xf32> to vector<4xf32>
    %172 = vector.shape_cast %171 : vector<4xf32> to vector<4x1xf32>
    %cst_142 = arith.constant 0.001953125 : f32
    %173 = vector.broadcast %cst_142 : f32 to vector<4x1xf32>
    %174 = arith.mulf %172, %173 : vector<4x1xf32>
    %175 = arith.mulf %167, %167 : vector<4x1xf32>
    %176 = arith.subf %174, %175 : vector<4x1xf32>
    %cst_143 = arith.constant 0.000000e+00 : f32
    %177 = vector.broadcast %cst_143 : f32 to vector<4x1xf32>
    %178 = arith.maximumf %176, %177 : vector<4x1xf32>
    %179 = vector.broadcast %167 : vector<4x1xf32> to vector<4x1024xf32>
    %180 = arith.subf %161, %179 : vector<4x1024xf32>
    %cst_144 = arith.constant 9.99999974E-6 : f32
    %181 = vector.broadcast %cst_144 : f32 to vector<4x1xf32>
    %182 = arith.addf %178, %181 : vector<4x1xf32>
    %183 = math.rsqrt %182 : vector<4x1xf32>
    %184 = vector.broadcast %183 : vector<4x1xf32> to vector<4x1024xf32>
    %185 = arith.mulf %180, %184 : vector<4x1024xf32>
    %cst_145 = arith.constant 0.000000e+00 : f32
    %186 = vector.broadcast %cst_145 : f32 to vector<4x1024xf32>
    %187 = arith.maximumf %185, %186 : vector<4x1024xf32>
    %188 = vector.broadcast %0 : vector<1x1024xf32> to vector<4x1024xf32>
    %189 = arith.mulf %187, %188 : vector<4x1024xf32>
    %cst_146 = arith.constant 0.000000e+00 : f32
    %190 = vector.broadcast %cst_146 : f32 to vector<4x128xf32>
    %c0_147 = arith.constant 0 : index
    %c0_148 = arith.constant 0 : index
    %191 = vector.load %arg6[%c0_147, %c0_148] : memref<4x1280xf32, #tpu.memory_space<vmem>>, vector<4x128xf32>
    tpu.vector_store %arg6[%c0_147, %c0_148], %190 {strides = array<i32>} : memref<4x1280xf32, #tpu.memory_space<vmem>>, vector<4x128xf32>,
    %cst_149 = arith.constant 0.000000e+00 : f32
    %192 = vector.broadcast %cst_149 : f32 to vector<4x128xf32>
    %c0_150 = arith.constant 0 : index
    %c1152 = arith.constant 1152 : index
    %193 = vector.load %arg6[%c0_150, %c1152] : memref<4x1280xf32, #tpu.memory_space<vmem>>, vector<4x128xf32>
    tpu.vector_store %arg6[%c0_150, %c1152], %192 {strides = array<i32>} : memref<4x1280xf32, #tpu.memory_space<vmem>>, vector<4x128xf32>,
    %c0_151 = arith.constant 0 : index
    %c128_152 = arith.constant 128 : index
    %194 = vector.load %arg6[%c0_151, %c128_152] : memref<4x1280xf32, #tpu.memory_space<vmem>>, vector<4x1024xf32>
    tpu.vector_store %arg6[%c0_151, %c128_152], %189 {strides = array<i32>} : memref<4x1280xf32, #tpu.memory_space<vmem>>, vector<4x1024xf32>,
    %c0_153 = arith.constant 0 : index
    %c17_154 = arith.constant 17 : index
    %195 = vector.load %arg6[%c0_153, %c17_154] : memref<4x1280xf32, #tpu.memory_space<vmem>>, vector<4x1024xf32>
    %c0_155 = arith.constant 0 : index
    %c0_156 = arith.constant 0 : index
    %c0_157 = arith.constant 0 : index
    %196 = vector.load %arg4[%c0_155, %c0_156, %c0_157] : memref<27x4x4xf32, #tpu.memory_space<vmem>>, vector<1x4x4xf32>
    %197 = vector.shape_cast %196 : vector<1x4x4xf32> to vector<4x4xf32>
    %cst_158 = arith.constant dense<0.000000e+00> : vector<4x1024xf32>
    %198 = tpu.matmul %197, %195, %cst_158 {dimension_numbers = #tpu.dot_dimension_numbers<[1], [0], [0], [1], [0, 0, 1, 1], [], []>} : vector<4x4xf32>, vector<4x1024xf32>, vector<4x1024xf32> -> vector<4x1024xf32>
    %c0_159 = arith.constant 0 : index
    %c18_160 = arith.constant 18 : index
    %199 = vector.load %arg6[%c0_159, %c18_160] : memref<4x1280xf32, #tpu.memory_space<vmem>>, vector<4x1024xf32>
    %c1_161 = arith.constant 1 : index
    %c0_162 = arith.constant 0 : index
    %c0_163 = arith.constant 0 : index
    %200 = vector.load %arg4[%c1_161, %c0_162, %c0_163] : memref<27x4x4xf32, #tpu.memory_space<vmem>>, vector<1x4x4xf32>
    %201 = vector.shape_cast %200 : vector<1x4x4xf32> to vector<4x4xf32>
    %cst_164 = arith.constant dense<0.000000e+00> : vector<4x1024xf32>
    %202 = tpu.matmul %201, %199, %cst_164 {dimension_numbers = #tpu.dot_dimension_numbers<[1], [0], [0], [1], [0, 0, 1, 1], [], []>} : vector<4x4xf32>, vector<4x1024xf32>, vector<4x1024xf32> -> vector<4x1024xf32>
    %203 = arith.addf %198, %202 : vector<4x1024xf32>
    %c0_165 = arith.constant 0 : index
    %c19_166 = arith.constant 19 : index
    %204 = vector.load %arg6[%c0_165, %c19_166] : memref<4x1280xf32, #tpu.memory_space<vmem>>, vector<4x1024xf32>
    %c2_167 = arith.constant 2 : index
    %c0_168 = arith.constant 0 : index
    %c0_169 = arith.constant 0 : index
    %205 = vector.load %arg4[%c2_167, %c0_168, %c0_169] : memref<27x4x4xf32, #tpu.memory_space<vmem>>, vector<1x4x4xf32>
    %206 = vector.shape_cast %205 : vector<1x4x4xf32> to vector<4x4xf32>
    %cst_170 = arith.constant dense<0.000000e+00> : vector<4x1024xf32>
    %207 = tpu.matmul %206, %204, %cst_170 {dimension_numbers = #tpu.dot_dimension_numbers<[1], [0], [0], [1], [0, 0, 1, 1], [], []>} : vector<4x4xf32>, vector<4x1024xf32>, vector<4x1024xf32> -> vector<4x1024xf32>
    %208 = arith.addf %203, %207 : vector<4x1024xf32>
    %c0_171 = arith.constant 0 : index
    %c27_172 = arith.constant 27 : index
    %209 = vector.load %arg6[%c0_171, %c27_172] : memref<4x1280xf32, #tpu.memory_space<vmem>>, vector<4x1024xf32>
    %c3_173 = arith.constant 3 : index
    %c0_174 = arith.constant 0 : index
    %c0_175 = arith.constant 0 : index
    %210 = vector.load %arg4[%c3_173, %c0_174, %c0_175] : memref<27x4x4xf32, #tpu.memory_space<vmem>>, vector<1x4x4xf32>
    %211 = vector.shape_cast %210 : vector<1x4x4xf32> to vector<4x4xf32>
    %cst_176 = arith.constant dense<0.000000e+00> : vector<4x1024xf32>
    %212 = tpu.matmul %211, %209, %cst_176 {dimension_numbers = #tpu.dot_dimension_numbers<[1], [0], [0], [1], [0, 0, 1, 1], [], []>} : vector<4x4xf32>, vector<4x1024xf32>, vector<4x1024xf32> -> vector<4x1024xf32>
    %213 = arith.addf %208, %212 : vector<4x1024xf32>
    %c0_177 = arith.constant 0 : index
    %c28_178 = arith.constant 28 : index
    %214 = vector.load %arg6[%c0_177, %c28_178] : memref<4x1280xf32, #tpu.memory_space<vmem>>, vector<4x1024xf32>
    %c4_179 = arith.constant 4 : index
    %c0_180 = arith.constant 0 : index
    %c0_181 = arith.constant 0 : index
    %215 = vector.load %arg4[%c4_179, %c0_180, %c0_181] : memref<27x4x4xf32, #tpu.memory_space<vmem>>, vector<1x4x4xf32>
    %216 = vector.shape_cast %215 : vector<1x4x4xf32> to vector<4x4xf32>
    %cst_182 = arith.constant dense<0.000000e+00> : vector<4x1024xf32>
    %217 = tpu.matmul %216, %214, %cst_182 {dimension_numbers = #tpu.dot_dimension_numbers<[1], [0], [0], [1], [0, 0, 1, 1], [], []>} : vector<4x4xf32>, vector<4x1024xf32>, vector<4x1024xf32> -> vector<4x1024xf32>
    %218 = arith.addf %213, %217 : vector<4x1024xf32>
    %c0_183 = arith.constant 0 : index
    %c29_184 = arith.constant 29 : index
    %219 = vector.load %arg6[%c0_183, %c29_184] : memref<4x1280xf32, #tpu.memory_space<vmem>>, vector<4x1024xf32>
    %c5_185 = arith.constant 5 : index
    %c0_186 = arith.constant 0 : index
    %c0_187 = arith.constant 0 : index
    %220 = vector.load %arg4[%c5_185, %c0_186, %c0_187] : memref<27x4x4xf32, #tpu.memory_space<vmem>>, vector<1x4x4xf32>
    %221 = vector.shape_cast %220 : vector<1x4x4xf32> to vector<4x4xf32>
    %cst_188 = arith.constant dense<0.000000e+00> : vector<4x1024xf32>
    %222 = tpu.matmul %221, %219, %cst_188 {dimension_numbers = #tpu.dot_dimension_numbers<[1], [0], [0], [1], [0, 0, 1, 1], [], []>} : vector<4x4xf32>, vector<4x1024xf32>, vector<4x1024xf32> -> vector<4x1024xf32>
    %223 = arith.addf %218, %222 : vector<4x1024xf32>
    %c0_189 = arith.constant 0 : index
    %c37_190 = arith.constant 37 : index
    %224 = vector.load %arg6[%c0_189, %c37_190] : memref<4x1280xf32, #tpu.memory_space<vmem>>, vector<4x1024xf32>
    %c6_191 = arith.constant 6 : index
    %c0_192 = arith.constant 0 : index
    %c0_193 = arith.constant 0 : index
    %225 = vector.load %arg4[%c6_191, %c0_192, %c0_193] : memref<27x4x4xf32, #tpu.memory_space<vmem>>, vector<1x4x4xf32>
    %226 = vector.shape_cast %225 : vector<1x4x4xf32> to vector<4x4xf32>
    %cst_194 = arith.constant dense<0.000000e+00> : vector<4x1024xf32>
    %227 = tpu.matmul %226, %224, %cst_194 {dimension_numbers = #tpu.dot_dimension_numbers<[1], [0], [0], [1], [0, 0, 1, 1], [], []>} : vector<4x4xf32>, vector<4x1024xf32>, vector<4x1024xf32> -> vector<4x1024xf32>
    %228 = arith.addf %223, %227 : vector<4x1024xf32>
    %c0_195 = arith.constant 0 : index
    %c38_196 = arith.constant 38 : index
    %229 = vector.load %arg6[%c0_195, %c38_196] : memref<4x1280xf32, #tpu.memory_space<vmem>>, vector<4x1024xf32>
    %c7_197 = arith.constant 7 : index
    %c0_198 = arith.constant 0 : index
    %c0_199 = arith.constant 0 : index
    %230 = vector.load %arg4[%c7_197, %c0_198, %c0_199] : memref<27x4x4xf32, #tpu.memory_space<vmem>>, vector<1x4x4xf32>
    %231 = vector.shape_cast %230 : vector<1x4x4xf32> to vector<4x4xf32>
    %cst_200 = arith.constant dense<0.000000e+00> : vector<4x1024xf32>
    %232 = tpu.matmul %231, %229, %cst_200 {dimension_numbers = #tpu.dot_dimension_numbers<[1], [0], [0], [1], [0, 0, 1, 1], [], []>} : vector<4x4xf32>, vector<4x1024xf32>, vector<4x1024xf32> -> vector<4x1024xf32>
    %233 = arith.addf %228, %232 : vector<4x1024xf32>
    %c0_201 = arith.constant 0 : index
    %c39_202 = arith.constant 39 : index
    %234 = vector.load %arg6[%c0_201, %c39_202] : memref<4x1280xf32, #tpu.memory_space<vmem>>, vector<4x1024xf32>
    %c8_203 = arith.constant 8 : index
    %c0_204 = arith.constant 0 : index
    %c0_205 = arith.constant 0 : index
    %235 = vector.load %arg4[%c8_203, %c0_204, %c0_205] : memref<27x4x4xf32, #tpu.memory_space<vmem>>, vector<1x4x4xf32>
    %236 = vector.shape_cast %235 : vector<1x4x4xf32> to vector<4x4xf32>
    %cst_206 = arith.constant dense<0.000000e+00> : vector<4x1024xf32>
    %237 = tpu.matmul %236, %234, %cst_206 {dimension_numbers = #tpu.dot_dimension_numbers<[1], [0], [0], [1], [0, 0, 1, 1], [], []>} : vector<4x4xf32>, vector<4x1024xf32>, vector<4x1024xf32> -> vector<4x1024xf32>
    %238 = arith.addf %233, %237 : vector<4x1024xf32>
    %c0_207 = arith.constant 0 : index
    %c117_208 = arith.constant 117 : index
    %239 = vector.load %arg6[%c0_207, %c117_208] : memref<4x1280xf32, #tpu.memory_space<vmem>>, vector<4x1024xf32>
    %c9_209 = arith.constant 9 : index
    %c0_210 = arith.constant 0 : index
    %c0_211 = arith.constant 0 : index
    %240 = vector.load %arg4[%c9_209, %c0_210, %c0_211] : memref<27x4x4xf32, #tpu.memory_space<vmem>>, vector<1x4x4xf32>
    %241 = vector.shape_cast %240 : vector<1x4x4xf32> to vector<4x4xf32>
    %cst_212 = arith.constant dense<0.000000e+00> : vector<4x1024xf32>
    %242 = tpu.matmul %241, %239, %cst_212 {dimension_numbers = #tpu.dot_dimension_numbers<[1], [0], [0], [1], [0, 0, 1, 1], [], []>} : vector<4x4xf32>, vector<4x1024xf32>, vector<4x1024xf32> -> vector<4x1024xf32>
    %243 = arith.addf %238, %242 : vector<4x1024xf32>
    %c0_213 = arith.constant 0 : index
    %c118_214 = arith.constant 118 : index
    %244 = vector.load %arg6[%c0_213, %c118_214] : memref<4x1280xf32, #tpu.memory_space<vmem>>, vector<4x1024xf32>
    %c10_215 = arith.constant 10 : index
    %c0_216 = arith.constant 0 : index
    %c0_217 = arith.constant 0 : index
    %245 = vector.load %arg4[%c10_215, %c0_216, %c0_217] : memref<27x4x4xf32, #tpu.memory_space<vmem>>, vector<1x4x4xf32>
    %246 = vector.shape_cast %245 : vector<1x4x4xf32> to vector<4x4xf32>
    %cst_218 = arith.constant dense<0.000000e+00> : vector<4x1024xf32>
    %247 = tpu.matmul %246, %244, %cst_218 {dimension_numbers = #tpu.dot_dimension_numbers<[1], [0], [0], [1], [0, 0, 1, 1], [], []>} : vector<4x4xf32>, vector<4x1024xf32>, vector<4x1024xf32> -> vector<4x1024xf32>
    %248 = arith.addf %243, %247 : vector<4x1024xf32>
    %c0_219 = arith.constant 0 : index
    %c119_220 = arith.constant 119 : index
    %249 = vector.load %arg6[%c0_219, %c119_220] : memref<4x1280xf32, #tpu.memory_space<vmem>>, vector<4x1024xf32>
    %c11_221 = arith.constant 11 : index
    %c0_222 = arith.constant 0 : index
    %c0_223 = arith.constant 0 : index
    %250 = vector.load %arg4[%c11_221, %c0_222, %c0_223] : memref<27x4x4xf32, #tpu.memory_space<vmem>>, vector<1x4x4xf32>
    %251 = vector.shape_cast %250 : vector<1x4x4xf32> to vector<4x4xf32>
    %cst_224 = arith.constant dense<0.000000e+00> : vector<4x1024xf32>
    %252 = tpu.matmul %251, %249, %cst_224 {dimension_numbers = #tpu.dot_dimension_numbers<[1], [0], [0], [1], [0, 0, 1, 1], [], []>} : vector<4x4xf32>, vector<4x1024xf32>, vector<4x1024xf32> -> vector<4x1024xf32>
    %253 = arith.addf %248, %252 : vector<4x1024xf32>
    %c0_225 = arith.constant 0 : index
    %c127_226 = arith.constant 127 : index
    %254 = vector.load %arg6[%c0_225, %c127_226] : memref<4x1280xf32, #tpu.memory_space<vmem>>, vector<4x1024xf32>
    %c12_227 = arith.constant 12 : index
    %c0_228 = arith.constant 0 : index
    %c0_229 = arith.constant 0 : index
    %255 = vector.load %arg4[%c12_227, %c0_228, %c0_229] : memref<27x4x4xf32, #tpu.memory_space<vmem>>, vector<1x4x4xf32>
    %256 = vector.shape_cast %255 : vector<1x4x4xf32> to vector<4x4xf32>
    %cst_230 = arith.constant dense<0.000000e+00> : vector<4x1024xf32>
    %257 = tpu.matmul %256, %254, %cst_230 {dimension_numbers = #tpu.dot_dimension_numbers<[1], [0], [0], [1], [0, 0, 1, 1], [], []>} : vector<4x4xf32>, vector<4x1024xf32>, vector<4x1024xf32> -> vector<4x1024xf32>
    %258 = arith.addf %253, %257 : vector<4x1024xf32>
    %c0_231 = arith.constant 0 : index
    %c128_232 = arith.constant 128 : index
    %259 = vector.load %arg6[%c0_231, %c128_232] : memref<4x1280xf32, #tpu.memory_space<vmem>>, vector<4x1024xf32>
    %c13_233 = arith.constant 13 : index
    %c0_234 = arith.constant 0 : index
    %c0_235 = arith.constant 0 : index
    %260 = vector.load %arg4[%c13_233, %c0_234, %c0_235] : memref<27x4x4xf32, #tpu.memory_space<vmem>>, vector<1x4x4xf32>
    %261 = vector.shape_cast %260 : vector<1x4x4xf32> to vector<4x4xf32>
    %cst_236 = arith.constant dense<0.000000e+00> : vector<4x1024xf32>
    %262 = tpu.matmul %261, %259, %cst_236 {dimension_numbers = #tpu.dot_dimension_numbers<[1], [0], [0], [1], [0, 0, 1, 1], [], []>} : vector<4x4xf32>, vector<4x1024xf32>, vector<4x1024xf32> -> vector<4x1024xf32>
    %263 = arith.addf %258, %262 : vector<4x1024xf32>
    %c0_237 = arith.constant 0 : index
    %c129_238 = arith.constant 129 : index
    %264 = vector.load %arg6[%c0_237, %c129_238] : memref<4x1280xf32, #tpu.memory_space<vmem>>, vector<4x1024xf32>
    %c14_239 = arith.constant 14 : index
    %c0_240 = arith.constant 0 : index
    %c0_241 = arith.constant 0 : index
    %265 = vector.load %arg4[%c14_239, %c0_240, %c0_241] : memref<27x4x4xf32, #tpu.memory_space<vmem>>, vector<1x4x4xf32>
    %266 = vector.shape_cast %265 : vector<1x4x4xf32> to vector<4x4xf32>
    %cst_242 = arith.constant dense<0.000000e+00> : vector<4x1024xf32>
    %267 = tpu.matmul %266, %264, %cst_242 {dimension_numbers = #tpu.dot_dimension_numbers<[1], [0], [0], [1], [0, 0, 1, 1], [], []>} : vector<4x4xf32>, vector<4x1024xf32>, vector<4x1024xf32> -> vector<4x1024xf32>
    %268 = arith.addf %263, %267 : vector<4x1024xf32>
    %c0_243 = arith.constant 0 : index
    %c137_244 = arith.constant 137 : index
    %269 = vector.load %arg6[%c0_243, %c137_244] : memref<4x1280xf32, #tpu.memory_space<vmem>>, vector<4x1024xf32>
    %c15_245 = arith.constant 15 : index
    %c0_246 = arith.constant 0 : index
    %c0_247 = arith.constant 0 : index
    %270 = vector.load %arg4[%c15_245, %c0_246, %c0_247] : memref<27x4x4xf32, #tpu.memory_space<vmem>>, vector<1x4x4xf32>
    %271 = vector.shape_cast %270 : vector<1x4x4xf32> to vector<4x4xf32>
    %cst_248 = arith.constant dense<0.000000e+00> : vector<4x1024xf32>
    %272 = tpu.matmul %271, %269, %cst_248 {dimension_numbers = #tpu.dot_dimension_numbers<[1], [0], [0], [1], [0, 0, 1, 1], [], []>} : vector<4x4xf32>, vector<4x1024xf32>, vector<4x1024xf32> -> vector<4x1024xf32>
    %273 = arith.addf %268, %272 : vector<4x1024xf32>
    %c0_249 = arith.constant 0 : index
    %c138_250 = arith.constant 138 : index
    %274 = vector.load %arg6[%c0_249, %c138_250] : memref<4x1280xf32, #tpu.memory_space<vmem>>, vector<4x1024xf32>
    %c16_251 = arith.constant 16 : index
    %c0_252 = arith.constant 0 : index
    %c0_253 = arith.constant 0 : index
    %275 = vector.load %arg4[%c16_251, %c0_252, %c0_253] : memref<27x4x4xf32, #tpu.memory_space<vmem>>, vector<1x4x4xf32>
    %276 = vector.shape_cast %275 : vector<1x4x4xf32> to vector<4x4xf32>
    %cst_254 = arith.constant dense<0.000000e+00> : vector<4x1024xf32>
    %277 = tpu.matmul %276, %274, %cst_254 {dimension_numbers = #tpu.dot_dimension_numbers<[1], [0], [0], [1], [0, 0, 1, 1], [], []>} : vector<4x4xf32>, vector<4x1024xf32>, vector<4x1024xf32> -> vector<4x1024xf32>
    %278 = arith.addf %273, %277 : vector<4x1024xf32>
    %c0_255 = arith.constant 0 : index
    %c139_256 = arith.constant 139 : index
    %279 = vector.load %arg6[%c0_255, %c139_256] : memref<4x1280xf32, #tpu.memory_space<vmem>>, vector<4x1024xf32>
    %c17_257 = arith.constant 17 : index
    %c0_258 = arith.constant 0 : index
    %c0_259 = arith.constant 0 : index
    %280 = vector.load %arg4[%c17_257, %c0_258, %c0_259] : memref<27x4x4xf32, #tpu.memory_space<vmem>>, vector<1x4x4xf32>
    %281 = vector.shape_cast %280 : vector<1x4x4xf32> to vector<4x4xf32>
    %cst_260 = arith.constant dense<0.000000e+00> : vector<4x1024xf32>
    %282 = tpu.matmul %281, %279, %cst_260 {dimension_numbers = #tpu.dot_dimension_numbers<[1], [0], [0], [1], [0, 0, 1, 1], [], []>} : vector<4x4xf32>, vector<4x1024xf32>, vector<4x1024xf32> -> vector<4x1024xf32>
    %283 = arith.addf %278, %282 : vector<4x1024xf32>
    %c0_261 = arith.constant 0 : index
    %c217_262 = arith.constant 217 : index
    %284 = vector.load %arg6[%c0_261, %c217_262] : memref<4x1280xf32, #tpu.memory_space<vmem>>, vector<4x1024xf32>
    %c18_263 = arith.constant 18 : index
    %c0_264 = arith.constant 0 : index
    %c0_265 = arith.constant 0 : index
    %285 = vector.load %arg4[%c18_263, %c0_264, %c0_265] : memref<27x4x4xf32, #tpu.memory_space<vmem>>, vector<1x4x4xf32>
    %286 = vector.shape_cast %285 : vector<1x4x4xf32> to vector<4x4xf32>
    %cst_266 = arith.constant dense<0.000000e+00> : vector<4x1024xf32>
    %287 = tpu.matmul %286, %284, %cst_266 {dimension_numbers = #tpu.dot_dimension_numbers<[1], [0], [0], [1], [0, 0, 1, 1], [], []>} : vector<4x4xf32>, vector<4x1024xf32>, vector<4x1024xf32> -> vector<4x1024xf32>
    %288 = arith.addf %283, %287 : vector<4x1024xf32>
    %c0_267 = arith.constant 0 : index
    %c218_268 = arith.constant 218 : index
    %289 = vector.load %arg6[%c0_267, %c218_268] : memref<4x1280xf32, #tpu.memory_space<vmem>>, vector<4x1024xf32>
    %c19_269 = arith.constant 19 : index
    %c0_270 = arith.constant 0 : index
    %c0_271 = arith.constant 0 : index
    %290 = vector.load %arg4[%c19_269, %c0_270, %c0_271] : memref<27x4x4xf32, #tpu.memory_space<vmem>>, vector<1x4x4xf32>
    %291 = vector.shape_cast %290 : vector<1x4x4xf32> to vector<4x4xf32>
    %cst_272 = arith.constant dense<0.000000e+00> : vector<4x1024xf32>
    %292 = tpu.matmul %291, %289, %cst_272 {dimension_numbers = #tpu.dot_dimension_numbers<[1], [0], [0], [1], [0, 0, 1, 1], [], []>} : vector<4x4xf32>, vector<4x1024xf32>, vector<4x1024xf32> -> vector<4x1024xf32>
    %293 = arith.addf %288, %292 : vector<4x1024xf32>
    %c0_273 = arith.constant 0 : index
    %c219_274 = arith.constant 219 : index
    %294 = vector.load %arg6[%c0_273, %c219_274] : memref<4x1280xf32, #tpu.memory_space<vmem>>, vector<4x1024xf32>
    %c20_275 = arith.constant 20 : index
    %c0_276 = arith.constant 0 : index
    %c0_277 = arith.constant 0 : index
    %295 = vector.load %arg4[%c20_275, %c0_276, %c0_277] : memref<27x4x4xf32, #tpu.memory_space<vmem>>, vector<1x4x4xf32>
    %296 = vector.shape_cast %295 : vector<1x4x4xf32> to vector<4x4xf32>
    %cst_278 = arith.constant dense<0.000000e+00> : vector<4x1024xf32>
    %297 = tpu.matmul %296, %294, %cst_278 {dimension_numbers = #tpu.dot_dimension_numbers<[1], [0], [0], [1], [0, 0, 1, 1], [], []>} : vector<4x4xf32>, vector<4x1024xf32>, vector<4x1024xf32> -> vector<4x1024xf32>
    %298 = arith.addf %293, %297 : vector<4x1024xf32>
    %c0_279 = arith.constant 0 : index
    %c227_280 = arith.constant 227 : index
    %299 = vector.load %arg6[%c0_279, %c227_280] : memref<4x1280xf32, #tpu.memory_space<vmem>>, vector<4x1024xf32>
    %c21_281 = arith.constant 21 : index
    %c0_282 = arith.constant 0 : index
    %c0_283 = arith.constant 0 : index
    %300 = vector.load %arg4[%c21_281, %c0_282, %c0_283] : memref<27x4x4xf32, #tpu.memory_space<vmem>>, vector<1x4x4xf32>
    %301 = vector.shape_cast %300 : vector<1x4x4xf32> to vector<4x4xf32>
    %cst_284 = arith.constant dense<0.000000e+00> : vector<4x1024xf32>
    %302 = tpu.matmul %301, %299, %cst_284 {dimension_numbers = #tpu.dot_dimension_numbers<[1], [0], [0], [1], [0, 0, 1, 1], [], []>} : vector<4x4xf32>, vector<4x1024xf32>, vector<4x1024xf32> -> vector<4x1024xf32>
    %303 = arith.addf %298, %302 : vector<4x1024xf32>
    %c0_285 = arith.constant 0 : index
    %c228_286 = arith.constant 228 : index
    %304 = vector.load %arg6[%c0_285, %c228_286] : memref<4x1280xf32, #tpu.memory_space<vmem>>, vector<4x1024xf32>
    %c22_287 = arith.constant 22 : index
    %c0_288 = arith.constant 0 : index
    %c0_289 = arith.constant 0 : index
    %305 = vector.load %arg4[%c22_287, %c0_288, %c0_289] : memref<27x4x4xf32, #tpu.memory_space<vmem>>, vector<1x4x4xf32>
    %306 = vector.shape_cast %305 : vector<1x4x4xf32> to vector<4x4xf32>
    %cst_290 = arith.constant dense<0.000000e+00> : vector<4x1024xf32>
    %307 = tpu.matmul %306, %304, %cst_290 {dimension_numbers = #tpu.dot_dimension_numbers<[1], [0], [0], [1], [0, 0, 1, 1], [], []>} : vector<4x4xf32>, vector<4x1024xf32>, vector<4x1024xf32> -> vector<4x1024xf32>
    %308 = arith.addf %303, %307 : vector<4x1024xf32>
    %c0_291 = arith.constant 0 : index
    %c229_292 = arith.constant 229 : index
    %309 = vector.load %arg6[%c0_291, %c229_292] : memref<4x1280xf32, #tpu.memory_space<vmem>>, vector<4x1024xf32>
    %c23_293 = arith.constant 23 : index
    %c0_294 = arith.constant 0 : index
    %c0_295 = arith.constant 0 : index
    %310 = vector.load %arg4[%c23_293, %c0_294, %c0_295] : memref<27x4x4xf32, #tpu.memory_space<vmem>>, vector<1x4x4xf32>
    %311 = vector.shape_cast %310 : vector<1x4x4xf32> to vector<4x4xf32>
    %cst_296 = arith.constant dense<0.000000e+00> : vector<4x1024xf32>
    %312 = tpu.matmul %311, %309, %cst_296 {dimension_numbers = #tpu.dot_dimension_numbers<[1], [0], [0], [1], [0, 0, 1, 1], [], []>} : vector<4x4xf32>, vector<4x1024xf32>, vector<4x1024xf32> -> vector<4x1024xf32>
    %313 = arith.addf %308, %312 : vector<4x1024xf32>
    %c0_297 = arith.constant 0 : index
    %c237_298 = arith.constant 237 : index
    %314 = vector.load %arg6[%c0_297, %c237_298] : memref<4x1280xf32, #tpu.memory_space<vmem>>, vector<4x1024xf32>
    %c24_299 = arith.constant 24 : index
    %c0_300 = arith.constant 0 : index
    %c0_301 = arith.constant 0 : index
    %315 = vector.load %arg4[%c24_299, %c0_300, %c0_301] : memref<27x4x4xf32, #tpu.memory_space<vmem>>, vector<1x4x4xf32>
    %316 = vector.shape_cast %315 : vector<1x4x4xf32> to vector<4x4xf32>
    %cst_302 = arith.constant dense<0.000000e+00> : vector<4x1024xf32>
    %317 = tpu.matmul %316, %314, %cst_302 {dimension_numbers = #tpu.dot_dimension_numbers<[1], [0], [0], [1], [0, 0, 1, 1], [], []>} : vector<4x4xf32>, vector<4x1024xf32>, vector<4x1024xf32> -> vector<4x1024xf32>
    %318 = arith.addf %313, %317 : vector<4x1024xf32>
    %c0_303 = arith.constant 0 : index
    %c238_304 = arith.constant 238 : index
    %319 = vector.load %arg6[%c0_303, %c238_304] : memref<4x1280xf32, #tpu.memory_space<vmem>>, vector<4x1024xf32>
    %c25_305 = arith.constant 25 : index
    %c0_306 = arith.constant 0 : index
    %c0_307 = arith.constant 0 : index
    %320 = vector.load %arg4[%c25_305, %c0_306, %c0_307] : memref<27x4x4xf32, #tpu.memory_space<vmem>>, vector<1x4x4xf32>
    %321 = vector.shape_cast %320 : vector<1x4x4xf32> to vector<4x4xf32>
    %cst_308 = arith.constant dense<0.000000e+00> : vector<4x1024xf32>
    %322 = tpu.matmul %321, %319, %cst_308 {dimension_numbers = #tpu.dot_dimension_numbers<[1], [0], [0], [1], [0, 0, 1, 1], [], []>} : vector<4x4xf32>, vector<4x1024xf32>, vector<4x1024xf32> -> vector<4x1024xf32>
    %323 = arith.addf %318, %322 : vector<4x1024xf32>
    %c0_309 = arith.constant 0 : index
    %c239_310 = arith.constant 239 : index
    %324 = vector.load %arg6[%c0_309, %c239_310] : memref<4x1280xf32, #tpu.memory_space<vmem>>, vector<4x1024xf32>
    %c26_311 = arith.constant 26 : index
    %c0_312 = arith.constant 0 : index
    %c0_313 = arith.constant 0 : index
    %325 = vector.load %arg4[%c26_311, %c0_312, %c0_313] : memref<27x4x4xf32, #tpu.memory_space<vmem>>, vector<1x4x4xf32>
    %326 = vector.shape_cast %325 : vector<1x4x4xf32> to vector<4x4xf32>
    %cst_314 = arith.constant dense<0.000000e+00> : vector<4x1024xf32>
    %327 = tpu.matmul %326, %324, %cst_314 {dimension_numbers = #tpu.dot_dimension_numbers<[1], [0], [0], [1], [0, 0, 1, 1], [], []>} : vector<4x4xf32>, vector<4x1024xf32>, vector<4x1024xf32> -> vector<4x1024xf32>
    %328 = arith.addf %323, %327 : vector<4x1024xf32>
    %329 = vector.broadcast %0 : vector<1x1024xf32> to vector<4x1024xf32>
    %330 = arith.mulf %328, %329 : vector<4x1024xf32>
    %cst_315 = arith.constant dense<0.000000e+00> : vector<4xf32>
    %331 = vector.multi_reduction <add>, %330, %cst_315 [1] : vector<4x1024xf32> to vector<4xf32>
    %332 = vector.shape_cast %331 : vector<4xf32> to vector<4x1xf32>
    %cst_316 = arith.constant 0.001953125 : f32
    %333 = vector.broadcast %cst_316 : f32 to vector<4x1xf32>
    %334 = arith.mulf %332, %333 : vector<4x1xf32>
    %335 = arith.mulf %328, %328 : vector<4x1024xf32>
    %336 = vector.broadcast %0 : vector<1x1024xf32> to vector<4x1024xf32>
    %337 = arith.mulf %335, %336 : vector<4x1024xf32>
    %cst_317 = arith.constant dense<0.000000e+00> : vector<4xf32>
    %338 = vector.multi_reduction <add>, %337, %cst_317 [1] : vector<4x1024xf32> to vector<4xf32>
    %339 = vector.shape_cast %338 : vector<4xf32> to vector<4x1xf32>
    %cst_318 = arith.constant 0.001953125 : f32
    %340 = vector.broadcast %cst_318 : f32 to vector<4x1xf32>
    %341 = arith.mulf %339, %340 : vector<4x1xf32>
    %342 = arith.mulf %334, %334 : vector<4x1xf32>
    %343 = arith.subf %341, %342 : vector<4x1xf32>
    %cst_319 = arith.constant 0.000000e+00 : f32
    %344 = vector.broadcast %cst_319 : f32 to vector<4x1xf32>
    %345 = arith.maximumf %343, %344 : vector<4x1xf32>
    %346 = vector.broadcast %334 : vector<4x1xf32> to vector<4x1024xf32>
    %347 = arith.subf %328, %346 : vector<4x1024xf32>
    %cst_320 = arith.constant 9.99999974E-6 : f32
    %348 = vector.broadcast %cst_320 : f32 to vector<4x1xf32>
    %349 = arith.addf %345, %348 : vector<4x1xf32>
    %350 = math.rsqrt %349 : vector<4x1xf32>
    %351 = vector.broadcast %350 : vector<4x1xf32> to vector<4x1024xf32>
    %352 = arith.mulf %347, %351 : vector<4x1024xf32>
    %c0_321 = arith.constant 0 : index
    %c0_322 = arith.constant 0 : index
    %c128_323 = arith.constant 128 : index
    %353 = vector.load %arg2[%c0_321, %c0_322, %c128_323] : memref<1x4x1280xf32, #tpu.memory_space<vmem>>, vector<1x4x1024xf32>
    %354 = vector.shape_cast %353 : vector<1x4x1024xf32> to vector<4x1024xf32>
    %355 = arith.addf %354, %352 : vector<4x1024xf32>
    %c0_324 = arith.constant 0 : index
    %c0_325 = arith.constant 0 : index
    %c0_326 = arith.constant 0 : index
    %356 = vector.load %arg5[%c0_324, %c0_325, %c0_326] : memref<1x4x1024xf32, #tpu.memory_space<vmem>>, vector<1x4x1024xf32>
    %357 = vector.shape_cast %356 : vector<1x4x1024xf32> to vector<4x1024xf32>
    %358 = vector.shape_cast %355 : vector<4x1024xf32> to vector<1x4x1024xf32>
    tpu.vector_store %arg5[%c0_324, %c0_325, %c0_326], %358 {strides = array<i32>} : memref<1x4x1024xf32, #tpu.memory_space<vmem>>, vector<1x4x1024xf32>,
    return
  }
  func.func @transform_0(%arg0: i32) -> (i32, i32) {
    %c0_i32 = arith.constant 0 : i32
    %c0_i32_0 = arith.constant 0 : i32
    %c0_i32_1 = arith.constant 0 : i32
    return %c0_i32, %c0_i32_0 : i32, i32
  }
  func.func @transform_1(%arg0: i32) -> (i32, i32, i32) {
    %c0_i32 = arith.constant 0 : i32
    %c0_i32_0 = arith.constant 0 : i32
    %c0_i32_1 = arith.constant 0 : i32
    return %arg0, %c0_i32, %c0_i32_0 : i32, i32, i32
  }
  func.func @transform_2(%arg0: i32) -> (i32, i32, i32) {
    %c0_i32 = arith.constant 0 : i32
    %c0_i32_0 = arith.constant 0 : i32
    %c0_i32_1 = arith.constant 0 : i32
    %c0_i32_2 = arith.constant 0 : i32
    return %c0_i32, %c0_i32_0, %c0_i32_1 : i32, i32, i32
  }
  func.func @transform_3(%arg0: i32) -> (i32, i32, i32) {
    %c0_i32 = arith.constant 0 : i32
    %c0_i32_0 = arith.constant 0 : i32
    %c0_i32_1 = arith.constant 0 : i32
    %c0_i32_2 = arith.constant 0 : i32
    return %c0_i32, %c0_i32_0, %c0_i32_1 : i32, i32, i32
  }
  func.func @transform_4(%arg0: i32) -> (i32, i32, i32) {
    %c0_i32 = arith.constant 0 : i32
    %c0_i32_0 = arith.constant 0 : i32
    %c0_i32_1 = arith.constant 0 : i32
    return %arg0, %c0_i32, %c0_i32_0 : i32, i32, i32
  }
}

</mosaic_0001>

<bundles_post_ra>
// kernel: resnet_block_forward.1
= control target key start
LH: loop header
LB: loop body
LE: loop exit
PB: predicated region body
PF: predicated region fallthrough
CT: control target
= control target key end

     0   :  { %s20334_s15 = smov 0   ;;  %s24074_s0 = inlined_call_operand.vmem [shape: f32[1,1024], index: 0, kind: input, shape index: {}]   ;;  %s24075_s1 = inlined_call_operand.vmem [shape: f32[2,4,1280], index: 1, kind: input, shape index: {}]   ;;  %s24076_s2 = inlined_call_operand.vmem [shape: f32[27,4,4], index: 2, kind: input, shape index: {}]   ;;  %s24077_s3 = inlined_call_operand.vmem [shape: f32[27,4,4], index: 3, kind: input, shape index: {}]   ;;  %s24078_s4 = inlined_call_operand.vmem [shape: f32[2,4,1024], index: 4, kind: output, shape index: {}]  }
   0x1 LB: > { %s19495_s16 = sadd.s32 4294967295, %s20280_s15   ;;  %p19499_p0 = scmp.ge.s32.totalorder %s20280_s15, 1  ;;  %s20280_s15 = sphi %s20334_s15, %s14_s15  }
   0x2   : > { %p162_p1 = scmp.lt.s32.totalorder %s20280_s15, 3 }
   0x4   : > { %p163_p2 = pnand %p19499_p0, %p162_p1 }
   0x6   : > { %166 = sbr.rel (%p163_p2) target bundleno = 1963 (0x7ab), region = 36 }
   0xb   : > { %p188_p3 = scmp.lt.s32.totalorder %s19495_s16, 1  ;;  %s20282_s21 = smov 110   ;;  %v24100_v3 = vmov 0.0   ;;  %vm234_vm0 = vcmask 900096   ;;  %vm247_vm1 = vcmask 1043456   ;;  %vm243_vm2 = vcmask 31744  }
   0xc   : > { %9837 = vst [vmem:[#allocation2] sm:$0xf] %v24100_v3  ;;  %9838 = vst [vmem:[#allocation2 + $0x24] sm:$0xf] %v24100_v3  ;;  %328 = vmatprep.mubr.f32.mxu0 %v24100_v3  ;;  %399 = vmatprep.mubr.f32.mxu1 %v24100_v3  ;;  %s20284_s22 = smov 111   ;;  %s20285_s23 = smov 109  }
   0xd   : > { %s24404_s16 = smov (!%p188_p3, %s19495_s16), 1  ;;  %s20286_s24 = smov 101   ;;  %v19503_v20 = vld [vmem:[%s24076_s2 + $0x4] sm:$0xf]  ;;  %vm566_vm3 = vcmask 908288   ;;  %vm912_vm4 = vcmask 891904  }
   0xe   : > { %s20206_s17 = smul.u32 40, %s24404_s16  ;;  %s20287_s25 = smov 100   ;;  %v204_v38 = vld [vmem:[%s24076_s2] sm:$0xf]  ;;  %v19528_v57 = vld [vmem:[%s24076_s2 + $0x8] sm:$0xf] }
   0xf   : > { %s20288_s26 = smov 99   ;;  %s20289_s27 = smov 91   ;;  %vm1266_vm5 = vcmask 826368   ;;  %vm1620_vm6 = vcmask 818176   ;;  %vm1974_vm7 = vcmask 809984   ;;  %vm2328_vm8 = vcmask 744448  }
  0x10   : > { %s20348_s20 = scalar_lea.vmem %s24075_s1, %s20206_s17  ;;  %s20290_s30 = smov 90   ;;  %vm2682_vm9 = vcmask 736256   ;;  %vm3036_vm10 = vcmask 728064   ;;  %vm3390_vm11 = vcmask 89088   ;;  %vm3744_vm12 = vcmask 80896  }
  0x11   : > { %v20351_v0 = vld [vmem:[%s20348_s20 + $0x8] sm:$0xff]  ;;  %v20354_v1 = vld [vmem:[%s20348_s20] sm:$0xff]  ;;  %v20367_v4 = vld [vmem:[%s20348_s20 + $0x10] sm:$0xff]  ;;  %s20291_s7 = smov 89   ;;  %s20292_s10 = smov 11   ;;  %vm4098_vm13 = vcmask 72704  }
  0x12   : > { %220 = vrot.lane.b32.xlu0 %v20351_v0, %s20282_s21  ;;  %216 = vrot.lane.b32.xlu1 %v20354_v1, %s20282_s21  ;;  %v20362_v2 = vcombine.high %v20351_v0, %v20351_v0  ;;  %v20377_v5 = vcombine.high %v20367_v4, %v20367_v4  ;;  %v20381_v6 = vcombine.high %v20354_v1, %v20354_v1  ;;  %v20384_v7 = vld [vmem:[%s20348_s20 + $0x18] sm:$0xff]  ;;  %v203_v9 = vld [vmem:[%s20348_s20 + $0x20] sm:$0xf]  ;;  %s20293_s13 = smov 10   ;;  %s20294_s18 = smov 9   ;;  %vm24079_vm14 = vcmask 7168  }
  0x13   : > { %v20392_v8 = vcombine.high %v20384_v7, %v20384_v7  ;;  %v882_v10 = vld [vmem:[%s20348_s20 + $0x20] sm:$0xf]  ;;  %s20295_s29 = smov 1   ;;  %s20296_s8 = smov 127   ;;  %vm24080_vm15 = vcmask 1039360  }
  0x14   : > { %v1236_v11 = vld [vmem:[%s20348_s20 + $0x20] sm:$0xf]  ;;  %s20297_s12 = smov 119   ;;  %s20298_s19 = smov 118  }
  0x15   : > { %v1590_v12 = vld [vmem:[%s20348_s20 + $0x20] sm:$0xf]  ;;  %s20299_s6 = smov 117   ;;  %s20300_s14 = smov 39  }
  0x16   : > { %224 = vrot.lane.b32.xlu0 %v20367_v4, %s20282_s21  ;;  %222 = vrot.lane.b32.xlu1 %v20362_v2, %s20282_s21  ;;  %v1944_v13 = vld [vmem:[%s20348_s20 + $0x20] sm:$0xf]  ;;  %s20301_s5 = smov 38   ;;  %s20302_s17 = smov 37  }
  0x17   : > { %v2298_v23 = vld [vmem:[%s20348_s20 + $0x20] sm:$0xf]  ;;  %s24081_s9 = smov 29   ;;  %s24084_s11 = smov 28  }
  0x18   : > { %v2652_v39 = vld [vmem:[%s20348_s20 + $0x20] sm:$0xf]  ;;  %s24299_s28 = smov 19  }
  0x19   : > { %v3006_v61 = vld [vmem:[%s20348_s20 + $0x20] sm:$0xf] }
  0x1a   : > { %226 = vrot.lane.b32.xlu1 %v20377_v5, %s20282_s21  ;;  %218 = vrot.lane.b32.xlu0 %v20381_v6, %s20282_s21 }
  0x1e   : > { %230 = vrot.lane.b32.xlu1 %v20392_v8, %s20282_s21  ;;  %228 = vrot.lane.b32.xlu0 %v20384_v7, %s20282_s21 }
  0x22   : > { %550 = vrot.lane.b32.xlu1 %v20381_v6, %s20284_s22  ;;  %232 = vrot.lane.b32.xlu0 %v203_v9, %s20282_s21 }
  0x26   : > { %548 = vrot.lane.b32.xlu1 %v20354_v1, %s20284_s22  ;;  %552 = vrot.lane.b32.xlu0 %v20351_v0, %s20284_s22 }
  0x2a   : > { %556 = vrot.lane.b32.xlu1 %v20367_v4, %s20284_s22  ;;  %554 = vrot.lane.b32.xlu0 %v20362_v2, %s20284_s22 }
  0x2e   : > { %560 = vrot.lane.b32.xlu1 %v20384_v7, %s20284_s22  ;;  %558 = vrot.lane.b32.xlu0 %v20377_v5, %s20284_s22 }
  0x32   : > { %564 = vrot.lane.b32.xlu1 %v203_v9, %s20284_s22  ;;  %562 = vrot.lane.b32.xlu0 %v20392_v8, %s20284_s22 }
  0x36   : > { %898 = vrot.lane.b32.xlu1 %v20351_v0, %s20285_s23  ;;  %896 = vrot.lane.b32.xlu0 %v20381_v6, %s20285_s23 }
  0x3a   : > { %900 = vrot.lane.b32.xlu1 %v20362_v2, %s20285_s23  ;;  %894 = vrot.lane.b32.xlu0 %v20354_v1, %s20285_s23 }
  0x3e   : > { %904 = vrot.lane.b32.xlu1 %v20377_v5, %s20285_s23  ;;  %902 = vrot.lane.b32.xlu0 %v20367_v4, %s20285_s23 }
  0x42   : > { %908 = vrot.lane.b32.xlu1 %v20392_v8, %s20285_s23  ;;  %906 = vrot.lane.b32.xlu0 %v20384_v7, %s20285_s23 }
  0x46   : > { %1250 = vrot.lane.b32.xlu1 %v20381_v6, %s20286_s24  ;;  %910 = vrot.lane.b32.xlu0 %v882_v10, %s20285_s23 }
  0x4a   : > { %1248 = vrot.lane.b32.xlu1 %v20354_v1, %s20286_s24  ;;  %1252 = vrot.lane.b32.xlu0 %v20351_v0, %s20286_s24 }
  0x4e   : > { %1256 = vrot.lane.b32.xlu1 %v20367_v4, %s20286_s24  ;;  %1254 = vrot.lane.b32.xlu0 %v20362_v2, %s20286_s24 }
  0x52   : > { %1260 = vrot.lane.b32.xlu1 %v20384_v7, %s20286_s24  ;;  %1258 = vrot.lane.b32.xlu0 %v20377_v5, %s20286_s24 }
  0x56   : > { %1264 = vrot.lane.b32.xlu1 %v1236_v11, %s20286_s24  ;;  %1262 = vrot.lane.b32.xlu0 %v20392_v8, %s20286_s24 }
  0x5a   : > { %1606 = vrot.lane.b32.xlu1 %v20351_v0, %s20287_s25  ;;  %1604 = vrot.lane.b32.xlu0 %v20381_v6, %s20287_s25 }
  0x5e   : > { %1608 = vrot.lane.b32.xlu1 %v20362_v2, %s20287_s25  ;;  %1602 = vrot.lane.b32.xlu0 %v20354_v1, %s20287_s25 }
  0x62   : > { %1612 = vrot.lane.b32.xlu1 %v20377_v5, %s20287_s25  ;;  %1610 = vrot.lane.b32.xlu0 %v20367_v4, %s20287_s25 }
  0x66   : > { %1616 = vrot.lane.b32.xlu1 %v20392_v8, %s20287_s25  ;;  %1614 = vrot.lane.b32.xlu0 %v20384_v7, %s20287_s25 }
  0x6a   : > { %1958 = vrot.lane.b32.xlu1 %v20381_v6, %s20288_s26  ;;  %1618 = vrot.lane.b32.xlu0 %v1590_v12, %s20287_s25 }
  0x6e   : > { %1956 = vrot.lane.b32.xlu1 %v20354_v1, %s20288_s26  ;;  %1960 = vrot.lane.b32.xlu0 %v20351_v0, %s20288_s26 }
  0x72   : > { %1964 = vrot.lane.b32.xlu1 %v20367_v4, %s20288_s26  ;;  %1962 = vrot.lane.b32.xlu0 %v20362_v2, %s20288_s26 }
  0x76   : > { %1968 = vrot.lane.b32.xlu1 %v20384_v7, %s20288_s26  ;;  %1966 = vrot.lane.b32.xlu0 %v20377_v5, %s20288_s26 }
  0x7a   : > { %1972 = vrot.lane.b32.xlu1 %v1944_v13, %s20288_s26  ;;  %1970 = vrot.lane.b32.xlu0 %v20392_v8, %s20288_s26 }
  0x7e   : > { %2314 = vrot.lane.b32.xlu1 %v20351_v0, %s20289_s27  ;;  %2312 = vrot.lane.b32.xlu0 %v20381_v6, %s20289_s27 }
  0x82   : > { %2316 = vrot.lane.b32.xlu1 %v20362_v2, %s20289_s27  ;;  %2310 = vrot.lane.b32.xlu0 %v20354_v1, %s20289_s27 }
  0x84   : > { %v221_v14 = vpop.permute.xlu0 %220  ;;  %v217_v15 = vpop.permute.xlu1 %216 }
  0x86   : > { %2320 = vrot.lane.b32.xlu1 %v20377_v5, %s20289_s27  ;;  %2318 = vrot.lane.b32.xlu0 %v20367_v4, %s20289_s27 }
  0x88   : > { %v225_v16 = vpop.permute.xlu0 %224  ;;  %v223_v17 = vpop.permute.xlu1 %222 }
  0x89   : > { %v238_v18 = vsel %vm234_vm0, %v223_v17, %v225_v16  ;;  %v237_v19 = vsel %vm234_vm0, %v221_v14, %v223_v17 }
  0x8a   : > { %19507 = vmatprep.subr.msk.mxu1 %vm247_vm1, %v238_v18  ;;  %2324 = vrot.lane.b32.xlu1 %v20392_v8, %s20289_s27 }
  0x8b   : > { %2322 = vrot.lane.b32.xlu0 %v20384_v7, %s20289_s27  ;;  %19508 = vmatpush1.msk.msra.mxu1 %vm247_vm1, %v237_v19 }
  0x8c   : > { %v227_v21 = vpop.permute.xlu1 %226  ;;  %v219_v22 = vpop.permute.xlu0 %218  ;;  %19509 = vmatmul.mubr.msk.f32.vlgmr.msra.gmra.mxu1 %vm243_vm2, %v19503_v20 }
  0x8d   : > { %v236_v24 = vsel %vm234_vm0, %v219_v22, %v221_v14  ;;  %v235_v25 = vsel %vm234_vm0, %v217_v15, %v219_v22  ;;  %541 = vmatprep.mubr.f32.mxu1 %v24100_v3  ;;  %v239_v29 = vsel %vm234_vm0, %v225_v16, %v227_v21  ;;  %v3360_v22 = vld [vmem:[%s20348_s20 + $0x20] sm:$0xf] }
  0x8e   : > { %2666 = vrot.lane.b32.xlu1 %v20381_v6, %s20290_s30  ;;  %19504 = vmatprep.subr.msk.mxu0 %vm247_vm1, %v236_v24 }
  0x8f   : > { %2326 = vrot.lane.b32.xlu0 %v2298_v23, %s20289_s27  ;;  %19505 = vmatpush1.msk.msra.mxu0 %vm247_vm1, %v235_v25 }
  0x90   : > { %v231_v26 = vpop.permute.xlu1 %230  ;;  %v229_v27 = vpop.permute.xlu0 %228  ;;  %19506 = vmatmul.mubr.msk.f32.vlgmr.msra.gmra.mxu0 %vm243_vm2, %v19503_v20 }
  0x91   : > { %v240_v28 = vsel %vm234_vm0, %v227_v21, %v229_v27  ;;  %470 = vmatprep.mubr.f32.mxu0 %v24100_v3  ;;  %v241_v33 = vsel %vm234_vm0, %v229_v27, %v231_v26  ;;  %v19541_v21 = vld [vmem:[%s24076_s2 + $0xc] sm:$0xf] }
  0x92   : > { %2664 = vrot.lane.b32.xlu1 %v20354_v1, %s20290_s30  ;;  %19510 = vmatprep.subr.msk.mxu0 %vm247_vm1, %v240_v28 }
  0x93   : > { %2668 = vrot.lane.b32.xlu0 %v20351_v0, %s20290_s30  ;;  %19511 = vmatpush1.msk.msra.mxu0 %vm247_vm1, %v239_v29 }
  0x94   : > { %v551_v30 = vpop.permute.xlu1 %550  ;;  %v233_v31 = vpop.permute.xlu0 %232  ;;  %19512 = vmatmul.mubr.msk.f32.vlgmr.msra.gmra.mxu0 %vm243_vm2, %v19503_v20 }
  0x95   : > { %v242_v32 = vsel %vm234_vm0, %v231_v26, %v233_v31  ;;  %658 = vmatprep.mubr.f32.mxu0 %v24100_v3 }
  0x96   : > { %2672 = vrot.lane.b32.xlu1 %v20367_v4, %s20290_s30  ;;  %19513 = vmatprep.subr.msk.mxu1 %vm247_vm1, %v242_v32 }
  0x97   : > { %2670 = vrot.lane.b32.xlu0 %v20362_v2, %s20290_s30  ;;  %19514 = vmatpush1.msk.msra.mxu1 %vm247_vm1, %v241_v33 }
  0x98   : > { %v549_v34 = vpop.permute.xlu1 %548  ;;  %v553_v35 = vpop.permute.xlu0 %552  ;;  %19515 = vmatmul.mubr.msk.f32.vlgmr.msra.gmra.mxu1 %vm243_vm2, %v19503_v20 }
  0x99   : > { %v567_v36 = vsel %vm566_vm3, %v549_v34, %v551_v30  ;;  %v568_v37 = vsel %vm566_vm3, %v551_v30, %v553_v35  ;;  %729 = vmatprep.mubr.f32.mxu1 %v24100_v3 }
  0x9a   : > { %2676 = vrot.lane.b32.xlu1 %v20384_v7, %s20290_s30  ;;  %19516 = vmatprep.subr.msk.mxu0 %vm247_vm1, %v568_v37 }
  0x9b   : > { %2674 = vrot.lane.b32.xlu0 %v20377_v5, %s20290_s30  ;;  %19517 = vmatpush1.msk.msra.mxu0 %vm247_vm1, %v567_v36 }
  0x9c   : > { %v557_v40 = vpop.permute.xlu1 %556  ;;  %v555_v41 = vpop.permute.xlu0 %554  ;;  %19518 = vmatmul.mubr.msk.f32.vlgmr.msra.gmra.mxu0 %vm243_vm2, %v204_v38 }
  0x9d   : > { %v569_v42 = vsel %vm566_vm3, %v553_v35, %v555_v41  ;;  %v570_v43 = vsel %vm566_vm3, %v555_v41, %v557_v40  ;;  %800 = vmatprep.mubr.f32.mxu0 %v24100_v3 }
  0x9e   : > { %2680 = vrot.lane.b32.xlu1 %v2652_v39, %s20290_s30  ;;  %19519 = vmatprep.subr.msk.mxu1 %vm247_vm1, %v570_v43 }
  0x9f   : > { %2678 = vrot.lane.b32.xlu0 %v20392_v8, %s20290_s30  ;;  %19520 = vmatpush1.msk.msra.mxu1 %vm247_vm1, %v569_v42 }
  0xa0   : > { %v561_v44 = vpop.permute.xlu1 %560  ;;  %v559_v45 = vpop.permute.xlu0 %558  ;;  %19521 = vmatmul.mubr.msk.f32.vlgmr.msra.gmra.mxu1 %vm243_vm2, %v204_v38 }
  0xa1   : > { %v571_v46 = vsel %vm566_vm3, %v557_v40, %v559_v45  ;;  %v572_v47 = vsel %vm566_vm3, %v559_v45, %v561_v44  ;;  %871 = vmatprep.mubr.f32.mxu1 %v24100_v3  ;;  %v19554_v40 = vld [vmem:[%s24076_s2 + $0x10] sm:$0xf] }
  0xa2   : > { %3022 = vrot.lane.b32.xlu1 %v20351_v0, %s20291_s7  ;;  %19522 = vmatprep.subr.msk.mxu0 %vm247_vm1, %v572_v47 }
  0xa3   : > { %3020 = vrot.lane.b32.xlu0 %v20381_v6, %s20291_s7  ;;  %19523 = vmatpush1.msk.msra.mxu0 %vm247_vm1, %v571_v46 }
  0xa4   : > { %v565_v48 = vpop.permute.xlu1 %564  ;;  %v563_v49 = vpop.permute.xlu0 %562  ;;  %19524 = vmatmul.mubr.msk.f32.vlgmr.msra.gmra.mxu0 %vm243_vm2, %v204_v38 }
  0xa5   : > { %v573_v50 = vsel %vm566_vm3, %v561_v44, %v563_v49  ;;  %v574_v51 = vsel %vm566_vm3, %v563_v49, %v565_v48  ;;  %1004 = vmatprep.mubr.f32.mxu0 %v24100_v3  ;;  %v3714_v44 = vld [vmem:[%s20348_s20 + $0x20] sm:$0xf] }
  0xa6   : > { %3024 = vrot.lane.b32.xlu1 %v20362_v2, %s20291_s7  ;;  %19525 = vmatprep.subr.msk.mxu1 %vm247_vm1, %v574_v51 }
  0xa7   : > { %3018 = vrot.lane.b32.xlu0 %v20354_v1, %s20291_s7  ;;  %19526 = vmatpush1.msk.msra.mxu1 %vm247_vm1, %v573_v50 }
  0xa8   : > { %v899_v52 = vpop.permute.xlu1 %898  ;;  %v897_v53 = vpop.permute.xlu0 %896  ;;  %19527 = vmatmul.mubr.msk.f32.vlgmr.msra.gmra.mxu1 %vm243_vm2, %v204_v38 }
  0xa9   : > { %v914_v54 = vsel %vm912_vm4, %v897_v53, %v899_v52  ;;  %1075 = vmatprep.mubr.f32.mxu1 %v24100_v3 }
  0xaa   : > { %3028 = vrot.lane.b32.xlu1 %v20377_v5, %s20291_s7  ;;  %19529 = vmatprep.subr.msk.mxu0 %vm247_vm1, %v914_v54 }
  0xab   : > { %3026 = vrot.lane.b32.xlu0 %v20367_v4, %s20291_s7 }
  0xac   : > { %v901_v55 = vpop.permute.xlu1 %900  ;;  %v895_v56 = vpop.permute.xlu0 %894 }
  0xad   : > { %v913_v58 = vsel %vm912_vm4, %v895_v56, %v897_v53  ;;  %v915_v63 = vsel %vm912_vm4, %v899_v52, %v901_v55 }
  0xae   : > { %3032 = vrot.lane.b32.xlu1 %v20392_v8, %s20291_s7  ;;  %19530 = vmatpush1.msk.msra.mxu0 %vm247_vm1, %v913_v58 }
  0xaf   : > { %3030 = vrot.lane.b32.xlu0 %v20384_v7, %s20291_s7  ;;  %19531 = vmatmul.mubr.msk.f32.vlgmr.msra.gmra.mxu0 %vm243_vm2, %v19528_v57 }
  0xb0   : > { %v905_v59 = vpop.permute.xlu1 %904  ;;  %v903_v60 = vpop.permute.xlu0 %902  ;;  %1146 = vmatprep.mubr.f32.mxu0 %v24100_v3 }
  0xb1   : > { %v916_v62 = vsel %vm912_vm4, %v901_v55, %v903_v60  ;;  %v917_v12 = vsel %vm912_vm4, %v903_v60, %v905_v59  ;;  %v4068_v60 = vld [vmem:[%s20348_s20 + $0x20] sm:$0xf] }
  0xb2   : > { %3374 = vrot.lane.b32.xlu1 %v20381_v6, %s20292_s10  ;;  %19532 = vmatprep.subr.msk.mxu1 %vm247_vm1, %v916_v62 }
  0xb3   : > { %3034 = vrot.lane.b32.xlu0 %v3006_v61, %s20291_s7  ;;  %19533 = vmatpush1.msk.msra.mxu1 %vm247_vm1, %v915_v63 }
  0xb4   : > { %v909_v9 = vpop.permute.xlu1 %908  ;;  %v907_v10 = vpop.permute.xlu0 %906  ;;  %19534 = vmatmul.mubr.msk.f32.vlgmr.msra.gmra.mxu1 %vm243_vm2, %v19528_v57 }
  0xb5   : > { %v918_v11 = vsel %vm912_vm4, %v905_v59, %v907_v10  ;;  %1217 = vmatprep.mubr.f32.mxu1 %v24100_v3  ;;  %v919_v16 = vsel %vm912_vm4, %v907_v10, %v909_v9  ;;  %v19567_v59 = vld [vmem:[%s24076_s2 + $0x14] sm:$0xf] }
  0xb6   : > { %3372 = vrot.lane.b32.xlu1 %v20354_v1, %s20292_s10  ;;  %19535 = vmatprep.subr.msk.mxu0 %vm247_vm1, %v918_v11 }
  0xb7   : > { %3376 = vrot.lane.b32.xlu0 %v20351_v0, %s20292_s10  ;;  %19536 = vmatpush1.msk.msra.mxu0 %vm247_vm1, %v917_v12 }
  0xb8   : > { %v1251_v13 = vpop.permute.xlu1 %1250  ;;  %v911_v14 = vpop.permute.xlu0 %910  ;;  %19537 = vmatmul.mubr.msk.f32.vlgmr.msra.gmra.mxu0 %vm243_vm2, %v19528_v57 }
  0xb9   : > { %v920_v15 = vsel %vm912_vm4, %v909_v9, %v911_v14  ;;  %1358 = vmatprep.mubr.f32.mxu0 %v24100_v3 }
  0xba   : > { %3380 = vrot.lane.b32.xlu1 %v20367_v4, %s20292_s10  ;;  %19538 = vmatprep.subr.msk.mxu1 %vm247_vm1, %v920_v15 }
  0xbb   : > { %3378 = vrot.lane.b32.xlu0 %v20362_v2, %s20292_s10  ;;  %19539 = vmatpush1.msk.msra.mxu1 %vm247_vm1, %v919_v16 }
  0xbc   : > { %v1249_v17 = vpop.permute.xlu1 %1248  ;;  %v1253_v18 = vpop.permute.xlu0 %1252  ;;  %19540 = vmatmul.mubr.msk.f32.vlgmr.msra.gmra.mxu1 %vm243_vm2, %v19528_v57 }
  0xbd   : > { %v1267_v19 = vsel %vm1266_vm5, %v1249_v17, %v1251_v13  ;;  %v1268_v20 = vsel %vm1266_vm5, %v1251_v13, %v1253_v18  ;;  %1429 = vmatprep.mubr.f32.mxu1 %v24100_v3 }
  0xbe   : > { %3384 = vrot.lane.b32.xlu1 %v20384_v7, %s20292_s10  ;;  %19542 = vmatprep.subr.msk.mxu0 %vm247_vm1, %v1268_v20  ;;  %v19580_v20 = vld [vmem:[%s24076_s2 + $0x18] sm:$0xf] }
  0xbf   : > { %3382 = vrot.lane.b32.xlu0 %v20377_v5, %s20292_s10  ;;  %19543 = vmatpush1.msk.msra.mxu0 %vm247_vm1, %v1267_v19 }
  0xc0   : > { %v1257_v23 = vpop.permute.xlu1 %1256  ;;  %v1255_v24 = vpop.permute.xlu0 %1254  ;;  %19544 = vmatmul.mubr.msk.f32.vlgmr.msra.gmra.mxu0 %vm243_vm2, %v19541_v21 }
  0xc1   : > { %v1269_v25 = vsel %vm1266_vm5, %v1253_v18, %v1255_v24  ;;  %v1270_v26 = vsel %vm1266_vm5, %v1255_v24, %v1257_v23  ;;  %1500 = vmatprep.mubr.f32.mxu0 %v24100_v3 }
  0xc2   : > { %3388 = vrot.lane.b32.xlu1 %v3360_v22, %s20292_s10  ;;  %19545 = vmatprep.subr.msk.mxu1 %vm247_vm1, %v1270_v26 }
  0xc3   : > { %3386 = vrot.lane.b32.xlu0 %v20392_v8, %s20292_s10  ;;  %19546 = vmatpush1.msk.msra.mxu1 %vm247_vm1, %v1269_v25  ;;  %v20800_v25 = vld [vmem:[%s20348_s20 + $0xc] sm:$0xff] }
  0xc4   : > { %v1261_v27 = vpop.permute.xlu1 %1260  ;;  %v1259_v28 = vpop.permute.xlu0 %1258  ;;  %19547 = vmatmul.mubr.msk.f32.vlgmr.msra.gmra.mxu1 %vm243_vm2, %v19541_v21 }
  0xc5   : > { %v1271_v29 = vsel %vm1266_vm5, %v1257_v23, %v1259_v28  ;;  %v1272_v30 = vsel %vm1266_vm5, %v1259_v28, %v1261_v27  ;;  %1571 = vmatprep.mubr.f32.mxu1 %v24100_v3  ;;  %v4422_v23 = vld [vmem:[%s20348_s20 + $0x20] sm:$0xf] }
  0xc6   : > { %3730 = vrot.lane.b32.xlu1 %v20351_v0, %s20293_s13  ;;  %19548 = vmatprep.subr.msk.mxu0 %vm247_vm1, %v1272_v30  ;;  %v20816_v30 = vld [vmem:[%s20348_s20 + $0x14] sm:$0xff] }
  0xc7   : > { %3728 = vrot.lane.b32.xlu0 %v20381_v6, %s20293_s13  ;;  %19549 = vmatpush1.msk.msra.mxu0 %vm247_vm1, %v1271_v29  ;;  %v20810_v29 = vcombine.high %v20800_v25, %v20800_v25 }
  0xc8   : > { %v1265_v31 = vpop.permute.xlu1 %1264  ;;  %v1263_v32 = vpop.permute.xlu0 %1262  ;;  %19550 = vmatmul.mubr.msk.f32.vlgmr.msra.gmra.mxu0 %vm243_vm2, %v19541_v21 }
  0xc9   : > { %v1273_v33 = vsel %vm1266_vm5, %v1261_v27, %v1263_v32  ;;  %v1274_v34 = vsel %vm1266_vm5, %v1263_v32, %v1265_v31  ;;  %1712 = vmatprep.mubr.f32.mxu0 %v24100_v3 }
  0xca   : > { %3732 = vrot.lane.b32.xlu1 %v20362_v2, %s20293_s13  ;;  %19551 = vmatprep.subr.msk.mxu1 %vm247_vm1, %v1274_v34 }
  0xcb   : > { %3726 = vrot.lane.b32.xlu0 %v20354_v1, %s20293_s13  ;;  %19552 = vmatpush1.msk.msra.mxu1 %vm247_vm1, %v1273_v33 }
  0xcc   : > { %v1607_v35 = vpop.permute.xlu1 %1606  ;;  %v1605_v36 = vpop.permute.xlu0 %1604  ;;  %19553 = vmatmul.mubr.msk.f32.vlgmr.msra.gmra.mxu1 %vm243_vm2, %v19541_v21 }
  0xcd   : > { %v1622_v37 = vsel %vm1620_vm6, %v1605_v36, %v1607_v35  ;;  %1783 = vmatprep.mubr.f32.mxu1 %v24100_v3 }
  0xce   : > { %3736 = vrot.lane.b32.xlu1 %v20377_v5, %s20293_s13  ;;  %19555 = vmatprep.subr.msk.mxu0 %vm247_vm1, %v1622_v37 }
  0xcf   : > { %3734 = vrot.lane.b32.xlu0 %v20367_v4, %s20293_s13 }
  0xd0   : > { %v1609_v38 = vpop.permute.xlu1 %1608  ;;  %v1603_v39 = vpop.permute.xlu0 %1602 }
  0xd1   : > { %v1621_v41 = vsel %vm1620_vm6, %v1603_v39, %v1605_v36  ;;  %v1623_v46 = vsel %vm1620_vm6, %v1607_v35, %v1609_v38  ;;  %v20827_v35 = vcombine.high %v20816_v30, %v20816_v30  ;;  %v20833_v36 = vld [vmem:[%s20348_s20 + $0x1c] sm:$0xff] }
  0xd2   : > { %3740 = vrot.lane.b32.xlu1 %v20392_v8, %s20293_s13  ;;  %19556 = vmatpush1.msk.msra.mxu0 %vm247_vm1, %v1621_v41  ;;  %v19593_v41 = vld [vmem:[%s24076_s2 + $0x1c] sm:$0xf] }
  0xd3   : > { %3738 = vrot.lane.b32.xlu0 %v20384_v7, %s20293_s13  ;;  %19557 = vmatmul.mubr.msk.f32.vlgmr.msra.gmra.mxu0 %vm243_vm2, %v19554_v40 }
  0xd4   : > { %v1613_v42 = vpop.permute.xlu1 %1612  ;;  %v1611_v43 = vpop.permute.xlu0 %1610  ;;  %1854 = vmatprep.mubr.f32.mxu0 %v24100_v3 }
  0xd5   : > { %v1624_v45 = vsel %vm1620_vm6, %v1609_v38, %v1611_v43  ;;  %v1625_v50 = vsel %vm1620_vm6, %v1611_v43, %v1613_v42  ;;  %v5101_v43 = vld [vmem:[%s20348_s20 + $0x24] sm:$0xf] }
  0xd6   : > { %4082 = vrot.lane.b32.xlu1 %v20381_v6, %s20294_s18  ;;  %19558 = vmatprep.subr.msk.mxu1 %vm247_vm1, %v1624_v45 }
  0xd7   : > { %3742 = vrot.lane.b32.xlu0 %v3714_v44, %s20293_s13  ;;  %19559 = vmatpush1.msk.msra.mxu1 %vm247_vm1, %v1623_v46 }
  0xd8   : > { %v1617_v47 = vpop.permute.xlu1 %1616  ;;  %v1615_v48 = vpop.permute.xlu0 %1614  ;;  %19560 = vmatmul.mubr.msk.f32.vlgmr.msra.gmra.mxu1 %vm243_vm2, %v19554_v40 }
  0xd9   : > { %v1626_v49 = vsel %vm1620_vm6, %v1613_v42, %v1615_v48  ;;  %1925 = vmatprep.mubr.f32.mxu1 %v24100_v3  ;;  %v1627_v54 = vsel %vm1620_vm6, %v1615_v48, %v1617_v47  ;;  %v20847_v42 = vcombine.high %v20833_v36, %v20833_v36 }
  0xda   : > { %4080 = vrot.lane.b32.xlu1 %v20354_v1, %s20294_s18  ;;  %19561 = vmatprep.subr.msk.mxu0 %vm247_vm1, %v1626_v49 }
  0xdb   : > { %4084 = vrot.lane.b32.xlu0 %v20351_v0, %s20294_s18  ;;  %19562 = vmatpush1.msk.msra.mxu0 %vm247_vm1, %v1625_v50 }
  0xdc   : > { %v1959_v51 = vpop.permute.xlu1 %1958  ;;  %v1619_v52 = vpop.permute.xlu0 %1618  ;;  %19563 = vmatmul.mubr.msk.f32.vlgmr.msra.gmra.mxu0 %vm243_vm2, %v19554_v40 }
  0xdd   : > { %v1628_v53 = vsel %vm1620_vm6, %v1617_v47, %v1619_v52  ;;  %2066 = vmatprep.mubr.f32.mxu0 %v24100_v3 }
  0xde   : > { %4088 = vrot.lane.b32.xlu1 %v20367_v4, %s20294_s18  ;;  %19564 = vmatprep.subr.msk.mxu1 %vm247_vm1, %v1628_v53 }
  0xdf   : > { %4086 = vrot.lane.b32.xlu0 %v20362_v2, %s20294_s18  ;;  %19565 = vmatpush1.msk.msra.mxu1 %vm247_vm1, %v1627_v54 }
  0xe0   : > { %v1957_v55 = vpop.permute.xlu1 %1956  ;;  %v1961_v56 = vpop.permute.xlu0 %1960  ;;  %19566 = vmatmul.mubr.msk.f32.vlgmr.msra.gmra.mxu1 %vm243_vm2, %v19554_v40 }
  0xe1   : > { %v1975_v57 = vsel %vm1974_vm7, %v1957_v55, %v1959_v51  ;;  %v1976_v58 = vsel %vm1974_vm7, %v1959_v51, %v1961_v56  ;;  %2137 = vmatprep.mubr.f32.mxu1 %v24100_v3 }
  0xe2   : > { %4092 = vrot.lane.b32.xlu1 %v20384_v7, %s20294_s18  ;;  %19568 = vmatprep.subr.msk.mxu0 %vm247_vm1, %v1976_v58 }
  0xe3   : > { %4090 = vrot.lane.b32.xlu0 %v20377_v5, %s20294_s18  ;;  %19569 = vmatpush1.msk.msra.mxu0 %vm247_vm1, %v1975_v57 }
  0xe4   : > { %v1965_v61 = vpop.permute.xlu1 %1964  ;;  %v1963_v62 = vpop.permute.xlu0 %1962  ;;  %19570 = vmatmul.mubr.msk.f32.vlgmr.msra.gmra.mxu0 %vm243_vm2, %v19567_v59 }
  0xe5   : > { %v1977_v63 = vsel %vm1974_vm7, %v1961_v56, %v1963_v62  ;;  %v1978_v9 = vsel %vm1974_vm7, %v1963_v62, %v1965_v61  ;;  %2208 = vmatprep.mubr.f32.mxu0 %v24100_v3 }
  0xe6   : > { %4096 = vrot.lane.b32.xlu1 %v4068_v60, %s20294_s18  ;;  %19571 = vmatprep.subr.msk.mxu1 %vm247_vm1, %v1978_v9  ;;  %v5455_v9 = vld [vmem:[%s20348_s20 + $0x24] sm:$0xf] }
  0xe7   : > { %4094 = vrot.lane.b32.xlu0 %v20392_v8, %s20294_s18  ;;  %19572 = vmatpush1.msk.msra.mxu1 %vm247_vm1, %v1977_v63 }
  0xe8   : > { %v1969_v10 = vpop.permute.xlu1 %1968  ;;  %v1967_v11 = vpop.permute.xlu0 %1966  ;;  %19573 = vmatmul.mubr.msk.f32.vlgmr.msra.gmra.mxu1 %vm243_vm2, %v19567_v59 }
  0xe9   : > { %v1979_v12 = vsel %vm1974_vm7, %v1965_v61, %v1967_v11  ;;  %v1980_v13 = vsel %vm1974_vm7, %v1967_v11, %v1969_v10  ;;  %2279 = vmatprep.mubr.f32.mxu1 %v24100_v3  ;;  %v19606_v61 = vld [vmem:[%s24076_s2 + $0x20] sm:$0xf] }
  0xea   : > { %4438 = vrot.lane.b32.xlu1 %v20351_v0, %s20295_s29  ;;  %19574 = vmatprep.subr.msk.mxu0 %vm247_vm1, %v1980_v13 }
  0xeb   : > { %4436 = vrot.lane.b32.xlu0 %v20381_v6, %s20295_s29  ;;  %19575 = vmatpush1.msk.msra.mxu0 %vm247_vm1, %v1979_v12 }
  0xec   : > { %v1973_v14 = vpop.permute.xlu1 %1972  ;;  %v1971_v15 = vpop.permute.xlu0 %1970  ;;  %19576 = vmatmul.mubr.msk.f32.vlgmr.msra.gmra.mxu0 %vm243_vm2, %v19567_v59 }
  0xed   : > { %v1981_v16 = vsel %vm1974_vm7, %v1969_v10, %v1971_v15  ;;  %v1982_v17 = vsel %vm1974_vm7, %v1971_v15, %v1973_v14  ;;  %2420 = vmatprep.mubr.f32.mxu0 %v24100_v3 }
  0xee   : > { %4440 = vrot.lane.b32.xlu1 %v20362_v2, %s20295_s29  ;;  %19577 = vmatprep.subr.msk.mxu1 %vm247_vm1, %v1982_v17 }
  0xef   : > { %4434 = vrot.lane.b32.xlu0 %v20354_v1, %s20295_s29  ;;  %19578 = vmatpush1.msk.msra.mxu1 %vm247_vm1, %v1981_v16  ;;  %v20774_v1 = vld [vmem:[%s20348_s20 + $0x4] sm:$0xff] }
  0xf0   : > { %v2315_v0 = vpop.permute.xlu1 %2314  ;;  %v2313_v6 = vpop.permute.xlu0 %2312  ;;  %19579 = vmatmul.mubr.msk.f32.vlgmr.msra.gmra.mxu1 %vm243_vm2, %v19567_v59 }
  0xf1   : > { %v2330_v18 = vsel %vm2328_vm8, %v2313_v6, %v2315_v0  ;;  %2491 = vmatprep.mubr.f32.mxu1 %v24100_v3 }
  0xf2   : > { %4444 = vrot.lane.b32.xlu1 %v20377_v5, %s20295_s29  ;;  %19581 = vmatprep.subr.msk.mxu0 %vm247_vm1, %v2330_v18  ;;  %v20785_v5 = vcombine.high %v20774_v1, %v20774_v1 }
  0xf3   : > { %4442 = vrot.lane.b32.xlu0 %v20367_v4, %s20295_s29 }
  0xf4   : > { %v2317_v2 = vpop.permute.xlu1 %2316  ;;  %v2311_v19 = vpop.permute.xlu0 %2310 }
  0xf5   : > { %v2329_v21 = vsel %vm2328_vm8, %v2311_v19, %v2313_v6 }
  0xf6   : > { %4448 = vrot.lane.b32.xlu1 %v20392_v8, %s20295_s29  ;;  %19582 = vmatpush1.msk.msra.mxu0 %vm247_vm1, %v2329_v21  ;;  %v2331_v8 = vsel %vm2328_vm8, %v2315_v0, %v2317_v2 }
  0xf7   : > { %4446 = vrot.lane.b32.xlu0 %v20384_v7, %s20295_s29  ;;  %19583 = vmatmul.mubr.msk.f32.vlgmr.msra.gmra.mxu0 %vm243_vm2, %v19580_v20 }
  0xf8   : > { %v2321_v4 = vpop.permute.xlu1 %2320  ;;  %v2319_v22 = vpop.permute.xlu0 %2318  ;;  %2562 = vmatprep.mubr.f32.mxu0 %v24100_v3 }
  0xf9   : > { %v2332_v24 = vsel %vm2328_vm8, %v2317_v2, %v2319_v22  ;;  %v2333_v28 = vsel %vm2328_vm8, %v2319_v22, %v2321_v4  ;;  %v5809_v22 = vld [vmem:[%s20348_s20 + $0x24] sm:$0xf] }
  0xfa   : > { %5115 = vrot.lane.b32.xlu1 %v20785_v5, %s20296_s8  ;;  %19584 = vmatprep.subr.msk.mxu1 %vm247_vm1, %v2332_v24 }
  0xfb   : > { %4450 = vrot.lane.b32.xlu0 %v4422_v23, %s20295_s29  ;;  %19585 = vmatpush1.msk.msra.mxu1 %vm247_vm1, %v2331_v8 }
  0xfc   : > { %v2325_v7 = vpop.permute.xlu1 %2324  ;;  %19586 = vmatmul.mubr.msk.f32.vlgmr.msra.gmra.mxu1 %vm243_vm2, %v19580_v20 }
  0xfd   : > { %v2323_v26 = vpop.permute.xlu0 %2322  ;;  %2633 = vmatprep.mubr.f32.mxu1 %v24100_v3 }
  0xfe   : > { %5113 = vrot.lane.b32.xlu1 %v20774_v1, %s20296_s8  ;;  %v2334_v27 = vsel %vm2328_vm8, %v2321_v4, %v2323_v26  ;;  %v2335_v34 = vsel %vm2328_vm8, %v2323_v26, %v2325_v7  ;;  %v19619_v4 = vld [vmem:[%s24076_s2 + $0x24] sm:$0xf] }
  0xff   : > { %5117 = vrot.lane.b32.xlu0 %v20800_v25, %s20296_s8  ;;  %19587 = vmatprep.subr.msk.mxu0 %vm247_vm1, %v2334_v27 }
 0x100   : > { %19588 = vmatpush1.msk.msra.mxu0 %vm247_vm1, %v2333_v28  ;;  %v2667_v31 = vpop.permute.xlu1 %2666 }
 0x101   : > { %v2327_v32 = vpop.permute.xlu0 %2326  ;;  %19589 = vmatmul.mubr.msk.f32.vlgmr.msra.gmra.mxu0 %vm243_vm2, %v19580_v20 }
 0x102   : > { %v2336_v33 = vsel %vm2328_vm8, %v2325_v7, %v2327_v32  ;;  %5121 = vrot.lane.b32.xlu1 %v20816_v30, %s20296_s8  ;;  %2774 = vmatprep.mubr.f32.mxu0 %v24100_v3 }
 0x103   : > { %5119 = vrot.lane.b32.xlu0 %v20810_v29, %s20296_s8  ;;  %19590 = vmatprep.subr.msk.mxu1 %vm247_vm1, %v2336_v33 }
 0x104   : > { %19591 = vmatpush1.msk.msra.mxu1 %vm247_vm1, %v2335_v34  ;;  %v2665_v37 = vpop.permute.xlu1 %2664 }
 0x105   : > { %v2683_v38 = vsel %vm2682_vm9, %v2665_v37, %v2667_v31  ;;  %v2669_v39 = vpop.permute.xlu0 %2668  ;;  %19592 = vmatmul.mubr.msk.f32.vlgmr.msra.gmra.mxu1 %vm243_vm2, %v19580_v20 }
 0x106   : > { %5125 = vrot.lane.b32.xlu1 %v20833_v36, %s20296_s8  ;;  %v2684_v40 = vsel %vm2682_vm9, %v2667_v31, %v2669_v39  ;;  %2845 = vmatprep.mubr.f32.mxu1 %v24100_v3 }
 0x107   : > { %5123 = vrot.lane.b32.xlu0 %v20827_v35, %s20296_s8  ;;  %19594 = vmatprep.subr.msk.mxu0 %vm247_vm1, %v2684_v40 }
 0x108   : > { %19595 = vmatpush1.msk.msra.mxu0 %vm247_vm1, %v2683_v38  ;;  %v2673_v44 = vpop.permute.xlu1 %2672 }
 0x109   : > { %v2671_v45 = vpop.permute.xlu0 %2670  ;;  %19596 = vmatmul.mubr.msk.f32.vlgmr.msra.gmra.mxu0 %vm243_vm2, %v19593_v41 }
 0x10a   : > { %v2685_v46 = vsel %vm2682_vm9, %v2669_v39, %v2671_v45  ;;  %5129 = vrot.lane.b32.xlu1 %v5101_v43, %s20296_s8  ;;  %v2686_v47 = vsel %vm2682_vm9, %v2671_v45, %v2673_v44  ;;  %2916 = vmatprep.mubr.f32.mxu0 %v24100_v3 }
 0x10b   : > { %5127 = vrot.lane.b32.xlu0 %v20847_v42, %s20296_s8  ;;  %19597 = vmatprep.subr.msk.mxu1 %vm247_vm1, %v2686_v47  ;;  %v6163_v47 = vld [vmem:[%s20348_s20 + $0x24] sm:$0xf] }
 0x10c   : > { %19598 = vmatpush1.msk.msra.mxu1 %vm247_vm1, %v2685_v46  ;;  %v2677_v48 = vpop.permute.xlu1 %2676 }
 0x10d   : > { %v2675_v49 = vpop.permute.xlu0 %2674  ;;  %19599 = vmatmul.mubr.msk.f32.vlgmr.msra.gmra.mxu1 %vm243_vm2, %v19593_v41 }
 0x10e   : > { %v2687_v50 = vsel %vm2682_vm9, %v2673_v44, %v2675_v49  ;;  %5471 = vrot.lane.b32.xlu1 %v20800_v25, %s20297_s12  ;;  %v2688_v51 = vsel %vm2682_vm9, %v2675_v49, %v2677_v48  ;;  %2987 = vmatprep.mubr.f32.mxu1 %v24100_v3  ;;  %v19632_v44 = vld [vmem:[%s24076_s2 + $0x28] sm:$0xf] }
 0x10f   : > { %5469 = vrot.lane.b32.xlu0 %v20785_v5, %s20297_s12  ;;  %19600 = vmatprep.subr.msk.mxu0 %vm247_vm1, %v2688_v51 }
 0x110   : > { %19601 = vmatpush1.msk.msra.mxu0 %vm247_vm1, %v2687_v50  ;;  %v2681_v52 = vpop.permute.xlu1 %2680 }
 0x111   : > { %v2679_v53 = vpop.permute.xlu0 %2678  ;;  %19602 = vmatmul.mubr.msk.f32.vlgmr.msra.gmra.mxu0 %vm243_vm2, %v19593_v41 }
 0x112   : > { %v2689_v54 = vsel %vm2682_vm9, %v2677_v48, %v2679_v53  ;;  %5473 = vrot.lane.b32.xlu1 %v20810_v29, %s20297_s12  ;;  %v2690_v55 = vsel %vm2682_vm9, %v2679_v53, %v2681_v52  ;;  %3128 = vmatprep.mubr.f32.mxu0 %v24100_v3 }
 0x113   : > { %5467 = vrot.lane.b32.xlu0 %v20774_v1, %s20297_s12  ;;  %19603 = vmatprep.subr.msk.mxu1 %vm247_vm1, %v2690_v55 }
 0x114   : > { %19604 = vmatpush1.msk.msra.mxu1 %vm247_vm1, %v2689_v54  ;;  %v3023_v56 = vpop.permute.xlu1 %3022 }
 0x115   : > { %v3021_v57 = vpop.permute.xlu0 %3020  ;;  %19605 = vmatmul.mubr.msk.f32.vlgmr.msra.gmra.mxu1 %vm243_vm2, %v19593_v41 }
 0x116   : > { %5477 = vrot.lane.b32.xlu1 %v20827_v35, %s20297_s12  ;;  %v3038_v58 = vsel %vm3036_vm10, %v3021_v57, %v3023_v56  ;;  %3199 = vmatprep.mubr.f32.mxu1 %v24100_v3 }
 0x117   : > { %5475 = vrot.lane.b32.xlu0 %v20816_v30, %s20297_s12  ;;  %19607 = vmatprep.subr.msk.mxu0 %vm247_vm1, %v3038_v58 }
 0x118   : > { %v3025_v59 = vpop.permute.xlu1 %3024 }
 0x119   : > { %v3019_v60 = vpop.permute.xlu0 %3018  ;;  %v3039_v12 = vsel %vm3036_vm10, %v3023_v56, %v3025_v59 }
 0x11a   : > { %v3037_v62 = vsel %vm3036_vm10, %v3019_v60, %v3021_v57  ;;  %5481 = vrot.lane.b32.xlu1 %v20847_v42, %s20297_s12 }
 0x11b   : > { %5479 = vrot.lane.b32.xlu0 %v20833_v36, %s20297_s12  ;;  %19608 = vmatpush1.msk.msra.mxu0 %vm247_vm1, %v3037_v62 }
 0x11c   : > { %v3029_v63 = vpop.permute.xlu1 %3028  ;;  %19609 = vmatmul.mubr.msk.f32.vlgmr.msra.gmra.mxu0 %vm243_vm2, %v19606_v61 }
 0x11d   : > { %v3027_v10 = vpop.permute.xlu0 %3026  ;;  %3270 = vmatprep.mubr.f32.mxu0 %v24100_v3 }
 0x11e   : > { %5823 = vrot.lane.b32.xlu1 %v20785_v5, %s20298_s19  ;;  %v3040_v11 = vsel %vm3036_vm10, %v3025_v59, %v3027_v10  ;;  %v3041_v16 = vsel %vm3036_vm10, %v3027_v10, %v3029_v63 }
 0x11f   : > { %5483 = vrot.lane.b32.xlu0 %v5455_v9, %s20297_s12  ;;  %19610 = vmatprep.subr.msk.mxu1 %vm247_vm1, %v3040_v11  ;;  %v6517_v9 = vld [vmem:[%s20348_s20 + $0x24] sm:$0xf] }
 0x120   : > { %19611 = vmatpush1.msk.msra.mxu1 %vm247_vm1, %v3039_v12  ;;  %v3033_v13 = vpop.permute.xlu1 %3032 }
 0x121   : > { %v3031_v14 = vpop.permute.xlu0 %3030  ;;  %19612 = vmatmul.mubr.msk.f32.vlgmr.msra.gmra.mxu1 %vm243_vm2, %v19606_v61 }
 0x122   : > { %5821 = vrot.lane.b32.xlu1 %v20774_v1, %s20298_s19  ;;  %v3042_v15 = vsel %vm3036_vm10, %v3029_v63, %v3031_v14  ;;  %3341 = vmatprep.mubr.f32.mxu1 %v24100_v3  ;;  %v3043_v18 = vsel %vm3036_vm10, %v3031_v14, %v3033_v13  ;;  %v19645_v63 = vld [vmem:[%s24076_s2 + $0x2c] sm:$0xf] }
 0x123   : > { %5825 = vrot.lane.b32.xlu0 %v20800_v25, %s20298_s19  ;;  %19613 = vmatprep.subr.msk.mxu0 %vm247_vm1, %v3042_v15 }
 0x124   : > { %19614 = vmatpush1.msk.msra.mxu0 %vm247_vm1, %v3041_v16  ;;  %v3375_v17 = vpop.permute.xlu1 %3374 }
 0x125   : > { %v3035_v0 = vpop.permute.xlu0 %3034  ;;  %19615 = vmatmul.mubr.msk.f32.vlgmr.msra.gmra.mxu0 %vm243_vm2, %v19606_v61 }
 0x126   : > { %v3044_v6 = vsel %vm3036_vm10, %v3033_v13, %v3035_v0  ;;  %5829 = vrot.lane.b32.xlu1 %v20816_v30, %s20298_s19  ;;  %3482 = vmatprep.mubr.f32.mxu0 %v24100_v3 }
 0x127   : > { %5827 = vrot.lane.b32.xlu0 %v20810_v29, %s20298_s19  ;;  %19616 = vmatprep.subr.msk.mxu1 %vm247_vm1, %v3044_v6 }
 0x128   : > { %19617 = vmatpush1.msk.msra.mxu1 %vm247_vm1, %v3043_v18  ;;  %v3373_v2 = vpop.permute.xlu1 %3372 }
 0x129   : > { %v3391_v19 = vsel %vm3390_vm11, %v3373_v2, %v3375_v17  ;;  %v3377_v20 = vpop.permute.xlu0 %3376  ;;  %19618 = vmatmul.mubr.msk.f32.vlgmr.msra.gmra.mxu1 %vm243_vm2, %v19606_v61 }
 0x12a   : > { %5833 = vrot.lane.b32.xlu1 %v20833_v36, %s20298_s19  ;;  %v3392_v21 = vsel %vm3390_vm11, %v3375_v17, %v3377_v20  ;;  %3553 = vmatprep.mubr.f32.mxu1 %v24100_v3 }
 0x12b   : > { %5831 = vrot.lane.b32.xlu0 %v20827_v35, %s20298_s19  ;;  %19620 = vmatprep.subr.msk.mxu0 %vm247_vm1, %v3392_v21 }
 0x12c   : > { %19621 = vmatpush1.msk.msra.mxu0 %vm247_vm1, %v3391_v19  ;;  %v3381_v23 = vpop.permute.xlu1 %3380 }
 0x12d   : > { %v3379_v24 = vpop.permute.xlu0 %3378  ;;  %19622 = vmatmul.mubr.msk.f32.vlgmr.msra.gmra.mxu0 %vm243_vm2, %v19619_v4 }
 0x12e   : > { %v3393_v8 = vsel %vm3390_vm11, %v3377_v20, %v3379_v24  ;;  %5837 = vrot.lane.b32.xlu1 %v5809_v22, %s20298_s19  ;;  %v3394_v7 = vsel %vm3390_vm11, %v3379_v24, %v3381_v23  ;;  %3624 = vmatprep.mubr.f32.mxu0 %v24100_v3 }
 0x12f   : > { %5835 = vrot.lane.b32.xlu0 %v20847_v42, %s20298_s19  ;;  %19623 = vmatprep.subr.msk.mxu1 %vm247_vm1, %v3394_v7 }
 0x130   : > { %19624 = vmatpush1.msk.msra.mxu1 %vm247_vm1, %v3393_v8  ;;  %v3385_v26 = vpop.permute.xlu1 %3384 }
 0x131   : > { %v3383_v27 = vpop.permute.xlu0 %3382  ;;  %19625 = vmatmul.mubr.msk.f32.vlgmr.msra.gmra.mxu1 %vm243_vm2, %v19619_v4 }
 0x132   : > { %v3395_v28 = vsel %vm3390_vm11, %v3381_v23, %v3383_v27  ;;  %6179 = vrot.lane.b32.xlu1 %v20800_v25, %s20299_s6  ;;  %v3396_v31 = vsel %vm3390_vm11, %v3383_v27, %v3385_v26  ;;  %3695 = vmatprep.mubr.f32.mxu1 %v24100_v3  ;;  %v19658_v27 = vld [vmem:[%s24076_s2 + $0x30] sm:$0xf] }
 0x133   : > { %6177 = vrot.lane.b32.xlu0 %v20785_v5, %s20299_s6  ;;  %19626 = vmatprep.subr.msk.mxu0 %vm247_vm1, %v3396_v31 }
 0x134   : > { %19627 = vmatpush1.msk.msra.mxu0 %vm247_vm1, %v3395_v28  ;;  %v3389_v32 = vpop.permute.xlu1 %3388 }
 0x135   : > { %v3387_v33 = vpop.permute.xlu0 %3386  ;;  %19628 = vmatmul.mubr.msk.f32.vlgmr.msra.gmra.mxu0 %vm243_vm2, %v19619_v4 }
 0x136   : > { %v3397_v34 = vsel %vm3390_vm11, %v3385_v26, %v3387_v33  ;;  %6181 = vrot.lane.b32.xlu1 %v20810_v29, %s20299_s6  ;;  %v3398_v37 = vsel %vm3390_vm11, %v3387_v33, %v3389_v32  ;;  %3836 = vmatprep.mubr.f32.mxu0 %v24100_v3 }
 0x137   : > { %6175 = vrot.lane.b32.xlu0 %v20774_v1, %s20299_s6  ;;  %19629 = vmatprep.subr.msk.mxu1 %vm247_vm1, %v3398_v37  ;;  %v6871_v37 = vld [vmem:[%s20348_s20 + $0x24] sm:$0xf] }
 0x138   : > { %19630 = vmatpush1.msk.msra.mxu1 %vm247_vm1, %v3397_v34  ;;  %v3731_v38 = vpop.permute.xlu1 %3730 }
 0x139   : > { %v3729_v39 = vpop.permute.xlu0 %3728  ;;  %19631 = vmatmul.mubr.msk.f32.vlgmr.msra.gmra.mxu1 %vm243_vm2, %v19619_v4 }
 0x13a   : > { %6185 = vrot.lane.b32.xlu1 %v20827_v35, %s20299_s6  ;;  %v3746_v40 = vsel %vm3744_vm12, %v3729_v39, %v3731_v38  ;;  %3907 = vmatprep.mubr.f32.mxu1 %v24100_v3 }
 0x13b   : > { %6183 = vrot.lane.b32.xlu0 %v20816_v30, %s20299_s6  ;;  %19633 = vmatprep.subr.msk.mxu0 %vm247_vm1, %v3746_v40 }
 0x13c   : > { %v3733_v41 = vpop.permute.xlu1 %3732 }
 0x13d   : > { %v3727_v43 = vpop.permute.xlu0 %3726  ;;  %v3747_v50 = vsel %vm3744_vm12, %v3731_v38, %v3733_v41 }
 0x13e   : > { %v3745_v45 = vsel %vm3744_vm12, %v3727_v43, %v3729_v39  ;;  %6189 = vrot.lane.b32.xlu1 %v20847_v42, %s20299_s6 }
 0x13f   : > { %6187 = vrot.lane.b32.xlu0 %v20833_v36, %s20299_s6  ;;  %19634 = vmatpush1.msk.msra.mxu0 %vm247_vm1, %v3745_v45 }
 0x140   : > { %v3737_v46 = vpop.permute.xlu1 %3736  ;;  %19635 = vmatmul.mubr.msk.f32.vlgmr.msra.gmra.mxu0 %vm243_vm2, %v19632_v44 }
 0x141   : > { %v3735_v48 = vpop.permute.xlu0 %3734  ;;  %3978 = vmatprep.mubr.f32.mxu0 %v24100_v3 }
 0x142   : > { %6531 = vrot.lane.b32.xlu1 %v20785_v5, %s20300_s14  ;;  %v3748_v49 = vsel %vm3744_vm12, %v3733_v41, %v3735_v48  ;;  %v3749_v54 = vsel %vm3744_vm12, %v3735_v48, %v3737_v46 }
 0x143   : > { %6191 = vrot.lane.b32.xlu0 %v6163_v47, %s20299_s6  ;;  %19636 = vmatprep.subr.msk.mxu1 %vm247_vm1, %v3748_v49 }
 0x144   : > { %19637 = vmatpush1.msk.msra.mxu1 %vm247_vm1, %v3747_v50  ;;  %v3741_v51 = vpop.permute.xlu1 %3740 }
 0x145   : > { %v3739_v52 = vpop.permute.xlu0 %3738  ;;  %19638 = vmatmul.mubr.msk.f32.vlgmr.msra.gmra.mxu1 %vm243_vm2, %v19632_v44 }
 0x146   : > { %6529 = vrot.lane.b32.xlu1 %v20774_v1, %s20300_s14  ;;  %v3750_v53 = vsel %vm3744_vm12, %v3737_v46, %v3739_v52  ;;  %4049 = vmatprep.mubr.f32.mxu1 %v24100_v3  ;;  %v3751_v58 = vsel %vm3744_vm12, %v3739_v52, %v3741_v51 }
 0x147   : > { %6533 = vrot.lane.b32.xlu0 %v20800_v25, %s20300_s14  ;;  %19639 = vmatprep.subr.msk.mxu0 %vm247_vm1, %v3750_v53 }
 0x148   : > { %19640 = vmatpush1.msk.msra.mxu0 %vm247_vm1, %v3749_v54  ;;  %v4083_v55 = vpop.permute.xlu1 %4082 }
 0x149   : > { %v3743_v56 = vpop.permute.xlu0 %3742  ;;  %19641 = vmatmul.mubr.msk.f32.vlgmr.msra.gmra.mxu0 %vm243_vm2, %v19632_v44 }
 0x14a   : > { %v3752_v57 = vsel %vm3744_vm12, %v3741_v51, %v3743_v56  ;;  %6537 = vrot.lane.b32.xlu1 %v20816_v30, %s20300_s14  ;;  %4190 = vmatprep.mubr.f32.mxu0 %v24100_v3 }
 0x14b   : > { %6535 = vrot.lane.b32.xlu0 %v20810_v29, %s20300_s14  ;;  %19642 = vmatprep.subr.msk.mxu1 %vm247_vm1, %v3752_v57 }
 0x14c   : > { %19643 = vmatpush1.msk.msra.mxu1 %vm247_vm1, %v3751_v58  ;;  %v4081_v59 = vpop.permute.xlu1 %4080  ;;  %v401_v23 = vpop.f32.mrf.mxu1 }
 0x14d   : > { %v4099_v60 = vsel %vm4098_vm13, %v4081_v59, %v4083_v55  ;;  %v4085_v61 = vpop.permute.xlu0 %4084  ;;  %19644 = vmatmul.mubr.msk.f32.vlgmr.msra.gmra.mxu1 %vm243_vm2, %v19632_v44 }
 0x14e   : > { %6541 = vrot.lane.b32.xlu1 %v20833_v36, %s20300_s14  ;;  %v4100_v62 = vsel %vm4098_vm13, %v4083_v55, %v4085_v61  ;;  %4261 = vmatprep.mubr.f32.mxu1 %v24100_v3  ;;  %v21073_v7 = vpop.f32.mrf.mxu1 }
 0x14f   : > { %6539 = vrot.lane.b32.xlu0 %v20827_v35, %s20300_s14  ;;  %19646 = vmatprep.subr.msk.mxu0 %vm247_vm1, %v4100_v62 }
 0x150   : > { %19647 = vmatpush1.msk.msra.mxu0 %vm247_vm1, %v4099_v60  ;;  %v4089_v10 = vpop.permute.xlu1 %4088  ;;  %v330_v18 = vpop.f32.mrf.mxu0  ;;  %v19671_v60 = vld [vmem:[%s24076_s2 + $0x34] sm:$0xf] }
 0x151   : > { %v4087_v11 = vpop.permute.xlu0 %4086  ;;  %19648 = vmatmul.mubr.msk.f32.vlgmr.msra.gmra.mxu0 %vm243_vm2, %v19645_v63 }
 0x152   : > { %v4101_v12 = vsel %vm4098_vm13, %v4085_v61, %v4087_v11  ;;  %6545 = vrot.lane.b32.xlu1 %v6517_v9, %s20300_s14  ;;  %v4102_v13 = vsel %vm4098_vm13, %v4087_v11, %v4089_v10  ;;  %4332 = vmatprep.mubr.f32.mxu0 %v24100_v3  ;;  %v21064_v4 = vpop.f32.mrf.mxu0 }
 0x153   : > { %6543 = vrot.lane.b32.xlu0 %v20847_v42, %s20300_s14  ;;  %19649 = vmatprep.subr.msk.mxu1 %vm247_vm1, %v4102_v13 }
 0x154   : > { %19650 = vmatpush1.msk.msra.mxu1 %vm247_vm1, %v4101_v12  ;;  %v4093_v14 = vpop.permute.xlu1 %4092  ;;  %v472_v24 = vpop.f32.mrf.mxu0 }
 0x155   : > { %v4091_v15 = vpop.permute.xlu0 %4090  ;;  %19651 = vmatmul.mubr.msk.f32.vlgmr.msra.gmra.mxu1 %vm243_vm2, %v19645_v63 }
 0x156   : > { %v4103_v16 = vsel %vm4098_vm13, %v4089_v10, %v4091_v15  ;;  %6887 = vrot.lane.b32.xlu1 %v20800_v25, %s20301_s5  ;;  %v4104_v17 = vsel %vm4098_vm13, %v4091_v15, %v4093_v14  ;;  %4403 = vmatprep.mubr.f32.mxu1 %v24100_v3  ;;  %v21078_v28 = vpop.f32.mrf.mxu0 }
 0x157   : > { %6885 = vrot.lane.b32.xlu0 %v20785_v5, %s20301_s5  ;;  %19652 = vmatprep.subr.msk.mxu0 %vm247_vm1, %v4104_v17 }
 0x158   : > { %19653 = vmatpush1.msk.msra.mxu0 %vm247_vm1, %v4103_v16  ;;  %v4097_v0 = vpop.permute.xlu1 %4096  ;;  %v543_v32 = vpop.f32.mrf.mxu1 }
 0x159   : > { %v4095_v6 = vpop.permute.xlu0 %4094  ;;  %19654 = vmatmul.mubr.msk.f32.vlgmr.msra.gmra.mxu0 %vm243_vm2, %v19645_v63 }
 0x15a   : > { %v4105_v2 = vsel %vm4098_vm13, %v4093_v14, %v4095_v6  ;;  %6889 = vrot.lane.b32.xlu1 %v20810_v29, %s20301_s5  ;;  %v4106_v19 = vsel %vm4098_vm13, %v4095_v6, %v4097_v0  ;;  %4544 = vmatprep.mubr.f32.mxu0 %v24100_v3  ;;  %v21089_v40 = vpop.f32.mrf.mxu1  ;;  %v7225_v0 = vld [vmem:[%s20348_s20 + $0x24] sm:$0xf] }
 0x15b   : > { %6883 = vrot.lane.b32.xlu0 %v20774_v1, %s20301_s5  ;;  %19655 = vmatprep.subr.msk.mxu1 %vm247_vm1, %v4106_v19 }
 0x15c   : > { %19656 = vmatpush1.msk.msra.mxu1 %vm247_vm1, %v4105_v2  ;;  %v4439_v20 = vpop.permute.xlu1 %4438  ;;  %v660_v33 = vpop.f32.mrf.mxu0 }
 0x15d   : > { %v4437_v21 = vpop.permute.xlu0 %4436  ;;  %19657 = vmatmul.mubr.msk.f32.vlgmr.msra.gmra.mxu1 %vm243_vm2, %v19645_v63  ;;  %v661_v38 = vadd.f32 %v660_v33, %v330_v18 }
 0x15e   : > { %6893 = vrot.lane.b32.xlu1 %v20827_v35, %s20301_s5  ;;  %v4454_v22 = vsel %vm24079_vm14, %v4437_v21, %v4439_v20  ;;  %4615 = vmatprep.mubr.f32.mxu1 %v24100_v3  ;;  %v21094_v43 = vpop.f32.mrf.mxu0 }
 0x15f   : > { %6891 = vrot.lane.b32.xlu0 %v20816_v30, %s20301_s5  ;;  %19659 = vmatprep.subr.msk.mxu0 %vm247_vm1, %v4454_v22 }
 0x160   : > { %v4441_v8 = vpop.permute.xlu1 %4440  ;;  %v731_v45 = vpop.f32.mrf.mxu1 }
 0x161   : > { %v4435_v26 = vpop.permute.xlu0 %4434  ;;  %v4455_v44 = vsel %vm24079_vm14, %v4439_v20, %v4441_v8  ;;  %v732_v47 = vadd.f32 %v731_v45, %v401_v23 }
 0x162   : > { %v4453_v31 = vsel %vm24079_vm14, %v4435_v26, %v4437_v21  ;;  %6897 = vrot.lane.b32.xlu1 %v20847_v42, %s20301_s5  ;;  %v21101_v51 = vpop.f32.mrf.mxu1 }
 0x163   : > { %6895 = vrot.lane.b32.xlu0 %v20833_v36, %s20301_s5  ;;  %19660 = vmatpush1.msk.msra.mxu0 %vm247_vm1, %v4453_v31 }
 0x164   : > { %v4445_v34 = vpop.permute.xlu1 %4444  ;;  %19661 = vmatmul.mubr.msk.f32.vlgmr.msra.gmra.mxu0 %vm243_vm2, %v19658_v27  ;;  %v802_v48 = vpop.f32.mrf.mxu0 }
 0x165   : > { %v4443_v39 = vpop.permute.xlu0 %4442  ;;  %4686 = vmatprep.mubr.f32.mxu0 %v24100_v3  ;;  %v803_v50 = vadd.f32 %v802_v48, %v472_v24 }
 0x166   : > { %7239 = vrot.lane.b32.xlu1 %v20785_v5, %s20302_s17  ;;  %v4456_v41 = vsel %vm24079_vm14, %v4441_v8, %v4443_v39  ;;  %v4457_v53 = vsel %vm24079_vm14, %v4443_v39, %v4445_v34  ;;  %v21111_v54 = vpop.f32.mrf.mxu0  ;;  %v19684_v8 = vld [vmem:[%s24076_s2 + $0x38] sm:$0xf] }
 0x167   : > { %6899 = vrot.lane.b32.xlu0 %v6871_v37, %s20301_s5  ;;  %19662 = vmatprep.subr.msk.mxu1 %vm247_vm1, %v4456_v41 }
 0x168   : > { %19663 = vmatpush1.msk.msra.mxu1 %vm247_vm1, %v4455_v44  ;;  %v4449_v46 = vpop.permute.xlu1 %4448  ;;  %v873_v55 = vpop.f32.mrf.mxu1 }
 0x169   : > { %v4447_v49 = vpop.permute.xlu0 %4446  ;;  %19664 = vmatmul.mubr.msk.f32.vlgmr.msra.gmra.mxu1 %vm243_vm2, %v19658_v27  ;;  %v21114_v57 = vadd.f32 %v873_v55, %v543_v32 }
 0x16a   : > { %7237 = vrot.lane.b32.xlu1 %v20774_v1, %s20302_s17  ;;  %v4458_v52 = vsel %vm24079_vm14, %v4445_v34, %v4447_v49  ;;  %4757 = vmatprep.mubr.f32.mxu1 %v24100_v3  ;;  %v4459_v61 = vsel %vm24079_vm14, %v4447_v49, %v4449_v46  ;;  %v21135_v10 = vpop.f32.mrf.mxu1 }
 0x16b   : > { %7241 = vrot.lane.b32.xlu0 %v20800_v25, %s20302_s17  ;;  %19665 = vmatprep.subr.msk.mxu0 %vm247_vm1, %v4458_v52 }
 0x16c   : > { %19666 = vmatpush1.msk.msra.mxu0 %vm247_vm1, %v4457_v53  ;;  %v5116_v56 = vpop.permute.xlu1 %5115  ;;  %v19697_v53 = vld [vmem:[%s24076_s2 + $0x3c] sm:$0xf] }
 0x16d   : > { %19667 = vmatmul.mubr.msk.f32.vlgmr.msra.gmra.mxu0 %vm243_vm2, %v19658_v27  ;;  %v4451_v58 = vpop.permute.xlu0 %4450  ;;  %19672 = vmatprep.subr.msk.mxu0 %vm247_vm1, %v20785_v5 }
 0x16e   : > { %v4460_v59 = vsel %vm24079_vm14, %v4449_v46, %v4451_v58  ;;  %7245 = vrot.lane.b32.xlu1 %v20816_v30, %s20302_s17  ;;  %19673 = vmatpush1.msk.msra.mxu0 %vm247_vm1, %v20774_v1  ;;  %vm24083_vm14 = vcmask 973824  }
 0x16f   : > { %7243 = vrot.lane.b32.xlu0 %v20810_v29, %s20302_s17  ;;  %19668 = vmatprep.subr.msk.mxu1 %vm247_vm1, %v4460_v59  ;;  %v1006_v62 = vpop.f32.mrf.mxu0 }
 0x170   : > { %19669 = vmatpush1.msk.msra.mxu1 %vm247_vm1, %v4459_v61  ;;  %4869 = vmatprep.mubr.f32.mxu0 %v24100_v3  ;;  %v5114_v63 = vpop.permute.xlu1 %5113  ;;  %v21133_v9 = vadd.f32 %v1006_v62, %v661_v38  ;;  %v7579_v62 = vld [vmem:[%s20348_s20 + $0x24] sm:$0xf] }
 0x171   : > { %19670 = vmatmul.mubr.msk.f32.vlgmr.msra.gmra.mxu1 %vm243_vm2, %v19658_v27  ;;  %19674 = vmatmul.mubr.msk.f32.vlgmr.msra.gmra.mxu0 %vm243_vm2, %v19671_v60  ;;  %v5118_v11 = vpop.permute.xlu0 %5117  ;;  %v21148_v13 = vpop.f32.mrf.mxu0  ;;  %v5132_v6 = vsel %vm24080_vm15, %v5114_v63, %v5116_v56 }
 0x172   : > { %19678 = vmatprep.subr.msk.mxu0 %vm247_vm1, %v20827_v35  ;;  %7249 = vrot.lane.b32.xlu1 %v20833_v36, %s20302_s17  ;;  %v5133_v12 = vsel %vm24080_vm15, %v5116_v56, %v5118_v11 }
 0x173   : > { %19679 = vmatpush1.msk.msra.mxu0 %vm247_vm1, %v20816_v30  ;;  %7247 = vrot.lane.b32.xlu0 %v20827_v35, %s20302_s17 }
 0x174   : > { %19675 = vmatprep.subr.msk.mxu1 %vm247_vm1, %v20810_v29  ;;  %19685 = vmatprep.subr.msk.mxu0 %vm247_vm1, %v5133_v12  ;;  %v5122_v14 = vpop.permute.xlu1 %5121  ;;  %v1077_v15 = vpop.f32.mrf.mxu1 }
 0x175   : > { %19676 = vmatpush1.msk.msra.mxu1 %vm247_vm1, %v20800_v25  ;;  %4940 = vmatprep.mubr.f32.mxu1 %v24100_v3  ;;  %v5120_v16 = vpop.permute.xlu0 %5119  ;;  %v21156_v17 = vadd.f32 %v1077_v15, %v732_v47 }
 0x176   : > { %5011 = vmatprep.mubr.f32.mxu0 %v24100_v3  ;;  %19677 = vmatmul.mubr.msk.f32.vlgmr.msra.gmra.mxu1 %vm243_vm2, %v19671_v60  ;;  %v5135_v18 = vsel %vm24080_vm15, %v5120_v16, %v5122_v14  ;;  %v21166_v2 = vpop.f32.mrf.mxu1  ;;  %v5134_v24 = vsel %vm24080_vm15, %v5118_v11, %v5120_v16 }
 0x177   : > { %19680 = vmatmul.mubr.msk.f32.vlgmr.msra.gmra.mxu0 %vm243_vm2, %v19671_v60  ;;  %19681 = vmatprep.subr.msk.mxu1 %vm247_vm1, %v20847_v42 }
 0x178   : > { %19686 = vmatpush1.msk.msra.mxu0 %vm247_vm1, %v5132_v6  ;;  %19682 = vmatpush1.msk.msra.mxu1 %vm247_vm1, %v20833_v36  ;;  %v5126_v19 = vpop.permute.xlu1 %5125  ;;  %v1148_v20 = vpop.f32.mrf.mxu0 }
 0x179   : > { %7253 = vrot.lane.b32.xlu1 %v7225_v0, %s20302_s17  ;;  %7251 = vrot.lane.b32.xlu0 %v20847_v42, %s20302_s17  ;;  %v5124_v21 = vpop.permute.xlu0 %5123  ;;  %v1228_v22 = vadd.f32 %v1148_v20, %v803_v50 }
 0x17a   : > { %19688 = vmatprep.subr.msk.mxu1 %vm247_vm1, %v5135_v18  ;;  %5082 = vmatprep.mubr.f32.mxu1 %v24100_v3  ;;  %v5137_v23 = vsel %vm24080_vm15, %v5124_v21, %v5126_v19  ;;  %v21183_v26 = vpop.f32.mrf.mxu0  ;;  %v5136_v27 = vsel %vm24080_vm15, %v5122_v14, %v5124_v21 }
 0x17b   : > { %19683 = vmatmul.mubr.msk.f32.vlgmr.msra.gmra.mxu1 %vm243_vm2, %v19671_v60  ;;  %5223 = vmatprep.mubr.f32.mxu0 %v24100_v3 }
 0x17c   : > { %19689 = vmatpush1.msk.msra.mxu1 %vm247_vm1, %v5134_v24  ;;  %19691 = vmatprep.subr.msk.mxu0 %vm247_vm1, %v5137_v23  ;;  %v5130_v31 = vpop.permute.xlu1 %5129  ;;  %v1219_v32 = vpop.f32.mrf.mxu1 }
 0x17d   : > { %7595 = vrot.lane.b32.xlu1 %v20800_v25, %s24081_s9  ;;  %7593 = vrot.lane.b32.xlu0 %v20785_v5, %s24081_s9  ;;  %v5128_v33 = vpop.permute.xlu0 %5127  ;;  %v1230_v34 = vadd.f32 %v1219_v32, %v21114_v57 }
 0x17e   : > { %19687 = vmatmul.mubr.msk.f32.vlgmr.msra.gmra.mxu0 %vm243_vm2, %v19684_v8  ;;  %5294 = vmatprep.mubr.f32.mxu1 %v24100_v3  ;;  %v5139_v37 = vsel %vm24080_vm15, %v5128_v33, %v5130_v31  ;;  %v5138_v38 = vsel %vm24080_vm15, %v5126_v19, %v5128_v33  ;;  %v21199_v39 = vpop.f32.mrf.mxu1  ;;  %vm24086_vm15 = vcmask 965632  }
 0x17f   : > { %19692 = vmatpush1.msk.msra.mxu0 %vm247_vm1, %v5136_v27  ;;  %19694 = vmatprep.subr.msk.mxu1 %vm247_vm1, %v5139_v37  ;;  %v19710_v27 = vld [vmem:[%s24076_s2 + $0x40] sm:$0xf] }
 0x180   : > { %19690 = vmatmul.mubr.msk.f32.vlgmr.msra.gmra.mxu1 %vm243_vm2, %v19684_v8  ;;  %v5472_v41 = vpop.permute.xlu1 %5471  ;;  %5365 = vmatprep.mubr.f32.mxu0 %v24100_v3  ;;  %v1360_v44 = vpop.f32.mrf.mxu0 }
 0x181   : > { %7597 = vrot.lane.b32.xlu1 %v20810_v29, %s24081_s9  ;;  %7591 = vrot.lane.b32.xlu0 %v20774_v1, %s24081_s9  ;;  %v5470_v45 = vpop.permute.xlu0 %5469  ;;  %v1578_v46 = vadd.f32 %v1360_v44, %v21133_v9  ;;  %v21297_v44 = vld [vmem:[%s20348_s20 + $0x4] sm:$0xff] }
 0x182   : > { %19695 = vmatpush1.msk.msra.mxu1 %vm247_vm1, %v5138_v38  ;;  %v5487_v47 = vsel %vm24083_vm14, %v5470_v45, %v5472_v41  ;;  %19693 = vmatmul.mubr.msk.f32.vlgmr.msra.gmra.mxu0 %vm243_vm2, %v19684_v8  ;;  %v21213_v48 = vpop.f32.mrf.mxu0  ;;  %v7933_v38 = vld [vmem:[%s20348_s20 + $0x24] sm:$0xf] }
 0x183   : > { %19698 = vmatprep.subr.msk.mxu0 %vm247_vm1, %v5487_v47  ;;  %5436 = vmatprep.mubr.f32.mxu1 %v24100_v3  ;;  %v21309_v47 = vcombine.high %v21297_v44, %v21297_v44 }
 0x184   : > { %v5474_v49 = vpop.permute.xlu1 %5473  ;;  %19696 = vmatmul.mubr.msk.f32.vlgmr.msra.gmra.mxu1 %vm243_vm2, %v19684_v8  ;;  %5577 = vmatprep.mubr.f32.mxu0 %v24100_v3  ;;  %v1431_v50 = vpop.f32.mrf.mxu1 }
 0x185   : > { %7601 = vrot.lane.b32.xlu1 %v20827_v35, %s24081_s9  ;;  %7599 = vrot.lane.b32.xlu0 %v20816_v30, %s24081_s9  ;;  %v5468_v52 = vpop.permute.xlu0 %5467  ;;  %v21225_v55 = vadd.f32 %v1431_v50, %v21156_v17  ;;  %v5488_v9 = vsel %vm24083_vm14, %v5472_v41, %v5474_v49 }
 0x186   : > { %v5486_v56 = vsel %vm24083_vm14, %v5468_v52, %v5470_v45  ;;  %5648 = vmatprep.mubr.f32.mxu1 %v24100_v3  ;;  %v21230_v57 = vpop.f32.mrf.mxu1 }
 0x187   : > { %19699 = vmatpush1.msk.msra.mxu0 %vm247_vm1, %v5486_v56 }
 0x188   : > { %v5478_v58 = vpop.permute.xlu1 %5477  ;;  %19700 = vmatmul.mubr.msk.f32.vlgmr.msra.gmra.mxu0 %vm243_vm2, %v19697_v53  ;;  %v1502_v59 = vpop.f32.mrf.mxu0 }
 0x189   : > { %7605 = vrot.lane.b32.xlu1 %v20847_v42, %s24081_s9  ;;  %7603 = vrot.lane.b32.xlu0 %v20833_v36, %s24081_s9  ;;  %v5476_v60 = vpop.permute.xlu0 %5475  ;;  %v21237_v61 = vadd.f32 %v1502_v59, %v1228_v22 }
 0x18a   : > { %v5489_v63 = vsel %vm24083_vm14, %v5474_v49, %v5476_v60  ;;  %5719 = vmatprep.mubr.f32.mxu0 %v24100_v3  ;;  %v5490_v17 = vsel %vm24083_vm14, %v5476_v60, %v5478_v58  ;;  %v21255_v0 = vpop.f32.mrf.mxu0 }
 0x18b   : > { %19701 = vmatprep.subr.msk.mxu1 %vm247_vm1, %v5489_v63 }
 0x18c   : > { %19702 = vmatpush1.msk.msra.mxu1 %vm247_vm1, %v5488_v9  ;;  %v5482_v11 = vpop.permute.xlu1 %5481  ;;  %v1573_v12 = vpop.f32.mrf.mxu1 }
 0x18d   : > { %7947 = vrot.lane.b32.xlu1 %v20785_v5, %s24084_s11  ;;  %7607 = vrot.lane.b32.xlu0 %v7579_v62, %s24081_s9  ;;  %v5480_v14 = vpop.permute.xlu0 %5479  ;;  %v21248_v15 = vadd.f32 %v1573_v12, %v1230_v34  ;;  %s24087_s9 = smov 27  }
 0x18e   : > { %v5491_v16 = vsel %vm24083_vm14, %v5478_v58, %v5480_v14  ;;  %19703 = vmatmul.mubr.msk.f32.vlgmr.msra.gmra.mxu1 %vm243_vm2, %v19697_v53  ;;  %v5492_v19 = vsel %vm24083_vm14, %v5480_v14, %v5482_v11  ;;  %v21270_v22 = vpop.f32.mrf.mxu1 }
 0x18f   : > { %19704 = vmatprep.subr.msk.mxu0 %vm247_vm1, %v5491_v16  ;;  %5790 = vmatprep.mubr.f32.mxu1 %v24100_v3 }
 0x190   : > { %19705 = vmatpush1.msk.msra.mxu0 %vm247_vm1, %v5490_v17  ;;  %v5824_v5 = vpop.permute.xlu1 %5823 }
 0x191   : > { %7945 = vrot.lane.b32.xlu1 %v20774_v1, %s24084_s11  ;;  %7949 = vrot.lane.b32.xlu0 %v20800_v25, %s24084_s11  ;;  %v5484_v6 = vpop.permute.xlu0 %5483 }
 0x192   : > { %v5493_v18 = vsel %vm24083_vm14, %v5482_v11, %v5484_v6  ;;  %19706 = vmatmul.mubr.msk.f32.vlgmr.msra.gmra.mxu0 %vm243_vm2, %v19697_v53  ;;  %vm24089_vm14 = vcmask 957440  }
 0x193   : > { %19707 = vmatprep.subr.msk.mxu1 %vm247_vm1, %v5493_v18  ;;  %5931 = vmatprep.mubr.f32.mxu0 %v24100_v3  ;;  %v1714_v20 = vpop.f32.mrf.mxu0  ;;  %v19723_v18 = vld [vmem:[%s24076_s2 + $0x44] sm:$0xf] }
 0x194   : > { %19708 = vmatpush1.msk.msra.mxu1 %vm247_vm1, %v5492_v19  ;;  %v5822_v21 = vpop.permute.xlu1 %5821  ;;  %v21268_v1 = vadd.f32 %v1714_v20, %v1578_v46 }
 0x195   : > { %7953 = vrot.lane.b32.xlu1 %v20816_v30, %s24084_s11  ;;  %7951 = vrot.lane.b32.xlu0 %v20810_v29, %s24084_s11  ;;  %v5840_v23 = vsel %vm24086_vm15, %v5822_v21, %v5824_v5  ;;  %v5826_v24 = vpop.permute.xlu0 %5825  ;;  %v21284_v30 = vpop.f32.mrf.mxu0 }
 0x196   : > { %v5841_v8 = vsel %vm24086_vm15, %v5824_v5, %v5826_v24  ;;  %19709 = vmatmul.mubr.msk.f32.vlgmr.msra.gmra.mxu1 %vm243_vm2, %v19697_v53 }
 0x197   : > { %19711 = vmatprep.subr.msk.mxu0 %vm247_vm1, %v5841_v8  ;;  %6002 = vmatprep.mubr.f32.mxu1 %v24100_v3 }
 0x198   : > { %19712 = vmatpush1.msk.msra.mxu0 %vm247_vm1, %v5840_v23  ;;  %v5830_v31 = vpop.permute.xlu1 %5829  ;;  %v1785_v32 = vpop.f32.mrf.mxu1 }
 0x199   : > { %7957 = vrot.lane.b32.xlu1 %v20833_v36, %s24084_s11  ;;  %7955 = vrot.lane.b32.xlu0 %v20827_v35, %s24084_s11  ;;  %v5828_v33 = vpop.permute.xlu0 %5827  ;;  %v1934_v34 = vadd.f32 %v1785_v32, %v21225_v55 }
 0x19a   : > { %19713 = vmatmul.mubr.msk.f32.vlgmr.msra.gmra.mxu0 %vm243_vm2, %v19710_v27  ;;  %v5842_v37 = vsel %vm24086_vm15, %v5826_v24, %v5828_v33  ;;  %v5843_v41 = vsel %vm24086_vm15, %v5828_v33, %v5830_v31  ;;  %v21301_v36 = vpop.f32.mrf.mxu1 }
 0x19b   : > { %19714 = vmatprep.subr.msk.mxu1 %vm247_vm1, %v5843_v41  ;;  %6073 = vmatprep.mubr.f32.mxu0 %v24100_v3  ;;  %v21391_v41 = vld [vmem:[%s20348_s20 + $0xc] sm:$0xff] }
 0x19c   : > { %19715 = vmatpush1.msk.msra.mxu1 %vm247_vm1, %v5842_v37  ;;  %v5834_v35 = vpop.permute.xlu1 %5833  ;;  %v1856_v45 = vpop.f32.mrf.mxu0 }
 0x19d   : > { %7961 = vrot.lane.b32.xlu1 %v7933_v38, %s24084_s11  ;;  %7959 = vrot.lane.b32.xlu0 %v20847_v42, %s24084_s11  ;;  %v5832_v46 = vpop.permute.xlu0 %5831  ;;  %v1936_v49 = vadd.f32 %v1856_v45, %v21237_v61  ;;  %v21329_v61 = vld [vmem:[%s20348_s20 + $0x14] sm:$0xff]  ;;  %s24090_s11 = smov 19  }
 0x19e   : > { %19716 = vmatmul.mubr.msk.f32.vlgmr.msra.gmra.mxu1 %vm243_vm2, %v19710_v27  ;;  %v5844_v50 = vsel %vm24086_vm15, %v5830_v31, %v5832_v46  ;;  %v5845_v52 = vsel %vm24086_vm15, %v5832_v46, %v5834_v35  ;;  %v21317_v53 = vpop.f32.mrf.mxu0  ;;  %v21342_v11 = vcombine.high %v21329_v61, %v21329_v61 }
 0x19f   : > { %19717 = vmatprep.subr.msk.mxu0 %vm247_vm1, %v5845_v52  ;;  %6144 = vmatprep.mubr.f32.mxu1 %v24100_v3 }
 0x1a0   : > { %19718 = vmatpush1.msk.msra.mxu0 %vm247_vm1, %v5844_v50  ;;  %v5838_v42 = vpop.permute.xlu1 %5837  ;;  %v1927_v55 = vpop.f32.mrf.mxu1  ;;  %v21404_v50 = vcombine.high %v21391_v41, %v21391_v41 }
 0x1a1   : > { %8303 = vrot.lane.b32.xlu1 %v20800_v25, %s24087_s9  ;;  %8301 = vrot.lane.b32.xlu0 %v21309_v47, %s24087_s9  ;;  %v5836_v56 = vpop.permute.xlu0 %5835  ;;  %v1938_v58 = vadd.f32 %v1927_v55, %v21248_v15  ;;  %v21348_v15 = vld [vmem:[%s20348_s20 + $0x1c] sm:$0xff] }
 0x1a2   : > { %19719 = vmatmul.mubr.msk.f32.vlgmr.msra.gmra.mxu0 %vm243_vm2, %v19710_v27  ;;  %v5846_v59 = vsel %vm24086_vm15, %v5834_v35, %v5836_v56  ;;  %v5847_v60 = vsel %vm24086_vm15, %v5836_v56, %v5838_v42  ;;  %v21333_v25 = vpop.f32.mrf.mxu1  ;;  %v21360_v6 = vcombine.high %v21348_v15, %v21348_v15  ;;  %vm24092_vm15 = vcmask 318464  }
 0x1a3   : > { %19720 = vmatprep.subr.msk.mxu1 %vm247_vm1, %v5847_v60  ;;  %6285 = vmatprep.mubr.f32.mxu0 %v24100_v3 }
 0x1a4   : > { %19721 = vmatpush1.msk.msra.mxu1 %vm247_vm1, %v5846_v59  ;;  %v6180_v62 = vpop.permute.xlu1 %6179  ;;  %v2068_v63 = vpop.f32.mrf.mxu0 }
 0x1a5   : > { %8305 = vrot.lane.b32.xlu1 %v20810_v29, %s24087_s9  ;;  %8299 = vrot.lane.b32.xlu0 %v21297_v44, %s24087_s9  ;;  %v6178_v9 = vpop.permute.xlu0 %6177  ;;  %v2286_v12 = vadd.f32 %v2068_v63, %v21268_v1 }
 0x1a6   : > { %19722 = vmatmul.mubr.msk.f32.vlgmr.msra.gmra.mxu1 %vm243_vm2, %v19710_v27  ;;  %v6195_v14 = vsel %vm24089_vm14, %v6178_v9, %v6180_v62  ;;  %v21352_v29 = vpop.f32.mrf.mxu0  ;;  %v8287_v27 = vld [vmem:[%s20348_s20 + $0x24] sm:$0xf] }
 0x1a7   : > { %19724 = vmatprep.subr.msk.mxu0 %vm247_vm1, %v6195_v14  ;;  %6356 = vmatprep.mubr.f32.mxu1 %v24100_v3 }
 0x1a8   : > { %v6182_v16 = vpop.permute.xlu1 %6181  ;;  %v2139_v17 = vpop.f32.mrf.mxu1 }
 0x1a9   : > { %8309 = vrot.lane.b32.xlu1 %v21342_v11, %s24087_s9  ;;  %8307 = vrot.lane.b32.xlu0 %v21329_v61, %s24087_s9  ;;  %v6176_v5 = vpop.permute.xlu0 %6175  ;;  %v21365_v19 = vadd.f32 %v2139_v17, %v1934_v34  ;;  %v6196_v32 = vsel %vm24089_vm14, %v6180_v62, %v6182_v16 }
 0x1aa   : > { %v6194_v20 = vsel %vm24089_vm14, %v6176_v5, %v6178_v9  ;;  %v21369_v21 = vpop.f32.mrf.mxu1 }
 0x1ab   : > { %19725 = vmatpush1.msk.msra.mxu0 %vm247_vm1, %v6194_v20 }
 0x1ac   : > { %19726 = vmatmul.mubr.msk.f32.vlgmr.msra.gmra.mxu0 %vm243_vm2, %v19723_v18  ;;  %v6186_v1 = vpop.permute.xlu1 %6185  ;;  %v2210_v23 = vpop.f32.mrf.mxu0 }
 0x1ad   : > { %8313 = vrot.lane.b32.xlu1 %v21360_v6, %s24087_s9  ;;  %8311 = vrot.lane.b32.xlu0 %v21348_v15, %s24087_s9  ;;  %v6184_v24 = vpop.permute.xlu0 %6183  ;;  %v21376_v8 = vadd.f32 %v2210_v23, %v1936_v49 }
 0x1ae   : > { %v6197_v31 = vsel %vm24089_vm14, %v6182_v16, %v6184_v24  ;;  %6427 = vmatprep.mubr.f32.mxu0 %v24100_v3  ;;  %v6198_v45 = vsel %vm24089_vm14, %v6184_v24, %v6186_v1  ;;  %v21397_v46 = vpop.f32.mrf.mxu0 }
 0x1af   : > { %19727 = vmatprep.subr.msk.mxu1 %vm247_vm1, %v6197_v31 }
 0x1b0   : > { %19728 = vmatpush1.msk.msra.mxu1 %vm247_vm1, %v6196_v32  ;;  %v6190_v33 = vpop.permute.xlu1 %6189  ;;  %v2281_v34 = vpop.f32.mrf.mxu1 }
 0x1b1   : > { %8655 = vrot.lane.b32.xlu1 %v21309_v47, %s24090_s11  ;;  %8315 = vrot.lane.b32.xlu0 %v8287_v27, %s24087_s9  ;;  %v6188_v37 = vpop.permute.xlu0 %6187  ;;  %v21387_v38 = vadd.f32 %v2281_v34, %v1938_v58  ;;  %s24093_s9 = smov 18  }
 0x1b2   : > { %19729 = vmatmul.mubr.msk.f32.vlgmr.msra.gmra.mxu1 %vm243_vm2, %v19723_v18  ;;  %v6199_v35 = vsel %vm24089_vm14, %v6186_v1, %v6188_v37  ;;  %v6200_v55 = vsel %vm24089_vm14, %v6188_v37, %v6190_v33  ;;  %v21416_v60 = vpop.f32.mrf.mxu1  ;;  %v8641_v1 = vld [vmem:[%s20348_s20 + $0x24] sm:$0xf] }
 0x1b3   : > { %19730 = vmatprep.subr.msk.mxu0 %vm247_vm1, %v6199_v35  ;;  %6498 = vmatprep.mubr.f32.mxu1 %v24100_v3 }
 0x1b4   : > { %19731 = vmatpush1.msk.msra.mxu0 %vm247_vm1, %v6198_v45  ;;  %v6532_v49 = vpop.permute.xlu1 %6531 }
 0x1b5   : > { %8653 = vrot.lane.b32.xlu1 %v21297_v44, %s24090_s11  ;;  %8657 = vrot.lane.b32.xlu0 %v21391_v41, %s24090_s11  ;;  %v6192_v52 = vpop.permute.xlu0 %6191 }
 0x1b6   : > { %19732 = vmatmul.mubr.msk.f32.vlgmr.msra.gmra.mxu0 %vm243_vm2, %v19723_v18  ;;  %v6201_v42 = vsel %vm24089_vm14, %v6190_v33, %v6192_v52  ;;  %vm24095_vm14 = vcmask 310272  }
 0x1b7   : > { %19733 = vmatprep.subr.msk.mxu1 %vm247_vm1, %v6201_v42  ;;  %6639 = vmatprep.mubr.f32.mxu0 %v24100_v3  ;;  %v2422_v56 = vpop.f32.mrf.mxu0 }
 0x1b8   : > { %19734 = vmatpush1.msk.msra.mxu1 %vm247_vm1, %v6200_v55  ;;  %v6530_v58 = vpop.permute.xlu1 %6529  ;;  %v21414_v59 = vadd.f32 %v2422_v56, %v2286_v12  ;;  %v19736_v12 = vld [vmem:[%s24076_s2 + $0x48] sm:$0xf] }
 0x1b9   : > { %8661 = vrot.lane.b32.xlu1 %v21329_v61, %s24090_s11  ;;  %8659 = vrot.lane.b32.xlu0 %v21404_v50, %s24090_s11  ;;  %v6548_v62 = vsel %vm24092_vm15, %v6530_v58, %v6532_v49  ;;  %v6534_v63 = vpop.permute.xlu0 %6533  ;;  %v21435_v5 = vpop.f32.mrf.mxu0 }
 0x1ba   : > { %19735 = vmatmul.mubr.msk.f32.vlgmr.msra.gmra.mxu1 %vm243_vm2, %v19723_v18  ;;  %v6549_v9 = vsel %vm24092_vm15, %v6532_v49, %v6534_v63 }
 0x1bb   : > { %19737 = vmatprep.subr.msk.mxu0 %vm247_vm1, %v6549_v9  ;;  %6710 = vmatprep.mubr.f32.mxu1 %v24100_v3 }
 0x1bc   : > { %19738 = vmatpush1.msk.msra.mxu0 %vm247_vm1, %v6548_v62  ;;  %v6538_v14 = vpop.permute.xlu1 %6537  ;;  %v2493_v16 = vpop.f32.mrf.mxu1 }
 0x1bd   : > { %8665 = vrot.lane.b32.xlu1 %v21348_v15, %s24090_s11  ;;  %8663 = vrot.lane.b32.xlu0 %v21342_v11, %s24090_s11  ;;  %v6536_v17 = vpop.permute.xlu0 %6535  ;;  %v2642_v18 = vadd.f32 %v2493_v16, %v21365_v19 }
 0x1be   : > { %19739 = vmatmul.mubr.msk.f32.vlgmr.msra.gmra.mxu0 %vm243_vm2, %v19736_v12  ;;  %v6550_v20 = vsel %vm24092_vm15, %v6534_v63, %v6536_v17  ;;  %v6551_v23 = vsel %vm24092_vm15, %v6536_v17, %v6538_v14  ;;  %v21445_v27 = vpop.f32.mrf.mxu1 }
 0x1bf   : > { %19740 = vmatprep.subr.msk.mxu1 %vm247_vm1, %v6551_v23  ;;  %6781 = vmatprep.mubr.f32.mxu0 %v24100_v3 }
 0x1c0   : > { %19741 = vmatpush1.msk.msra.mxu1 %vm247_vm1, %v6550_v20  ;;  %v6542_v24 = vpop.permute.xlu1 %6541 }
 0x1c1   : > { %8669 = vrot.lane.b32.xlu1 %v8641_v1, %s24090_s11  ;;  %8667 = vrot.lane.b32.xlu0 %v21360_v6, %s24090_s11  ;;  %v6540_v19 = vpop.permute.xlu0 %6539  ;;  %v2564_v31 = vpop.f32.mrf.mxu0  ;;  %s20308_s11 = smov 17  }
 0x1c2   : > { %19742 = vmatmul.mubr.msk.f32.vlgmr.msra.gmra.mxu1 %vm243_vm2, %v19736_v12  ;;  %v6552_v32 = vsel %vm24092_vm15, %v6538_v14, %v6540_v19  ;;  %v6553_v33 = vsel %vm24092_vm15, %v6540_v19, %v6542_v24  ;;  %v2644_v34 = vadd.f32 %v2564_v31, %v21376_v8  ;;  %v8995_v31 = vld [vmem:[%s20348_s20 + $0x24] sm:$0xf] }
 0x1c3   : > { %19743 = vmatprep.subr.msk.mxu0 %vm247_vm1, %v6553_v33  ;;  %6852 = vmatprep.mubr.f32.mxu1 %v24100_v3  ;;  %v21457_v35 = vpop.f32.mrf.mxu0 }
 0x1c4   : > { %19744 = vmatpush1.msk.msra.mxu0 %vm247_vm1, %v6552_v32  ;;  %v6546_v37 = vpop.permute.xlu1 %6545 }
 0x1c5   : > { %9011 = vrot.lane.b32.xlu1 %v21391_v41, %s24093_s9  ;;  %9009 = vrot.lane.b32.xlu0 %v21309_v47, %s24093_s9  ;;  %v6544_v45 = vpop.permute.xlu0 %6543  ;;  %v2635_v49 = vpop.f32.mrf.mxu1 }
 0x1c6   : > { %19745 = vmatmul.mubr.msk.f32.vlgmr.msra.gmra.mxu0 %vm243_vm2, %v19736_v12  ;;  %v6554_v8 = vsel %vm24092_vm15, %v6542_v24, %v6544_v45  ;;  %v6555_v52 = vsel %vm24092_vm15, %v6544_v45, %v6546_v37  ;;  %v2646_v42 = vadd.f32 %v2635_v49, %v21387_v38  ;;  %vm24096_vm15 = vcmask 302080  }
 0x1c7   : > { %19746 = vmatprep.subr.msk.mxu1 %vm247_vm1, %v6555_v52  ;;  %6993 = vmatprep.mubr.f32.mxu0 %v24100_v3  ;;  %v21470_v56 = vpop.f32.mrf.mxu1 }
 0x1c8   : > { %19747 = vmatpush1.msk.msra.mxu1 %vm247_vm1, %v6554_v8  ;;  %v6888_v55 = vpop.permute.xlu1 %6887 }
 0x1c9   : > { %9013 = vrot.lane.b32.xlu1 %v21404_v50, %s24093_s9  ;;  %9007 = vrot.lane.b32.xlu0 %v21297_v44, %s24093_s9  ;;  %v6886_v58 = vpop.permute.xlu0 %6885  ;;  %v2776_v62 = vpop.f32.mrf.mxu0 }
 0x1ca   : > { %19748 = vmatmul.mubr.msk.f32.vlgmr.msra.gmra.mxu1 %vm243_vm2, %v19736_v12  ;;  %v6903_v38 = vsel %vm24095_vm14, %v6886_v58, %v6888_v55  ;;  %v2994_v63 = vadd.f32 %v2776_v62, %v21414_v59  ;;  %v19749_v12 = vld [vmem:[%s24076_s2 + $0x4c] sm:$0xf] }
 0x1cb   : > { %19750 = vmatprep.subr.msk.mxu0 %vm247_vm1, %v6903_v38  ;;  %7064 = vmatprep.mubr.f32.mxu1 %v24100_v3  ;;  %v21481_v14 = vpop.f32.mrf.mxu0 }
 0x1cc   : > { %v6890_v9 = vpop.permute.xlu1 %6889 }
 0x1cd   : > { %9017 = vrot.lane.b32.xlu1 %v21342_v11, %s24093_s9  ;;  %9015 = vrot.lane.b32.xlu0 %v21329_v61, %s24093_s9  ;;  %v6884_v16 = vpop.permute.xlu0 %6883  ;;  %v2847_v59 = vpop.f32.mrf.mxu1  ;;  %v6904_v33 = vsel %vm24095_vm14, %v6888_v55, %v6890_v9 }
 0x1ce   : > { %v6902_v17 = vsel %vm24095_vm14, %v6884_v16, %v6886_v58  ;;  %v21491_v20 = vadd.f32 %v2847_v59, %v2642_v18 }
 0x1cf   : > { %19751 = vmatpush1.msk.msra.mxu0 %vm247_vm1, %v6902_v17  ;;  %v21495_v23 = vpop.f32.mrf.mxu1 }
 0x1d0   : > { %19752 = vmatmul.mubr.msk.f32.vlgmr.msra.gmra.mxu0 %vm243_vm2, %v19749_v12  ;;  %v6894_v1 = vpop.permute.xlu1 %6893 }
 0x1d1   : > { %9021 = vrot.lane.b32.xlu1 %v21360_v6, %s24093_s9  ;;  %9019 = vrot.lane.b32.xlu0 %v21348_v15, %s24093_s9  ;;  %v6892_v24 = vpop.permute.xlu0 %6891  ;;  %v2918_v19 = vpop.f32.mrf.mxu0 }
 0x1d2   : > { %v6905_v32 = vsel %vm24095_vm14, %v6890_v9, %v6892_v24  ;;  %7135 = vmatprep.mubr.f32.mxu0 %v24100_v3  ;;  %v21504_v18 = vadd.f32 %v2918_v19, %v2644_v34  ;;  %v6906_v52 = vsel %vm24095_vm14, %v6892_v24, %v6894_v1  ;;  %v9349_v19 = vld [vmem:[%s20348_s20 + $0x24] sm:$0xf] }
 0x1d3   : > { %19753 = vmatprep.subr.msk.mxu1 %vm247_vm1, %v6905_v32  ;;  %v21518_v58 = vpop.f32.mrf.mxu0 }
 0x1d4   : > { %19754 = vmatpush1.msk.msra.mxu1 %vm247_vm1, %v6904_v33  ;;  %v6898_v37 = vpop.permute.xlu1 %6897 }
 0x1d5   : > { %9363 = vrot.lane.b32.xlu1 %v21309_v47, %s20308_s11  ;;  %9023 = vrot.lane.b32.xlu0 %v8995_v31, %s24093_s9  ;;  %v6896_v45 = vpop.permute.xlu0 %6895  ;;  %v2989_v49 = vpop.f32.mrf.mxu1  ;;  %s24293_s9 = smov 27  }
 0x1d6   : > { %19755 = vmatmul.mubr.msk.f32.vlgmr.msra.gmra.mxu1 %vm243_vm2, %v19749_v12  ;;  %v6907_v34 = vsel %vm24095_vm14, %v6894_v1, %v6896_v45  ;;  %v3000_v8 = vadd.f32 %v2989_v49, %v2646_v42  ;;  %v6908_v62 = vsel %vm24095_vm14, %v6896_v45, %v6898_v37 }
 0x1d7   : > { %19756 = vmatprep.subr.msk.mxu0 %vm247_vm1, %v6907_v34  ;;  %7206 = vmatprep.mubr.f32.mxu1 %v24100_v3  ;;  %v21535_v59 = vpop.f32.mrf.mxu1 }
 0x1d8   : > { %19757 = vmatpush1.msk.msra.mxu0 %vm247_vm1, %v6906_v52  ;;  %v7240_v55 = vpop.permute.xlu1 %7239 }
 0x1d9   : > { %9361 = vrot.lane.b32.xlu1 %v21297_v44, %s20308_s11  ;;  %9365 = vrot.lane.b32.xlu0 %v21391_v41, %s20308_s11  ;;  %v6900_v47 = vpop.permute.xlu0 %6899 }
 0x1da   : > { %19758 = vmatmul.mubr.msk.f32.vlgmr.msra.gmra.mxu0 %vm243_vm2, %v19749_v12  ;;  %v6909_v42 = vsel %vm24095_vm14, %v6898_v37, %v6900_v47  ;;  %vm24097_vm14 = vcmask 236544  }
 0x1db   : > { %19759 = vmatprep.subr.msk.mxu1 %vm247_vm1, %v6909_v42  ;;  %7347 = vmatprep.mubr.f32.mxu0 %v24100_v3 }
 0x1dc   : > { %19760 = vmatpush1.msk.msra.mxu1 %vm247_vm1, %v6908_v62  ;;  %v7238_v38 = vpop.permute.xlu1 %7237  ;;  %v3130_v9 = vpop.f32.mrf.mxu0 }
 0x1dd   : > { %9369 = vrot.lane.b32.xlu1 %v21329_v61, %s20308_s11  ;;  %9367 = vrot.lane.b32.xlu0 %v21404_v50, %s20308_s11  ;;  %v7256_v44 = vsel %vm24096_vm15, %v7238_v38, %v7240_v55  ;;  %v7242_v41 = vpop.permute.xlu0 %7241  ;;  %v3348_v16 = vadd.f32 %v3130_v9, %v2994_v63  ;;  %v19762_v61 = vld [vmem:[%s24076_s2 + $0x50] sm:$0xf] }
 0x1de   : > { %19761 = vmatmul.mubr.msk.f32.vlgmr.msra.gmra.mxu1 %vm243_vm2, %v19749_v12  ;;  %v7257_v17 = vsel %vm24096_vm15, %v7240_v55, %v7242_v41  ;;  %v21545_v1 = vpop.f32.mrf.mxu0 }
 0x1df   : > { %19763 = vmatprep.subr.msk.mxu0 %vm247_vm1, %v7257_v17  ;;  %7418 = vmatprep.mubr.f32.mxu1 %v24100_v3 }
 0x1e0   : > { %19764 = vmatpush1.msk.msra.mxu0 %vm247_vm1, %v7256_v44  ;;  %v7246_v50 = vpop.permute.xlu1 %7245 }
 0x1e1   : > { %9373 = vrot.lane.b32.xlu1 %v21348_v15, %s20308_s11  ;;  %9371 = vrot.lane.b32.xlu0 %v21342_v11, %s20308_s11  ;;  %v7244_v63 = vpop.permute.xlu0 %7243  ;;  %v3201_v12 = vpop.f32.mrf.mxu1 }
 0x1e2   : > { %19765 = vmatmul.mubr.msk.f32.vlgmr.msra.gmra.mxu0 %vm243_vm2, %v19762_v61  ;;  %v7258_v24 = vsel %vm24096_vm15, %v7242_v41, %v7244_v63  ;;  %v7259_v31 = vsel %vm24096_vm15, %v7244_v63, %v7246_v50  ;;  %v3350_v32 = vadd.f32 %v3201_v12, %v21491_v20 }
 0x1e3   : > { %19766 = vmatprep.subr.msk.mxu1 %vm247_vm1, %v7259_v31  ;;  %7489 = vmatprep.mubr.f32.mxu0 %v24100_v3  ;;  %v21559_v33 = vpop.f32.mrf.mxu1 }
 0x1e4   : > { %19767 = vmatpush1.msk.msra.mxu1 %vm247_vm1, %v7258_v24  ;;  %v7250_v15 = vpop.permute.xlu1 %7249 }
 0x1e5   : > { %9377 = vrot.lane.b32.xlu1 %v9349_v19, %s20308_s11  ;;  %9375 = vrot.lane.b32.xlu0 %v21360_v6, %s20308_s11  ;;  %v7248_v11 = vpop.permute.xlu0 %7247  ;;  %v3272_v37 = vpop.f32.mrf.mxu0 }
 0x1e6   : > { %19768 = vmatmul.mubr.msk.f32.vlgmr.msra.gmra.mxu1 %vm243_vm2, %v19762_v61  ;;  %v7260_v20 = vsel %vm24096_vm15, %v7246_v50, %v7248_v11  ;;  %v7261_v45 = vsel %vm24096_vm15, %v7248_v11, %v7250_v15  ;;  %v3352_v49 = vadd.f32 %v3272_v37, %v21504_v18 }
 0x1e7   : > { %19769 = vmatprep.subr.msk.mxu0 %vm247_vm1, %v7261_v45  ;;  %7560 = vmatprep.mubr.f32.mxu1 %v24100_v3  ;;  %v21572_v34 = vpop.f32.mrf.mxu0 }
 0x1e8   : > { %19770 = vmatpush1.msk.msra.mxu0 %vm247_vm1, %v7260_v20 }
 0x1e9   : > { %19771 = vmatmul.mubr.msk.f32.vlgmr.msra.gmra.mxu0 %vm243_vm2, %v19762_v61  ;;  %v3343_v6 = vpop.f32.mrf.mxu1 }
 0x1ea   : > { %7701 = vmatprep.mubr.f32.mxu0 %v24100_v3  ;;  %v3354_v52 = vadd.f32 %v3343_v6, %v3000_v8 }
 0x1eb   : > { %v7254_v55 = vpop.permute.xlu1 %7253  ;;  %v7252_v47 = vpop.permute.xlu0 %7251 }
 0x1ec   : > { %v7262_v42 = vsel %vm24096_vm15, %v7250_v15, %v7252_v47  ;;  %v7263_v18 = vsel %vm24096_vm15, %v7252_v47, %v7254_v55  ;;  %v21578_v38 = vpop.f32.mrf.mxu1  ;;  %vm24098_vm15 = vcmask 228352  }
 0x1ed   : > { %19772 = vmatprep.subr.msk.mxu1 %vm247_vm1, %v7263_v18  ;;  %v3484_v62 = vpop.f32.mrf.mxu0 }
 0x1ee   : > { %19773 = vmatpush1.msk.msra.mxu1 %vm247_vm1, %v7262_v42  ;;  %v3702_v9 = vadd.f32 %v3484_v62, %v3348_v16  ;;  %v19775_v16 = vld [vmem:[%s24076_s2 + $0x54] sm:$0xf] }
 0x1ef   : > { %v7596_v44 = vpop.permute.xlu1 %7595  ;;  %19774 = vmatmul.mubr.msk.f32.vlgmr.msra.gmra.mxu1 %vm243_vm2, %v19762_v61  ;;  %v7594_v41 = vpop.permute.xlu0 %7593 }
 0x1f0   : > { %v7611_v8 = vsel %vm24097_vm14, %v7594_v41, %v7596_v44  ;;  %7772 = vmatprep.mubr.f32.mxu1 %v24100_v3  ;;  %v21585_v17 = vpop.f32.mrf.mxu0 }
 0x1f1   : > { %19776 = vmatprep.subr.msk.mxu0 %vm247_vm1, %v7611_v8  ;;  %v3555_v50 = vpop.f32.mrf.mxu1 }
 0x1f2   : > { %v3704_v63 = vadd.f32 %v3555_v50, %v3350_v32 }
 0x1f3   : > { %v7598_v12 = vpop.permute.xlu1 %7597  ;;  %v7592_v24 = vpop.permute.xlu0 %7591 }
 0x1f4   : > { %v7610_v19 = vsel %vm24097_vm14, %v7592_v24, %v7594_v41  ;;  %v21592_v31 = vpop.f32.mrf.mxu1  ;;  %v7612_v20 = vsel %vm24097_vm14, %v7596_v44, %v7598_v12 }
 0x1f5   : > { %19777 = vmatpush1.msk.msra.mxu0 %vm247_vm1, %v7610_v19  ;;  %v3626_v61 = vpop.f32.mrf.mxu0 }
 0x1f6   : > { %19778 = vmatmul.mubr.msk.f32.vlgmr.msra.gmra.mxu0 %vm243_vm2, %v19775_v16  ;;  %v3706_v15 = vadd.f32 %v3626_v61, %v3352_v49 }
 0x1f7   : > { %v7602_v11 = vpop.permute.xlu1 %7601  ;;  %v7600_v37 = vpop.permute.xlu0 %7599  ;;  %7843 = vmatprep.mubr.f32.mxu0 %v24100_v3 }
 0x1f8   : > { %v7613_v32 = vsel %vm24097_vm14, %v7598_v12, %v7600_v37  ;;  %v21603_v42 = vpop.f32.mrf.mxu0  ;;  %v7614_v18 = vsel %vm24097_vm14, %v7600_v37, %v7602_v11  ;;  %v19788_v37 = vld [vmem:[%s24076_s2 + $0x58] sm:$0xf] }
 0x1f9   : > { %19779 = vmatprep.subr.msk.mxu1 %vm247_vm1, %v7613_v32  ;;  %v3697_v45 = vpop.f32.mrf.mxu1 }
 0x1fa   : > { %19780 = vmatpush1.msk.msra.mxu1 %vm247_vm1, %v7612_v20  ;;  %v3708_v6 = vadd.f32 %v3697_v45, %v3354_v52 }
 0x1fb   : > { %v7606_v55 = vpop.permute.xlu1 %7605  ;;  %19781 = vmatmul.mubr.msk.f32.vlgmr.msra.gmra.mxu1 %vm243_vm2, %v19775_v16  ;;  %v7604_v47 = vpop.permute.xlu0 %7603 }
 0x1fc   : > { %v7615_v49 = vsel %vm24097_vm14, %v7602_v11, %v7604_v47  ;;  %7914 = vmatprep.mubr.f32.mxu1 %v24100_v3  ;;  %v7616_v8 = vsel %vm24097_vm14, %v7604_v47, %v7606_v55  ;;  %v21613_v12 = vpop.f32.mrf.mxu1 }
 0x1fd   : > { %19782 = vmatprep.subr.msk.mxu0 %vm247_vm1, %v7615_v49 }
 0x1fe   : > { %19783 = vmatpush1.msk.msra.mxu0 %vm247_vm1, %v7614_v18 }
 0x1ff   : > { %v7948_v62 = vpop.permute.xlu1 %7947  ;;  %19784 = vmatmul.mubr.msk.f32.vlgmr.msra.gmra.mxu0 %vm243_vm2, %v19775_v16  ;;  %v7608_v52 = vpop.permute.xlu0 %7607 }
 0x200   : > { %v7617_v44 = vsel %vm24097_vm14, %v7606_v55, %v7608_v52  ;;  %8055 = vmatprep.mubr.f32.mxu0 %v24100_v3  ;;  %v3838_v41 = vpop.f32.mrf.mxu0  ;;  %vm24099_vm14 = vcmask 220160  }
 0x201   : > { %19785 = vmatprep.subr.msk.mxu1 %vm247_vm1, %v7617_v44  ;;  %v4056_v50 = vadd.f32 %v3838_v41, %v3702_v9 }
 0x202   : > { %19786 = vmatpush1.msk.msra.mxu1 %vm247_vm1, %v7616_v8  ;;  %v21624_v9 = vpop.f32.mrf.mxu0 }
 0x203   : > { %v7946_v24 = vpop.permute.xlu1 %7945  ;;  %19787 = vmatmul.mubr.msk.f32.vlgmr.msra.gmra.mxu1 %vm243_vm2, %v19775_v16  ;;  %v7950_v19 = vpop.permute.xlu0 %7949 }
 0x204   : > { %v7964_v61 = vsel %vm24098_vm15, %v7946_v24, %v7948_v62  ;;  %v7965_v11 = vsel %vm24098_vm15, %v7948_v62, %v7950_v19  ;;  %8126 = vmatprep.mubr.f32.mxu1 %v24100_v3 }
 0x205   : > { %19789 = vmatprep.subr.msk.mxu0 %vm247_vm1, %v7965_v11  ;;  %v3909_v32 = vpop.f32.mrf.mxu1 }
 0x206   : > { %19790 = vmatpush1.msk.msra.mxu0 %vm247_vm1, %v7964_v61  ;;  %v4058_v20 = vadd.f32 %v3909_v32, %v3704_v63 }
 0x207   : > { %v7954_v16 = vpop.permute.xlu1 %7953  ;;  %19791 = vmatmul.mubr.msk.f32.vlgmr.msra.gmra.mxu0 %vm243_vm2, %v19788_v37  ;;  %v7952_v45 = vpop.permute.xlu0 %7951 }
 0x208   : > { %v7966_v55 = vsel %vm24098_vm15, %v7950_v19, %v7952_v45  ;;  %v7967_v47 = vsel %vm24098_vm15, %v7952_v45, %v7954_v16  ;;  %8197 = vmatprep.mubr.f32.mxu0 %v24100_v3  ;;  %v21632_v18 = vpop.f32.mrf.mxu1 }
 0x209   : > { %19792 = vmatprep.subr.msk.mxu1 %vm247_vm1, %v7967_v47  ;;  %v3980_v49 = vpop.f32.mrf.mxu0 }
 0x20a   : > { %19793 = vmatpush1.msk.msra.mxu1 %vm247_vm1, %v7966_v55  ;;  %v4060_v62 = vadd.f32 %v3980_v49, %v3706_v15 }
 0x20b   : > { %v7958_v52 = vpop.permute.xlu1 %7957  ;;  %19794 = vmatmul.mubr.msk.f32.vlgmr.msra.gmra.mxu1 %vm243_vm2, %v19788_v37  ;;  %v7956_v63 = vpop.permute.xlu0 %7955 }
 0x20c   : > { %v7968_v44 = vsel %vm24098_vm15, %v7954_v16, %v7956_v63  ;;  %v7969_v41 = vsel %vm24098_vm15, %v7956_v63, %v7958_v52  ;;  %8268 = vmatprep.mubr.f32.mxu1 %v24100_v3  ;;  %v21640_v8 = vpop.f32.mrf.mxu0 }
 0x20d   : > { %19795 = vmatprep.subr.msk.mxu0 %vm247_vm1, %v7969_v41  ;;  %v4051_v24 = vpop.f32.mrf.mxu1 }
 0x20e   : > { %19796 = vmatpush1.msk.msra.mxu0 %vm247_vm1, %v7968_v44  ;;  %v4062_v19 = vadd.f32 %v4051_v24, %v3708_v6 }
 0x20f   : > { %v7962_v61 = vpop.permute.xlu1 %7961  ;;  %19797 = vmatmul.mubr.msk.f32.vlgmr.msra.gmra.mxu0 %vm243_vm2, %v19788_v37  ;;  %v7960_v15 = vpop.permute.xlu0 %7959 }
 0x210   : > { %v7970_v11 = vsel %vm24098_vm15, %v7958_v52, %v7960_v15  ;;  %v7971_v32 = vsel %vm24098_vm15, %v7960_v15, %v7962_v61  ;;  %8409 = vmatprep.mubr.f32.mxu0 %v24100_v3  ;;  %v21648_v45 = vpop.f32.mrf.mxu1  ;;  %vm24102_vm15 = vcmask 154624  }
 0x211   : > { %19798 = vmatprep.subr.msk.mxu1 %vm247_vm1, %v7971_v32  ;;  %v4192_v16 = vpop.f32.mrf.mxu0  ;;  %24126 = vst [vmem:[#allocation3_spill] sm:$0xff] %v21648_v45 }
 0x212   : > { %19799 = vmatpush1.msk.msra.mxu1 %vm247_vm1, %v7970_v11  ;;  %v4410_v55 = vadd.f32 %v4192_v16, %v4056_v50  ;;  %v19801_v50 = vld [vmem:[%s24076_s2 + $0x5c] sm:$0xf] }
 0x213   : > { %v8304_v6 = vpop.permute.xlu1 %8303  ;;  %19800 = vmatmul.mubr.msk.f32.vlgmr.msra.gmra.mxu1 %vm243_vm2, %v19788_v37  ;;  %v8302_v47 = vpop.permute.xlu0 %8301 }
 0x214   : > { %v8319_v49 = vsel %vm24099_vm14, %v8302_v47, %v8304_v6  ;;  %8480 = vmatprep.mubr.f32.mxu1 %v24100_v3  ;;  %v21655_v52 = vpop.f32.mrf.mxu0 }
 0x215   : > { %19802 = vmatprep.subr.msk.mxu0 %vm247_vm1, %v8319_v49  ;;  %24127 = vst [vmem:[#allocation4_spill] sm:$0xff] %v21655_v52  ;;  %v4263_v63 = vpop.f32.mrf.mxu1 }
 0x216   : > { %v4412_v44 = vadd.f32 %v4263_v63, %v4058_v20 }
 0x217   : > { %v8306_v41 = vpop.permute.xlu1 %8305  ;;  %v8300_v24 = vpop.permute.xlu0 %8299 }
 0x218   : > { %v8318_v61 = vsel %vm24099_vm14, %v8300_v24, %v8302_v47  ;;  %v21662_v15 = vpop.f32.mrf.mxu1  ;;  %v8320_v49 = vsel %vm24099_vm14, %v8304_v6, %v8306_v41 }
 0x219   : > { %19803 = vmatpush1.msk.msra.mxu0 %vm247_vm1, %v8318_v61  ;;  %v4334_v37 = vpop.f32.mrf.mxu0  ;;  %24128 = vst [vmem:[#allocation5_spill] sm:$0xff] %v21662_v15 }
 0x21a   : > { %19804 = vmatmul.mubr.msk.f32.vlgmr.msra.gmra.mxu0 %vm243_vm2, %v19801_v50  ;;  %v4414_v11 = vadd.f32 %v4334_v37, %v4060_v62 }
 0x21b   : > { %v8310_v32 = vpop.permute.xlu1 %8309  ;;  %v8308_v16 = vpop.permute.xlu0 %8307  ;;  %8551 = vmatprep.mubr.f32.mxu0 %v24100_v3 }
 0x21c   : > { %v8321_v20 = vsel %vm24099_vm14, %v8306_v41, %v8308_v16  ;;  %v21673_v37 = vpop.f32.mrf.mxu0  ;;  %v8322_v15 = vsel %vm24099_vm14, %v8308_v16, %v8310_v32 }
 0x21d   : > { %19805 = vmatprep.subr.msk.mxu1 %vm247_vm1, %v8321_v20  ;;  %v4405_v63 = vpop.f32.mrf.mxu1  ;;  %24129 = vst [vmem:[#allocation6_spill] sm:$0xff] %v21673_v37 }
 0x21e   : > { %19806 = vmatpush1.msk.msra.mxu1 %vm247_vm1, %v8320_v49  ;;  %v4416_v47 = vadd.f32 %v4405_v63, %v4062_v19 }
 0x21f   : > { %v8314_v24 = vpop.permute.xlu1 %8313  ;;  %19807 = vmatmul.mubr.msk.f32.vlgmr.msra.gmra.mxu1 %vm243_vm2, %v19801_v50  ;;  %v8312_v61 = vpop.permute.xlu0 %8311 }
 0x220   : > { %v8323_v62 = vsel %vm24099_vm14, %v8310_v32, %v8312_v61  ;;  %8622 = vmatprep.mubr.f32.mxu1 %v24100_v3  ;;  %v8324_v49 = vsel %vm24099_vm14, %v8312_v61, %v8314_v24  ;;  %v21683_v32 = vpop.f32.mrf.mxu1 }
 0x221   : > { %19808 = vmatprep.subr.msk.mxu0 %vm247_vm1, %v8323_v62  ;;  %24130 = vst [vmem:[#allocation7_spill] sm:$0xff] %v21683_v32 }
 0x222   : > { %19809 = vmatpush1.msk.msra.mxu0 %vm247_vm1, %v8322_v15 }
 0x223   : > { %v8656_v6 = vpop.permute.xlu1 %8655  ;;  %19810 = vmatmul.mubr.msk.f32.vlgmr.msra.gmra.mxu0 %vm243_vm2, %v19801_v50  ;;  %v8316_v19 = vpop.permute.xlu0 %8315 }
 0x224   : > { %v8325_v41 = vsel %vm24099_vm14, %v8314_v24, %v8316_v19  ;;  %8763 = vmatprep.mubr.f32.mxu0 %v24100_v3  ;;  %v4546_v20 = vpop.f32.mrf.mxu0  ;;  %v19814_v24 = vld [vmem:[%s24076_s2 + $0x60] sm:$0xf]  ;;  %vm9025_vm14 = vcmask 146432  }
 0x225   : > { %19811 = vmatprep.subr.msk.mxu1 %vm247_vm1, %v8325_v41  ;;  %v4764_v63 = vadd.f32 %v4546_v20, %v4410_v55 }
 0x226   : > { %19812 = vmatpush1.msk.msra.mxu1 %vm247_vm1, %v8324_v49  ;;  %v21694_v55 = vpop.f32.mrf.mxu0 }
 0x227   : > { %v8654_v15 = vpop.permute.xlu1 %8653  ;;  %19813 = vmatmul.mubr.msk.f32.vlgmr.msra.gmra.mxu1 %vm243_vm2, %v19801_v50  ;;  %v8658_v16 = vpop.permute.xlu0 %8657  ;;  %24131 = vst [vmem:[#allocation8_spill] sm:$0xff] %v21694_v55 }
 0x228   : > { %v8672_v62 = vsel %vm24102_vm15, %v8654_v15, %v8656_v6  ;;  %v8673_v19 = vsel %vm24102_vm15, %v8656_v6, %v8658_v16  ;;  %8834 = vmatprep.mubr.f32.mxu1 %v24100_v3 }
 0x229   : > { %19815 = vmatprep.subr.msk.mxu0 %vm247_vm1, %v8673_v19  ;;  %v4617_v61 = vpop.f32.mrf.mxu1 }
 0x22a   : > { %19816 = vmatpush1.msk.msra.mxu0 %vm247_vm1, %v8672_v62  ;;  %v4766_v41 = vadd.f32 %v4617_v61, %v4412_v44 }
 0x22b   : > { %v8662_v50 = vpop.permute.xlu1 %8661  ;;  %19817 = vmatmul.mubr.msk.f32.vlgmr.msra.gmra.mxu0 %vm243_vm2, %v19814_v24  ;;  %v8660_v20 = vpop.permute.xlu0 %8659 }
 0x22c   : > { %v8674_v6 = vsel %vm24102_vm15, %v8658_v16, %v8660_v20  ;;  %v8675_v49 = vsel %vm24102_vm15, %v8660_v20, %v8662_v50  ;;  %8905 = vmatprep.mubr.f32.mxu0 %v24100_v3  ;;  %v21702_v19 = vpop.f32.mrf.mxu1 }
 0x22d   : > { %19818 = vmatprep.subr.msk.mxu1 %vm247_vm1, %v8675_v49  ;;  %v4688_v15 = vpop.f32.mrf.mxu0  ;;  %24132 = vst [vmem:[#allocation9_spill] sm:$0xff] %v21702_v19 }
 0x22e   : > { %19819 = vmatpush1.msk.msra.mxu1 %vm247_vm1, %v8674_v6  ;;  %v4768_v55 = vadd.f32 %v4688_v15, %v4414_v11 }
 0x22f   : > { %v8666_v62 = vpop.permute.xlu1 %8665  ;;  %19820 = vmatmul.mubr.msk.f32.vlgmr.msra.gmra.mxu1 %vm243_vm2, %v19814_v24  ;;  %v8664_v44 = vpop.permute.xlu0 %8663 }
 0x230   : > { %v8676_v61 = vsel %vm24102_vm15, %v8662_v50, %v8664_v44  ;;  %v8677_v16 = vsel %vm24102_vm15, %v8664_v44, %v8666_v62  ;;  %8976 = vmatprep.mubr.f32.mxu1 %v24100_v3  ;;  %v21709_v20 = vpop.f32.mrf.mxu0 }
 0x231   : > { %24133 = vst [vmem:[#allocation10_spill] sm:$0xff] %v21709_v20  ;;  %19821 = vmatprep.subr.msk.mxu0 %vm247_vm1, %v8677_v16  ;;  %v4759_v49 = vpop.f32.mrf.mxu1 }
 0x232   : > { %19822 = vmatpush1.msk.msra.mxu0 %vm247_vm1, %v8676_v61  ;;  %v4770_v19 = vadd.f32 %v4759_v49, %v4416_v47  ;;  %v4871_v6 = vpop.f32.mrf.mxu0 }
 0x233   : > { %v8670_v11 = vpop.permute.xlu1 %8669  ;;  %19823 = vmatmul.mubr.msk.f32.vlgmr.msra.gmra.mxu0 %vm243_vm2, %v19814_v24  ;;  %v8668_v15 = vpop.permute.xlu0 %8667  ;;  %v5089_v32 = vadd.f32 %v4871_v6, %v4764_v63 }
 0x234   : > { %v8678_v50 = vsel %vm24102_vm15, %v8666_v62, %v8668_v15  ;;  %v8679_v44 = vsel %vm24102_vm15, %v8668_v15, %v8670_v11  ;;  %9117 = vmatprep.mubr.f32.mxu0 %v24100_v3  ;;  %v21717_v37 = vpop.f32.mrf.mxu1  ;;  %v21719_v20 = vpop.f32.mrf.mxu0  ;;  %vm9379_vm15 = vcmask 138240  }
 0x235   : > { %24134 = vst [vmem:[#allocation11_spill] sm:$0xff] %v21717_v37  ;;  %24135 = vst [vmem:[#allocation12_spill] sm:$0xff] %v21719_v20  ;;  %19824 = vmatprep.subr.msk.mxu1 %vm247_vm1, %v8679_v44 }
 0x236   : > { %19825 = vmatpush1.msk.msra.mxu1 %vm247_vm1, %v8678_v50  ;;  %v4942_v47 = vpop.f32.mrf.mxu1 }
 0x237   : > { %v9012_v61 = vpop.permute.xlu1 %9011  ;;  %19826 = vmatmul.mubr.msk.f32.vlgmr.msra.gmra.mxu1 %vm243_vm2, %v19814_v24  ;;  %v9010_v63 = vpop.permute.xlu0 %9009  ;;  %v5091_v16 = vadd.f32 %v4942_v47, %v4766_v41  ;;  %v19827_v24 = vld [vmem:[%s24076_s2 + $0x64] sm:$0xf] }
 0x238   : > { %v9027_v62 = vsel %vm9025_vm14, %v9010_v63, %v9012_v61  ;;  %9188 = vmatprep.mubr.f32.mxu1 %v24100_v3  ;;  %v5013_v49 = vpop.f32.mrf.mxu0  ;;  %v21726_v6 = vpop.f32.mrf.mxu1 }
 0x239   : > { %24136 = vst [vmem:[#allocation13_spill] sm:$0xff] %v21726_v6  ;;  %19828 = vmatprep.subr.msk.mxu0 %vm247_vm1, %v9027_v62  ;;  %v5093_v11 = vadd.f32 %v5013_v49, %v4768_v55  ;;  %v24139_v49 = vmov 0.0  }
 0x23a   : > { %v21729_v15 = vpop.f32.mrf.mxu0 }
 0x23b   : > { %24137 = vst [vmem:[#allocation14_spill] sm:$0xff] %v21729_v15  ;;  %v9014_v44 = vpop.permute.xlu1 %9013  ;;  %v9008_v50 = vpop.permute.xlu0 %9007 }
 0x23c   : > { %v9026_v41 = vsel %vm9025_vm14, %v9008_v50, %v9010_v63  ;;  %v5084_v47 = vpop.f32.mrf.mxu1  ;;  %v9028_v63 = vsel %vm9025_vm14, %v9012_v61, %v9014_v44 }
 0x23d   : > { %19829 = vmatpush1.msk.msra.mxu0 %vm247_vm1, %v9026_v41  ;;  %v5095_v3 = vadd.f32 %v5084_v47, %v4770_v19 }
 0x23e   : > { %19830 = vmatmul.mubr.msk.f32.vlgmr.msra.gmra.mxu0 %vm243_vm2, %v19827_v24  ;;  %v5225_v6 = vpop.f32.mrf.mxu0  ;;  %v21737_v20 = vpop.f32.mrf.mxu1 }
 0x23f   : > { %24138 = vst [vmem:[#allocation15_spill] sm:$0xff] %v21737_v20  ;;  %v9018_v55 = vpop.permute.xlu1 %9017  ;;  %v9016_v62 = vpop.permute.xlu0 %9015  ;;  %9259 = vmatprep.mubr.f32.mxu0 %v24139_v49  ;;  %v5443_v15 = vadd.f32 %v5225_v6, %v5089_v32 }
 0x240   : > { %v9029_v37 = vsel %vm9025_vm14, %v9014_v44, %v9016_v62  ;;  %v21741_v52 = vpop.f32.mrf.mxu0  ;;  %v5296_v45 = vpop.f32.mrf.mxu1 }
 0x241   : > { %24140 = vst [vmem:[#allocation16_spill] sm:$0xff] %v21741_v52  ;;  %19831 = vmatprep.subr.msk.mxu1 %vm247_vm1, %v9029_v37  ;;  %v5445_v19 = vadd.f32 %v5296_v45, %v5091_v16  ;;  %v9030_v37 = vsel %vm9025_vm14, %v9016_v62, %v9018_v55 }
 0x242   : > { %19832 = vmatpush1.msk.msra.mxu1 %vm247_vm1, %v9028_v63  ;;  %v5367_v50 = vpop.f32.mrf.mxu0  ;;  %v21746_v41 = vpop.f32.mrf.mxu1 }
 0x243   : > { %v9022_v47 = vpop.permute.xlu1 %9021  ;;  %19833 = vmatmul.mubr.msk.f32.vlgmr.msra.gmra.mxu1 %vm243_vm2, %v19827_v24  ;;  %v9020_v20 = vpop.permute.xlu0 %9019  ;;  %v5447_v32 = vadd.f32 %v5367_v50, %v5093_v11 }
 0x244   : > { %v9031_v6 = vsel %vm9025_vm14, %v9018_v55, %v9020_v20  ;;  %9330 = vmatprep.mubr.f32.mxu1 %v24139_v49  ;;  %v21751_v52 = vpop.f32.mrf.mxu0  ;;  %v5438_v61 = vpop.f32.mrf.mxu1  ;;  %v9032_v50 = vsel %vm9025_vm14, %v9020_v20, %v9022_v47  ;;  %v19840_v20 = vld [vmem:[%s24076_s2 + $0x68] sm:$0xf] }
 0x245   : > { %19834 = vmatprep.subr.msk.mxu0 %vm247_vm1, %v9031_v6  ;;  %v5449_v45 = vadd.f32 %v5438_v61, %v5095_v3 }
 0x246   : > { %19835 = vmatpush1.msk.msra.mxu0 %vm247_vm1, %v9030_v37  ;;  %v21764_v3 = vpop.f32.mrf.mxu1 }
 0x247   : > { %v9364_v16 = vpop.permute.xlu1 %9363  ;;  %19836 = vmatmul.mubr.msk.f32.vlgmr.msra.gmra.mxu0 %vm243_vm2, %v19827_v24  ;;  %v9024_v44 = vpop.permute.xlu0 %9023 }
 0x248   : > { %v9033_v11 = vsel %vm9025_vm14, %v9022_v47, %v9024_v44  ;;  %9471 = vmatprep.mubr.f32.mxu0 %v24139_v49  ;;  %v5579_v63 = vpop.f32.mrf.mxu0 }
 0x249   : > { %19837 = vmatprep.subr.msk.mxu1 %vm247_vm1, %v9033_v11  ;;  %v21761_v55 = vadd.f32 %v5579_v63, %v5443_v15 }
 0x24a   : > { %19838 = vmatpush1.msk.msra.mxu1 %vm247_vm1, %v9032_v50  ;;  %v21775_v15 = vpop.f32.mrf.mxu0 }
 0x24b   : > { %24141 = vst [vmem:[#allocation17_spill] sm:$0xff] %v21761_v55  ;;  %v9362_v62 = vpop.permute.xlu1 %9361  ;;  %19839 = vmatmul.mubr.msk.f32.vlgmr.msra.gmra.mxu1 %vm243_vm2, %v19827_v24  ;;  %v9366_v6 = vpop.permute.xlu0 %9365 }
 0x24c   : > { %v9380_v61 = vsel %vm9379_vm15, %v9362_v62, %v9364_v16  ;;  %v9381_v37 = vsel %vm9379_vm15, %v9364_v16, %v9366_v6  ;;  %9542 = vmatprep.mubr.f32.mxu1 %v24139_v49 }
 0x24d   : > { %19841 = vmatprep.subr.msk.mxu0 %vm247_vm1, %v9381_v37 }
 0x24e   : > { %19842 = vmatpush1.msk.msra.mxu0 %vm247_vm1, %v9380_v61  ;;  %v5650_v47 = vpop.f32.mrf.mxu1 }
 0x24f   : > { %v9370_v44 = vpop.permute.xlu1 %9369  ;;  %19843 = vmatmul.mubr.msk.f32.vlgmr.msra.gmra.mxu0 %vm243_vm2, %v19840_v20  ;;  %v9368_v24 = vpop.permute.xlu0 %9367  ;;  %v21778_v11 = vadd.f32 %v5650_v47, %v5445_v19 }
 0x250   : > { %v9382_v16 = vsel %vm9379_vm15, %v9366_v6, %v9368_v24  ;;  %v9383_v63 = vsel %vm9379_vm15, %v9368_v24, %v9370_v44  ;;  %9613 = vmatprep.mubr.f32.mxu0 %v24139_v49  ;;  %v21785_v62 = vpop.f32.mrf.mxu1 }
 0x251   : > { %24142 = vst [vmem:[#allocation18_spill] sm:$0xff] %v21778_v11  ;;  %19844 = vmatprep.subr.msk.mxu1 %vm247_vm1, %v9383_v63  ;;  %24143 = vst [vmem:[#allocation19_spill] sm:$0xff] %v21785_v62 }
 0x252   : > { %19845 = vmatpush1.msk.msra.mxu1 %vm247_vm1, %v9382_v16  ;;  %v5721_v50 = vpop.f32.mrf.mxu0 }
 0x253   : > { %v9374_v61 = vpop.permute.xlu1 %9373  ;;  %19846 = vmatmul.mubr.msk.f32.vlgmr.msra.gmra.mxu1 %vm243_vm2, %v19840_v20  ;;  %v9372_v37 = vpop.permute.xlu0 %9371  ;;  %v5801_v55 = vadd.f32 %v5721_v50, %v5447_v32 }
 0x254   : > { %v9384_v19 = vsel %vm9379_vm15, %v9370_v44, %v9372_v37  ;;  %v9385_v6 = vsel %vm9379_vm15, %v9372_v37, %v9374_v61  ;;  %9684 = vmatprep.mubr.f32.mxu1 %v24139_v49  ;;  %v21795_v62 = vpop.f32.mrf.mxu0 }
 0x255   : > { %19847 = vmatprep.subr.msk.mxu0 %vm247_vm1, %v9385_v6 }
 0x256   : > { %19848 = vmatpush1.msk.msra.mxu0 %vm247_vm1, %v9384_v19  ;;  %v5792_v47 = vpop.f32.mrf.mxu1 }
 0x257   : > { %v9378_v24 = vpop.permute.xlu1 %9377  ;;  %19849 = vmatmul.mubr.msk.f32.vlgmr.msra.gmra.mxu0 %vm243_vm2, %v19840_v20  ;;  %v9376_v16 = vpop.permute.xlu0 %9375  ;;  %v5803_v63 = vadd.f32 %v5792_v47, %v5449_v45 }
 0x258   : > { %v9386_v11 = vsel %vm9379_vm15, %v9374_v61, %v9376_v16  ;;  %v9387_v32 = vsel %vm9379_vm15, %v9376_v16, %v9378_v24  ;;  %9985 = vmatprep.mubr.f32.mxu0 %v24139_v49  ;;  %v21804_v50 = vpop.f32.mrf.mxu1 }
 0x259   : > { %19850 = vmatprep.subr.msk.mxu1 %vm247_vm1, %v9387_v32 }
 0x25a   : > { %19851 = vmatpush1.msk.msra.mxu1 %vm247_vm1, %v9386_v11  ;;  %v21802_v44 = vpop.f32.mrf.mxu0 }
 0x25b   : > { %19852 = vmatmul.mubr.msk.f32.vlgmr.msra.gmra.mxu1 %vm243_vm2, %v19840_v20 }
 0x25c   : > { %10056 = vmatprep.mubr.f32.mxu1 %v24139_v49  ;;  %v21807_v45 = vpop.f32.mrf.mxu0 }
 0x25d   : > { %24144 = vst [vmem:[#allocation20_spill] sm:$0xff] %v21807_v45 }
 0x25e   : > { %v21809_v61 = vpop.f32.mrf.mxu1 }
 0x25f   : > { %24145 = vst [vmem:[#allocation21_spill] sm:$0xff] %v21809_v61 }
 0x260   : > { %v21813_v6 = vpop.f32.mrf.mxu1 }
 0x262   : > { %v6075_v37 = vpop.f32.mrf.mxu0 }
 0x263   : > { %v21811_v19 = vadd.f32 %v6075_v37, %v5801_v55 }
 0x264   : > { %v21817_v11 = vpop.f32.mrf.mxu0 }
 0x265   : > { %24146 = vst [vmem:[#allocation22_spill] sm:$0xff] %v21811_v19 }
 0x266   : > { %v6146_v47 = vpop.f32.mrf.mxu1 }
 0x267   : > { %v21815_v24 = vadd.f32 %v6146_v47, %v5803_v63 }
 0x268   : > { %v21821_v16 = vpop.f32.mrf.mxu1 }
 0x269   : > { %24147 = vst [vmem:[#allocation23_spill] sm:$0xff] %v21815_v24 }
 0x26c   : > { %v21819_v20 = vpop.f32.mrf.mxu0 }
 0x26d   : > { %24148 = vst [vmem:[#allocation24_spill] sm:$0xff] %v21819_v20 }
 0x26e   : > { %v21823_v32 = vpop.f32.mrf.mxu0 }
 0x26f   : > { %24149 = vst [vmem:[#allocation25_spill] sm:$0xff] %v21823_v32 }
 0x272   : > { %v21825_v49 = vpop.f32.mrf.mxu1 }
 0x273   : > { %24150 = vst [vmem:[#allocation26_spill] sm:$0xff] %v21825_v49 }
 0x274   : > { %v21829_v61 = vpop.f32.mrf.mxu1 }
 0x275   : > { %24152 = vst [vmem:[#allocation28_spill] sm:$0xff] %v21829_v61 }
 0x276   : > { %v21827_v45 = vpop.f32.mrf.mxu0 }
 0x277   : > { %24151 = vst [vmem:[#allocation27_spill] sm:$0xff] %v21827_v45 }
 0x278   : > { %v21831_v55 = vpop.f32.mrf.mxu0 }
 0x279   : > { %24153 = vst [vmem:[#allocation29_spill] sm:$0xff] %v21831_v55 }
 0x27a   : > { %v21833_v37 = vpop.f32.mrf.mxu1 }
 0x27b   : > { %24154 = vst [vmem:[#allocation30_spill] sm:$0xff] %v21833_v37 }
 0x27c   : > { %v21837_v47 = vpop.f32.mrf.mxu1 }
 0x27e   : > { %v21835_v63 = vpop.f32.mrf.mxu0 }
 0x27f   : > { %24155 = vst [vmem:[#allocation31_spill] sm:$0xff] %v21835_v63 }
 0x280   : > { %v21839_v24 = vpop.f32.mrf.mxu0 }
 0x281   : > { %24156 = vst [vmem:[#allocation32_spill] sm:$0xff] %v21839_v24  ;;  %v663_v24 = vadd.f32 %v21094_v43, %v21064_v4 }
 0x282   : > { %v21841_v19 = vpop.f32.mrf.mxu1 }
 0x283   : > { %24157 = vst [vmem:[#allocation33_spill] sm:$0xff] %v21841_v19 }
 0x284   : > { %v21845_v32 = vpop.f32.mrf.mxu1 }
 0x286   : > { %v21843_v20 = vpop.f32.mrf.mxu0 }
 0x287   : > { %24158 = vst [vmem:[#allocation34_spill] sm:$0xff] %v21843_v20  ;;  %v734_v20 = vadd.f32 %v21101_v51, %v21073_v7 }
 0x288   : > { %v21847_v49 = vpop.f32.mrf.mxu0 }
 0x289   : > { %24159 = vst [vmem:[#allocation35_spill] sm:$0xff] %v21847_v49  ;;  %v805_v49 = vadd.f32 %v21111_v54, %v21078_v28 }
 0x28a   : > { %v21849_v45 = vpop.f32.mrf.mxu1 }
 0x28b   : > { %24160 = vst [vmem:[#allocation36_spill] sm:$0xff] %v21849_v45  ;;  %v1229_v7 = vadd.f32 %v21183_v26, %v805_v49 }
 0x28c   : > { %v21853_v55 = vpop.f32.mrf.mxu1 }
 0x28d   : > { %24162 = vst [vmem:[#allocation38_spill] sm:$0xff] %v21853_v55  ;;  %v876_v55 = vadd.f32 %v21135_v10, %v21089_v40  ;;  %v1583_v40 = vadd.f32 %v21255_v0, %v1229_v7 }
 0x28f   : > { %v1231_v51 = vadd.f32 %v21199_v39, %v876_v55  ;;  %v1937_v39 = vadd.f32 %v21317_v53, %v1583_v40 }
 0x290   : > { %v21851_v61 = vpop.f32.mrf.mxu0 }
 0x291   : > { %24161 = vst [vmem:[#allocation37_spill] sm:$0xff] %v21851_v61 }
 0x292   : > { %v21855_v37 = vpop.f32.mrf.mxu0 }
 0x293   : > { %24163 = vst [vmem:[#allocation39_spill] sm:$0xff] %v21855_v37  ;;  %v1225_v37 = vadd.f32 %v21148_v13, %v663_v24 }
 0x295   : > { %v1579_v28 = vadd.f32 %v21213_v48, %v1225_v37 }
 0x296   : > { %v21857_v63 = vpop.f32.mrf.mxu1 }
 0x297   : > { %24164 = vst [vmem:[#allocation40_spill] sm:$0xff] %v21857_v63  ;;  %v1227_v63 = vadd.f32 %v21166_v2, %v734_v20  ;;  %v1585_v2 = vadd.f32 %v21270_v22, %v1231_v51  ;;  %v1933_v26 = vadd.f32 %v21284_v30, %v1579_v28  ;;  %v2291_v22 = vadd.f32 %v21397_v46, %v1937_v39 }
 0x298   : > { %v21867_v45 = vpop.f32.mrf.mxu1 }
 0x299   : > { %v1581_v54 = vadd.f32 %v21230_v57, %v1227_v63  ;;  %v1939_v57 = vadd.f32 %v21333_v25, %v1585_v2  ;;  %v2287_v0 = vadd.f32 %v21352_v29, %v1933_v26  ;;  %v2645_v25 = vadd.f32 %v21457_v35, %v2291_v22 }
 0x29a   : > { %v21863_v19 = vpop.f32.mrf.mxu0 }
 0x29b   : > { %24165 = vst [vmem:[#allocation41_spill] sm:$0xff] %v21863_v19  ;;  %v1935_v49 = vadd.f32 %v21301_v36, %v1581_v54  ;;  %v2293_v36 = vadd.f32 %v21416_v60, %v1939_v57  ;;  %v2641_v53 = vadd.f32 %v21435_v5, %v2287_v0  ;;  %v2999_v60 = vadd.f32 %v21518_v58, %v2645_v25 }
 0x29c   : > { %v21873_v61 = vpop.f32.mrf.mxu0 }
 0x29d   : > { %v2289_v20 = vadd.f32 %v21369_v21, %v1935_v49  ;;  %v2647_v51 = vadd.f32 %v21470_v56, %v2293_v36  ;;  %v2995_v46 = vadd.f32 %v21481_v14, %v2641_v53  ;;  %v3353_v56 = vadd.f32 %v21572_v34, %v2999_v60  ;;  %v24167_v36 = vld [vmem:[#allocation4_spill] sm:$0xff]  ;;  %v24168_v53 = vld [vmem:[#allocation5_spill] sm:$0xff] }
 0x29e   : > { %v21875_v4 = vpop.f32.mrf.mxu1  ;;  %v24171_v60 = vld [vmem:[#allocation8_spill] sm:$0xff] }
 0x29f   : > { %v2643_v63 = vadd.f32 %v21445_v27, %v2289_v20  ;;  %v3001_v27 = vadd.f32 %v21535_v59, %v2647_v51  ;;  %v3349_v35 = vadd.f32 %v21545_v1, %v2995_v46  ;;  %v3707_v59 = vadd.f32 %v21603_v42, %v3353_v56  ;;  %v24173_v56 = vld [vmem:[#allocation10_spill] sm:$0xff] }
 0x2a0   : > { %v21883_v19 = vpop.f32.mrf.mxu1 }
 0x2a1   : > { %v2997_v28 = vadd.f32 %v21495_v23, %v2643_v63  ;;  %v3355_v23 = vadd.f32 %v21578_v38, %v3001_v27  ;;  %v3703_v58 = vadd.f32 %v21585_v17, %v3349_v35  ;;  %v4061_v38 = vadd.f32 %v21640_v8, %v3707_v59  ;;  %v24172_v27 = vld [vmem:[#allocation9_spill] sm:$0xff]  ;;  %v24174_v59 = vld [vmem:[#allocation11_spill] sm:$0xff] }
 0x2a2   : > { %v21878_v43 = vpop.f32.mrf.mxu0 }
 0x2a3   : > { %v3351_v40 = vadd.f32 %v21559_v33, %v2997_v28  ;;  %v3709_v57 = vadd.f32 %v21613_v12, %v3355_v23  ;;  %v4057_v34 = vadd.f32 %v21624_v9, %v3703_v58  ;;  %v24169_v12 = vld [vmem:[#allocation6_spill] sm:$0xff] }
 0x2a4   : > { %v21886_v10 = vpop.f32.mrf.mxu0  ;;  %v4415_v9 = vadd.f32 %v24169_v12, %v4061_v38  ;;  %v24176_v38 = vld [vmem:[#allocation13_spill] sm:$0xff] }
 0x2a5   : > { %v3705_v49 = vadd.f32 %v21592_v31, %v3351_v40  ;;  %v24166_v31 = vld [vmem:[#allocation3_spill] sm:$0xff]  ;;  %v4411_v42 = vadd.f32 %v24167_v36, %v4057_v34  ;;  %v24175_v34 = vld [vmem:[#allocation12_spill] sm:$0xff] }
 0x2a6   : > { %v21888_v13 = vpop.f32.mrf.mxu1  ;;  %v4063_v22 = vadd.f32 %v24166_v31, %v3709_v57  ;;  %v4769_v23 = vadd.f32 %v24173_v56, %v4415_v9 }
 0x2a7   : > { %v4059_v0 = vadd.f32 %v21632_v18, %v3705_v49  ;;  %v24170_v18 = vld [vmem:[#allocation7_spill] sm:$0xff]  ;;  %v4765_v8 = vadd.f32 %v24171_v60, %v4411_v42 }
 0x2a8   : > { %v21896_v48 = vpop.f32.mrf.mxu1  ;;  %v4417_v28 = vadd.f32 %v24170_v18, %v4063_v22  ;;  %v24178_v22 = vld [vmem:[#allocation14_spill] sm:$0xff]  ;;  %v24181_v18 = vld [vmem:[#allocation16_spill] sm:$0xff] }
 0x2a9   : > { %v21893_v24 = vpop.f32.mrf.mxu0  ;;  %v4413_v63 = vadd.f32 %v24168_v53, %v4059_v0  ;;  %v5090_v0 = vadd.f32 %v24175_v34, %v4765_v8  ;;  %v5094_v42 = vadd.f32 %v24178_v22, %v4769_v23  ;;  %v24187_v22 = vld [vmem:[#allocation17_spill] sm:$0xff] }
 0x2aa   : > { %v4771_v57 = vadd.f32 %v24174_v59, %v4417_v28  ;;  %v24184_v59 = vld [vmem:[#allocation19_spill] sm:$0xff] }
 0x2ab   : > { %v21901_v55 = vpop.f32.mrf.mxu0  ;;  %v4767_v35 = vadd.f32 %v24172_v27, %v4413_v63  ;;  %v24180_v63 = vld [vmem:[#allocation15_spill] sm:$0xff]  ;;  %v5444_v9 = vadd.f32 %v24181_v18, %v5090_v0  ;;  %v5448_v28 = vadd.f32 %v21751_v52, %v5094_v42  ;;  %v6151_v52 = vadd.f32 %v21802_v44, %v24187_v22  ;;  %v24194_v22 = vld [vmem:[#allocation26_spill] sm:$0xff] }
 0x2ac   : > { %v5096_v12 = vadd.f32 %v24180_v63, %v4771_v57  ;;  %v9700_v57 = vlaneseq  ;;  %v24188_v63 = vld [vmem:[#allocation20_spill] sm:$0xff] }
 0x2ad   : > { %v5092_v31 = vadd.f32 %v24176_v38, %v4767_v35  ;;  %v5798_v23 = vadd.f32 %v21775_v15, %v5444_v9  ;;  %v5802_v0 = vadd.f32 %v21795_v62, %v5448_v28  ;;  %v24190_v15 = vld [vmem:[#allocation21_spill] sm:$0xff] }
 0x2ae   : > { %v5450_v35 = vadd.f32 %v21764_v3, %v5096_v12  ;;  %v24189_v12 = vld [vmem:[#allocation18_spill] sm:$0xff]  ;;  %v9701_v62 = vshrl.u32 %v9700_v57, 7 }
 0x2af   : > { %v21903_v37 = vpop.f32.mrf.mxu1  ;;  %v5446_v60 = vadd.f32 %v21746_v41, %v5092_v31  ;;  %v6152_v3 = vadd.f32 %v24188_v63, %v5798_v23  ;;  %v6153_v18 = vadd.f32 %v24190_v15, %v24189_v12  ;;  %v24196_v63 = vld [vmem:[#allocation22_spill] sm:$0xff]  ;;  %v24198_v15 = vld [vmem:[#allocation29_spill] sm:$0xff] }
 0x2b0   : > { %v5804_v42 = vadd.f32 %v21804_v50, %v5450_v35  ;;  %v24195_v35 = vld [vmem:[#allocation28_spill] sm:$0xff] }
 0x2b1   : > { %v21911_v7 = vpop.f32.mrf.mxu1  ;;  %v5800_v34 = vadd.f32 %v24184_v59, %v5446_v60  ;;  %v6156_v60 = vadd.f32 %v21817_v11, %v5802_v0  ;;  %v6507_v50 = vadd.f32 %v24194_v22, %v6153_v18  ;;  %v24200_v11 = vld [vmem:[#allocation23_spill] sm:$0xff]  ;;  %v24201_v0 = vld [vmem:[#allocation30_spill] sm:$0xff] }
 0x2b2   : > { %v6158_v28 = vadd.f32 %v21821_v16, %v5804_v42  ;;  %v6511_v57 = vadd.f32 %v24201_v0, %v24200_v11  ;;  %v24202_v42 = vld [vmem:[#allocation31_spill] sm:$0xff]  ;;  %v24208_v11 = vld [vmem:[#allocation37_spill] sm:$0xff] }
 0x2b3   : > { %v6154_v9 = vadd.f32 %v21813_v6, %v5800_v34  ;;  %v6510_v6 = vadd.f32 %v24198_v15, %v6156_v60  ;;  %v9710_v60 = vsub.s32 2, %v9701_v62  ;;  %v24207_v15 = vld [vmem:[#allocation34_spill] sm:$0xff] }
 0x2b4   : > { %v6512_v16 = vadd.f32 %v21837_v47, %v6158_v28  ;;  %v198_v47 = vld [vmem:[%s24074_s0] sm:$0xff]  ;;  %v24209_v28 = vld [vmem:[#allocation35_spill] sm:$0xff] }
 0x2b5   : > { %v6508_v23 = vadd.f32 %v24195_v35, %v6154_v9  ;;  %v9706_v35 = vsub.s32 1, %v9701_v62 }
 0x2b6   : > { %v21906_v30 = vpop.f32.mrf.mxu0 }
 0x2b8   : > { %v21914_v29 = vpop.f32.mrf.mxu0 }
 0x2bb   : > { %v21916_v21 = vpop.f32.mrf.mxu1 }
 0x2bd   : > { %v21924_v5 = vpop.f32.mrf.mxu1 }
 0x2bf   : > { %v21921_v54 = vpop.f32.mrf.mxu0 }
 0x2c1   : > { %v21929_v2 = vpop.f32.mrf.mxu0 }
 0x2c3   : > { %v21931_v26 = vpop.f32.mrf.mxu1 }
 0x2c5   : > { %v21939_v39 = vpop.f32.mrf.mxu1 }
 0x2c7   : > { %v21934_v14 = vpop.f32.mrf.mxu0 }
 0x2c9   : > { %v21942_v1 = vpop.f32.mrf.mxu0 }
 0x2cb   : > { %v21944_v33 = vpop.f32.mrf.mxu1 }
 0x2cd   : > { %v21952_v17 = vpop.f32.mrf.mxu1 }
 0x2cf   : > { %v21949_v20 = vpop.f32.mrf.mxu0 }
 0x2d1   : > { %v21957_v25 = vpop.f32.mrf.mxu0 }
 0x2d3   : > { %v21959_v51 = vpop.f32.mrf.mxu1 }
 0x2d5   : > { %v21967_v40 = vpop.f32.mrf.mxu1 }
 0x2da   : > { %v21962_v46 = vpop.f32.mrf.mxu0 }
 0x2dc   : > { %v21970_v58 = vpop.f32.mrf.mxu0 }
 0x2df   : > { %v21972_v49 = vpop.f32.mrf.mxu1 }
 0x2e1   : > { %v21980_v53 = vpop.f32.mrf.mxu1 }
 0x2e2   : > { %24179 = vst [vmem:[#allocation4_spill] sm:$0xff] %v21980_v53  ;;  %v22049_v53 = vrot.slane %v198_v47, %v9710_v60 }
 0x2e3   : > { %v21977_v36 = vpop.f32.mrf.mxu0 }
 0x2e4   : > { %24177 = vst [vmem:[#allocation3_spill] sm:$0xff] %v21977_v36  ;;  %v24212_v36 = vld [vmem:[#allocation39_spill] sm:$0xff]  ;;  %24216 = vst [vmem:[#allocation16_spill] sm:$0xff] %v22049_v53 }
 0x2e5   : > { %v21985_v27 = vpop.f32.mrf.mxu0 }
 0x2e6   : > { %24182 = vst [vmem:[#allocation5_spill] sm:$0xff] %v21985_v27  ;;  %v24197_v27 = vld [vmem:[#allocation27_spill] sm:$0xff] }
 0x2e7   : > { %v21987_v56 = vpop.f32.mrf.mxu1  ;;  %v6509_v12 = vadd.f32 %v24197_v27, %v24196_v63  ;;  %v9702_v27 = vsub.s32 0, %v9701_v62  ;;  %v6862_v63 = vadd.f32 %v21845_v32, %v6508_v23 }
 0x2e8   : > { %24183 = vst [vmem:[#allocation6_spill] sm:$0xff] %v21987_v56  ;;  %v24193_v56 = vld [vmem:[#allocation25_spill] sm:$0xff] }
 0x2e9   : > { %v21995_v38 = vpop.f32.mrf.mxu1  ;;  %v6506_v44 = vadd.f32 %v24193_v56, %v6152_v3  ;;  %v24204_v3 = vld [vmem:[#allocation33_spill] sm:$0xff] }
 0x2ea   : > { %24185 = vst [vmem:[#allocation7_spill] sm:$0xff] %v21995_v38  ;;  %v6861_v18 = vadd.f32 %v24204_v3, %v6507_v50  ;;  %v24210_v50 = vld [vmem:[#allocation36_spill] sm:$0xff]  ;;  %v9718_v3 = vsub.s32 4, %v9701_v62 }
 0x2eb   : > { %v21990_v8 = vpop.f32.mrf.mxu0 }
 0x2ed   : > { %v21998_v41 = vpop.f32.mrf.mxu0 }
 0x2ef   : > { %v22000_v31 = vpop.f32.mrf.mxu1 }
 0x2f0   : > { %24186 = vst [vmem:[#allocation8_spill] sm:$0xff] %v22000_v31  ;;  %v24192_v31 = vld [vmem:[#allocation24_spill] sm:$0xff] }
 0x2f1   : > { %v6505_v38 = vadd.f32 %v24192_v31, %v6151_v52  ;;  %v22020_v34 = vpop.f32.mrf.mxu1  ;;  %v24203_v52 = vld [vmem:[#allocation32_spill] sm:$0xff] }
 0x2f2   : > { %24199 = vst [vmem:[#allocation10_spill] sm:$0xff] %v22020_v34  ;;  %v6860_v56 = vadd.f32 %v24203_v52, %v6506_v44  ;;  %v6864_v44 = vadd.f32 %v24209_v28, %v6510_v6  ;;  %v9730_v6 = vsub.s32 7, %v9701_v62 }
 0x2f3   : > { %v22010_v59 = vpop.f32.mrf.mxu0  ;;  %v6859_v31 = vadd.f32 %v24202_v42, %v6505_v38  ;;  %v9714_v38 = vsub.s32 3, %v9701_v62  ;;  %v6865_v42 = vadd.f32 %v24210_v50, %v6511_v57  ;;  %v24217_v57 = vld [vmem:[#allocation40_spill] sm:$0xff] }
 0x2f4   : > { %24191 = vst [vmem:[#allocation9_spill] sm:$0xff] %v22010_v59  ;;  %v6863_v59 = vadd.f32 %v24207_v15, %v6509_v12  ;;  %v7214_v32 = vadd.f32 %v24212_v36, %v6860_v56  ;;  %v9726_v12 = vsub.s32 6, %v9701_v62  ;;  %v22045_v15 = vrot.slane %v198_v47, %v9702_v27  ;;  %v24219_v36 = vld [vmem:[#allocation41_spill] sm:$0xff] }
 0x2f5   : > { %v22028_v22 = vpop.f32.mrf.mxu0  ;;  %v7213_v0 = vadd.f32 %v24208_v11, %v6859_v31  ;;  %v22047_v11 = vrot.slane %v198_v47, %v9706_v35  ;;  %v7215_v28 = vadd.f32 %v24217_v57, %v6861_v18 }
 0x2f6   : > { %24205 = vst [vmem:[#allocation11_spill] sm:$0xff] %v22028_v22  ;;  %v24211_v22 = vld [vmem:[#allocation38_spill] sm:$0xff]  ;;  %24214 = vst [vmem:[#allocation14_spill] sm:$0xff] %v22045_v15  ;;  %v7568_v50 = vadd.f32 %v21886_v10, %v7214_v32  ;;  %v7217_v56 = vadd.f32 %v24219_v36, %v6863_v59  ;;  %v22065_v60 = vrot.slane %v198_v47, %v9726_v12  ;;  %v24225_v12 = vld [vmem:[#allocation3_spill] sm:$0xff] }
 0x2f7   : > { %v22030_v9 = vpop.f32.mrf.mxu1  ;;  %v6866_v34 = vadd.f32 %v24211_v22, %v6512_v16  ;;  %v7567_v23 = vadd.f32 %v21878_v43, %v7213_v0  ;;  %24215 = vst [vmem:[#allocation15_spill] sm:$0xff] %v22047_v11  ;;  %v22054_v22 = vrot.slane %v198_v47, %v9714_v38  ;;  %v7216_v43 = vadd.f32 %v21867_v45, %v6862_v63 }
 0x2f8   : > { %24206 = vst [vmem:[#allocation12_spill] sm:$0xff] %v22030_v9  ;;  %v9722_v9 = vsub.s32 5, %v9701_v62  ;;  %v7218_v62 = vadd.f32 %v21873_v61, %v6864_v44  ;;  %v7922_v18 = vadd.f32 %v21914_v29, %v7568_v50  ;;  %24222 = vst [vmem:[#allocation18_spill] sm:$0xff] %v22065_v60  ;;  %v7569_v59 = vadd.f32 %v21888_v13, %v7215_v28  ;;  %v24228_v50 = vld [vmem:[#allocation7_spill] sm:$0xff] }
 0x2f9   : > { %v22043_v31 = vpop.f32.mrf.mxu1  ;;  %v7921_v16 = vadd.f32 %v21906_v30, %v7567_v23  ;;  %24218 = vst [vmem:[#allocation19_spill] sm:$0xff] %v22054_v22  ;;  %v7219_v30 = vadd.f32 %v21875_v4, %v6865_v42  ;;  %v7220_v45 = vadd.f32 %v21883_v19, %v6866_v34  ;;  %v22070_v38 = vrot.slane %v198_v47, %v9730_v6  ;;  %v24224_v23 = vld [vmem:[#allocation4_spill] sm:$0xff]  ;;  %v24230_v36 = vld [vmem:[#allocation10_spill] sm:$0xff] }
 0x2fa   : > { %24213 = vst [vmem:[#allocation13_spill] sm:$0xff] %v22043_v31  ;;  %v22058_v31 = vrot.slane %v198_v47, %v9718_v3  ;;  %v22060_v35 = vrot.slane %v198_v47, %v9722_v9  ;;  %v7570_v9 = vadd.f32 %v21896_v48, %v7216_v43  ;;  %v7571_v3 = vadd.f32 %v21893_v24, %v7217_v56 }
 0x2fb   : > { %v8275_v10 = vadd.f32 %v21934_v14, %v7921_v16  ;;  %24223 = vst [vmem:[#allocation21_spill] sm:$0xff] %v22070_v38  ;;  %v8276_v61 = vadd.f32 %v21942_v1, %v7922_v18  ;;  %v7572_v14 = vadd.f32 %v21901_v55, %v7218_v62  ;;  %v7573_v44 = vadd.f32 %v21903_v37, %v7219_v30  ;;  %v24229_v16 = vld [vmem:[#allocation8_spill] sm:$0xff]  ;;  %v24231_v18 = vld [vmem:[#allocation9_spill] sm:$0xff] }
 0x2fc   : > { %24220 = vst [vmem:[#allocation17_spill] sm:$0xff] %v22058_v31  ;;  %24221 = vst [vmem:[#allocation20_spill] sm:$0xff] %v22060_v35  ;;  %v7574_v4 = vadd.f32 %v21911_v7, %v7220_v45  ;;  %v7923_v19 = vadd.f32 %v21916_v21, %v7569_v59  ;;  %v7924_v34 = vadd.f32 %v21924_v5, %v7570_v9 }
 0x2fd   : > { %v8629_v29 = vadd.f32 %v21962_v46, %v8275_v10  ;;  %v7925_v47 = vadd.f32 %v21921_v54, %v7571_v3  ;;  %v8630_v48 = vadd.f32 %v21970_v58, %v8276_v61  ;;  %v7926_v1 = vadd.f32 %v21929_v2, %v7572_v14  ;;  %v24232_v30 = vld [vmem:[#allocation11_spill] sm:$0xff] }
 0x2fe   : > { %v9119_v52 = vpop.f32.mrf.mxu0  ;;  %v7927_v46 = vadd.f32 %v21931_v26, %v7573_v44  ;;  %v7928_v55 = vadd.f32 %v21939_v39, %v7574_v4  ;;  %v8277_v37 = vadd.f32 %v21944_v33, %v7923_v19  ;;  %v8278_v21 = vadd.f32 %v21952_v17, %v7924_v34 }
 0x2ff   : > { %v8983_v24 = vadd.f32 %v21990_v8, %v8629_v29  ;;  %v8279_v5 = vadd.f32 %v21949_v20, %v7925_v47  ;;  %v8984_v54 = vadd.f32 %v21998_v41, %v8630_v48  ;;  %v8280_v58 = vadd.f32 %v21957_v25, %v7926_v1  ;;  %v24226_v20 = vld [vmem:[#allocation5_spill] sm:$0xff]  ;;  %v24227_v41 = vld [vmem:[#allocation6_spill] sm:$0xff]  ;;  %v24233_v59 = vld [vmem:[#allocation12_spill] sm:$0xff] }
 0x300   : > { %v9121_v0 = vpop.f32.mrf.mxu0  ;;  %v8281_v8 = vadd.f32 %v21959_v51, %v7927_v46  ;;  %v8282_v2 = vadd.f32 %v21967_v40, %v7928_v55  ;;  %v8631_v26 = vadd.f32 %v21972_v49, %v8277_v37  ;;  %v8632_v33 = vadd.f32 %v24224_v23, %v8278_v21 }
 0x301   : > { %v9337_v32 = vadd.f32 %v9119_v52, %v8983_v24  ;;  %v8633_v6 = vadd.f32 %v24225_v12, %v8279_v5  ;;  %v9338_v57 = vadd.f32 %v9121_v0, %v8984_v54  ;;  %v8634_v28 = vadd.f32 %v24226_v20, %v8280_v58  ;;  %v24234_v19 = vld [vmem:[#allocation13_spill] sm:$0xff] }
 0x302   : > { %v8635_v52 = vadd.f32 %v24227_v41, %v8281_v8  ;;  %v8636_v25 = vadd.f32 %v24228_v50, %v8282_v2  ;;  %v8985_v51 = vadd.f32 %v24229_v16, %v8631_v26  ;;  %v8986_v49 = vadd.f32 %v24230_v36, %v8632_v33 }
 0x303   : > { %v9190_v27 = vpop.f32.mrf.mxu1  ;;  %v8987_v10 = vadd.f32 %v24231_v18, %v8633_v6  ;;  %v8988_v45 = vadd.f32 %v24232_v30, %v8634_v28 }
 0x304   : > { %v8989_v9 = vadd.f32 %v24233_v59, %v8635_v52  ;;  %v9339_v3 = vadd.f32 %v9190_v27, %v8985_v51  ;;  %v8990_v34 = vadd.f32 %v24234_v19, %v8636_v25 }
 0x305   : > { %v9192_v13 = vpop.f32.mrf.mxu1 }
 0x306   : > { %v9340_v29 = vadd.f32 %v9192_v13, %v8986_v49 }
 0x307   : > { %v9261_v63 = vpop.f32.mrf.mxu0 }
 0x308   : > { %v9341_v47 = vadd.f32 %v9261_v63, %v8987_v10 }
 0x309   : > { %v9263_v7 = vpop.f32.mrf.mxu0 }
 0x30a   : > { %v9342_v48 = vadd.f32 %v9263_v7, %v8988_v45 }
 0x30b   : > { %v9332_v42 = vpop.f32.mrf.mxu1 }
 0x30c   : > { %v9343_v2 = vadd.f32 %v9332_v42, %v8989_v9 }
 0x30d   : > { %v9334_v43 = vpop.f32.mrf.mxu1 }
 0x30e   : > { %v9344_v28 = vadd.f32 %v9334_v43, %v8990_v34 }
 0x30f   : > { %v9473_v39 = vpop.f32.mrf.mxu0 }
 0x310   : > { %v22097_v17 = vadd.f32 %v9473_v39, %v9337_v32 }
 0x311   : > { %v9475_v40 = vpop.f32.mrf.mxu0 }
 0x312   : > { %v9740_v56 = vmul.f32 %v22045_v15, %v22097_v17  ;;  %v9766_v0 = vmul.f32 %v22097_v17, %v22097_v17  ;;  %v22108_v62 = vadd.f32 %v9475_v40, %v9338_v57 }
 0x313   : > { %v9544_v61 = vpop.f32.mrf.mxu1 }
 0x314   : > { %v9774_v14 = vmul.f32 %v9766_v0, %v22045_v15  ;;  %v9741_v44 = vmul.f32 %v22047_v11, %v22108_v62  ;;  %v9767_v4 = vmul.f32 %v22108_v62, %v22108_v62  ;;  %v22119_v24 = vadd.f32 %v9544_v61, %v9339_v3 }
 0x315   : > { %v9546_v1 = vpop.f32.mrf.mxu1  ;;  %v9748_v46 = vsel %vm247_vm1, %v9740_v56, 0.0 }
 0x316   : > { %v9749_v27 = vsel %vm247_vm1, %v9741_v44, 0.0  ;;  %v9775_v13 = vmul.f32 %v9767_v4, %v22047_v11  ;;  %v22124_v55 = vadd.f32 %v9546_v1, %v9340_v29  ;;  %v9782_v37 = vsel %vm247_vm1, %v9774_v14, 0.0 }
 0x317   : > { %v9750_v21 = vadd.f32 %v9749_v27, %v9748_v46  ;;  %v9742_v5 = vmul.f32 %v22049_v53, %v22119_v24  ;;  %v9768_v63 = vmul.f32 %v22119_v24, %v22119_v24  ;;  %v9615_v7 = vpop.f32.mrf.mxu0 }
 0x318   : > { %v9783_v54 = vsel %vm247_vm1, %v9775_v13, 0.0  ;;  %v9743_v32 = vmul.f32 %v22054_v22, %v22124_v55  ;;  %v9769_v58 = vmul.f32 %v22124_v55, %v22124_v55  ;;  %v22136_v8 = vadd.f32 %v9615_v7, %v9341_v47 }
 0x319   : > { %v9784_v26 = vadd.f32 %v9783_v54, %v9782_v37  ;;  %v9751_v39 = vsel %vm247_vm1, %v9742_v5, 0.0  ;;  %v9776_v23 = vmul.f32 %v9768_v63, %v22049_v53  ;;  %v9617_v33 = vpop.f32.mrf.mxu0 }
 0x31a   : > { %v9752_v12 = vadd.f32 %v9751_v39, %v9750_v21  ;;  %v9753_v6 = vsel %vm247_vm1, %v9743_v32, 0.0  ;;  %v9777_v57 = vmul.f32 %v9769_v58, %v22054_v22  ;;  %v9744_v20 = vmul.f32 %v22058_v31, %v22136_v8 }
 0x31b   : > { %v9785_v41 = vsel %vm247_vm1, %v9776_v23, 0.0  ;;  %v9770_v42 = vmul.f32 %v22136_v8, %v22136_v8  ;;  %v9696_v52 = vadd.f32 %v9617_v33, %v9342_v48  ;;  %v9686_v50 = vpop.f32.mrf.mxu1 }
 0x31c   : > { %v9786_v25 = vadd.f32 %v9785_v41, %v9784_v26  ;;  %v9754_v16 = vadd.f32 %v9753_v6, %v9752_v12  ;;  %v9787_v51 = vsel %vm247_vm1, %v9777_v57, 0.0  ;;  %v9755_v40 = vsel %vm247_vm1, %v9744_v20, 0.0 }
 0x31d   : > { %v9778_v36 = vmul.f32 %v9770_v42, %v22058_v31  ;;  %v9745_v49 = vmul.f32 %v22060_v35, %v9696_v52  ;;  %v9771_v56 = vmul.f32 %v9696_v52, %v9696_v52  ;;  %v9697_v0 = vadd.f32 %v9686_v50, %v9343_v2  ;;  %v9688_v43 = vpop.f32.mrf.mxu1 }
 0x31e   : > { %v9788_v18 = vadd.f32 %v9787_v51, %v9786_v25  ;;  %v9756_v10 = vadd.f32 %v9755_v40, %v9754_v16  ;;  %v9698_v30 = vadd.f32 %v9688_v43, %v9344_v28 }
 0x31f   : > { %v9789_v45 = vsel %vm247_vm1, %v9778_v36, 0.0  ;;  %v9757_v59 = vsel %vm247_vm1, %v9745_v49, 0.0  ;;  %v9779_v9 = vmul.f32 %v9771_v56, %v22060_v35  ;;  %v9746_v3 = vmul.f32 %v22065_v60, %v9697_v0 }
 0x320   : > { %v9772_v61 = vmul.f32 %v9697_v0, %v9697_v0  ;;  %v9747_v29 = vmul.f32 %v22070_v38, %v9698_v30  ;;  %v9773_v14 = vmul.f32 %v9698_v30, %v9698_v30  ;;  %v9758_v44 = vadd.f32 %v9757_v59, %v9756_v10 }
 0x321   : > { %v9759_v4 = vsel %vm247_vm1, %v9746_v3, 0.0  ;;  %v9790_v19 = vadd.f32 %v9789_v45, %v9788_v18  ;;  %v9791_v34 = vsel %vm247_vm1, %v9779_v9, 0.0 }
 0x322   : > { %v9780_v47 = vmul.f32 %v9772_v61, %v22065_v60  ;;  %v9760_v48 = vadd.f32 %v9759_v4, %v9758_v44  ;;  %v9761_v1 = vsel %vm247_vm1, %v9747_v29, 0.0  ;;  %v9781_v46 = vmul.f32 %v9773_v14, %v22070_v38 }
 0x323   : > { %v9792_v27 = vadd.f32 %v9791_v34, %v9790_v19 }
 0x324   : > { %v9762_v13 = vadd.f32 %v9761_v1, %v9760_v48  ;;  %v9793_v37 = vsel %vm247_vm1, %v9780_v47, 0.0  ;;  %v9795_v21 = vsel %vm247_vm1, %v9781_v46, 0.0 }
 0x325   : > { %v9794_v5 = vadd.f32 %v9793_v37, %v9792_v27 }
 0x326   : > { %9763 = vadd.xlane.f32.xlu0 %v9762_v13 }
 0x327   : > { %v9796_v63 = vadd.f32 %v9795_v21, %v9794_v5 }
 0x329   : > { %9797 = vadd.xlane.f32.xlu1 %v9796_v63 }
 0x3af   : > { %v9764_v7 = vpop.xlane.xlu0 %9763 }
 0x3b0   : > { %v9765_v54 = vmul.f32 0.001953125, %v9764_v7 }
 0x3b2   : > { %v9798_v32 = vpop.xlane.xlu1 %9797  ;;  %v9800_v2 = vmul.f32 %v9765_v54, %v9765_v54  ;;  %v9803_v33 = vsub.f32 %v22097_v17, %v9765_v54  ;;  %v9804_v12 = vsub.f32 %v22108_v62, %v9765_v54  ;;  %v9805_v6 = vsub.f32 %v22119_v24, %v9765_v54 }
 0x3b3   : > { %v9799_v58 = vmul.f32 0.001953125, %v9798_v32  ;;  %v9806_v57 = vsub.f32 %v22124_v55, %v9765_v54  ;;  %v9807_v28 = vsub.f32 %v22136_v8, %v9765_v54  ;;  %v9808_v41 = vsub.f32 %v9696_v52, %v9765_v54 }
 0x3b4   : > { %v9809_v42 = vsub.f32 %v9697_v0, %v9765_v54  ;;  %v9810_v50 = vsub.f32 %v9698_v30, %v9765_v54 }
 0x3b5   : > { %v9801_v26 = vsub.f32 %v9799_v58, %v9800_v2 }
 0x3b7   : > { %v9802_v39 = vmax.f32 %v9801_v26, 0.0 }
 0x3b9   : > { %v9811_v23 = vadd.f32 1e-05, %v9802_v39 }
 0x3bb   : > { %20266 = vrsqrt.f32 %v9811_v23 }
 0x3c8   : > { %v20267_v20 = vpop.eup %20266 }
 0x3c9   : > { %v9813_v25 = vmul.f32 %v20267_v20, %v9803_v33  ;;  %v9814_v16 = vmul.f32 %v20267_v20, %v9804_v12  ;;  %v9815_v51 = vmul.f32 %v20267_v20, %v9805_v6  ;;  %v9816_v40 = vmul.f32 %v20267_v20, %v9806_v57 }
 0x3ca   : > { %v9817_v36 = vmul.f32 %v20267_v20, %v9807_v28  ;;  %v9818_v49 = vmul.f32 %v20267_v20, %v9808_v41  ;;  %v9819_v56 = vmul.f32 %v20267_v20, %v9809_v42  ;;  %v9820_v17 = vmul.f32 %v20267_v20, %v9810_v50 }
 0x3cb   : > { %v9821_v43 = vmax.f32 %v9813_v25, 0.0  ;;  %v9822_v62 = vmax.f32 %v9814_v16, 0.0  ;;  %v9823_v18 = vmax.f32 %v9815_v51, 0.0  ;;  %v9824_v24 = vmax.f32 %v9816_v40, 0.0 }
 0x3cc   : > { %v9825_v10 = vmax.f32 %v9817_v36, 0.0  ;;  %v9826_v55 = vmax.f32 %v9818_v49, 0.0  ;;  %v9827_v45 = vmax.f32 %v9819_v56, 0.0  ;;  %v9828_v59 = vmax.f32 %v9820_v17, 0.0 }
 0x3cd   : > { %v9829_v8 = vmul.f32 %v9821_v43, %v22045_v15  ;;  %v22170_v52 = vmul.f32 %v9822_v62, %v22047_v11  ;;  %v9831_v0 = vmul.f32 %v9823_v18, %v22049_v53  ;;  %v22174_v30 = vmul.f32 %v9824_v24, %v22054_v22 }
 0x3ce   : > { %v9833_v9 = vmul.f32 %v9825_v10, %v22058_v31  ;;  %v22178_v3 = vmul.f32 %v9826_v55, %v22060_v35  ;;  %v9835_v61 = vmul.f32 %v9827_v45, %v22065_v60  ;;  %v22182_v29 = vmul.f32 %v9828_v59, %v22070_v38 }
 0x3cf   : > { %v22185_v14 = vcombine.low %v9829_v8, %v22170_v52  ;;  %v22188_v44 = vcombine.low %v9831_v0, %v22174_v30 }
 0x3d0   : > { %v22191_v4 = vcombine.low %v9833_v9, %v22178_v3  ;;  %v22194_v19 = vcombine.low %v9835_v61, %v22182_v29 }
 0x3d1   : > { %9855 = vst [vmem:[#allocation2 + $0x4] sm:$0xff] %v22185_v14  ;;  %9856 = vst [vmem:[#allocation2 + $0xc] sm:$0xff] %v22188_v44 }
 0x3d2   : > { %9857 = vst [vmem:[#allocation2 + $0x14] sm:$0xff] %v22191_v4  ;;  %9858 = vst [vmem:[#allocation2 + $0x1c] sm:$0xff] %v22194_v19 }
 0x3d8   : > { %v22200_v34 = vld [vmem:[#allocation2 + $0x8] sm:$0xff]  ;;  %v22202_v47 = vld [vmem:[#allocation2] sm:$0xff] }
 0x3d9   : > { %9880 = vrot.lane.b32.xlu1 %v22200_v34, %s20282_s21  ;;  %9876 = vrot.lane.b32.xlu0 %v22202_v47, %s20282_s21  ;;  %v22208_v48 = vld [vmem:[#allocation2 + $0x10] sm:$0xff]  ;;  %v22214_v1 = vld [vmem:[#allocation2 + $0x18] sm:$0xff]  ;;  %v9863_v46 = vld [vmem:[#allocation2 + $0x20] sm:$0xf]  ;;  %v22322_v39 = vcombine.high %v22200_v34, %v22200_v34  ;;  %v22326_v23 = vcombine.high %v22202_v47, %v22202_v47 }
 0x3da   : > { %v10538_v27 = vld [vmem:[#allocation2 + $0x20] sm:$0xf]  ;;  %v22338_v6 = vcombine.high %v22208_v48, %v22208_v48  ;;  %v22350_v28 = vcombine.high %v22214_v1, %v22214_v1 }
 0x3db   : > { %v10891_v13 = vld [vmem:[#allocation2 + $0x20] sm:$0xf] }
 0x3dc   : > { %v11244_v37 = vld [vmem:[#allocation2 + $0x20] sm:$0xf] }
 0x3dd   : > { %10205 = vrot.lane.b32.xlu1 %v22202_v47, %s20284_s22  ;;  %9884 = vrot.lane.b32.xlu0 %v22208_v48, %s20282_s21  ;;  %v11597_v21 = vld [vmem:[#allocation2 + $0x20] sm:$0xf] }
 0x3de   : > { %v11950_v5 = vld [vmem:[#allocation2 + $0x20] sm:$0xf] }
 0x3df   : > { %v12303_v63 = vld [vmem:[#allocation2 + $0x20] sm:$0xf] }
 0x3e0   : > { %v12656_v7 = vld [vmem:[#allocation2 + $0x20] sm:$0xf] }
 0x3e1   : > { %10213 = vrot.lane.b32.xlu1 %v22208_v48, %s20284_s22  ;;  %9888 = vrot.lane.b32.xlu0 %v22214_v1, %s20282_s21  ;;  %v13009_v54 = vld [vmem:[#allocation2 + $0x20] sm:$0xf] }
 0x3e2   : > { %v13362_v32 = vld [vmem:[#allocation2 + $0x20] sm:$0xf] }
 0x3e3   : > { %v13715_v26 = vld [vmem:[#allocation2 + $0x20] sm:$0xf] }
 0x3e5   : > { %10217 = vrot.lane.b32.xlu1 %v22214_v1, %s20284_s22  ;;  %9892 = vrot.lane.b32.xlu0 %v9863_v46, %s20282_s21 }
 0x3e9   : > { %10221 = vrot.lane.b32.xlu1 %v9863_v46, %s20284_s22  ;;  %10209 = vrot.lane.b32.xlu0 %v22200_v34, %s20284_s22 }
 0x3ed   : > { %10554 = vrot.lane.b32.xlu1 %v22200_v34, %s20285_s23  ;;  %10550 = vrot.lane.b32.xlu0 %v22202_v47, %s20285_s23 }
 0x3f1   : > { %10903 = vrot.lane.b32.xlu1 %v22202_v47, %s20286_s24  ;;  %10558 = vrot.lane.b32.xlu0 %v22208_v48, %s20285_s23 }
 0x3f5   : > { %10911 = vrot.lane.b32.xlu1 %v22208_v48, %s20286_s24  ;;  %10562 = vrot.lane.b32.xlu0 %v22214_v1, %s20285_s23 }
 0x3f9   : > { %10915 = vrot.lane.b32.xlu1 %v22214_v1, %s20286_s24  ;;  %10566 = vrot.lane.b32.xlu0 %v10538_v27, %s20285_s23 }
 0x3fd   : > { %10919 = vrot.lane.b32.xlu1 %v10891_v13, %s20286_s24  ;;  %10907 = vrot.lane.b32.xlu0 %v22200_v34, %s20286_s24 }
 0x401   : > { %11260 = vrot.lane.b32.xlu1 %v22200_v34, %s20287_s25  ;;  %11256 = vrot.lane.b32.xlu0 %v22202_v47, %s20287_s25 }
 0x405   : > { %11609 = vrot.lane.b32.xlu1 %v22202_v47, %s20288_s26  ;;  %11264 = vrot.lane.b32.xlu0 %v22208_v48, %s20287_s25 }
 0x409   : > { %11617 = vrot.lane.b32.xlu1 %v22208_v48, %s20288_s26  ;;  %11268 = vrot.lane.b32.xlu0 %v22214_v1, %s20287_s25 }
 0x40d   : > { %11621 = vrot.lane.b32.xlu1 %v22214_v1, %s20288_s26  ;;  %11272 = vrot.lane.b32.xlu0 %v11244_v37, %s20287_s25 }
 0x411   : > { %11625 = vrot.lane.b32.xlu1 %v11597_v21, %s20288_s26  ;;  %11613 = vrot.lane.b32.xlu0 %v22200_v34, %s20288_s26 }
 0x415   : > { %11966 = vrot.lane.b32.xlu1 %v22200_v34, %s20289_s27  ;;  %11962 = vrot.lane.b32.xlu0 %v22202_v47, %s20289_s27 }
 0x419   : > { %12315 = vrot.lane.b32.xlu1 %v22202_v47, %s20290_s30  ;;  %11970 = vrot.lane.b32.xlu0 %v22208_v48, %s20289_s27 }
 0x41d   : > { %12323 = vrot.lane.b32.xlu1 %v22208_v48, %s20290_s30  ;;  %11974 = vrot.lane.b32.xlu0 %v22214_v1, %s20289_s27 }
 0x421   : > { %12327 = vrot.lane.b32.xlu1 %v22214_v1, %s20290_s30  ;;  %11978 = vrot.lane.b32.xlu0 %v11950_v5, %s20289_s27 }
 0x425   : > { %12331 = vrot.lane.b32.xlu1 %v12303_v63, %s20290_s30  ;;  %12319 = vrot.lane.b32.xlu0 %v22200_v34, %s20290_s30 }
 0x429   : > { %12672 = vrot.lane.b32.xlu1 %v22200_v34, %s20291_s7  ;;  %12668 = vrot.lane.b32.xlu0 %v22202_v47, %s20291_s7 }
 0x42d   : > { %13021 = vrot.lane.b32.xlu1 %v22202_v47, %s20292_s10  ;;  %12676 = vrot.lane.b32.xlu0 %v22208_v48, %s20291_s7 }
 0x431   : > { %13029 = vrot.lane.b32.xlu1 %v22208_v48, %s20292_s10  ;;  %12680 = vrot.lane.b32.xlu0 %v22214_v1, %s20291_s7 }
 0x435   : > { %13033 = vrot.lane.b32.xlu1 %v22214_v1, %s20292_s10  ;;  %12684 = vrot.lane.b32.xlu0 %v12656_v7, %s20291_s7 }
 0x439   : > { %13037 = vrot.lane.b32.xlu1 %v13009_v54, %s20292_s10  ;;  %13025 = vrot.lane.b32.xlu0 %v22200_v34, %s20292_s10 }
 0x43d   : > { %13378 = vrot.lane.b32.xlu1 %v22200_v34, %s20293_s13  ;;  %13374 = vrot.lane.b32.xlu0 %v22202_v47, %s20293_s13 }
 0x441   : > { %13727 = vrot.lane.b32.xlu1 %v22202_v47, %s20294_s18  ;;  %13382 = vrot.lane.b32.xlu0 %v22208_v48, %s20293_s13 }
 0x445   : > { %13735 = vrot.lane.b32.xlu1 %v22208_v48, %s20294_s18  ;;  %13386 = vrot.lane.b32.xlu0 %v22214_v1, %s20293_s13 }
 0x449   : > { %13739 = vrot.lane.b32.xlu1 %v22214_v1, %s20294_s18  ;;  %13390 = vrot.lane.b32.xlu0 %v13362_v32, %s20293_s13 }
 0x44b   : > { %v22313_v58 = vpop.permute.xlu1 %9880  ;;  %v22315_v2 = vpop.permute.xlu0 %9876 }
 0x44d   : > { %13743 = vrot.lane.b32.xlu1 %v13715_v26, %s20294_s18  ;;  %13731 = vrot.lane.b32.xlu0 %v22200_v34, %s20294_s18 }
 0x44f   : > { %v22328_v33 = vpop.permute.xlu1 %10205  ;;  %v22330_v12 = vpop.permute.xlu0 %9884 }
 0x451   : > { %9882 = vrot.lane.b32.xlu1 %v22322_v39, %s20282_s21  ;;  %9878 = vrot.lane.b32.xlu0 %v22326_v23, %s20282_s21 }
 0x453   : > { %v22340_v57 = vpop.permute.xlu1 %10213  ;;  %v22342_v20 = vpop.permute.xlu0 %9888 }
 0x455   : > { %9886 = vrot.lane.b32.xlu1 %v22338_v6, %s20282_s21  ;;  %10211 = vrot.lane.b32.xlu0 %v22322_v39, %s20284_s22 }
 0x457   : > { %v22352_v41 = vpop.permute.xlu1 %10217  ;;  %v22354_v42 = vpop.permute.xlu0 %9892 }
 0x459   : > { %9890 = vrot.lane.b32.xlu1 %v22350_v28, %s20282_s21  ;;  %10215 = vrot.lane.b32.xlu0 %v22338_v6, %s20284_s22 }
 0x45b   : > { %v22360_v50 = vpop.permute.xlu1 %10221  ;;  %v22362_v25 = vpop.permute.xlu0 %10209 }
 0x45d   : > { %10207 = vrot.lane.b32.xlu1 %v22326_v23, %s20284_s22  ;;  %10219 = vrot.lane.b32.xlu0 %v22350_v28, %s20284_s22  ;;  %s24308_s22 = smov 18  }
 0x45f   : > { %v22368_v16 = vpop.permute.xlu1 %10554  ;;  %v22370_v51 = vpop.permute.xlu0 %10550 }
 0x461   : > { %10556 = vrot.lane.b32.xlu1 %v22322_v39, %s20285_s23  ;;  %10552 = vrot.lane.b32.xlu0 %v22326_v23, %s20285_s23 }
 0x463   : > { %v22376_v40 = vpop.permute.xlu1 %10903  ;;  %v22378_v36 = vpop.permute.xlu0 %10558 }
 0x465   : > { %10560 = vrot.lane.b32.xlu1 %v22338_v6, %s20285_s23  ;;  %10909 = vrot.lane.b32.xlu0 %v22322_v39, %s20286_s24 }
 0x467   : > { %v22384_v49 = vpop.permute.xlu1 %10911  ;;  %v22386_v56 = vpop.permute.xlu0 %10562 }
 0x469   : > { %10564 = vrot.lane.b32.xlu1 %v22350_v28, %s20285_s23  ;;  %10913 = vrot.lane.b32.xlu0 %v22338_v6, %s20286_s24 }
 0x46b   : > { %v22392_v17 = vpop.permute.xlu1 %10915  ;;  %v22394_v43 = vpop.permute.xlu0 %10566 }
 0x46d   : > { %10905 = vrot.lane.b32.xlu1 %v22326_v23, %s20286_s24  ;;  %10917 = vrot.lane.b32.xlu0 %v22350_v28, %s20286_s24 }
 0x46f   : > { %v22400_v62 = vpop.permute.xlu1 %10919  ;;  %v22402_v18 = vpop.permute.xlu0 %10907 }
 0x471   : > { %11262 = vrot.lane.b32.xlu1 %v22322_v39, %s20287_s25  ;;  %11258 = vrot.lane.b32.xlu0 %v22326_v23, %s20287_s25 }
 0x473   : > { %v22408_v24 = vpop.permute.xlu1 %11260  ;;  %v22410_v10 = vpop.permute.xlu0 %11256 }
 0x475   : > { %11266 = vrot.lane.b32.xlu1 %v22338_v6, %s20287_s25  ;;  %11615 = vrot.lane.b32.xlu0 %v22322_v39, %s20288_s26 }
 0x477   : > { %v22416_v55 = vpop.permute.xlu1 %11609  ;;  %v22418_v45 = vpop.permute.xlu0 %11264 }
 0x479   : > { %11270 = vrot.lane.b32.xlu1 %v22350_v28, %s20287_s25  ;;  %11619 = vrot.lane.b32.xlu0 %v22338_v6, %s20288_s26 }
 0x47b   : > { %v22424_v59 = vpop.permute.xlu1 %11617  ;;  %v22426_v8 = vpop.permute.xlu0 %11268 }
 0x47d   : > { %11611 = vrot.lane.b32.xlu1 %v22326_v23, %s20288_s26  ;;  %11623 = vrot.lane.b32.xlu0 %v22350_v28, %s20288_s26 }
 0x47f   : > { %v22432_v0 = vpop.permute.xlu1 %11621  ;;  %v22434_v9 = vpop.permute.xlu0 %11272 }
 0x481   : > { %11968 = vrot.lane.b32.xlu1 %v22322_v39, %s20289_s27  ;;  %11964 = vrot.lane.b32.xlu0 %v22326_v23, %s20289_s27 }
 0x483   : > { %v22440_v61 = vpop.permute.xlu1 %11625  ;;  %v22442_v46 = vpop.permute.xlu0 %11613 }
 0x485   : > { %11972 = vrot.lane.b32.xlu1 %v22338_v6, %s20289_s27  ;;  %12321 = vrot.lane.b32.xlu0 %v22322_v39, %s20290_s30 }
 0x487   : > { %v22448_v27 = vpop.permute.xlu1 %11966  ;;  %v22450_v13 = vpop.permute.xlu0 %11962 }
 0x489   : > { %11976 = vrot.lane.b32.xlu1 %v22350_v28, %s20289_s27  ;;  %12325 = vrot.lane.b32.xlu0 %v22338_v6, %s20290_s30 }
 0x48b   : > { %v22456_v37 = vpop.permute.xlu1 %12315  ;;  %v22458_v21 = vpop.permute.xlu0 %11970 }
 0x48d   : > { %12317 = vrot.lane.b32.xlu1 %v22326_v23, %s20290_s30  ;;  %12329 = vrot.lane.b32.xlu0 %v22350_v28, %s20290_s30 }
 0x48f   : > { %v22464_v5 = vpop.permute.xlu1 %12323  ;;  %v22466_v63 = vpop.permute.xlu0 %11974 }
 0x491   : > { %12674 = vrot.lane.b32.xlu1 %v22322_v39, %s20291_s7  ;;  %12670 = vrot.lane.b32.xlu0 %v22326_v23, %s20291_s7 }
 0x493   : > { %v22472_v7 = vpop.permute.xlu1 %12327  ;;  %v22474_v54 = vpop.permute.xlu0 %11978 }
 0x495   : > { %12678 = vrot.lane.b32.xlu1 %v22338_v6, %s20291_s7  ;;  %13027 = vrot.lane.b32.xlu0 %v22322_v39, %s20292_s10 }
 0x497   : > { %v22480_v32 = vpop.permute.xlu1 %12331  ;;  %v22482_v26 = vpop.permute.xlu0 %12319 }
 0x499   : > { %12682 = vrot.lane.b32.xlu1 %v22350_v28, %s20291_s7  ;;  %13031 = vrot.lane.b32.xlu0 %v22338_v6, %s20292_s10 }
 0x49b   : > { %v22488_v38 = vpop.permute.xlu1 %12672  ;;  %v22490_v60 = vpop.permute.xlu0 %12668 }
 0x49d   : > { %13023 = vrot.lane.b32.xlu1 %v22326_v23, %s20292_s10  ;;  %13035 = vrot.lane.b32.xlu0 %v22350_v28, %s20292_s10 }
 0x49f   : > { %v22496_v35 = vpop.permute.xlu1 %13021  ;;  %v22498_v31 = vpop.permute.xlu0 %12676 }
 0x4a0   : > { %24235 = vst [vmem:[#allocation24_spill] sm:$0xff] %v22496_v35 }
 0x4a1   : > { %13380 = vrot.lane.b32.xlu1 %v22322_v39, %s20293_s13  ;;  %13376 = vrot.lane.b32.xlu0 %v22326_v23, %s20293_s13 }
 0x4a3   : > { %v22504_v22 = vpop.permute.xlu1 %13029  ;;  %v22506_v53 = vpop.permute.xlu0 %12680 }
 0x4a4   : > { %24236 = vst [vmem:[#allocation25_spill] sm:$0xff] %v22504_v22  ;;  %24237 = vst [vmem:[#allocation26_spill] sm:$0xff] %v22506_v53 }
 0x4a5   : > { %13384 = vrot.lane.b32.xlu1 %v22338_v6, %s20293_s13  ;;  %13733 = vrot.lane.b32.xlu0 %v22322_v39, %s20294_s18 }
 0x4a7   : > { %v22512_v11 = vpop.permute.xlu1 %13033  ;;  %v22514_v15 = vpop.permute.xlu0 %12684 }
 0x4a8   : > { %24238 = vst [vmem:[#allocation28_spill] sm:$0xff] %v22512_v11  ;;  %24239 = vst [vmem:[#allocation22_spill] sm:$0xff] %v22514_v15 }
 0x4a9   : > { %13388 = vrot.lane.b32.xlu1 %v22350_v28, %s20293_s13  ;;  %13737 = vrot.lane.b32.xlu0 %v22338_v6, %s20294_s18 }
 0x4ab   : > { %v22520_v35 = vpop.permute.xlu1 %13037  ;;  %v22522_v22 = vpop.permute.xlu0 %13025 }
 0x4ac   : > { %24240 = vst [vmem:[#allocation27_spill] sm:$0xff] %v22520_v35  ;;  %24241 = vst [vmem:[#allocation29_spill] sm:$0xff] %v22522_v22 }
 0x4ad   : > { %13729 = vrot.lane.b32.xlu1 %v22326_v23, %s20294_s18  ;;  %13741 = vrot.lane.b32.xlu0 %v22350_v28, %s20294_s18  ;;  %s24285_s18 = smov 28  }
 0x4af   : > { %v22528_v53 = vpop.permute.xlu1 %13378  ;;  %v22530_v11 = vpop.permute.xlu0 %13374 }
 0x4b0   : > { %24242 = vst [vmem:[#allocation23_spill] sm:$0xff] %v22528_v53 }
 0x4b1   : > { %14084 = vrot.lane.b32.xlu1 %v22200_v34, %s20295_s29  ;;  %14082 = vrot.lane.b32.xlu0 %v22326_v23, %s20295_s29 }
 0x4b3   : > { %v22536_v15 = vpop.permute.xlu1 %13727  ;;  %v22538_v35 = vpop.permute.xlu0 %13382 }
 0x4b4   : > { %24243 = vst [vmem:[#allocation30_spill] sm:$0xff] %v22536_v15  ;;  %v14068_v15 = vld [vmem:[#allocation2 + $0x20] sm:$0xf] }
 0x4b5   : > { %14086 = vrot.lane.b32.xlu1 %v22322_v39, %s20295_s29  ;;  %14080 = vrot.lane.b32.xlu0 %v22202_v47, %s20295_s29 }
 0x4b7   : > { %v22544_v22 = vpop.permute.xlu1 %13735  ;;  %v22546_v53 = vpop.permute.xlu0 %13386 }
 0x4b9   : > { %14090 = vrot.lane.b32.xlu1 %v22338_v6, %s20295_s29  ;;  %14088 = vrot.lane.b32.xlu0 %v22208_v48, %s20295_s29  ;;  %v22566_v6 = vcombine.low %v22170_v52, %v22170_v52 }
 0x4bb   : > { %v22552_v34 = vpop.permute.xlu1 %13739  ;;  %v22554_v23 = vpop.permute.xlu0 %13390 }
 0x4bc   : > { %24244 = vst [vmem:[#allocation31_spill] sm:$0xff] %v22552_v34 }
 0x4bd   : > { %14094 = vrot.lane.b32.xlu1 %v22350_v28, %s20295_s29  ;;  %14092 = vrot.lane.b32.xlu0 %v22214_v1, %s20295_s29 }
 0x4bf   : > { %v22560_v47 = vpop.permute.xlu1 %13743  ;;  %v22562_v39 = vpop.permute.xlu0 %13731 }
 0x4c0   : > { %24245 = vst [vmem:[#allocation32_spill] sm:$0xff] %v22560_v47 }
 0x4c1   : > { %14760 = vrot.lane.b32.xlu1 %v22566_v6, %s20296_s8  ;;  %14096 = vrot.lane.b32.xlu0 %v14068_v15, %s20295_s29  ;;  %v19853_v15 = vld [vmem:[%s24077_s3 + $0x4] sm:$0xf] }
 0x4c3   : > { %v9883_v48 = vpop.permute.xlu1 %9882  ;;  %v9879_v34 = vpop.permute.xlu0 %9878 }
 0x4c4   : > { %v9896_v28 = vsel %vm234_vm0, %v22313_v58, %v9883_v48  ;;  %v9894_v1 = vsel %vm234_vm0, %v22315_v2, %v9879_v34  ;;  %v9897_v47 = vsel %vm234_vm0, %v9883_v48, %v22330_v12  ;;  %v9895_v52 = vsel %vm234_vm0, %v9879_v34, %v22313_v58 }
 0x4c5   : > { %19857 = vmatprep.subr.msk.mxu1 %vm247_vm1, %v9897_v47  ;;  %14758 = vrot.lane.b32.xlu1 %v22185_v14, %s20296_s8  ;;  %v22592_v34 = vcombine.low %v22174_v30, %v22174_v30 }
 0x4c6   : > { %14762 = vrot.lane.b32.xlu0 %v22188_v44, %s20296_s8  ;;  %19854 = vmatprep.subr.msk.mxu0 %vm247_vm1, %v9895_v52 }
 0x4c7   : > { %19855 = vmatpush1.msk.msra.mxu0 %vm247_vm1, %v9894_v1  ;;  %19858 = vmatpush1.msk.msra.mxu1 %vm247_vm1, %v9896_v28  ;;  %v9887_v2 = vpop.permute.xlu1 %9886  ;;  %v10212_v58 = vpop.permute.xlu0 %10211  ;;  %v22610_v1 = vcombine.low %v22178_v3, %v22178_v3 }
 0x4c8   : > { %v9898_v47 = vsel %vm234_vm0, %v22330_v12, %v9887_v2  ;;  %v9899_v48 = vsel %vm234_vm0, %v9887_v2, %v22342_v20  ;;  %19856 = vmatmul.mubr.msk.f32.vlgmr.msra.gmra.mxu0 %vm243_vm2, %v19853_v15  ;;  %19859 = vmatmul.mubr.msk.f32.vlgmr.msra.gmra.mxu1 %vm243_vm2, %v19853_v15  ;;  %v24246_v12 = vmov 0.0   ;;  %v10226_v3 = vsel %vm566_vm3, %v10212_v58, %v22340_v57 }
 0x4c9   : > { %14766 = vrot.lane.b32.xlu1 %v22191_v4, %s20296_s8  ;;  %19860 = vmatprep.subr.msk.mxu0 %vm247_vm1, %v9899_v48 }
 0x4ca   : > { %14764 = vrot.lane.b32.xlu0 %v22592_v34, %s20296_s8  ;;  %19861 = vmatpush1.msk.msra.mxu0 %vm247_vm1, %v9898_v47  ;;  %v14746_v47 = vld [vmem:[#allocation2 + $0x24] sm:$0xf] }
 0x4cb   : > { %v9891_v30 = vpop.permute.xlu1 %9890  ;;  %v10216_v28 = vpop.permute.xlu0 %10215  ;;  %10127 = vmatprep.mubr.f32.mxu0 %v24246_v12  ;;  %10198 = vmatprep.mubr.f32.mxu1 %v24246_v12 }
 0x4cc   : > { %v9900_v52 = vsel %vm234_vm0, %v22342_v20, %v9891_v30  ;;  %v9901_v2 = vsel %vm234_vm0, %v9891_v30, %v22354_v42  ;;  %19862 = vmatmul.mubr.msk.f32.vlgmr.msra.gmra.mxu0 %vm243_vm2, %v19853_v15  ;;  %v10225_v20 = vsel %vm566_vm3, %v22362_v25, %v10212_v58  ;;  %v22631_v30 = vcombine.low %v22182_v29, %v22182_v29  ;;  %v9864_v29 = vld [vmem:[%s24077_s3] sm:$0xf] }
 0x4cd   : > { %19863 = vmatprep.subr.msk.mxu1 %vm247_vm1, %v9901_v2  ;;  %14770 = vrot.lane.b32.xlu1 %v22194_v19, %s20296_s8  ;;  %vm24258_vm0 = vcmask 7168  }
 0x4ce   : > { %14768 = vrot.lane.b32.xlu0 %v22610_v1, %s20296_s8  ;;  %19864 = vmatpush1.msk.msra.mxu1 %vm247_vm1, %v9900_v52 }
 0x4cf   : > { %19865 = vmatmul.mubr.msk.f32.vlgmr.msra.gmra.mxu1 %vm243_vm2, %v19853_v15  ;;  %v10208_v42 = vpop.permute.xlu1 %10207  ;;  %19869 = vmatprep.subr.msk.mxu1 %vm247_vm1, %v10226_v3  ;;  %v10220_v48 = vpop.permute.xlu0 %10219  ;;  %v10228_v15 = vsel %vm566_vm3, %v10216_v28, %v22352_v41 }
 0x4d0   : > { %v10223_v52 = vsel %vm566_vm3, %v22328_v33, %v10208_v42  ;;  %19870 = vmatpush1.msk.msra.mxu1 %vm247_vm1, %v10225_v20  ;;  %v10224_v2 = vsel %vm566_vm3, %v10208_v42, %v22362_v25  ;;  %v10230_v58 = vsel %vm566_vm3, %v10220_v48, %v22360_v50  ;;  %10314 = vmatprep.mubr.f32.mxu0 %v24246_v12 }
 0x4d1   : > { %14774 = vrot.lane.b32.xlu1 %v14746_v47, %s20296_s8  ;;  %19866 = vmatprep.subr.msk.mxu0 %vm247_vm1, %v10224_v2  ;;  %v10227_v50 = vsel %vm566_vm3, %v22340_v57, %v10216_v28  ;;  %v10229_v3 = vsel %vm566_vm3, %v22352_v41, %v10220_v48  ;;  %v19878_v2 = vld [vmem:[%s24077_s3 + $0x8] sm:$0xf]  ;;  %vm24259_vm3 = vmmov %vm24258_vm0 }
 0x4d2   : > { %14772 = vrot.lane.b32.xlu0 %v22631_v30, %s20296_s8  ;;  %19875 = vmatprep.subr.msk.mxu1 %vm247_vm1, %v10230_v58 }
 0x4d3   : > { %19867 = vmatpush1.msk.msra.mxu0 %vm247_vm1, %v10223_v52  ;;  %v10557_v33 = vpop.permute.xlu1 %10556  ;;  %v10553_v25 = vpop.permute.xlu0 %10552  ;;  %10385 = vmatprep.mubr.f32.mxu1 %v24246_v12 }
 0x4d4   : > { %19868 = vmatmul.mubr.msk.f32.vlgmr.msra.gmra.mxu0 %vm243_vm2, %v9864_v29  ;;  %19871 = vmatmul.mubr.msk.f32.vlgmr.msra.gmra.mxu1 %vm243_vm2, %v9864_v29  ;;  %v10569_v47 = vsel %vm912_vm4, %v10553_v25, %v22368_v16  ;;  %v10571_v57 = vsel %vm912_vm4, %v10557_v33, %v22378_v36  ;;  %v10570_v20 = vsel %vm912_vm4, %v22368_v16, %v10557_v33 }
 0x4d5   : > { %19872 = vmatprep.subr.msk.mxu0 %vm247_vm1, %v10228_v15  ;;  %19876 = vmatpush1.msk.msra.mxu1 %vm247_vm1, %v10229_v3  ;;  %v10568_v42 = vsel %vm912_vm4, %v22370_v51, %v10553_v25 }
 0x4d6   : > { %19873 = vmatpush1.msk.msra.mxu0 %vm247_vm1, %v10227_v50  ;;  %15115 = vrot.lane.b32.xlu1 %v22188_v44, %s20297_s12 }
 0x4d7   : > { %15113 = vrot.lane.b32.xlu0 %v22566_v6, %s20297_s12  ;;  %v10561_v41 = vpop.permute.xlu1 %10560  ;;  %v10910_v28 = vpop.permute.xlu0 %10909  ;;  %19879 = vmatprep.subr.msk.mxu0 %vm247_vm1, %v10569_v47 }
 0x4d8   : > { %19882 = vmatprep.subr.msk.mxu1 %vm247_vm1, %v10571_v57  ;;  %10456 = vmatprep.mubr.f32.mxu0 %v24246_v12  ;;  %v10573_v48 = vsel %vm912_vm4, %v10561_v41, %v22386_v56  ;;  %v10572_v51 = vsel %vm912_vm4, %v22378_v36, %v10561_v41  ;;  %v10924_v36 = vsel %vm1266_vm5, %v10910_v28, %v22384_v49 }
 0x4d9   : > { %10527 = vmatprep.mubr.f32.mxu1 %v24246_v12  ;;  %19874 = vmatmul.mubr.msk.f32.vlgmr.msra.gmra.mxu0 %vm243_vm2, %v9864_v29  ;;  %v10923_v3 = vsel %vm1266_vm5, %v22402_v18, %v10910_v28  ;;  %v15099_v28 = vld [vmem:[#allocation2 + $0x24] sm:$0xf] }
 0x4da   : > { %19877 = vmatmul.mubr.msk.f32.vlgmr.msra.gmra.mxu1 %vm243_vm2, %v9864_v29  ;;  %19880 = vmatpush1.msk.msra.mxu0 %vm247_vm1, %v10568_v42 }
 0x4db   : > { %19883 = vmatpush1.msk.msra.mxu1 %vm247_vm1, %v10570_v20  ;;  %v10565_v52 = vpop.permute.xlu1 %10564  ;;  %v10914_v16 = vpop.permute.xlu0 %10913  ;;  %15117 = vrot.lane.b32.xlu1 %v22592_v34, %s20297_s12 }
 0x4dc   : > { %15111 = vrot.lane.b32.xlu0 %v22185_v14, %s20297_s12  ;;  %19885 = vmatprep.subr.msk.mxu0 %vm247_vm1, %v10573_v48  ;;  %v10575_v58 = vsel %vm912_vm4, %v10565_v52, %v22394_v43  ;;  %v10574_v29 = vsel %vm912_vm4, %v22386_v56, %v10565_v52  ;;  %v10925_v57 = vsel %vm1266_vm5, %v22384_v49, %v10914_v16  ;;  %vm24260_vm4 = vmmov %vm24258_vm0 }
 0x4dd   : > { %10659 = vmatprep.mubr.f32.mxu0 %v24246_v12  ;;  %10730 = vmatprep.mubr.f32.mxu1 %v24246_v12  ;;  %v10926_v41 = vsel %vm1266_vm5, %v10914_v16, %v22392_v17  ;;  %v19904_v16 = vld [vmem:[%s24077_s3 + $0x10] sm:$0xf] }
 0x4de   : > { %19881 = vmatmul.mubr.msk.f32.vlgmr.msra.gmra.mxu0 %vm243_vm2, %v19878_v2  ;;  %19884 = vmatmul.mubr.msk.f32.vlgmr.msra.gmra.mxu1 %vm243_vm2, %v19878_v2 }
 0x4df   : > { %19886 = vmatpush1.msk.msra.mxu0 %vm247_vm1, %v10572_v51  ;;  %v10906_v33 = vpop.permute.xlu1 %10905  ;;  %v10918_v25 = vpop.permute.xlu0 %10917  ;;  %15121 = vrot.lane.b32.xlu1 %v22610_v1, %s20297_s12 }
 0x4e0   : > { %15119 = vrot.lane.b32.xlu0 %v22191_v4, %s20297_s12  ;;  %19888 = vmatprep.subr.msk.mxu1 %vm247_vm1, %v10575_v58  ;;  %v10922_v56 = vsel %vm1266_vm5, %v10906_v33, %v22402_v18  ;;  %v10928_v43 = vsel %vm1266_vm5, %v10918_v25, %v22400_v62  ;;  %v10921_v47 = vsel %vm1266_vm5, %v22376_v40, %v10906_v33  ;;  %v19891_v62 = vld [vmem:[%s24077_s3 + $0xc] sm:$0xf] }
 0x4e1   : > { %10801 = vmatprep.mubr.f32.mxu0 %v24246_v12  ;;  %19889 = vmatpush1.msk.msra.mxu1 %vm247_vm1, %v10574_v29  ;;  %v10927_v20 = vsel %vm1266_vm5, %v22392_v17, %v10918_v25  ;;  %vm24261_vm5 = vmmov %vm24258_vm0 }
 0x4e2   : > { %10872 = vmatprep.mubr.f32.mxu1 %v24246_v12  ;;  %19887 = vmatmul.mubr.msk.f32.vlgmr.msra.gmra.mxu0 %vm243_vm2, %v19878_v2 }
 0x4e3   : > { %19890 = vmatmul.mubr.msk.f32.vlgmr.msra.gmra.mxu1 %vm243_vm2, %v19878_v2  ;;  %v11263_v50 = vpop.permute.xlu1 %11262  ;;  %v11259_v15 = vpop.permute.xlu0 %11258  ;;  %19895 = vmatprep.subr.msk.mxu1 %vm247_vm1, %v10924_v36  ;;  %v15452_v36 = vld [vmem:[#allocation2 + $0x24] sm:$0xf] }
 0x4e4   : > { %15125 = vrot.lane.b32.xlu1 %v22631_v30, %s20297_s12  ;;  %19896 = vmatpush1.msk.msra.mxu1 %vm247_vm1, %v10923_v3  ;;  %v11275_v42 = vsel %vm1620_vm6, %v11259_v15, %v22408_v24  ;;  %v11277_v49 = vsel %vm1620_vm6, %v11263_v50, %v22418_v45  ;;  %v11276_v52 = vsel %vm1620_vm6, %v22408_v24, %v11263_v50  ;;  %v22841_v50 = vld [vmem:[#allocation2 + $0x4] sm:$0xff] }
 0x4e5   : > { %15123 = vrot.lane.b32.xlu0 %v22194_v19, %s20297_s12  ;;  %19892 = vmatprep.subr.msk.mxu0 %vm247_vm1, %v10922_v56  ;;  %v11274_v2 = vsel %vm1620_vm6, %v22410_v10, %v11259_v15  ;;  %v22854_v3 = vcombine.high %v22841_v50, %v22841_v50 }
 0x4e6   : > { %19901 = vmatprep.subr.msk.mxu1 %vm247_vm1, %v10928_v43  ;;  %19893 = vmatpush1.msk.msra.mxu0 %vm247_vm1, %v10921_v47 }
 0x4e7   : > { %11012 = vmatprep.mubr.f32.mxu0 %v24246_v12  ;;  %v11267_v40 = vpop.permute.xlu1 %11266  ;;  %v11616_v18 = vpop.permute.xlu0 %11615  ;;  %11083 = vmatprep.mubr.f32.mxu1 %v24246_v12 }
 0x4e8   : > { %19894 = vmatmul.mubr.msk.f32.vlgmr.msra.gmra.mxu0 %vm243_vm2, %v19891_v62  ;;  %19897 = vmatmul.mubr.msk.f32.vlgmr.msra.gmra.mxu1 %vm243_vm2, %v19891_v62  ;;  %v11278_v10 = vsel %vm1620_vm6, %v22418_v45, %v11267_v40  ;;  %v11630_v45 = vsel %vm1974_vm7, %v11616_v18, %v22424_v59  ;;  %v11629_v33 = vsel %vm1974_vm7, %v22442_v46, %v11616_v18 }
 0x4e9   : > { %19898 = vmatprep.subr.msk.mxu0 %vm247_vm1, %v10926_v41  ;;  %19902 = vmatpush1.msk.msra.mxu1 %vm247_vm1, %v10927_v20 }
 0x4ea   : > { %19899 = vmatpush1.msk.msra.mxu0 %vm247_vm1, %v10925_v57  ;;  %15466 = vrot.lane.b32.xlu1 %v22566_v6, %s20298_s19  ;;  %v11279_v6 = vsel %vm1620_vm6, %v11267_v40, %v22426_v8  ;;  %v22866_v40 = vld [vmem:[#allocation2 + $0xc] sm:$0xff] }
 0x4eb   : > { %15127 = vrot.lane.b32.xlu0 %v15099_v28, %s20297_s12  ;;  %v11271_v17 = vpop.permute.xlu1 %11270  ;;  %v11620_v48 = vpop.permute.xlu0 %11619  ;;  %19905 = vmatprep.subr.msk.mxu0 %vm247_vm1, %v11275_v42  ;;  %v22885_v41 = vcombine.high %v22866_v40, %v22866_v40  ;;  %v22895_v42 = vld [vmem:[#allocation2 + $0x14] sm:$0xff]  ;;  %s20205_s12 = sshll.u32 %s24404_s16, 5 }
 0x4ec   : > { %19908 = vmatprep.subr.msk.mxu1 %vm247_vm1, %v11277_v49  ;;  %11154 = vmatprep.mubr.f32.mxu0 %v24246_v12  ;;  %v11281_v58 = vsel %vm1620_vm6, %v11271_v17, %v22434_v9 }
 0x4ed   : > { %11225 = vmatprep.mubr.f32.mxu1 %v24246_v12  ;;  %19900 = vmatmul.mubr.msk.f32.vlgmr.msra.gmra.mxu0 %vm243_vm2, %v19891_v62 }
 0x4ee   : > { %19903 = vmatmul.mubr.msk.f32.vlgmr.msra.gmra.mxu1 %vm243_vm2, %v19891_v62  ;;  %19906 = vmatpush1.msk.msra.mxu0 %vm247_vm1, %v11274_v2 }
 0x4ef   : > { %19909 = vmatpush1.msk.msra.mxu1 %vm247_vm1, %v11276_v52  ;;  %v11612_v51 = vpop.permute.xlu1 %11611  ;;  %v11624_v24 = vpop.permute.xlu0 %11623  ;;  %15464 = vrot.lane.b32.xlu1 %v22185_v14, %s20298_s19  ;;  %v11280_v14 = vsel %vm1620_vm6, %v22426_v8, %v11271_v17  ;;  %vm24262_vm6 = vmmov %vm24258_vm0 }
 0x4f0   : > { %15468 = vrot.lane.b32.xlu0 %v22188_v44, %s20298_s19  ;;  %19911 = vmatprep.subr.msk.mxu0 %vm247_vm1, %v11279_v6  ;;  %v11634_v8 = vsel %vm1974_vm7, %v11624_v24, %v22440_v61  ;;  %v11627_v25 = vsel %vm1974_vm7, %v22416_v55, %v11612_v51  ;;  %v19917_v61 = vld [vmem:[%s24077_s3 + $0x14] sm:$0xf]  ;;  %v11633_v56 = vsel %vm1974_vm7, %v22432_v0, %v11624_v24 }
 0x4f1   : > { %11365 = vmatprep.mubr.f32.mxu0 %v24246_v12  ;;  %11436 = vmatprep.mubr.f32.mxu1 %v24246_v12 }
 0x4f2   : > { %19907 = vmatmul.mubr.msk.f32.vlgmr.msra.gmra.mxu0 %vm243_vm2, %v19904_v16  ;;  %19910 = vmatmul.mubr.msk.f32.vlgmr.msra.gmra.mxu1 %vm243_vm2, %v19904_v16 }
 0x4f3   : > { %19912 = vmatpush1.msk.msra.mxu0 %vm247_vm1, %v11278_v10  ;;  %v11969_v44 = vpop.permute.xlu1 %11968  ;;  %v11965_v29 = vpop.permute.xlu0 %11964  ;;  %15472 = vrot.lane.b32.xlu1 %v22191_v4, %s20298_s19  ;;  %v11628_v4 = vsel %vm1974_vm7, %v11612_v51, %v22442_v46  ;;  %v22939_v51 = vld [vmem:[#allocation2 + $0x1c] sm:$0xff] }
 0x4f4   : > { %15470 = vrot.lane.b32.xlu0 %v22592_v34, %s20298_s19  ;;  %19914 = vmatprep.subr.msk.mxu1 %vm247_vm1, %v11281_v58  ;;  %v11981_v43 = vsel %vm2328_vm8, %v11965_v29, %v22448_v27  ;;  %v11982_v47 = vsel %vm2328_vm8, %v22448_v27, %v11969_v44  ;;  %v19930_v27 = vld [vmem:[%s24077_s3 + $0x18] sm:$0xf]  ;;  %v22957_v58 = vcombine.high %v22939_v51, %v22939_v51 }
 0x4f5   : > { %11507 = vmatprep.mubr.f32.mxu0 %v24246_v12  ;;  %19915 = vmatpush1.msk.msra.mxu1 %vm247_vm1, %v11280_v14 }
 0x4f6   : > { %11578 = vmatprep.mubr.f32.mxu1 %v24246_v12  ;;  %19913 = vmatmul.mubr.msk.f32.vlgmr.msra.gmra.mxu0 %vm243_vm2, %v19904_v16 }
 0x4f7   : > { %19916 = vmatmul.mubr.msk.f32.vlgmr.msra.gmra.mxu1 %vm243_vm2, %v19904_v16  ;;  %v11973_v9 = vpop.permute.xlu1 %11972  ;;  %v22804_v34 = vpop.permute.xlu0 %12321  ;;  %19921 = vmatprep.subr.msk.mxu1 %vm247_vm1, %v11630_v45  ;;  %v15805_v45 = vld [vmem:[#allocation2 + $0x24] sm:$0xf] }
 0x4f8   : > { %15476 = vrot.lane.b32.xlu1 %v22194_v19, %s20298_s19  ;;  %19922 = vmatpush1.msk.msra.mxu1 %vm247_vm1, %v11629_v33  ;;  %v11631_v19 = vsel %vm1974_vm7, %v22424_v59, %v11620_v48  ;;  %v11983_v59 = vsel %vm2328_vm8, %v11969_v44, %v22458_v21  ;;  %v11985_v62 = vsel %vm2328_vm8, %v11973_v9, %v22466_v63 }
 0x4f9   : > { %15474 = vrot.lane.b32.xlu0 %v22610_v1, %s20298_s19  ;;  %19918 = vmatprep.subr.msk.mxu0 %vm247_vm1, %v11628_v4  ;;  %v11632_v1 = vsel %vm1974_vm7, %v11620_v48, %v22432_v0  ;;  %v11984_v57 = vsel %vm2328_vm8, %v22458_v21, %v11973_v9  ;;  %v12335_v6 = vsel %vm2682_vm9, %v22482_v26, %v22804_v34  ;;  %v24247_v9 = vld [vmem:[#allocation26_spill] sm:$0xff]  ;;  %vm24263_vm7 = vmmov %vm24258_vm0 }
 0x4fa   : > { %19927 = vmatprep.subr.msk.mxu1 %vm247_vm1, %v11634_v8  ;;  %19919 = vmatpush1.msk.msra.mxu0 %vm247_vm1, %v11627_v25 }
 0x4fb   : > { %11718 = vmatprep.mubr.f32.mxu0 %v24246_v12  ;;  %v11977_v55 = vpop.permute.xlu1 %11976  ;;  %v22823_v46 = vpop.permute.xlu0 %12325  ;;  %11789 = vmatprep.mubr.f32.mxu1 %v24246_v12 }
 0x4fc   : > { %19920 = vmatmul.mubr.msk.f32.vlgmr.msra.gmra.mxu0 %vm243_vm2, %v19917_v61  ;;  %19923 = vmatmul.mubr.msk.f32.vlgmr.msra.gmra.mxu1 %vm243_vm2, %v19917_v61  ;;  %v11987_v28 = vsel %vm2328_vm8, %v11977_v55, %v22474_v54  ;;  %v11986_v20 = vsel %vm2328_vm8, %v22466_v63, %v11977_v55  ;;  %v22911_v63 = vcombine.high %v22895_v42, %v22895_v42 }
 0x4fd   : > { %19924 = vmatprep.subr.msk.mxu0 %vm247_vm1, %v11632_v1  ;;  %19928 = vmatpush1.msk.msra.mxu1 %vm247_vm1, %v11633_v56  ;;  %v12336_v54 = vsel %vm2682_vm9, %v22804_v34, %v22464_v5  ;;  %v12337_v24 = vsel %vm2682_vm9, %v22464_v5, %v22823_v46  ;;  %v12338_v10 = vsel %vm2682_vm9, %v22823_v46, %v22472_v7  ;;  %v24250_v56 = vld [vmem:[#allocation29_spill] sm:$0xff] }
 0x4fe   : > { %19925 = vmatpush1.msk.msra.mxu0 %vm247_vm1, %v11631_v19  ;;  %15480 = vrot.lane.b32.xlu1 %v15452_v36, %s20298_s19 }
 0x4ff   : > { %15478 = vrot.lane.b32.xlu0 %v22631_v30, %s20298_s19  ;;  %v12318_v0 = vpop.permute.xlu1 %12317  ;;  %v22846_v15 = vpop.permute.xlu0 %12329  ;;  %19931 = vmatprep.subr.msk.mxu0 %vm247_vm1, %v11981_v43  ;;  %v11980_v30 = vsel %vm2328_vm8, %v22450_v13, %v11965_v29  ;;  %vm24264_vm8 = vmmov %vm24258_vm0 }
 0x500   : > { %19934 = vmatprep.subr.msk.mxu1 %vm247_vm1, %v11983_v59  ;;  %11860 = vmatprep.mubr.f32.mxu0 %v24246_v12  ;;  %v12334_v17 = vsel %vm2682_vm9, %v12318_v0, %v22482_v26  ;;  %v12340_v48 = vsel %vm2682_vm9, %v22846_v15, %v22480_v32  ;;  %v12333_v16 = vsel %vm2682_vm9, %v22456_v37, %v12318_v0  ;;  %v19943_v32 = vld [vmem:[%s24077_s3 + $0x1c] sm:$0xf]  ;;  %v24251_v59 = vld [vmem:[#allocation27_spill] sm:$0xff] }
 0x501   : > { %11931 = vmatprep.mubr.f32.mxu1 %v24246_v12  ;;  %19926 = vmatmul.mubr.msk.f32.vlgmr.msra.gmra.mxu0 %vm243_vm2, %v19917_v61  ;;  %v12339_v14 = vsel %vm2682_vm9, %v22472_v7, %v22846_v15  ;;  %vm24265_vm9 = vmmov %vm24258_vm0 }
 0x502   : > { %19929 = vmatmul.mubr.msk.f32.vlgmr.msra.gmra.mxu1 %vm243_vm2, %v19917_v61  ;;  %19932 = vmatpush1.msk.msra.mxu0 %vm247_vm1, %v11980_v30  ;;  %v24248_v61 = vld [vmem:[#allocation22_spill] sm:$0xff] }
 0x503   : > { %19935 = vmatpush1.msk.msra.mxu1 %vm247_vm1, %v11982_v47  ;;  %v22871_v18 = vpop.permute.xlu1 %12674  ;;  %v22873_v13 = vpop.permute.xlu0 %12670  ;;  %15821 = vrot.lane.b32.xlu1 %v22866_v40, %s20299_s6 }
 0x504   : > { %15819 = vrot.lane.b32.xlu0 %v22854_v3, %s20299_s6  ;;  %19937 = vmatprep.subr.msk.mxu0 %vm247_vm1, %v11985_v62  ;;  %v12687_v5 = vsel %vm3036_vm10, %v22873_v13, %v22488_v38  ;;  %v12689_v44 = vsel %vm3036_vm10, %v22871_v18, %v22498_v31  ;;  %v12688_v4 = vsel %vm3036_vm10, %v22488_v38, %v22871_v18  ;;  %v19956_v38 = vld [vmem:[%s24077_s3 + $0x20] sm:$0xf]  ;;  %v24252_v62 = vld [vmem:[#allocation24_spill] sm:$0xff]  ;;  %v19969_v18 = vld [vmem:[%s24077_s3 + $0x24] sm:$0xf] }
 0x505   : > { %12071 = vmatprep.mubr.f32.mxu0 %v24246_v12  ;;  %12142 = vmatprep.mubr.f32.mxu1 %v24246_v12  ;;  %v12686_v8 = vsel %vm3036_vm10, %v22490_v60, %v22873_v13 }
 0x506   : > { %19933 = vmatmul.mubr.msk.f32.vlgmr.msra.gmra.mxu0 %vm243_vm2, %v19930_v27  ;;  %19936 = vmatmul.mubr.msk.f32.vlgmr.msra.gmra.mxu1 %vm243_vm2, %v19930_v27 }
 0x507   : > { %19938 = vmatpush1.msk.msra.mxu0 %vm247_vm1, %v11984_v57  ;;  %v22897_v21 = vpop.permute.xlu1 %12678  ;;  %v22899_v49 = vpop.permute.xlu0 %13027  ;;  %15823 = vrot.lane.b32.xlu1 %v22885_v41, %s20299_s6 }
 0x508   : > { %15817 = vrot.lane.b32.xlu0 %v22841_v50, %s20299_s6  ;;  %19940 = vmatprep.subr.msk.mxu1 %vm247_vm1, %v11987_v28  ;;  %v12691_v34 = vsel %vm3036_vm10, %v22897_v21, %v24247_v9  ;;  %v12690_v60 = vsel %vm3036_vm10, %v22498_v31, %v22897_v21  ;;  %v24249_v31 = vld [vmem:[#allocation25_spill] sm:$0xff]  ;;  %v13041_v30 = vsel %vm3390_vm11, %v24250_v56, %v22899_v49 }
 0x509   : > { %12213 = vmatprep.mubr.f32.mxu0 %v24246_v12  ;;  %19941 = vmatpush1.msk.msra.mxu1 %vm247_vm1, %v11986_v20  ;;  %v13042_v36 = vsel %vm3390_vm11, %v22899_v49, %v24249_v31  ;;  %v24253_v20 = vld [vmem:[#allocation28_spill] sm:$0xff] }
 0x50a   : > { %12284 = vmatprep.mubr.f32.mxu1 %v24246_v12  ;;  %19939 = vmatmul.mubr.msk.f32.vlgmr.msra.gmra.mxu0 %vm243_vm2, %v19930_v27 }
 0x50b   : > { %19942 = vmatmul.mubr.msk.f32.vlgmr.msra.gmra.mxu1 %vm243_vm2, %v19930_v27  ;;  %v12683_v52 = vpop.permute.xlu1 %12682  ;;  %v22923_v2 = vpop.permute.xlu0 %13031  ;;  %19947 = vmatprep.subr.msk.mxu1 %vm247_vm1, %v12336_v54  ;;  %v24254_v54 = vld [vmem:[#allocation23_spill] sm:$0xff] }
 0x50c   : > { %15827 = vrot.lane.b32.xlu1 %v22911_v63, %s20299_s6  ;;  %19948 = vmatpush1.msk.msra.mxu1 %vm247_vm1, %v12335_v6  ;;  %v12693_v55 = vsel %vm3036_vm10, %v12683_v52, %v24248_v61  ;;  %v12692_v46 = vsel %vm3036_vm10, %v24247_v9, %v12683_v52  ;;  %v13043_v28 = vsel %vm3390_vm11, %v24249_v31, %v22923_v2  ;;  %v16158_v6 = vld [vmem:[#allocation2 + $0x24] sm:$0xf]  ;;  %vm24266_vm10 = vcmask 1039360  }
 0x50d   : > { %15825 = vrot.lane.b32.xlu0 %v22895_v42, %s20299_s6  ;;  %19944 = vmatprep.subr.msk.mxu0 %vm247_vm1, %v12334_v17  ;;  %v13044_v21 = vsel %vm3390_vm11, %v22923_v2, %v24253_v20  ;;  %v24256_v9 = vld [vmem:[#allocation30_spill] sm:$0xff] }
 0x50e   : > { %19953 = vmatprep.subr.msk.mxu1 %vm247_vm1, %v12340_v48  ;;  %19945 = vmatpush1.msk.msra.mxu0 %vm247_vm1, %v12333_v16 }
 0x50f   : > { %12424 = vmatprep.mubr.f32.mxu0 %v24246_v12  ;;  %v13024_v37 = vpop.permute.xlu1 %13023  ;;  %v22945_v26 = vpop.permute.xlu0 %13035  ;;  %12495 = vmatprep.mubr.f32.mxu1 %v24246_v12 }
 0x510   : > { %19946 = vmatmul.mubr.msk.f32.vlgmr.msra.gmra.mxu0 %vm243_vm2, %v19943_v32  ;;  %19949 = vmatmul.mubr.msk.f32.vlgmr.msra.gmra.mxu1 %vm243_vm2, %v19943_v32  ;;  %v13040_v43 = vsel %vm3390_vm11, %v13024_v37, %v24250_v56  ;;  %v13046_v0 = vsel %vm3390_vm11, %v22945_v26, %v24251_v59  ;;  %v13039_v27 = vsel %vm3390_vm11, %v24252_v62, %v13024_v37  ;;  %v20008_v56 = vld [vmem:[%s24077_s3 + $0x30] sm:$0xf] }
 0x511   : > { %19950 = vmatprep.subr.msk.mxu0 %vm247_vm1, %v12338_v10  ;;  %19954 = vmatpush1.msk.msra.mxu1 %vm247_vm1, %v12339_v14  ;;  %v13045_v49 = vsel %vm3390_vm11, %v24253_v20, %v22945_v26  ;;  %v19982_v26 = vld [vmem:[%s24077_s3 + $0x28] sm:$0xf]  ;;  %vm24267_vm11 = vmmov %vm24266_vm10 }
 0x512   : > { %19951 = vmatpush1.msk.msra.mxu0 %vm247_vm1, %v12337_v24  ;;  %15831 = vrot.lane.b32.xlu1 %v22957_v58, %s20299_s6 }
 0x513   : > { %15829 = vrot.lane.b32.xlu0 %v22939_v51, %s20299_s6  ;;  %v22976_v7 = vpop.permute.xlu1 %13380  ;;  %v22978_v29 = vpop.permute.xlu0 %13376  ;;  %19957 = vmatprep.subr.msk.mxu0 %vm247_vm1, %v12687_v5 }
 0x514   : > { %19960 = vmatprep.subr.msk.mxu1 %vm247_vm1, %v12689_v44  ;;  %12566 = vmatprep.mubr.f32.mxu0 %v24246_v12  ;;  %v13393_v17 = vsel %vm3744_vm12, %v22978_v29, %v24254_v54  ;;  %v13395_v48 = vsel %vm3744_vm12, %v22976_v7, %v22538_v35  ;;  %v13394_v16 = vsel %vm3744_vm12, %v24254_v54, %v22976_v7  ;;  %v16864_v54 = vld [vmem:[#allocation2 + $0x24] sm:$0xf] }
 0x515   : > { %12637 = vmatprep.mubr.f32.mxu1 %v24246_v12  ;;  %19952 = vmatmul.mubr.msk.f32.vlgmr.msra.gmra.mxu0 %vm243_vm2, %v19943_v32 }
 0x516   : > { %19955 = vmatmul.mubr.msk.f32.vlgmr.msra.gmra.mxu1 %vm243_vm2, %v19943_v32  ;;  %19958 = vmatpush1.msk.msra.mxu0 %vm247_vm1, %v12686_v8  ;;  %v13392_v32 = vsel %vm3744_vm12, %v22530_v11, %v22978_v29  ;;  %v24255_v29 = vld [vmem:[#allocation32_spill] sm:$0xff] }
 0x517   : > { %19961 = vmatpush1.msk.msra.mxu1 %vm247_vm1, %v12688_v4  ;;  %v23000_v33 = vpop.permute.xlu1 %13384  ;;  %v23002_v25 = vpop.permute.xlu0 %13733  ;;  %16172 = vrot.lane.b32.xlu1 %v22854_v3, %s20300_s14 }
 0x518   : > { %15833 = vrot.lane.b32.xlu0 %v15805_v45, %s20299_s6  ;;  %19963 = vmatprep.subr.msk.mxu0 %vm247_vm1, %v12691_v34  ;;  %v13397_v37 = vsel %vm3744_vm12, %v23000_v33, %v22546_v53  ;;  %v13396_v11 = vsel %vm3744_vm12, %v22538_v35, %v23000_v33  ;;  %v13747_v35 = vsel %vm4098_vm13, %v22562_v39, %v23002_v25  ;;  %v24257_v33 = vld [vmem:[#allocation31_spill] sm:$0xff] }
 0x519   : > { %12777 = vmatprep.mubr.f32.mxu0 %v24246_v12  ;;  %12848 = vmatprep.mubr.f32.mxu1 %v24246_v12 }
 0x51a   : > { %19959 = vmatmul.mubr.msk.f32.vlgmr.msra.gmra.mxu0 %vm243_vm2, %v19956_v38  ;;  %19962 = vmatmul.mubr.msk.f32.vlgmr.msra.gmra.mxu1 %vm243_vm2, %v19956_v38 }
 0x51b   : > { %19964 = vmatpush1.msk.msra.mxu0 %vm247_vm1, %v12690_v60  ;;  %v23020_v19 = vpop.permute.xlu1 %13388  ;;  %v23022_v1 = vpop.permute.xlu0 %13737  ;;  %16170 = vrot.lane.b32.xlu1 %v22841_v50, %s20300_s14 }
 0x51c   : > { %16174 = vrot.lane.b32.xlu0 %v22866_v40, %s20300_s14  ;;  %19966 = vmatprep.subr.msk.mxu1 %vm247_vm1, %v12693_v55  ;;  %v13399_v14 = vsel %vm3744_vm12, %v23020_v19, %v22554_v23  ;;  %v13398_v5 = vsel %vm3744_vm12, %v22546_v53, %v23020_v19  ;;  %v13748_v53 = vsel %vm4098_vm13, %v23002_v25, %v22544_v22  ;;  %vm24268_vm12 = vmmov %vm24266_vm10 }
 0x51d   : > { %12919 = vmatprep.mubr.f32.mxu0 %v24246_v12  ;;  %19967 = vmatpush1.msk.msra.mxu1 %vm247_vm1, %v12692_v46  ;;  %v13750_v60 = vsel %vm4098_vm13, %v23022_v1, %v24257_v33  ;;  %v13749_v46 = vsel %vm4098_vm13, %v22544_v22, %v23022_v1 }
 0x51e   : > { %12990 = vmatprep.mubr.f32.mxu1 %v24246_v12  ;;  %19965 = vmatmul.mubr.msk.f32.vlgmr.msra.gmra.mxu0 %vm243_vm2, %v19956_v38 }
 0x51f   : > { %19968 = vmatmul.mubr.msk.f32.vlgmr.msra.gmra.mxu1 %vm243_vm2, %v19956_v38  ;;  %v23042_v15 = vpop.permute.xlu1 %13729  ;;  %v23044_v47 = vpop.permute.xlu0 %13741  ;;  %19973 = vmatprep.subr.msk.mxu1 %vm247_vm1, %v13042_v36 }
 0x520   : > { %16178 = vrot.lane.b32.xlu1 %v22895_v42, %s20300_s14  ;;  %19974 = vmatpush1.msk.msra.mxu1 %vm247_vm1, %v13041_v30  ;;  %v13746_v23 = vsel %vm4098_vm13, %v23042_v15, %v22562_v39  ;;  %v13752_v45 = vsel %vm4098_vm13, %v23044_v47, %v24255_v29  ;;  %v13745_v34 = vsel %vm4098_vm13, %v24256_v9, %v23042_v15  ;;  %v19995_v39 = vld [vmem:[%s24077_s3 + $0x2c] sm:$0xf] }
 0x521   : > { %16176 = vrot.lane.b32.xlu0 %v22885_v41, %s20300_s14  ;;  %19970 = vmatprep.subr.msk.mxu0 %vm247_vm1, %v13040_v43  ;;  %v13751_v25 = vsel %vm4098_vm13, %v24257_v33, %v23044_v47  ;;  %vm24269_vm13 = vmmov %vm24266_vm10 }
 0x522   : > { %19979 = vmatprep.subr.msk.mxu1 %vm247_vm1, %v13046_v0  ;;  %19971 = vmatpush1.msk.msra.mxu0 %vm247_vm1, %v13039_v27  ;;  %v16511_v0 = vld [vmem:[#allocation2 + $0x24] sm:$0xf] }
 0x523   : > { %13130 = vmatprep.mubr.f32.mxu0 %v24246_v12  ;;  %v23064_v13 = vpop.permute.xlu1 %14084  ;;  %v23066_v57 = vpop.permute.xlu0 %14082  ;;  %13201 = vmatprep.mubr.f32.mxu1 %v24246_v12 }
 0x524   : > { %19972 = vmatmul.mubr.msk.f32.vlgmr.msra.gmra.mxu0 %vm243_vm2, %v19969_v18  ;;  %19975 = vmatmul.mubr.msk.f32.vlgmr.msra.gmra.mxu1 %vm243_vm2, %v19969_v18  ;;  %v14099_v55 = vsel %vm24258_vm0, %v23066_v57, %v23064_v13  ;;  %vm24270_vm0 = vmmov %vm24266_vm10 }
 0x525   : > { %19976 = vmatprep.subr.msk.mxu0 %vm247_vm1, %v13044_v21  ;;  %19980 = vmatpush1.msk.msra.mxu1 %vm247_vm1, %v13045_v49 }
 0x526   : > { %19977 = vmatpush1.msk.msra.mxu0 %vm247_vm1, %v13043_v28  ;;  %16182 = vrot.lane.b32.xlu1 %v22939_v51, %s20300_s14 }
 0x527   : > { %16180 = vrot.lane.b32.xlu0 %v22911_v63, %s20300_s14  ;;  %v23093_v52 = vpop.permute.xlu1 %14086  ;;  %v23095_v2 = vpop.permute.xlu0 %14080  ;;  %19983 = vmatprep.subr.msk.mxu0 %vm247_vm1, %v13393_v17 }
 0x528   : > { %19986 = vmatprep.subr.msk.mxu1 %vm247_vm1, %v13395_v48  ;;  %13272 = vmatprep.mubr.f32.mxu0 %v24246_v12  ;;  %v14098_v22 = vsel %vm24260_vm4, %v23095_v2, %v23066_v57  ;;  %v14100_v59 = vsel %vm24262_vm6, %v23064_v13, %v23093_v52  ;;  %v20021_v13 = vld [vmem:[%s24077_s3 + $0x34] sm:$0xf]  ;;  %vm24272_vm4 = vmmov %vm24270_vm0 }
 0x529   : > { %13343 = vmatprep.mubr.f32.mxu1 %v24246_v12  ;;  %19978 = vmatmul.mubr.msk.f32.vlgmr.msra.gmra.mxu0 %vm243_vm2, %v19969_v18  ;;  %vm24275_vm6 = vmmov %vm24270_vm0 }
 0x52a   : > { %19981 = vmatmul.mubr.msk.f32.vlgmr.msra.gmra.mxu1 %vm243_vm2, %v19969_v18  ;;  %19984 = vmatpush1.msk.msra.mxu0 %vm247_vm1, %v13392_v32  ;;  %v20034_v32 = vld [vmem:[%s24077_s3 + $0x38] sm:$0xf] }
 0x52b   : > { %19987 = vmatpush1.msk.msra.mxu1 %vm247_vm1, %v13394_v16  ;;  %v23117_v24 = vpop.permute.xlu1 %14090  ;;  %v23119_v10 = vpop.permute.xlu0 %14088  ;;  %16186 = vrot.lane.b32.xlu1 %v16158_v6, %s20300_s14 }
 0x52c   : > { %16184 = vrot.lane.b32.xlu0 %v22957_v58, %s20300_s14  ;;  %19989 = vmatprep.subr.msk.mxu0 %vm247_vm1, %v13397_v37  ;;  %v14101_v19 = vsel %vm24259_vm3, %v23093_v52, %v23119_v10  ;;  %v14102_v47 = vsel %vm24263_vm7, %v23119_v10, %v23117_v24  ;;  %vm24271_vm3 = vmmov %vm24270_vm0 }
 0x52d   : > { %13483 = vmatprep.mubr.f32.mxu0 %v24246_v12  ;;  %13554 = vmatprep.mubr.f32.mxu1 %v24246_v12 }
 0x52e   : > { %19985 = vmatmul.mubr.msk.f32.vlgmr.msra.gmra.mxu0 %vm243_vm2, %v19982_v26  ;;  %19988 = vmatmul.mubr.msk.f32.vlgmr.msra.gmra.mxu1 %vm243_vm2, %v19982_v26 }
 0x52f   : > { %19990 = vmatpush1.msk.msra.mxu0 %vm247_vm1, %v13396_v11  ;;  %v23139_v44 = vpop.permute.xlu1 %14094  ;;  %v23141_v7 = vpop.permute.xlu0 %14092  ;;  %16527 = vrot.lane.b32.xlu1 %v22866_v40, %s20301_s5 }
 0x530   : > { %16525 = vrot.lane.b32.xlu0 %v22854_v3, %s20301_s5  ;;  %19992 = vmatprep.subr.msk.mxu1 %vm247_vm1, %v13399_v14  ;;  %v14103_v36 = vsel %vm24261_vm5, %v23117_v24, %v23141_v7  ;;  %v14104_v18 = vsel %vm24265_vm9, %v23141_v7, %v23139_v44  ;;  %vm24274_vm5 = vcmask 973824  }
 0x531   : > { %13696 = vmatprep.mubr.f32.mxu1 %v24246_v12  ;;  %19993 = vmatpush1.msk.msra.mxu1 %vm247_vm1, %v13398_v5  ;;  %vm24276_vm7 = vmmov %vm24274_vm5 }
 0x532   : > { %13625 = vmatprep.mubr.f32.mxu0 %v24246_v12  ;;  %19994 = vmatmul.mubr.msk.f32.vlgmr.msra.gmra.mxu1 %vm243_vm2, %v19982_v26  ;;  %vm24278_vm9 = vmmov %vm24274_vm5 }
 0x533   : > { %19999 = vmatprep.subr.msk.mxu1 %vm247_vm1, %v13748_v53  ;;  %v23165_v4 = vpop.permute.xlu1 %14760  ;;  %v14097_v8 = vpop.permute.xlu0 %14096  ;;  %19991 = vmatmul.mubr.msk.f32.vlgmr.msra.gmra.mxu0 %vm243_vm2, %v19982_v26 }
 0x534   : > { %20000 = vmatpush1.msk.msra.mxu1 %vm247_vm1, %v13747_v35  ;;  %16529 = vrot.lane.b32.xlu1 %v22885_v41, %s20301_s5  ;;  %v14105_v27 = vsel %vm24264_vm8, %v23139_v44, %v14097_v8  ;;  %vm24277_vm8 = vmmov %vm24274_vm5 }
 0x535   : > { %16523 = vrot.lane.b32.xlu0 %v22841_v50, %s20301_s5  ;;  %19996 = vmatprep.subr.msk.mxu0 %vm247_vm1, %v13746_v23  ;;  %v20047_v23 = vld [vmem:[%s24077_s3 + $0x3c] sm:$0xf] }
 0x536   : > { %20005 = vmatprep.subr.msk.mxu1 %vm247_vm1, %v13752_v45  ;;  %19997 = vmatpush1.msk.msra.mxu0 %vm247_vm1, %v13745_v34 }
 0x537   : > { %13907 = vmatprep.mubr.f32.mxu1 %v24246_v12  ;;  %v23183_v38 = vpop.permute.xlu1 %14758  ;;  %13836 = vmatprep.mubr.f32.mxu0 %v24246_v12 }
 0x538   : > { %20001 = vmatmul.mubr.msk.f32.vlgmr.msra.gmra.mxu1 %vm243_vm2, %v19995_v39  ;;  %v23193_v61 = vpop.permute.xlu0 %14762  ;;  %20002 = vmatprep.subr.msk.mxu0 %vm247_vm1, %v13750_v60  ;;  %v14776_v17 = vsel %vm24267_vm11, %v23183_v38, %v23165_v4  ;;  %vm24280_vm11 = vmmov %vm24274_vm5 }
 0x539   : > { %20006 = vmatpush1.msk.msra.mxu1 %vm247_vm1, %v13751_v25  ;;  %19998 = vmatmul.mubr.msk.f32.vlgmr.msra.gmra.mxu0 %vm243_vm2, %v19995_v39  ;;  %v14777_v20 = vsel %vm24266_vm10, %v23165_v4, %v23193_v61  ;;  %vm24279_vm10 = vmmov %vm24274_vm5 }
 0x53a   : > { %16533 = vrot.lane.b32.xlu1 %v22911_v63, %s20301_s5  ;;  %20003 = vmatpush1.msk.msra.mxu0 %vm247_vm1, %v13749_v46  ;;  %v20060_v46 = vld [vmem:[%s24077_s3 + $0x40] sm:$0xf] }
 0x53b   : > { %16531 = vrot.lane.b32.xlu0 %v22895_v42, %s20301_s5  ;;  %v23212_v31 = vpop.permute.xlu1 %14766  ;;  %20009 = vmatprep.subr.msk.mxu0 %vm247_vm1, %v14099_v55 }
 0x53c   : > { %13978 = vmatprep.mubr.f32.mxu0 %v24246_v12  ;;  %v23219_v1 = vpop.permute.xlu0 %14764  ;;  %14049 = vmatprep.mubr.f32.mxu1 %v24246_v12 }
 0x53d   : > { %20012 = vmatprep.subr.msk.mxu1 %vm247_vm1, %v14101_v19  ;;  %20004 = vmatmul.mubr.msk.f32.vlgmr.msra.gmra.mxu0 %vm243_vm2, %v19995_v39  ;;  %v14779_v48 = vsel %vm24268_vm12, %v23219_v1, %v23212_v31  ;;  %v14778_v16 = vsel %vm24270_vm0, %v23193_v61, %v23219_v1  ;;  %vm24281_vm12 = vmmov %vm24274_vm5 }
 0x53e   : > { %16537 = vrot.lane.b32.xlu1 %v22957_v58, %s20301_s5  ;;  %20010 = vmatpush1.msk.msra.mxu0 %vm247_vm1, %v14098_v22  ;;  %vm24283_vm0 = vmmov %vm24274_vm5 }
 0x53f   : > { %16535 = vrot.lane.b32.xlu0 %v22939_v51, %s20301_s5  ;;  %v23235_v43 = vpop.permute.xlu1 %14770  ;;  %20007 = vmatmul.mubr.msk.f32.vlgmr.msra.gmra.mxu1 %vm243_vm2, %v19995_v39  ;;  %v17217_v39 = vld [vmem:[#allocation2 + $0x24] sm:$0xf] }
 0x540   : > { %14189 = vmatprep.mubr.f32.mxu0 %v24246_v12  ;;  %v23242_v15 = vpop.permute.xlu0 %14768  ;;  %20013 = vmatpush1.msk.msra.mxu1 %vm247_vm1, %v14100_v59 }
 0x541   : > { %20015 = vmatprep.subr.msk.mxu0 %vm247_vm1, %v14103_v36  ;;  %20011 = vmatmul.mubr.msk.f32.vlgmr.msra.gmra.mxu0 %vm243_vm2, %v20008_v56  ;;  %v14781_v6 = vsel %vm24269_vm13, %v23242_v15, %v23235_v43  ;;  %v14780_v37 = vsel %vm24271_vm3, %v23212_v31, %v23242_v15  ;;  %vm24282_vm13 = vcmask 965632  }
 0x542   : > { %16878 = vrot.lane.b32.xlu1 %v22854_v3, %s20302_s17  ;;  %14260 = vmatprep.mubr.f32.mxu1 %v24246_v12  ;;  %vm24284_vm3 = vmmov %vm24282_vm13 }
 0x543   : > { %16539 = vrot.lane.b32.xlu0 %v16511_v0, %s20301_s5  ;;  %v14775_v30 = vpop.permute.xlu1 %14774  ;;  %20016 = vmatpush1.msk.msra.mxu0 %vm247_vm1, %v14102_v47  ;;  %v17570_v0 = vld [vmem:[#allocation2 + $0x24] sm:$0xf] }
 0x544   : > { %14331 = vmatprep.mubr.f32.mxu0 %v24246_v12  ;;  %v23256_v62 = vpop.permute.xlu0 %14772  ;;  %20014 = vmatmul.mubr.msk.f32.vlgmr.msra.gmra.mxu1 %vm243_vm2, %v20008_v56 }
 0x545   : > { %20022 = vmatprep.subr.msk.mxu0 %vm247_vm1, %v22854_v3  ;;  %20017 = vmatmul.mubr.msk.f32.vlgmr.msra.gmra.mxu0 %vm243_vm2, %v20008_v56  ;;  %v14783_v26 = vsel %vm24272_vm4, %v23256_v62, %v14775_v30  ;;  %v14782_v14 = vsel %vm24275_vm6, %v23235_v43, %v23256_v62  ;;  %vm24286_vm4 = vmmov %vm24284_vm3 }
 0x546   : > { %16876 = vrot.lane.b32.xlu1 %v22841_v50, %s20302_s17  ;;  %20023 = vmatpush1.msk.msra.mxu0 %vm247_vm1, %v22841_v50  ;;  %vm24288_vm6 = vmmov %vm24284_vm3 }
 0x547   : > { %16880 = vrot.lane.b32.xlu0 %v22866_v40, %s20302_s17  ;;  %20018 = vmatprep.subr.msk.mxu1 %vm247_vm1, %v14105_v27 }
 0x548   : > { %20028 = vmatprep.subr.msk.mxu0 %vm247_vm1, %v22911_v63  ;;  %20019 = vmatpush1.msk.msra.mxu1 %vm247_vm1, %v14104_v18  ;;  %v23281_v57 = vpop.permute.xlu1 %15115  ;;  %v20073_v18 = vld [vmem:[%s24077_s3 + $0x44] sm:$0xf] }
 0x549   : > { %14402 = vmatprep.mubr.f32.mxu1 %v24246_v12  ;;  %v15114_v28 = vpop.permute.xlu0 %15113  ;;  %14514 = vmatprep.mubr.f32.mxu0 %v24246_v12 }
 0x54a   : > { %16884 = vrot.lane.b32.xlu1 %v22895_v42, %s20302_s17  ;;  %20020 = vmatmul.mubr.msk.f32.vlgmr.msra.gmra.mxu1 %vm243_vm2, %v20008_v56  ;;  %v15130_v24 = vsel %vm24274_vm5, %v15114_v28, %v23281_v57  ;;  %vm24287_vm5 = vmmov %vm24284_vm3 }
 0x54b   : > { %16882 = vrot.lane.b32.xlu0 %v22885_v41, %s20302_s17  ;;  %20024 = vmatmul.mubr.msk.f32.vlgmr.msra.gmra.mxu0 %vm243_vm2, %v20021_v13 }
 0x54c   : > { %20025 = vmatprep.subr.msk.mxu1 %vm247_vm1, %v22885_v41  ;;  %20029 = vmatpush1.msk.msra.mxu0 %vm247_vm1, %v22895_v42 }
 0x54d   : > { %20026 = vmatpush1.msk.msra.mxu1 %vm247_vm1, %v22866_v40  ;;  %v15118_v21 = vpop.permute.xlu1 %15117  ;;  %20035 = vmatprep.subr.msk.mxu0 %vm247_vm1, %v14777_v20 }
 0x54e   : > { %16888 = vrot.lane.b32.xlu1 %v22939_v51, %s20302_s17  ;;  %20031 = vmatprep.subr.msk.mxu1 %vm247_vm1, %v22957_v58  ;;  %v15112_v49 = vpop.permute.xlu0 %15111  ;;  %v15131_v29 = vsel %vm24279_vm10, %v23281_v57, %v15118_v21  ;;  %vm24292_vm10 = vcmask 957440  }
 0x54f   : > { %16886 = vrot.lane.b32.xlu0 %v22911_v63, %s20302_s17  ;;  %14585 = vmatprep.mubr.f32.mxu1 %v24246_v12  ;;  %v15129_v5 = vsel %vm24276_vm7, %v15112_v49, %v15114_v28  ;;  %vm24289_vm7 = vmmov %vm24284_vm3 }
 0x550   : > { %14656 = vmatprep.mubr.f32.mxu0 %v24246_v12  ;;  %20027 = vmatmul.mubr.msk.f32.vlgmr.msra.gmra.mxu1 %vm243_vm2, %v20021_v13 }
 0x551   : > { %20030 = vmatmul.mubr.msk.f32.vlgmr.msra.gmra.mxu0 %vm243_vm2, %v20021_v13  ;;  %20032 = vmatpush1.msk.msra.mxu1 %vm247_vm1, %v22939_v51  ;;  %v15122_v52 = vpop.permute.xlu1 %15121 }
 0x552   : > { %20036 = vmatpush1.msk.msra.mxu0 %vm247_vm1, %v14776_v17  ;;  %v15120_v2 = vpop.permute.xlu0 %15119  ;;  %16892 = vrot.lane.b32.xlu1 %v16864_v54, %s20302_s17 }
 0x553   : > { %16890 = vrot.lane.b32.xlu0 %v22957_v58, %s20302_s17  ;;  %20038 = vmatprep.subr.msk.mxu1 %vm247_vm1, %v14779_v48  ;;  %s24273_s17 = smov 29   ;;  %v15132_v44 = vsel %vm24277_vm8, %v15118_v21, %v15120_v2  ;;  %v15133_v9 = vsel %vm24281_vm12, %v15120_v2, %v15122_v52  ;;  %vm24290_vm8 = vmmov %vm24284_vm3 }
 0x554   : > { %14727 = vmatprep.mubr.f32.mxu1 %v24246_v12  ;;  %14867 = vmatprep.mubr.f32.mxu0 %v24246_v12  ;;  %vm24295_vm12 = vmmov %vm24292_vm10 }
 0x555   : > { %20033 = vmatmul.mubr.msk.f32.vlgmr.msra.gmra.mxu1 %vm243_vm2, %v20021_v13  ;;  %20041 = vmatprep.subr.msk.mxu0 %vm247_vm1, %v14781_v6 }
 0x556   : > { %20039 = vmatpush1.msk.msra.mxu1 %vm247_vm1, %v14778_v16  ;;  %17233 = vrot.lane.b32.xlu1 %v22866_v40, %s24273_s17  ;;  %v15126_v10 = vpop.permute.xlu1 %15125 }
 0x557   : > { %17231 = vrot.lane.b32.xlu0 %v22854_v3, %s24273_s17  ;;  %v15124_v11 = vpop.permute.xlu0 %15123  ;;  %20037 = vmatmul.mubr.msk.f32.vlgmr.msra.gmra.mxu0 %vm243_vm2, %v20034_v32 }
 0x558   : > { %14938 = vmatprep.mubr.f32.mxu1 %v24246_v12  ;;  %20042 = vmatpush1.msk.msra.mxu0 %vm247_vm1, %v14780_v37  ;;  %v15134_v35 = vsel %vm24278_vm9, %v15122_v52, %v15124_v11  ;;  %v15135_v38 = vsel %vm24283_vm0, %v15124_v11, %v15126_v10  ;;  %vm24291_vm9 = vmmov %vm24284_vm3  ;;  %v17923_v52 = vld [vmem:[#allocation2 + $0x24] sm:$0xf] }
 0x559   : > { %20044 = vmatprep.subr.msk.mxu1 %vm247_vm1, %v14783_v26  ;;  %20040 = vmatmul.mubr.msk.f32.vlgmr.msra.gmra.mxu1 %vm243_vm2, %v20034_v32  ;;  %vm24297_vm0 = vmmov %vm24292_vm10 }
 0x55a   : > { %20048 = vmatprep.subr.msk.mxu0 %vm247_vm1, %v15130_v24  ;;  %17235 = vrot.lane.b32.xlu1 %v22885_v41, %s24273_s17 }
 0x55b   : > { %17229 = vrot.lane.b32.xlu0 %v22841_v50, %s24273_s17  ;;  %20045 = vmatpush1.msk.msra.mxu1 %vm247_vm1, %v14782_v14 }
 0x55c   : > { %15009 = vmatprep.mubr.f32.mxu0 %v24246_v12  ;;  %15080 = vmatprep.mubr.f32.mxu1 %v24246_v12  ;;  %v15467_v7 = vpop.permute.xlu1 %15466 }
 0x55d   : > { %20043 = vmatmul.mubr.msk.f32.vlgmr.msra.gmra.mxu0 %vm243_vm2, %v20034_v32  ;;  %v15128_v53 = vpop.permute.xlu0 %15127  ;;  %20051 = vmatprep.subr.msk.mxu1 %vm247_vm1, %v15132_v44 }
 0x55e   : > { %20049 = vmatpush1.msk.msra.mxu0 %vm247_vm1, %v15129_v5  ;;  %17239 = vrot.lane.b32.xlu1 %v22911_v63, %s24273_s17  ;;  %v15136_v45 = vsel %vm24280_vm11, %v15126_v10, %v15128_v53  ;;  %vm24294_vm11 = vmmov %vm24292_vm10 }
 0x55f   : > { %17237 = vrot.lane.b32.xlu0 %v22895_v42, %s24273_s17  ;;  %20046 = vmatmul.mubr.msk.f32.vlgmr.msra.gmra.mxu1 %vm243_vm2, %v20034_v32 }
 0x560   : > { %15220 = vmatprep.mubr.f32.mxu0 %v24246_v12  ;;  %20052 = vmatpush1.msk.msra.mxu1 %vm247_vm1, %v15131_v29 }
 0x561   : > { %20054 = vmatprep.subr.msk.mxu0 %vm247_vm1, %v15134_v35  ;;  %20050 = vmatmul.mubr.msk.f32.vlgmr.msra.gmra.mxu0 %vm243_vm2, %v20047_v23  ;;  %v15465_v4 = vpop.permute.xlu1 %15464 }
 0x562   : > { %15291 = vmatprep.mubr.f32.mxu1 %v24246_v12  ;;  %v15469_v8 = vpop.permute.xlu0 %15468  ;;  %17243 = vrot.lane.b32.xlu1 %v22957_v58, %s24273_s17  ;;  %v15482_v33 = vsel %vm24284_vm3, %v15465_v4, %v15467_v7  ;;  %vm24298_vm3 = vmmov %vm24297_vm0 }
 0x563   : > { %17241 = vrot.lane.b32.xlu0 %v22939_v51, %s24273_s17  ;;  %v15483_v34 = vsel %vm24282_vm13, %v15467_v7, %v15469_v8  ;;  %20055 = vmatpush1.msk.msra.mxu0 %vm247_vm1, %v15133_v9  ;;  %vm24296_vm13 = vmmov %vm24292_vm10  ;;  %v23501_v7 = vld [vmem:[%s24077_s3 + $0x48] sm:$0xf] }
 0x564   : > { %20057 = vmatprep.subr.msk.mxu1 %vm247_vm1, %v15136_v45  ;;  %20053 = vmatmul.mubr.msk.f32.vlgmr.msra.gmra.mxu1 %vm243_vm2, %v20047_v23 }
 0x565   : > { %15362 = vmatprep.mubr.f32.mxu0 %v24246_v12  ;;  %20058 = vmatpush1.msk.msra.mxu1 %vm247_vm1, %v15135_v38  ;;  %v15473_v25 = vpop.permute.xlu1 %15472 }
 0x566   : > { %20061 = vmatprep.subr.msk.mxu0 %vm247_vm1, %v15483_v34  ;;  %v15471_v60 = vpop.permute.xlu0 %15470  ;;  %17584 = vrot.lane.b32.xlu1 %v22854_v3, %s24285_s18 }
 0x567   : > { %17245 = vrot.lane.b32.xlu0 %v17217_v39, %s24273_s17  ;;  %v15485_v61 = vsel %vm24286_vm4, %v15471_v60, %v15473_v25  ;;  %20056 = vmatmul.mubr.msk.f32.vlgmr.msra.gmra.mxu0 %vm243_vm2, %v20047_v23  ;;  %v15484_v55 = vsel %vm24287_vm5, %v15469_v8, %v15471_v60  ;;  %vm24300_vm4 = vmmov %vm24297_vm0 }
 0x568   : > { %15433 = vmatprep.mubr.f32.mxu1 %v24246_v12  ;;  %20062 = vmatpush1.msk.msra.mxu0 %vm247_vm1, %v15482_v33  ;;  %vm24301_vm5 = vmmov %vm24297_vm0  ;;  %v18276_v33 = vld [vmem:[#allocation2 + $0x24] sm:$0xf] }
 0x569   : > { %15573 = vmatprep.mubr.f32.mxu0 %v24246_v12  ;;  %20064 = vmatprep.subr.msk.mxu1 %vm247_vm1, %v15485_v61 }
 0x56a   : > { %20059 = vmatmul.mubr.msk.f32.vlgmr.msra.gmra.mxu1 %vm243_vm2, %v20047_v23  ;;  %v15477_v19 = vpop.permute.xlu1 %15476  ;;  %17582 = vrot.lane.b32.xlu1 %v22841_v50, %s24285_s18 }
 0x56b   : > { %17586 = vrot.lane.b32.xlu0 %v22866_v40, %s24285_s18  ;;  %v15475_v31 = vpop.permute.xlu0 %15474  ;;  %20063 = vmatmul.mubr.msk.f32.vlgmr.msra.gmra.mxu0 %vm243_vm2, %v20060_v46 }
 0x56c   : > { %20065 = vmatpush1.msk.msra.mxu1 %vm247_vm1, %v15484_v55  ;;  %v15486_v22 = vsel %vm24288_vm6, %v15473_v25, %v15475_v31  ;;  %v15487_v1 = vsel %vm24289_vm7, %v15475_v31, %v15477_v19  ;;  %15644 = vmatprep.mubr.f32.mxu1 %v24246_v12  ;;  %vm24302_vm6 = vcmask 318464  }
 0x56d   : > { %20067 = vmatprep.subr.msk.mxu0 %vm247_vm1, %v15487_v1  ;;  %15715 = vmatprep.mubr.f32.mxu0 %v24246_v12  ;;  %vm24303_vm7 = vmmov %vm24302_vm6 }
 0x56e   : > { %20066 = vmatmul.mubr.msk.f32.vlgmr.msra.gmra.mxu1 %vm243_vm2, %v20060_v46  ;;  %20068 = vmatpush1.msk.msra.mxu0 %vm247_vm1, %v15486_v22 }
 0x56f   : > { %17590 = vrot.lane.b32.xlu1 %v22895_v42, %s24285_s18  ;;  %17588 = vrot.lane.b32.xlu0 %v22885_v41, %s24285_s18 }
 0x570   : > { %15786 = vmatprep.mubr.f32.mxu1 %v24246_v12  ;;  %v15481_v36 = vpop.permute.xlu1 %15480  ;;  %20069 = vmatmul.mubr.msk.f32.vlgmr.msra.gmra.mxu0 %vm243_vm2, %v20060_v46 }
 0x571   : > { %v15479_v56 = vpop.permute.xlu0 %15478  ;;  %15926 = vmatprep.mubr.f32.mxu0 %v24246_v12 }
 0x572   : > { %v15488_v43 = vsel %vm24290_vm8, %v15477_v19, %v15479_v56  ;;  %v15489_v59 = vsel %vm24291_vm9, %v15479_v56, %v15481_v36  ;;  %vm24304_vm8 = vmmov %vm24302_vm6  ;;  %v23526_v19 = vld [vmem:[#allocation2 + $0x4] sm:$0xff] }
 0x573   : > { %17594 = vrot.lane.b32.xlu1 %v22939_v51, %s24285_s18  ;;  %17592 = vrot.lane.b32.xlu0 %v22911_v63, %s24285_s18  ;;  %vm24305_vm9 = vmmov %vm24302_vm6 }
 0x574   : > { %20070 = vmatprep.subr.msk.mxu1 %vm247_vm1, %v15489_v59  ;;  %v23534_v59 = vcombine.high %v23526_v19, %v23526_v19 }
 0x575   : > { %20071 = vmatpush1.msk.msra.mxu1 %vm247_vm1, %v15488_v43  ;;  %v15822_v15 = vpop.permute.xlu1 %15821 }
 0x576   : > { %20072 = vmatmul.mubr.msk.f32.vlgmr.msra.gmra.mxu1 %vm243_vm2, %v20060_v46  ;;  %v15820_v47 = vpop.permute.xlu0 %15819 }
 0x577   : > { %17598 = vrot.lane.b32.xlu1 %v17570_v0, %s24285_s18  ;;  %17596 = vrot.lane.b32.xlu0 %v22957_v58, %s24285_s18  ;;  %v15836_v30 = vsel %vm24292_vm10, %v15820_v47, %v15822_v15  ;;  %vm24306_vm10 = vmmov %vm24302_vm6 }
 0x578   : > { %20074 = vmatprep.subr.msk.mxu0 %vm247_vm1, %v15836_v30  ;;  %15997 = vmatprep.mubr.f32.mxu1 %v24246_v12 }
 0x579   : > { %v15824_v62 = vpop.permute.xlu1 %15823 }
 0x57a   : > { %v15818_v27 = vpop.permute.xlu0 %15817  ;;  %v15837_v21 = vsel %vm24296_vm13, %v15822_v15, %v15824_v62  ;;  %vm24310_vm13 = vmmov %vm24302_vm6 }
 0x57b   : > { %17939 = vrot.lane.b32.xlu1 %v22866_v40, %s24293_s9  ;;  %17937 = vrot.lane.b32.xlu0 %v22854_v3, %s24293_s9  ;;  %v15835_v13 = vsel %vm24294_vm11, %v15818_v27, %v15820_v47  ;;  %vm24307_vm11 = vmmov %vm24302_vm6  ;;  %v23537_v47 = vld [vmem:[#allocation2 + $0xc] sm:$0xff] }
 0x57c   : > { %20075 = vmatpush1.msk.msra.mxu0 %vm247_vm1, %v15835_v13 }
 0x57d   : > { %20076 = vmatmul.mubr.msk.f32.vlgmr.msra.gmra.mxu0 %vm243_vm2, %v20073_v18 }
 0x57e   : > { %16068 = vmatprep.mubr.f32.mxu0 %v24246_v12  ;;  %v15828_v57 = vpop.permute.xlu1 %15827 }
 0x57f   : > { %17941 = vrot.lane.b32.xlu1 %v22885_v41, %s24293_s9  ;;  %17935 = vrot.lane.b32.xlu0 %v22841_v50, %s24293_s9  ;;  %v15826_v28 = vpop.permute.xlu0 %15825 }
 0x580   : > { %v15838_v20 = vsel %vm24295_vm12, %v15824_v62, %v15826_v28  ;;  %v15839_v48 = vsel %vm24298_vm3, %v15826_v28, %v15828_v57  ;;  %vm24309_vm12 = vmmov %vm24302_vm6 }
 0x581   : > { %20077 = vmatprep.subr.msk.mxu1 %vm247_vm1, %v15838_v20 }
 0x582   : > { %20078 = vmatpush1.msk.msra.mxu1 %vm247_vm1, %v15837_v21  ;;  %v23551_v21 = vcombine.high %v23537_v47, %v23537_v47 }
 0x583   : > { %17945 = vrot.lane.b32.xlu1 %v22911_v63, %s24293_s9  ;;  %17943 = vrot.lane.b32.xlu0 %v22895_v42, %s24293_s9 }
 0x584   : > { %20079 = vmatmul.mubr.msk.f32.vlgmr.msra.gmra.mxu1 %vm243_vm2, %v20073_v18  ;;  %v15832_v49 = vpop.permute.xlu1 %15831 }
 0x585   : > { %v15830_v54 = vpop.permute.xlu0 %15829  ;;  %16139 = vmatprep.mubr.f32.mxu1 %v24246_v12 }
 0x586   : > { %v15840_v17 = vsel %vm24297_vm0, %v15828_v57, %v15830_v54  ;;  %v15841_v10 = vsel %vm24301_vm5, %v15830_v54, %v15832_v49  ;;  %vm24311_vm0 = vcmask 310272  }
 0x587   : > { %17949 = vrot.lane.b32.xlu1 %v22957_v58, %s24293_s9  ;;  %17947 = vrot.lane.b32.xlu0 %v22939_v51, %s24293_s9  ;;  %vm24312_vm3 = vmmov %vm24311_vm0 }
 0x588   : > { %20080 = vmatprep.subr.msk.mxu0 %vm247_vm1, %v15840_v17  ;;  %v9987_v2 = vpop.f32.mrf.mxu0  ;;  %v10058_v6 = vpop.f32.mrf.mxu1  ;;  %vm24314_vm5 = vmmov %vm24311_vm0 }
 0x589   : > { %20081 = vmatpush1.msk.msra.mxu0 %vm247_vm1, %v15839_v48  ;;  %v16173_v16 = vpop.permute.xlu1 %16172 }
 0x58a   : > { %20082 = vmatmul.mubr.msk.f32.vlgmr.msra.gmra.mxu0 %vm243_vm2, %v20073_v18  ;;  %v15834_v32 = vpop.permute.xlu0 %15833  ;;  %v9989_v26 = vpop.f32.mrf.mxu0 }
 0x58b   : > { %18290 = vrot.lane.b32.xlu1 %v22854_v3, %s24299_s28  ;;  %17951 = vrot.lane.b32.xlu0 %v17923_v52, %s24293_s9  ;;  %v15842_v37 = vsel %vm24300_vm4, %v15832_v49, %v15834_v32  ;;  %v10060_v24 = vpop.f32.mrf.mxu1  ;;  %vm24313_vm4 = vmmov %vm24311_vm0 }
 0x58c   : > { %20083 = vmatprep.subr.msk.mxu1 %vm247_vm1, %v15842_v37  ;;  %16279 = vmatprep.mubr.f32.mxu0 %v24246_v12  ;;  %v10129_v11 = vpop.f32.mrf.mxu0 }
 0x58d   : > { %20084 = vmatpush1.msk.msra.mxu1 %vm247_vm1, %v15841_v10  ;;  %v16171_v14 = vpop.permute.xlu1 %16170 }
 0x58e   : > { %20085 = vmatmul.mubr.msk.f32.vlgmr.msra.gmra.mxu1 %vm243_vm2, %v20073_v18  ;;  %v16175_v5 = vpop.permute.xlu0 %16174  ;;  %v16188_v3 = vsel %vm24302_vm6, %v16171_v14, %v16173_v16  ;;  %v10131_v35 = vpop.f32.mrf.mxu0  ;;  %vm24315_vm6 = vmmov %vm24311_vm0 }
 0x58f   : > { %18288 = vrot.lane.b32.xlu1 %v22841_v50, %s24299_s28  ;;  %18292 = vrot.lane.b32.xlu0 %v22866_v40, %s24299_s28  ;;  %v16189_v44 = vsel %vm24303_vm7, %v16173_v16, %v16175_v5  ;;  %v10200_v53 = vpop.f32.mrf.mxu1  ;;  %vm24316_vm7 = vmmov %vm24311_vm0 }
 0x590   : > { %20087 = vmatprep.subr.msk.mxu0 %vm247_vm1, %v16189_v44  ;;  %16350 = vmatprep.mubr.f32.mxu1 %v24246_v12  ;;  %v23570_v44 = vld [vmem:[%s24077_s3 + $0x4c] sm:$0xf] }
 0x591   : > { %20088 = vmatpush1.msk.msra.mxu0 %vm247_vm1, %v16188_v3  ;;  %v10202_v50 = vpop.f32.mrf.mxu1 }
 0x592   : > { %v16179_v23 = vpop.permute.xlu1 %16178  ;;  %20089 = vmatmul.mubr.msk.f32.vlgmr.msra.gmra.mxu0 %vm243_vm2, %v23501_v7 }
 0x593   : > { %18296 = vrot.lane.b32.xlu1 %v22895_v42, %s24299_s28  ;;  %18294 = vrot.lane.b32.xlu0 %v22885_v41, %s24299_s28  ;;  %v16177_v40 = vpop.permute.xlu0 %16176 }
 0x594   : > { %v16190_v29 = vsel %vm24304_vm8, %v16175_v5, %v16177_v40  ;;  %v16191_v45 = vsel %vm24305_vm9, %v16177_v40, %v16179_v23  ;;  %16421 = vmatprep.mubr.f32.mxu0 %v24246_v12  ;;  %v10316_v4 = vpop.f32.mrf.mxu0  ;;  %v10387_v9 = vpop.f32.mrf.mxu1  ;;  %vm24317_vm8 = vmmov %vm24311_vm0 }
 0x595   : > { %20090 = vmatprep.subr.msk.mxu1 %vm247_vm1, %v16191_v45  ;;  %v10317_v8 = vadd.f32 %v10316_v4, %v9987_v2  ;;  %v10388_v39 = vadd.f32 %v10387_v9, %v10058_v6  ;;  %v18629_v45 = vld [vmem:[#allocation2 + $0x24] sm:$0xf]  ;;  %vm24318_vm9 = vmmov %vm24311_vm0 }
 0x596   : > { %20091 = vmatpush1.msk.msra.mxu1 %vm247_vm1, %v16190_v29  ;;  %v10318_v34 = vpop.f32.mrf.mxu0  ;;  %v10389_v38 = vpop.f32.mrf.mxu1 }
 0x597   : > { %18300 = vrot.lane.b32.xlu1 %v22939_v51, %s24299_s28  ;;  %18298 = vrot.lane.b32.xlu0 %v22911_v63, %s24299_s28  ;;  %v10319_v41 = vadd.f32 %v10318_v34, %v9989_v26  ;;  %v10390_v25 = vadd.f32 %v10389_v38, %v10060_v24 }
 0x598   : > { %20092 = vmatmul.mubr.msk.f32.vlgmr.msra.gmra.mxu1 %vm243_vm2, %v23501_v7  ;;  %v16183_v60 = vpop.permute.xlu1 %16182 }
 0x599   : > { %v16181_v61 = vpop.permute.xlu0 %16180  ;;  %16492 = vmatprep.mubr.f32.mxu1 %v24246_v12  ;;  %v10458_v31 = vpop.f32.mrf.mxu0 }
 0x59a   : > { %v16192_v55 = vsel %vm24306_vm10, %v16179_v23, %v16181_v61  ;;  %v16193_v46 = vsel %vm24307_vm11, %v16181_v61, %v16183_v60  ;;  %v10529_v22 = vpop.f32.mrf.mxu1  ;;  %v10459_v1 = vadd.f32 %v10458_v31, %v10129_v11  ;;  %vm24319_vm10 = vcmask 302080  }
 0x59b   : > { %18304 = vrot.lane.b32.xlu1 %v18276_v33, %s24299_s28  ;;  %18302 = vrot.lane.b32.xlu0 %v22957_v58, %s24299_s28  ;;  %v10530_v36 = vadd.f32 %v10529_v22, %v10200_v53  ;;  %v10460_v56 = vpop.f32.mrf.mxu0  ;;  %vm24320_vm11 = vmmov %vm24319_vm10  ;;  %s197_s28 = scalar_lea.vmem %s24078_s4, %s20205_s12 }
 0x59c   : > { %20093 = vmatprep.subr.msk.mxu0 %vm247_vm1, %v16193_v46  ;;  %v10531_v43 = vpop.f32.mrf.mxu1  ;;  %v10461_v0 = vadd.f32 %v10460_v56, %v10131_v35 }
 0x59d   : > { %20094 = vmatpush1.msk.msra.mxu0 %vm247_vm1, %v16192_v55  ;;  %v10532_v15 = vadd.f32 %v10531_v43, %v10202_v50  ;;  %v16187_v30 = vpop.permute.xlu1 %16186 }
 0x59e   : > { %20095 = vmatmul.mubr.msk.f32.vlgmr.msra.gmra.mxu0 %vm243_vm2, %v23501_v7  ;;  %v16185_v62 = vpop.permute.xlu0 %16184  ;;  %v10661_v13 = vpop.f32.mrf.mxu0 }
 0x59f   : > { %18645 = vrot.lane.b32.xlu1 %v23537_v47, %s24308_s22  ;;  %18643 = vrot.lane.b32.xlu0 %v23534_v59, %s24308_s22  ;;  %v16194_v27 = vsel %vm24309_vm12, %v16183_v60, %v16185_v62  ;;  %v16195_v18 = vsel %vm24310_vm13, %v16185_v62, %v16187_v30  ;;  %v10732_v57 = vpop.f32.mrf.mxu1  ;;  %v10879_v28 = vadd.f32 %v10661_v13, %v10317_v8  ;;  %vm24321_vm12 = vmmov %vm24319_vm10 }
 0x5a0   : > { %20096 = vmatprep.subr.msk.mxu1 %vm247_vm1, %v16195_v18  ;;  %16632 = vmatprep.mubr.f32.mxu0 %v24246_v12  ;;  %v10881_v20 = vadd.f32 %v10732_v57, %v10388_v39  ;;  %v10663_v49 = vpop.f32.mrf.mxu0  ;;  %vm24322_vm13 = vmmov %vm24319_vm10 }
 0x5a1   : > { %20097 = vmatpush1.msk.msra.mxu1 %vm247_vm1, %v16194_v27  ;;  %v10734_v54 = vpop.f32.mrf.mxu1  ;;  %v16528_v17 = vpop.permute.xlu1 %16527  ;;  %v10880_v52 = vadd.f32 %v10663_v49, %v10319_v41 }
 0x5a2   : > { %20098 = vmatmul.mubr.msk.f32.vlgmr.msra.gmra.mxu1 %vm243_vm2, %v23501_v7  ;;  %v16526_v48 = vpop.permute.xlu0 %16525  ;;  %v10882_v2 = vadd.f32 %v10734_v54, %v10390_v25  ;;  %v10803_v16 = vpop.f32.mrf.mxu0 }
 0x5a3   : > { %18647 = vrot.lane.b32.xlu1 %v23551_v21, %s24308_s22  ;;  %18641 = vrot.lane.b32.xlu0 %v23526_v19, %s24308_s22  ;;  %v16542_v6 = vsel %vm24311_vm0, %v16526_v48, %v16528_v17  ;;  %v10874_v32 = vpop.f32.mrf.mxu1  ;;  %v10883_v37 = vadd.f32 %v10803_v16, %v10459_v1  ;;  %v20112_v16 = vld [vmem:[%s24077_s3 + $0x50] sm:$0xf]  ;;  %vm24323_vm0 = vmmov %vm24319_vm10 }
 0x5a4   : > { %20100 = vmatprep.subr.msk.mxu0 %vm247_vm1, %v16542_v6  ;;  %16703 = vmatprep.mubr.f32.mxu1 %v24246_v12  ;;  %v10885_v26 = vadd.f32 %v10874_v32, %v10530_v36  ;;  %v10805_v24 = vpop.f32.mrf.mxu0 }
 0x5a5   : > { %v10876_v10 = vpop.f32.mrf.mxu1  ;;  %v10884_v11 = vadd.f32 %v10805_v24, %v10461_v0 }
 0x5a6   : > { %v10886_v14 = vadd.f32 %v10876_v10, %v10532_v15  ;;  %v16530_v5 = vpop.permute.xlu1 %16529 }
 0x5a7   : > { %18651 = vrot.lane.b32.xlu1 %v22911_v63, %s24308_s22  ;;  %18649 = vrot.lane.b32.xlu0 %v22895_v42, %s24308_s22  ;;  %v16524_v3 = vpop.permute.xlu0 %16523 }
 0x5a8   : > { %v16541_v7 = vsel %vm24312_vm3, %v16524_v3, %v16526_v48  ;;  %v11014_v53 = vpop.f32.mrf.mxu0  ;;  %v11085_v50 = vpop.f32.mrf.mxu1  ;;  %vm24324_vm3 = vmmov %vm24323_vm0 }
 0x5a9   : > { %20101 = vmatpush1.msk.msra.mxu0 %vm247_vm1, %v16541_v7  ;;  %v11232_v35 = vadd.f32 %v11014_v53, %v10879_v28  ;;  %v11234_v23 = vadd.f32 %v11085_v50, %v10881_v20 }
 0x5aa   : > { %20102 = vmatmul.mubr.msk.f32.vlgmr.msra.gmra.mxu0 %vm243_vm2, %v23570_v44  ;;  %v11016_v63 = vpop.f32.mrf.mxu0  ;;  %v11087_v40 = vpop.f32.mrf.mxu1 }
 0x5ab   : > { %18655 = vrot.lane.b32.xlu1 %v22957_v58, %s24308_s22  ;;  %18653 = vrot.lane.b32.xlu0 %v22939_v51, %s24308_s22  ;;  %v11233_v42 = vadd.f32 %v11016_v63, %v10880_v52  ;;  %v11235_v4 = vadd.f32 %v11087_v40, %v10882_v2  ;;  %v16543_v51 = vsel %vm24314_vm5, %v16528_v17, %v16530_v5  ;;  %v18981_v52 = vld [vmem:[#allocation2 + $0x1c] sm:$0xff]  ;;  %vm24326_vm5 = vmmov %vm24323_vm0 }
 0x5ac   : > { %v16534_v29 = vpop.permute.xlu1 %16533  ;;  %16774 = vmatprep.mubr.f32.mxu0 %v24246_v12  ;;  %v18993_v10 = vcombine.high %v18981_v52, %v18981_v52 }
 0x5ad   : > { %v16532_v8 = vpop.permute.xlu0 %16531  ;;  %v11156_v34 = vpop.f32.mrf.mxu0 }
 0x5ae   : > { %v16544_v9 = vsel %vm24313_vm4, %v16530_v5, %v16532_v8  ;;  %v11227_v39 = vpop.f32.mrf.mxu1  ;;  %v11236_v58 = vadd.f32 %v11156_v34, %v10883_v37  ;;  %v16545_v36 = vsel %vm24316_vm7, %v16532_v8, %v16534_v29  ;;  %vm24325_vm4 = vmmov %vm24323_vm0 }
 0x5af   : > { %18996 = vrot.lane.b32.xlu1 %v23534_v59, %s20308_s11  ;;  %18657 = vrot.lane.b32.xlu0 %v18629_v45, %s24308_s22  ;;  %v11238_v41 = vadd.f32 %v11227_v39, %v10885_v26  ;;  %v11158_v33 = vpop.f32.mrf.mxu0  ;;  %v18982_v26 = vld [vmem:[#allocation2 + $0x24] sm:$0xf] }
 0x5b0   : > { %20103 = vmatprep.subr.msk.mxu1 %vm247_vm1, %v16544_v9  ;;  %v16538_v38 = vpop.permute.xlu1 %16537  ;;  %v11237_v60 = vadd.f32 %v11158_v33, %v10884_v11  ;;  %v11229_v61 = vpop.f32.mrf.mxu1 }
 0x5b1   : > { %20104 = vmatpush1.msk.msra.mxu1 %vm247_vm1, %v16543_v51  ;;  %v16536_v25 = vpop.permute.xlu0 %16535  ;;  %v11239_v31 = vadd.f32 %v11229_v61, %v10886_v14 }
 0x5b2   : > { %20105 = vmatmul.mubr.msk.f32.vlgmr.msra.gmra.mxu1 %vm243_vm2, %v23570_v44  ;;  %v16546_v55 = vsel %vm24315_vm6, %v16534_v29, %v16536_v25  ;;  %v11367_v46 = vpop.f32.mrf.mxu0  ;;  %v11438_v1 = vpop.f32.mrf.mxu1  ;;  %v16547_v13 = vsel %vm24318_vm9, %v16536_v25, %v16538_v38  ;;  %vm24327_vm6 = vcmask 236544  }
 0x5b3   : > { %18994 = vrot.lane.b32.xlu1 %v23526_v19, %s20308_s11  ;;  %18998 = vrot.lane.b32.xlu0 %v23537_v47, %s20308_s11  ;;  %v11585_v22 = vadd.f32 %v11367_v46, %v11232_v35  ;;  %v11587_v59 = vadd.f32 %v11438_v1, %v11234_v23  ;;  %v18980_v47 = vld [vmem:[#allocation2 + $0x14] sm:$0xff]  ;;  %vm24328_vm7 = vmmov %vm24327_vm6 }
 0x5b4   : > { %20106 = vmatprep.subr.msk.mxu0 %vm247_vm1, %v16546_v55  ;;  %v16879_v56 = vpop.permute.xlu1 %16878  ;;  %16845 = vmatprep.mubr.f32.mxu1 %v24246_v12  ;;  %v11369_v43 = vpop.f32.mrf.mxu0  ;;  %v18992_v49 = vcombine.high %v18980_v47, %v18980_v47  ;;  %vm24330_vm9 = vmmov %vm24327_vm6 }
 0x5b5   : > { %20107 = vmatpush1.msk.msra.mxu0 %vm247_vm1, %v16545_v36  ;;  %v16540_v0 = vpop.permute.xlu0 %16539  ;;  %v11586_v15 = vadd.f32 %v11369_v43, %v11233_v42  ;;  %v11440_v30 = vpop.f32.mrf.mxu1 }
 0x5b6   : > { %20108 = vmatmul.mubr.msk.f32.vlgmr.msra.gmra.mxu0 %vm243_vm2, %v23570_v44  ;;  %v16548_v19 = vsel %vm24317_vm8, %v16538_v38, %v16540_v0  ;;  %v11588_v62 = vadd.f32 %v11440_v30, %v11235_v4  ;;  %v11509_v27 = vpop.f32.mrf.mxu0  ;;  %vm24329_vm8 = vmmov %vm24327_vm6 }
 0x5b7   : > { %19002 = vrot.lane.b32.xlu1 %v18980_v47, %s20308_s11  ;;  %19000 = vrot.lane.b32.xlu0 %v23551_v21, %s20308_s11  ;;  %v11580_v18 = vpop.f32.mrf.mxu1  ;;  %v11589_v28 = vadd.f32 %v11509_v27, %v11236_v58 }
 0x5b8   : > { %20109 = vmatprep.subr.msk.mxu1 %vm247_vm1, %v16548_v19  ;;  %v16877_v57 = vpop.permute.xlu1 %16876  ;;  %16985 = vmatprep.mubr.f32.mxu0 %v24246_v12  ;;  %v11591_v20 = vadd.f32 %v11580_v18, %v11238_v41  ;;  %v11511_v17 = vpop.f32.mrf.mxu0 }
 0x5b9   : > { %20110 = vmatpush1.msk.msra.mxu1 %vm247_vm1, %v16547_v13  ;;  %v16881_v54 = vpop.permute.xlu0 %16880  ;;  %v16894_v48 = vsel %vm24319_vm10, %v16877_v57, %v16879_v56  ;;  %v11590_v2 = vadd.f32 %v11511_v17, %v11237_v60  ;;  %v11582_v6 = vpop.f32.mrf.mxu1  ;;  %vm24331_vm10 = vmmov %vm24327_vm6 }
 0x5ba   : > { %20111 = vmatmul.mubr.msk.f32.vlgmr.msra.gmra.mxu1 %vm243_vm2, %v23570_v44  ;;  %v16895_v21 = vsel %vm24320_vm11, %v16879_v56, %v16881_v54  ;;  %v11592_v32 = vadd.f32 %v11582_v6, %v11239_v31  ;;  %vm24332_vm11 = vmmov %vm24327_vm6 }
 0x5bb   : > { %19006 = vrot.lane.b32.xlu1 %v18981_v52, %s20308_s11  ;;  %19004 = vrot.lane.b32.xlu0 %v18992_v49, %s20308_s11 }
 0x5bc   : > { %20113 = vmatprep.subr.msk.mxu0 %vm247_vm1, %v16895_v21  ;;  %v16885_v37 = vpop.permute.xlu1 %16884  ;;  %17056 = vmatprep.mubr.f32.mxu1 %v24246_v12  ;;  %v11720_v24 = vpop.f32.mrf.mxu0 }
 0x5bd   : > { %20114 = vmatpush1.msk.msra.mxu0 %vm247_vm1, %v16894_v48  ;;  %v16883_v11 = vpop.permute.xlu0 %16882  ;;  %v11938_v14 = vadd.f32 %v11720_v24, %v11585_v22  ;;  %v11791_v5 = vpop.f32.mrf.mxu1 }
 0x5be   : > { %20115 = vmatmul.mubr.msk.f32.vlgmr.msra.gmra.mxu0 %vm243_vm2, %v20112_v16  ;;  %v16896_v3 = vsel %vm24321_vm12, %v16881_v54, %v16883_v11  ;;  %v16897_v44 = vsel %vm24322_vm13, %v16883_v11, %v16885_v37  ;;  %v11722_v7 = vpop.f32.mrf.mxu0  ;;  %v11940_v53 = vadd.f32 %v11791_v5, %v11587_v59  ;;  %vm24333_vm12 = vmmov %vm24327_vm6 }
 0x5bf   : > { %19010 = vrot.lane.b32.xlu1 %v18982_v26, %s20308_s11  ;;  %19008 = vrot.lane.b32.xlu0 %v18993_v10, %s20308_s11  ;;  %v11939_v35 = vadd.f32 %v11722_v7, %v11586_v15  ;;  %v11793_v50 = vpop.f32.mrf.mxu1  ;;  %vm24334_vm13 = vmmov %vm24327_vm6 }
 0x5c0   : > { %20116 = vmatprep.subr.msk.mxu1 %vm247_vm1, %v16897_v44  ;;  %v16889_v63 = vpop.permute.xlu1 %16888  ;;  %17127 = vmatprep.mubr.f32.mxu0 %v24246_v12  ;;  %v11941_v23 = vadd.f32 %v11793_v50, %v11588_v62  ;;  %v20125_v62 = vld [vmem:[%s24077_s3 + $0x54] sm:$0xf] }
 0x5c1   : > { %20117 = vmatpush1.msk.msra.mxu1 %vm247_vm1, %v16896_v3  ;;  %v16887_v42 = vpop.permute.xlu0 %16886  ;;  %v11862_v45 = vpop.f32.mrf.mxu0 }
 0x5c2   : > { %20118 = vmatmul.mubr.msk.f32.vlgmr.msra.gmra.mxu1 %vm243_vm2, %v20112_v16  ;;  %v16898_v40 = vsel %vm24323_vm0, %v16885_v37, %v16887_v42  ;;  %v16899_v29 = vsel %vm24324_vm3, %v16887_v42, %v16889_v63  ;;  %v11933_v4 = vpop.f32.mrf.mxu1  ;;  %v11942_v8 = vadd.f32 %v11862_v45, %v11589_v28  ;;  %vm24335_vm0 = vcmask 228352  }
 0x5c3   : > { %20119 = vmatprep.subr.msk.mxu0 %vm247_vm1, %v16899_v29  ;;  %17198 = vmatprep.mubr.f32.mxu1 %v24246_v12  ;;  %v11944_v9 = vadd.f32 %v11933_v4, %v11591_v20  ;;  %v11864_v34 = vpop.f32.mrf.mxu0  ;;  %vm24336_vm3 = vmmov %vm24335_vm0 }
 0x5c4   : > { %20120 = vmatpush1.msk.msra.mxu0 %vm247_vm1, %v16898_v40  ;;  %v11935_v39 = vpop.f32.mrf.mxu1  ;;  %v16893_v58 = vpop.permute.xlu1 %16892  ;;  %v11943_v51 = vadd.f32 %v11864_v34, %v11590_v2 }
 0x5c5   : > { %20121 = vmatmul.mubr.msk.f32.vlgmr.msra.gmra.mxu0 %vm243_vm2, %v20112_v16  ;;  %v16891_v41 = vpop.permute.xlu0 %16890  ;;  %v11945_v38 = vadd.f32 %v11935_v39, %v11592_v32 }
 0x5c6   : > { %v16900_v33 = vsel %vm24325_vm4, %v16889_v63, %v16891_v41  ;;  %v16901_v25 = vsel %vm24326_vm5, %v16891_v41, %v16893_v58  ;;  %17338 = vmatprep.mubr.f32.mxu0 %v24246_v12  ;;  %v12073_v60 = vpop.f32.mrf.mxu0  ;;  %v12144_v55 = vpop.f32.mrf.mxu1  ;;  %vm24337_vm4 = vmmov %vm24335_vm0 }
 0x5c7   : > { %20122 = vmatprep.subr.msk.mxu1 %vm247_vm1, %v16901_v25  ;;  %v12291_v61 = vadd.f32 %v12073_v60, %v11938_v14  ;;  %v12293_v31 = vadd.f32 %v12144_v55, %v11940_v53  ;;  %vm24338_vm5 = vmmov %vm24335_vm0 }
 0x5c8   : > { %20123 = vmatpush1.msk.msra.mxu1 %vm247_vm1, %v16900_v33  ;;  %v12075_v46 = vpop.f32.mrf.mxu0  ;;  %v17234_v22 = vpop.permute.xlu1 %17233  ;;  %v20138_v33 = vld [vmem:[%s24077_s3 + $0x58] sm:$0xf] }
 0x5c9   : > { %20124 = vmatmul.mubr.msk.f32.vlgmr.msra.gmra.mxu1 %vm243_vm2, %v20112_v16  ;;  %v17232_v1 = vpop.permute.xlu0 %17231  ;;  %v12292_v36 = vadd.f32 %v12075_v46, %v11939_v35  ;;  %v12146_v43 = vpop.f32.mrf.mxu1 }
 0x5ca   : > { %v17248_v56 = vsel %vm24327_vm6, %v17232_v1, %v17234_v22  ;;  %17409 = vmatprep.mubr.f32.mxu1 %v24246_v12  ;;  %v12215_v59 = vpop.f32.mrf.mxu0  ;;  %v12294_v0 = vadd.f32 %v12146_v43, %v11941_v23  ;;  %vm24339_vm6 = vmmov %vm24335_vm0 }
 0x5cb   : > { %20126 = vmatprep.subr.msk.mxu0 %vm247_vm1, %v17248_v56  ;;  %v12295_v15 = vadd.f32 %v12215_v59, %v11942_v8  ;;  %v12286_v30 = vpop.f32.mrf.mxu1 }
 0x5cc   : > { %v17236_v19 = vpop.permute.xlu1 %17235  ;;  %v12297_v27 = vadd.f32 %v12286_v30, %v11944_v9  ;;  %v12217_v13 = vpop.f32.mrf.mxu0 }
 0x5cd   : > { %v17230_v47 = vpop.permute.xlu0 %17229  ;;  %v12288_v57 = vpop.f32.mrf.mxu1  ;;  %v12296_v28 = vadd.f32 %v12217_v13, %v11943_v51  ;;  %v17249_v6 = vsel %vm24330_vm9, %v17234_v22, %v17236_v19  ;;  %vm24342_vm9 = vmmov %vm24335_vm0 }
 0x5ce   : > { %v17247_v18 = vsel %vm24328_vm7, %v17230_v47, %v17232_v1  ;;  %v12298_v20 = vadd.f32 %v12288_v57, %v11945_v38  ;;  %vm24340_vm7 = vmmov %vm24335_vm0 }
 0x5cf   : > { %20127 = vmatpush1.msk.msra.mxu0 %vm247_vm1, %v17247_v18 }
 0x5d0   : > { %20128 = vmatmul.mubr.msk.f32.vlgmr.msra.gmra.mxu0 %vm243_vm2, %v20125_v62  ;;  %v12426_v49 = vpop.f32.mrf.mxu0  ;;  %v17240_v54 = vpop.permute.xlu1 %17239 }
 0x5d1   : > { %v17238_v17 = vpop.permute.xlu0 %17237  ;;  %17480 = vmatprep.mubr.f32.mxu0 %v24246_v12  ;;  %v12644_v48 = vadd.f32 %v12426_v49, %v12291_v61  ;;  %v12497_v2 = vpop.f32.mrf.mxu1 }
 0x5d2   : > { %v17250_v21 = vsel %vm24329_vm8, %v17236_v19, %v17238_v17  ;;  %v12428_v52 = vpop.f32.mrf.mxu0  ;;  %v12646_v32 = vadd.f32 %v12497_v2, %v12293_v31  ;;  %v17251_v3 = vsel %vm24332_vm11, %v17238_v17, %v17240_v54  ;;  %vm24341_vm8 = vmmov %vm24335_vm0 }
 0x5d3   : > { %20129 = vmatprep.subr.msk.mxu1 %vm247_vm1, %v17250_v21  ;;  %v12645_v16 = vadd.f32 %v12428_v52, %v12292_v36  ;;  %v12499_v37 = vpop.f32.mrf.mxu1 }
 0x5d4   : > { %20130 = vmatpush1.msk.msra.mxu1 %vm247_vm1, %v17249_v6  ;;  %v17244_v26 = vpop.permute.xlu1 %17243  ;;  %v12647_v10 = vadd.f32 %v12499_v37, %v12294_v0 }
 0x5d5   : > { %20131 = vmatmul.mubr.msk.f32.vlgmr.msra.gmra.mxu1 %vm243_vm2, %v20125_v62  ;;  %v17242_v24 = vpop.permute.xlu0 %17241  ;;  %v12568_v14 = vpop.f32.mrf.mxu0 }
 0x5d6   : > { %v17252_v11 = vsel %vm24331_vm10, %v17240_v54, %v17242_v24  ;;  %17551 = vmatprep.mubr.f32.mxu1 %v24246_v12  ;;  %v12639_v5 = vpop.f32.mrf.mxu1  ;;  %v12648_v44 = vadd.f32 %v12568_v14, %v12295_v15  ;;  %v17253_v45 = vsel %vm24334_vm13, %v17242_v24, %v17244_v26  ;;  %vm24343_vm10 = vcmask 220160  }
 0x5d7   : > { %20132 = vmatprep.subr.msk.mxu0 %vm247_vm1, %v17252_v11  ;;  %v12650_v7 = vadd.f32 %v12639_v5, %v12297_v27  ;;  %v12570_v53 = vpop.f32.mrf.mxu0  ;;  %vm24344_vm11 = vmmov %vm24343_vm10 }
 0x5d8   : > { %20133 = vmatpush1.msk.msra.mxu0 %vm247_vm1, %v17251_v3  ;;  %v12641_v35 = vpop.f32.mrf.mxu1  ;;  %v17585_v50 = vpop.permute.xlu1 %17584  ;;  %v12649_v23 = vadd.f32 %v12570_v53, %v12296_v28  ;;  %vm24346_vm13 = vmmov %vm24343_vm10 }
 0x5d9   : > { %20134 = vmatmul.mubr.msk.f32.vlgmr.msra.gmra.mxu0 %vm243_vm2, %v20125_v62  ;;  %v17246_v63 = vpop.permute.xlu0 %17245  ;;  %v12651_v42 = vadd.f32 %v12641_v35, %v12298_v20 }
 0x5da   : > { %v17254_v40 = vsel %vm24333_vm12, %v17244_v26, %v17246_v63  ;;  %17691 = vmatprep.mubr.f32.mxu0 %v24246_v12  ;;  %v12779_v29 = vpop.f32.mrf.mxu0  ;;  %v12850_v8 = vpop.f32.mrf.mxu1  ;;  %vm24345_vm12 = vmmov %vm24343_vm10 }
 0x5db   : > { %20135 = vmatprep.subr.msk.mxu1 %vm247_vm1, %v17254_v40  ;;  %v12997_v4 = vadd.f32 %v12779_v29, %v12644_v48  ;;  %v12999_v34 = vadd.f32 %v12850_v8, %v12646_v32 }
 0x5dc   : > { %20136 = vmatpush1.msk.msra.mxu1 %vm247_vm1, %v17253_v45  ;;  %v12781_v9 = vpop.f32.mrf.mxu0  ;;  %v17583_v39 = vpop.permute.xlu1 %17582 }
 0x5dd   : > { %20137 = vmatmul.mubr.msk.f32.vlgmr.msra.gmra.mxu1 %vm243_vm2, %v20125_v62  ;;  %v17587_v58 = vpop.permute.xlu0 %17586  ;;  %v12998_v41 = vadd.f32 %v12781_v9, %v12645_v16  ;;  %v17600_v51 = vsel %vm24335_vm0, %v17583_v39, %v17585_v50  ;;  %v12852_v25 = vpop.f32.mrf.mxu1  ;;  %vm24347_vm0 = vmmov %vm24343_vm10 }
 0x5de   : > { %v17601_v38 = vsel %vm24336_vm3, %v17585_v50, %v17587_v58  ;;  %17762 = vmatprep.mubr.f32.mxu1 %v24246_v12  ;;  %v12921_v60 = vpop.f32.mrf.mxu0  ;;  %v13000_v61 = vadd.f32 %v12852_v25, %v12647_v10  ;;  %vm24348_vm3 = vmmov %vm24347_vm0 }
 0x5df   : > { %20139 = vmatprep.subr.msk.mxu0 %vm247_vm1, %v17601_v38  ;;  %v13001_v55 = vadd.f32 %v12921_v60, %v12648_v44  ;;  %v12992_v46 = vpop.f32.mrf.mxu1 }
 0x5e0   : > { %20140 = vmatpush1.msk.msra.mxu0 %vm247_vm1, %v17600_v51  ;;  %v13003_v1 = vadd.f32 %v12992_v46, %v12650_v7  ;;  %v12923_v43 = vpop.f32.mrf.mxu0 }
 0x5e1   : > { %v17591_v31 = vpop.permute.xlu1 %17590  ;;  %20141 = vmatmul.mubr.msk.f32.vlgmr.msra.gmra.mxu0 %vm243_vm2, %v20138_v33  ;;  %v17589_v22 = vpop.permute.xlu0 %17588  ;;  %v13002_v0 = vadd.f32 %v12923_v43, %v12649_v23  ;;  %v20151_v23 = vld [vmem:[%s24077_s3 + $0x5c] sm:$0xf] }
 0x5e2   : > { %v17602_v36 = vsel %vm24337_vm4, %v17587_v58, %v17589_v22  ;;  %v17603_v56 = vsel %vm24338_vm5, %v17589_v22, %v17591_v31  ;;  %17833 = vmatprep.mubr.f32.mxu0 %v24246_v12  ;;  %v12994_v59 = vpop.f32.mrf.mxu1  ;;  %vm24349_vm4 = vmmov %vm24347_vm0 }
 0x5e3   : > { %20142 = vmatprep.subr.msk.mxu1 %vm247_vm1, %v17603_v56  ;;  %v13004_v15 = vadd.f32 %v12994_v59, %v12651_v42  ;;  %vm24350_vm5 = vmmov %vm24347_vm0 }
 0x5e4   : > { %20143 = vmatpush1.msk.msra.mxu1 %vm247_vm1, %v17602_v36  ;;  %v13132_v30 = vpop.f32.mrf.mxu0  ;;  %v13203_v57 = vpop.f32.mrf.mxu1 }
 0x5e5   : > { %v17595_v19 = vpop.permute.xlu1 %17594  ;;  %20144 = vmatmul.mubr.msk.f32.vlgmr.msra.gmra.mxu1 %vm243_vm2, %v20138_v33  ;;  %v17593_v47 = vpop.permute.xlu0 %17592  ;;  %v13350_v62 = vadd.f32 %v13132_v30, %v12997_v4  ;;  %v13352_v20 = vadd.f32 %v13203_v57, %v12999_v34 }
 0x5e6   : > { %v17604_v27 = vsel %vm24339_vm6, %v17591_v31, %v17593_v47  ;;  %v17605_v18 = vsel %vm24340_vm7, %v17593_v47, %v17595_v19  ;;  %17904 = vmatprep.mubr.f32.mxu1 %v24246_v12  ;;  %v13134_v13 = vpop.f32.mrf.mxu0  ;;  %v13205_v49 = vpop.f32.mrf.mxu1  ;;  %vm24351_vm6 = vcmask 154624  }
 0x5e7   : > { %20145 = vmatprep.subr.msk.mxu0 %vm247_vm1, %v17605_v18  ;;  %v13351_v28 = vadd.f32 %v13134_v13, %v12998_v41  ;;  %v13353_v48 = vadd.f32 %v13205_v49, %v13000_v61  ;;  %vm24352_vm7 = vmmov %vm24351_vm6 }
 0x5e8   : > { %20146 = vmatpush1.msk.msra.mxu0 %vm247_vm1, %v17604_v27 }
 0x5e9   : > { %v17599_v54 = vpop.permute.xlu1 %17598  ;;  %20147 = vmatmul.mubr.msk.f32.vlgmr.msra.gmra.mxu0 %vm243_vm2, %v20138_v33  ;;  %v17597_v17 = vpop.permute.xlu0 %17596 }
 0x5ea   : > { %v17606_v21 = vsel %vm24341_vm8, %v17595_v19, %v17597_v17  ;;  %v17607_v52 = vsel %vm24342_vm9, %v17597_v17, %v17599_v54  ;;  %18044 = vmatprep.mubr.f32.mxu0 %v24246_v12  ;;  %v13274_v2 = vpop.f32.mrf.mxu0  ;;  %v13345_v6 = vpop.f32.mrf.mxu1  ;;  %vm24353_vm8 = vmmov %vm24351_vm6 }
 0x5eb   : > { %20148 = vmatprep.subr.msk.mxu1 %vm247_vm1, %v17607_v52  ;;  %v13354_v16 = vadd.f32 %v13274_v2, %v13001_v55  ;;  %v13356_v32 = vadd.f32 %v13345_v6, %v13003_v1  ;;  %vm24354_vm9 = vmmov %vm24351_vm6 }
 0x5ec   : > { %20149 = vmatpush1.msk.msra.mxu1 %vm247_vm1, %v17606_v21  ;;  %v13276_v37 = vpop.f32.mrf.mxu0  ;;  %v13347_v26 = vpop.f32.mrf.mxu1  ;;  %v20164_v21 = vld [vmem:[%s24077_s3 + $0x60] sm:$0xf] }
 0x5ed   : > { %v17940_v24 = vpop.permute.xlu1 %17939  ;;  %20150 = vmatmul.mubr.msk.f32.vlgmr.msra.gmra.mxu1 %vm243_vm2, %v20138_v33  ;;  %v17938_v10 = vpop.permute.xlu0 %17937  ;;  %v13355_v11 = vadd.f32 %v13276_v37, %v13002_v0  ;;  %v13357_v14 = vadd.f32 %v13347_v26, %v13004_v15 }
 0x5ee   : > { %v17954_v5 = vsel %vm24343_vm10, %v17938_v10, %v17940_v24  ;;  %18115 = vmatprep.mubr.f32.mxu1 %v24246_v12  ;;  %v13485_v3 = vpop.f32.mrf.mxu0  ;;  %v13556_v7 = vpop.f32.mrf.mxu1  ;;  %vm24355_vm10 = vmmov %vm24351_vm6 }
 0x5ef   : > { %20152 = vmatprep.subr.msk.mxu0 %vm247_vm1, %v17954_v5  ;;  %v13703_v44 = vadd.f32 %v13485_v3, %v13350_v62  ;;  %v13705_v35 = vadd.f32 %v13556_v7, %v13352_v20 }
 0x5f0   : > { %v13487_v53 = vpop.f32.mrf.mxu0  ;;  %v13558_v29 = vpop.f32.mrf.mxu1 }
 0x5f1   : > { %v17942_v50 = vpop.permute.xlu1 %17941  ;;  %v17936_v63 = vpop.permute.xlu0 %17935  ;;  %v13704_v42 = vadd.f32 %v13487_v53, %v13351_v28  ;;  %v13706_v45 = vadd.f32 %v13558_v29, %v13353_v48 }
 0x5f2   : > { %v17953_v40 = vsel %vm24344_vm11, %v17936_v63, %v17938_v10  ;;  %v13698_v8 = vpop.f32.mrf.mxu1  ;;  %v17955_v33 = vsel %vm24346_vm13, %v17940_v24, %v17942_v50  ;;  %vm24356_vm11 = vmmov %vm24351_vm6 }
 0x5f3   : > { %20153 = vmatpush1.msk.msra.mxu0 %vm247_vm1, %v17953_v40  ;;  %v13627_v4 = vpop.f32.mrf.mxu0  ;;  %v13709_v58 = vadd.f32 %v13698_v8, %v13356_v32  ;;  %vm24358_vm13 = vmmov %vm24351_vm6 }
 0x5f4   : > { %20154 = vmatmul.mubr.msk.f32.vlgmr.msra.gmra.mxu0 %vm243_vm2, %v20151_v23  ;;  %v13707_v39 = vadd.f32 %v13627_v4, %v13354_v16  ;;  %v13700_v38 = vpop.f32.mrf.mxu1 }
 0x5f5   : > { %v17946_v9 = vpop.permute.xlu1 %17945  ;;  %v17944_v34 = vpop.permute.xlu0 %17943  ;;  %18186 = vmatprep.mubr.f32.mxu0 %v24246_v12  ;;  %v13710_v60 = vadd.f32 %v13700_v38, %v13357_v14 }
 0x5f6   : > { %v17956_v41 = vsel %vm24345_vm12, %v17942_v50, %v17944_v34  ;;  %v13629_v51 = vpop.f32.mrf.mxu0  ;;  %v17957_v56 = vsel %vm24348_vm3, %v17944_v34, %v17946_v9  ;;  %vm24357_vm12 = vmmov %vm24351_vm6 }
 0x5f7   : > { %20155 = vmatprep.subr.msk.mxu1 %vm247_vm1, %v17956_v41  ;;  %v13708_v25 = vadd.f32 %v13629_v51, %v13355_v11 }
 0x5f8   : > { %20156 = vmatpush1.msk.msra.mxu1 %vm247_vm1, %v17955_v33  ;;  %v13909_v61 = vpop.f32.mrf.mxu1 }
 0x5f9   : > { %v17950_v55 = vpop.permute.xlu1 %17949  ;;  %20157 = vmatmul.mubr.msk.f32.vlgmr.msra.gmra.mxu1 %vm243_vm2, %v20151_v23  ;;  %v17948_v46 = vpop.permute.xlu0 %17947  ;;  %v14058_v31 = vadd.f32 %v13909_v61, %v13705_v35 }
 0x5fa   : > { %v17958_v22 = vsel %vm24347_vm0, %v17946_v9, %v17948_v46  ;;  %18257 = vmatprep.mubr.f32.mxu1 %v24246_v12  ;;  %v13838_v1 = vpop.f32.mrf.mxu0  ;;  %v13911_v36 = vpop.f32.mrf.mxu1  ;;  %v17959_v27 = vsel %vm24350_vm5, %v17948_v46, %v17950_v55 }
 0x5fb   : > { %20158 = vmatprep.subr.msk.mxu0 %vm247_vm1, %v17958_v22  ;;  %v14056_v43 = vadd.f32 %v13838_v1, %v13703_v44  ;;  %v14059_v59 = vadd.f32 %v13911_v36, %v13706_v45 }
 0x5fc   : > { %20159 = vmatpush1.msk.msra.mxu0 %vm247_vm1, %v17957_v56  ;;  %v13840_v0 = vpop.f32.mrf.mxu0 }
 0x5fd   : > { %v18291_v15 = vpop.permute.xlu1 %18290  ;;  %20160 = vmatmul.mubr.msk.f32.vlgmr.msra.gmra.mxu0 %vm243_vm2, %v20151_v23  ;;  %v17952_v30 = vpop.permute.xlu0 %17951  ;;  %v14057_v19 = vadd.f32 %v13840_v0, %v13704_v42 }
 0x5fe   : > { %v17960_v47 = vsel %vm24349_vm4, %v17950_v55, %v17952_v30  ;;  %18397 = vmatprep.mubr.f32.mxu0 %v24246_v12  ;;  %v13980_v62 = vpop.f32.mrf.mxu0 }
 0x5ff   : > { %20161 = vmatprep.subr.msk.mxu1 %vm247_vm1, %v17960_v47  ;;  %v14060_v18 = vadd.f32 %v13980_v62, %v13707_v39  ;;  %v14051_v57 = vpop.f32.mrf.mxu1 }
 0x600   : > { %20162 = vmatpush1.msk.msra.mxu1 %vm247_vm1, %v17959_v27  ;;  %v13982_v13 = vpop.f32.mrf.mxu0  ;;  %v14062_v54 = vadd.f32 %v14051_v57, %v13709_v58 }
 0x601   : > { %v18289_v28 = vpop.permute.xlu1 %18288  ;;  %20163 = vmatmul.mubr.msk.f32.vlgmr.msra.gmra.mxu1 %vm243_vm2, %v20151_v23  ;;  %v18293_v20 = vpop.permute.xlu0 %18292  ;;  %v14061_v49 = vadd.f32 %v13982_v13, %v13708_v25 }
 0x602   : > { %v18306_v17 = vsel %vm24351_vm6, %v18289_v28, %v18291_v15  ;;  %v18307_v48 = vsel %vm24352_vm7, %v18291_v15, %v18293_v20  ;;  %18468 = vmatprep.mubr.f32.mxu1 %v24246_v12  ;;  %v14191_v52 = vpop.f32.mrf.mxu0  ;;  %v14053_v2 = vpop.f32.mrf.mxu1 }
 0x603   : > { %20165 = vmatprep.subr.msk.mxu0 %vm247_vm1, %v18307_v48  ;;  %v14409_v6 = vadd.f32 %v14191_v52, %v14056_v43  ;;  %v14063_v16 = vadd.f32 %v14053_v2, %v13710_v60 }
 0x604   : > { %20166 = vmatpush1.msk.msra.mxu0 %vm247_vm1, %v18306_v17  ;;  %v14193_v32 = vpop.f32.mrf.mxu0  ;;  %v14262_v14 = vpop.f32.mrf.mxu1 }
 0x605   : > { %v18297_v37 = vpop.permute.xlu1 %18296  ;;  %20167 = vmatmul.mubr.msk.f32.vlgmr.msra.gmra.mxu0 %vm243_vm2, %v20164_v21  ;;  %v18295_v26 = vpop.permute.xlu0 %18294  ;;  %v14410_v24 = vadd.f32 %v14193_v32, %v14057_v19  ;;  %v14411_v3 = vadd.f32 %v14262_v14, %v14058_v31 }
 0x606   : > { %v18308_v10 = vsel %vm24353_vm8, %v18293_v20, %v18295_v26  ;;  %v18309_v11 = vsel %vm24354_vm9, %v18295_v26, %v18297_v37  ;;  %18539 = vmatprep.mubr.f32.mxu0 %v24246_v12  ;;  %v14333_v5 = vpop.f32.mrf.mxu0  ;;  %v14264_v7 = vpop.f32.mrf.mxu1 }
 0x607   : > { %20168 = vmatprep.subr.msk.mxu1 %vm247_vm1, %v18309_v11  ;;  %v14413_v44 = vadd.f32 %v14333_v5, %v14060_v18  ;;  %v14412_v63 = vadd.f32 %v14264_v7, %v14059_v59  ;;  %v20177_v59 = vld [vmem:[%s24077_s3 + $0x64] sm:$0xf] }
 0x608   : > { %20169 = vmatpush1.msk.msra.mxu1 %vm247_vm1, %v18308_v10  ;;  %v14335_v53 = vpop.f32.mrf.mxu0 }
 0x609   : > { %v18301_v35 = vpop.permute.xlu1 %18300  ;;  %20170 = vmatmul.mubr.msk.f32.vlgmr.msra.gmra.mxu1 %vm243_vm2, %v20164_v21  ;;  %v18299_v50 = vpop.permute.xlu0 %18298  ;;  %v14414_v23 = vadd.f32 %v14335_v53, %v14061_v49 }
 0x60a   : > { %v18310_v42 = vsel %vm24355_vm10, %v18297_v37, %v18299_v50  ;;  %v18311_v40 = vsel %vm24356_vm11, %v18299_v50, %v18301_v35  ;;  %18610 = vmatprep.mubr.f32.mxu1 %v24246_v12  ;;  %v14404_v29 = vpop.f32.mrf.mxu1 }
 0x60b   : > { %20171 = vmatprep.subr.msk.mxu0 %vm247_vm1, %v18311_v40  ;;  %v14415_v45 = vadd.f32 %v14404_v29, %v14062_v54  ;;  %v14516_v4 = vpop.f32.mrf.mxu0 }
 0x60c   : > { %20172 = vmatpush1.msk.msra.mxu0 %vm247_vm1, %v18310_v42  ;;  %v14734_v34 = vadd.f32 %v14516_v4, %v14409_v6  ;;  %v14406_v41 = vpop.f32.mrf.mxu1 }
 0x60d   : > { %v18305_v8 = vpop.permute.xlu1 %18304  ;;  %20173 = vmatmul.mubr.msk.f32.vlgmr.msra.gmra.mxu0 %vm243_vm2, %v20164_v21  ;;  %v18303_v9 = vpop.permute.xlu0 %18302  ;;  %v14416_v38 = vadd.f32 %v14406_v41, %v14063_v16 }
 0x60e   : > { %v18312_v39 = vsel %vm24357_vm12, %v18301_v35, %v18303_v9  ;;  %v18313_v58 = vsel %vm24358_vm13, %v18303_v9, %v18305_v8  ;;  %18750 = vmatprep.mubr.f32.mxu0 %v24246_v12  ;;  %v14518_v51 = vpop.f32.mrf.mxu0  ;;  %v20190_v9 = vld [vmem:[%s24077_s3 + $0x68] sm:$0xf] }
 0x60f   : > { %20174 = vmatprep.subr.msk.mxu1 %vm247_vm1, %v18313_v58  ;;  %v14735_v33 = vadd.f32 %v14518_v51, %v14410_v24 }
 0x610   : > { %20175 = vmatpush1.msk.msra.mxu1 %vm247_vm1, %v18312_v39  ;;  %v14587_v55 = vpop.f32.mrf.mxu1 }
 0x611   : > { %v18646_v25 = vpop.permute.xlu1 %18645  ;;  %20176 = vmatmul.mubr.msk.f32.vlgmr.msra.gmra.mxu1 %vm243_vm2, %v20164_v21  ;;  %v18644_v60 = vpop.permute.xlu0 %18643  ;;  %v14736_v31 = vadd.f32 %v14587_v55, %v14411_v3 }
 0x612   : > { %v18660_v61 = vsel %vm9025_vm14, %v18644_v60, %v18646_v25  ;;  %18821 = vmatprep.mubr.f32.mxu1 %v24246_v12  ;;  %v14658_v46 = vpop.f32.mrf.mxu0  ;;  %v14589_v1 = vpop.f32.mrf.mxu1 }
 0x613   : > { %20178 = vmatprep.subr.msk.mxu0 %vm247_vm1, %v18660_v61  ;;  %v14738_v22 = vadd.f32 %v14658_v46, %v14413_v44  ;;  %v14737_v0 = vadd.f32 %v14589_v1, %v14412_v63 }
 0x614   : > { %v14660_v36 = vpop.f32.mrf.mxu0 }
 0x615   : > { %v18648_v56 = vpop.permute.xlu1 %18647  ;;  %v18642_v43 = vpop.permute.xlu0 %18641  ;;  %v14739_v15 = vadd.f32 %v14660_v36, %v14414_v23 }
 0x616   : > { %v18659_v30 = vsel %vm9025_vm14, %v18642_v43, %v18644_v60  ;;  %v14729_v19 = vpop.f32.mrf.mxu1  ;;  %v18661_v17 = vsel %vm9025_vm14, %v18646_v25, %v18648_v56 }
 0x617   : > { %20179 = vmatpush1.msk.msra.mxu0 %vm247_vm1, %v18659_v30  ;;  %v14740_v47 = vadd.f32 %v14729_v19, %v14415_v45  ;;  %v14869_v62 = vpop.f32.mrf.mxu0 }
 0x618   : > { %20180 = vmatmul.mubr.msk.f32.vlgmr.msra.gmra.mxu0 %vm243_vm2, %v20177_v59  ;;  %v14731_v27 = vpop.f32.mrf.mxu1  ;;  %v15087_v57 = vadd.f32 %v14869_v62, %v14734_v34 }
 0x619   : > { %v18652_v18 = vpop.permute.xlu1 %18651  ;;  %v18650_v13 = vpop.permute.xlu0 %18649  ;;  %18892 = vmatprep.mubr.f32.mxu0 %v24246_v12  ;;  %v14741_v28 = vadd.f32 %v14731_v27, %v14416_v38 }
 0x61a   : > { %v18662_v20 = vsel %vm9025_vm14, %v18648_v56, %v18650_v13  ;;  %v14871_v49 = vpop.f32.mrf.mxu0  ;;  %v14940_v54 = vpop.f32.mrf.mxu1  ;;  %v18663_v26 = vsel %vm9025_vm14, %v18650_v13, %v18652_v18 }
 0x61b   : > { %20181 = vmatprep.subr.msk.mxu1 %vm247_vm1, %v18662_v20  ;;  %v15088_v48 = vadd.f32 %v14871_v49, %v14735_v33  ;;  %v15089_v21 = vadd.f32 %v14940_v54, %v14736_v31 }
 0x61c   : > { %20182 = vmatpush1.msk.msra.mxu1 %vm247_vm1, %v18661_v17  ;;  %v14942_v52 = vpop.f32.mrf.mxu1 }
 0x61d   : > { %v18656_v2 = vpop.permute.xlu1 %18655  ;;  %20183 = vmatmul.mubr.msk.f32.vlgmr.msra.gmra.mxu1 %vm243_vm2, %v20177_v59  ;;  %v18654_v6 = vpop.permute.xlu0 %18653  ;;  %v15090_v16 = vadd.f32 %v14942_v52, %v14737_v0 }
 0x61e   : > { %v18664_v32 = vsel %vm9025_vm14, %v18652_v18, %v18654_v6  ;;  %18963 = vmatprep.mubr.f32.mxu1 %v24246_v12  ;;  %v15011_v37 = vpop.f32.mrf.mxu0  ;;  %v18665_v50 = vsel %vm9025_vm14, %v18654_v6, %v18656_v2 }
 0x61f   : > { %20184 = vmatprep.subr.msk.mxu0 %vm247_vm1, %v18664_v32  ;;  %v15091_v24 = vadd.f32 %v15011_v37, %v14738_v22  ;;  %v15082_v11 = vpop.f32.mrf.mxu1 }
 0x620   : > { %20185 = vmatpush1.msk.msra.mxu0 %vm247_vm1, %v18663_v26  ;;  %v15013_v10 = vpop.f32.mrf.mxu0  ;;  %v15093_v44 = vadd.f32 %v15082_v11, %v14740_v47 }
 0x621   : > { %v18997_v14 = vpop.permute.xlu1 %18996  ;;  %20186 = vmatmul.mubr.msk.f32.vlgmr.msra.gmra.mxu0 %vm243_vm2, %v20177_v59  ;;  %v18658_v5 = vpop.permute.xlu0 %18657  ;;  %v15092_v3 = vadd.f32 %v15013_v10, %v14739_v15 }
 0x622   : > { %v18666_v7 = vsel %vm9025_vm14, %v18656_v2, %v18658_v5  ;;  %19103 = vmatprep.mubr.f32.mxu0 %v24246_v12  ;;  %v15222_v53 = vpop.f32.mrf.mxu0  ;;  %v15084_v35 = vpop.f32.mrf.mxu1 }
 0x623   : > { %20187 = vmatprep.subr.msk.mxu1 %vm247_vm1, %v18666_v7  ;;  %v23775_v63 = vadd.f32 %v15222_v53, %v15087_v57  ;;  %v15094_v23 = vadd.f32 %v15084_v35, %v14741_v28 }
 0x624   : > { %20188 = vmatpush1.msk.msra.mxu1 %vm247_vm1, %v18665_v50  ;;  %v15224_v42 = vpop.f32.mrf.mxu0  ;;  %v15293_v34 = vpop.f32.mrf.mxu1 }
 0x625   : > { %v18995_v40 = vpop.permute.xlu1 %18994  ;;  %20189 = vmatmul.mubr.msk.f32.vlgmr.msra.gmra.mxu1 %vm243_vm2, %v20177_v59  ;;  %v18999_v29 = vpop.permute.xlu0 %18998  ;;  %v23779_v45 = vadd.f32 %v15224_v42, %v15088_v48  ;;  %v23788_v39 = vadd.f32 %v15293_v34, %v15089_v21 }
 0x626   : > { %v19012_v4 = vsel %vm9379_vm15, %v18995_v40, %v18997_v14  ;;  %v19013_v8 = vsel %vm9379_vm15, %v18997_v14, %v18999_v29  ;;  %19174 = vmatprep.mubr.f32.mxu1 %v24246_v12  ;;  %v15295_v41 = vpop.f32.mrf.mxu1 }
 0x627   : > { %20191 = vmatprep.subr.msk.mxu0 %vm247_vm1, %v19013_v8  ;;  %v15364_v58 = vpop.f32.mrf.mxu0  ;;  %v23792_v25 = vadd.f32 %v15295_v41, %v15090_v16 }
 0x628   : > { %20192 = vmatpush1.msk.msra.mxu0 %vm247_vm1, %v19012_v4  ;;  %v15444_v33 = vadd.f32 %v15364_v58, %v15091_v24 }
 0x629   : > { %v19003_v51 = vpop.permute.xlu1 %19002  ;;  %20193 = vmatmul.mubr.msk.f32.vlgmr.msra.gmra.mxu0 %vm243_vm2, %v20190_v9  ;;  %v19001_v38 = vpop.permute.xlu0 %19000 }
 0x62a   : > { %v19014_v60 = vsel %vm9379_vm15, %v18999_v29, %v19001_v38  ;;  %v19015_v61 = vsel %vm9379_vm15, %v19001_v38, %v19003_v51  ;;  %19245 = vmatprep.mubr.f32.mxu0 %v24246_v12  ;;  %v15366_v55 = vpop.f32.mrf.mxu0  ;;  %v15435_v46 = vpop.f32.mrf.mxu1 }
 0x62b   : > { %20194 = vmatprep.subr.msk.mxu1 %vm247_vm1, %v19015_v61  ;;  %v15445_v31 = vadd.f32 %v15366_v55, %v15092_v3  ;;  %v15446_v22 = vadd.f32 %v15435_v46, %v15093_v44 }
 0x62c   : > { %20195 = vmatpush1.msk.msra.mxu1 %vm247_vm1, %v19014_v60  ;;  %v23799_v1 = vpop.f32.mrf.mxu0  ;;  %v15437_v36 = vpop.f32.mrf.mxu1 }
 0x62d   : > { %v19007_v56 = vpop.permute.xlu1 %19006  ;;  %20196 = vmatmul.mubr.msk.f32.vlgmr.msra.gmra.mxu1 %vm243_vm2, %v20190_v9  ;;  %v19005_v43 = vpop.permute.xlu0 %19004  ;;  %v15447_v59 = vadd.f32 %v15437_v36, %v15094_v23 }
 0x62e   : > { %v19016_v0 = vsel %vm9379_vm15, %v19003_v51, %v19005_v43  ;;  %v19017_v15 = vsel %vm9379_vm15, %v19005_v43, %v19007_v56  ;;  %19316 = vmatprep.mubr.f32.mxu1 %v24246_v12  ;;  %v23807_v30 = vpop.f32.mrf.mxu0  ;;  %v23809_v19 = vpop.f32.mrf.mxu1 }
 0x62f   : > { %20197 = vmatprep.subr.msk.mxu0 %vm247_vm1, %v19017_v15 }
 0x630   : > { %20198 = vmatpush1.msk.msra.mxu0 %vm247_vm1, %v19016_v0  ;;  %v15717_v13 = vpop.f32.mrf.mxu0  ;;  %v23818_v57 = vpop.f32.mrf.mxu1 }
 0x631   : > { %v19011_v47 = vpop.permute.xlu1 %19010  ;;  %20199 = vmatmul.mubr.msk.f32.vlgmr.msra.gmra.mxu0 %vm243_vm2, %v20190_v9  ;;  %v19009_v62 = vpop.permute.xlu0 %19008  ;;  %v23815_v12 = vadd.f32 %v15717_v13, %v15444_v33 }
 0x632   : > { %v19018_v27 = vsel %vm9379_vm15, %v19007_v56, %v19009_v62  ;;  %v19019_v18 = vsel %vm9379_vm15, %v19009_v62, %v19011_v47  ;;  %v15719_v28 = vpop.f32.mrf.mxu0 }
 0x633   : > { %20200 = vmatprep.subr.msk.mxu1 %vm247_vm1, %v19019_v18  ;;  %v23821_v20 = vadd.f32 %v15719_v28, %v15445_v31 }
 0x634   : > { %20201 = vmatpush1.msk.msra.mxu1 %vm247_vm1, %v19018_v27 }
 0x635   : > { %20202 = vmatmul.mubr.msk.f32.vlgmr.msra.gmra.mxu1 %vm243_vm2, %v20190_v9 }
 0x636   : > { %v15788_v49 = vpop.f32.mrf.mxu1 }
 0x637   : > { %v23823_v54 = vadd.f32 %v15788_v49, %v15446_v22 }
 0x638   : > { %v15790_v17 = vpop.f32.mrf.mxu1 }
 0x639   : > { %v23825_v48 = vadd.f32 %v15790_v17, %v15447_v59 }
 0x63d   : > { %v15928_v21 = vpop.f32.mrf.mxu0 }
 0x63f   : > { %v23827_v52 = vpop.f32.mrf.mxu0 }
 0x644   : > { %v23829_v2 = vpop.f32.mrf.mxu1 }
 0x646   : > { %v23833_v16 = vpop.f32.mrf.mxu1 }
 0x64a   : > { %v23831_v6 = vpop.f32.mrf.mxu0 }
 0x64c   : > { %v23835_v32 = vpop.f32.mrf.mxu0 }
 0x64e   : > { %v23837_v37 = vpop.f32.mrf.mxu1 }
 0x650   : > { %v23839_v24 = vpop.f32.mrf.mxu1 }
 0x652   : > { %v16281_v26 = vpop.f32.mrf.mxu0 }
 0x654   : > { %v16283_v10 = vpop.f32.mrf.mxu0 }
 0x658   : > { %v23841_v11 = vpop.f32.mrf.mxu1 }
 0x65a   : > { %v23845_v5 = vpop.f32.mrf.mxu1 }
 0x65e   : > { %v23843_v14 = vpop.f32.mrf.mxu0 }
 0x660   : > { %v23847_v3 = vpop.f32.mrf.mxu0 }
 0x662   : > { %v23849_v44 = vpop.f32.mrf.mxu1 }
 0x664   : > { %v23851_v53 = vpop.f32.mrf.mxu1 }
 0x66a   : > { %v16634_v7 = vpop.f32.mrf.mxu0 }
 0x66c   : > { %v16636_v35 = vpop.f32.mrf.mxu0 }
 0x672   : > { %v23853_v50 = vpop.f32.mrf.mxu1 }
 0x674   : > { %v23857_v42 = vpop.f32.mrf.mxu1 }
 0x676   : > { %v23855_v23 = vpop.f32.mrf.mxu0 }
 0x678   : > { %v23859_v40 = vpop.f32.mrf.mxu0 }
 0x67a   : > { %v23861_v29 = vpop.f32.mrf.mxu1 }
 0x67c   : > { %v23863_v8 = vpop.f32.mrf.mxu1 }
 0x67e   : > { %v16987_v4 = vpop.f32.mrf.mxu0 }
 0x680   : > { %v16989_v9 = vpop.f32.mrf.mxu0 }
 0x682   : > { %v23865_v34 = vpop.f32.mrf.mxu1 }
 0x684   : > { %v23869_v41 = vpop.f32.mrf.mxu1 }
 0x685   : > { %v23867_v58 = vpop.f32.mrf.mxu0 }
 0x687   : > { %v23871_v51 = vpop.f32.mrf.mxu0 }
 0x689   : > { %v23873_v38 = vpop.f32.mrf.mxu1 }
 0x68b   : > { %v23875_v60 = vpop.f32.mrf.mxu1 }
 0x690   : > { %v17340_v33 = vpop.f32.mrf.mxu0 }
 0x692   : > { %v17342_v61 = vpop.f32.mrf.mxu0 }
 0x695   : > { %v23877_v55 = vpop.f32.mrf.mxu1 }
 0x697   : > { %v23881_v31 = vpop.f32.mrf.mxu1 }
 0x699   : > { %v23879_v46 = vpop.f32.mrf.mxu0 }
 0x69b   : > { %v23883_v22 = vpop.f32.mrf.mxu0 }
 0x69c   : > { %24359 = vst [vmem:[#allocation33_spill] sm:$0xff] %v23883_v22 }
 0x69d   : > { %v23885_v36 = vpop.f32.mrf.mxu1 }
 0x69e   : > { %24360 = vst [vmem:[#allocation34_spill] sm:$0xff] %v23885_v36 }
 0x69f   : > { %v23887_v43 = vpop.f32.mrf.mxu1 }
 0x6a0   : > { %24361 = vst [vmem:[#allocation37_spill] sm:$0xff] %v23887_v43 }
 0x6a1   : > { %v17693_v56 = vpop.f32.mrf.mxu0 }
 0x6a3   : > { %v23889_v59 = vpop.f32.mrf.mxu0 }
 0x6a5   : > { %v23891_v0 = vpop.f32.mrf.mxu1 }
 0x6a6   : > { %24362 = vst [vmem:[#allocation35_spill] sm:$0xff] %v23891_v0 }
 0x6a7   : > { %v23895_v47 = vpop.f32.mrf.mxu1 }
 0x6a8   : > { %24364 = vst [vmem:[#allocation38_spill] sm:$0xff] %v23895_v47 }
 0x6a9   : > { %v23893_v15 = vpop.f32.mrf.mxu0 }
 0x6aa   : > { %24363 = vst [vmem:[#allocation36_spill] sm:$0xff] %v23893_v15 }
 0x6ab   : > { %v23897_v62 = vpop.f32.mrf.mxu0 }
 0x6ac   : > { %24365 = vst [vmem:[#allocation39_spill] sm:$0xff] %v23897_v62 }
 0x6ad   : > { %v23899_v27 = vpop.f32.mrf.mxu1 }
 0x6ae   : > { %24366 = vst [vmem:[#allocation40_spill] sm:$0xff] %v23899_v27 }
 0x6af   : > { %v23901_v13 = vpop.f32.mrf.mxu1 }
 0x6b0   : > { %24367 = vst [vmem:[#allocation41_spill] sm:$0xff] %v23901_v13  ;;  %v15793_v13 = vadd.f32 %v23799_v1, %v23775_v63  ;;  %v15796_v63 = vadd.f32 %v23818_v57, %v23792_v25  ;;  %v16153_v25 = vadd.f32 %v23839_v24, %v23825_v48 }
 0x6b4   : > { %v18046_v18 = vpop.f32.mrf.mxu0 }
 0x6b6   : > { %v23903_v28 = vpop.f32.mrf.mxu0 }
 0x6b9   : > { %v23905_v49 = vpop.f32.mrf.mxu1 }
 0x6ba   : > { %24368 = vst [vmem:[#allocation4_spill] sm:$0xff] %v23905_v49 }
 0x6bb   : > { %v23909_v43 = vpop.f32.mrf.mxu1 }
 0x6bc   : > { %24370 = vst [vmem:[#allocation5_spill] sm:$0xff] %v23909_v43  ;;  %v16146_v43 = vadd.f32 %v15928_v21, %v15793_v13  ;;  %v16149_v21 = vadd.f32 %v23833_v16, %v15796_v63  ;;  %v24382_v63 = vld [vmem:[#allocation36_spill] sm:$0xff] }
 0x6bd   : > { %v23907_v17 = vpop.f32.mrf.mxu0 }
 0x6be   : > { %24369 = vst [vmem:[#allocation3_spill] sm:$0xff] %v23907_v17  ;;  %v15794_v17 = vadd.f32 %v23807_v30, %v23779_v45  ;;  %v16502_v16 = vadd.f32 %v23845_v5, %v16149_v21  ;;  %v24384_v21 = vld [vmem:[#allocation39_spill] sm:$0xff] }
 0x6bf   : > { %v23911_v0 = vpop.f32.mrf.mxu0 }
 0x6c0   : > { %24371 = vst [vmem:[#allocation6_spill] sm:$0xff] %v23911_v0  ;;  %v16499_v0 = vadd.f32 %v16281_v26, %v16146_v43  ;;  %v16855_v24 = vadd.f32 %v23857_v42, %v16502_v16 }
 0x6c1   : > { %v23913_v15 = vpop.f32.mrf.mxu1 }
 0x6c2   : > { %24372 = vst [vmem:[#allocation7_spill] sm:$0xff] %v23913_v15  ;;  %v16147_v15 = vadd.f32 %v23827_v52, %v15794_v17  ;;  %v16150_v52 = vadd.f32 %v23831_v6, %v23815_v12  ;;  %v24381_v17 = vld [vmem:[#allocation38_spill] sm:$0xff] }
 0x6c3   : > { %v23915_v36 = vpop.f32.mrf.mxu1 }
 0x6c4   : > { %24373 = vst [vmem:[#allocation8_spill] sm:$0xff] %v23915_v36  ;;  %v15795_v36 = vadd.f32 %v23809_v19, %v23788_v39  ;;  %v16500_v1 = vadd.f32 %v16283_v10, %v16147_v15  ;;  %v16151_v39 = vadd.f32 %v23835_v32, %v23821_v20  ;;  %v16152_v19 = vadd.f32 %v23837_v37, %v23823_v54  ;;  %v24379_v15 = vld [vmem:[#allocation37_spill] sm:$0xff] }
 0x6c5   : > { %v18399_v47 = vpop.f32.mrf.mxu0  ;;  %v16503_v10 = vadd.f32 %v23843_v14, %v16150_v52  ;;  %v16506_v32 = vadd.f32 %v23851_v53, %v16153_v25  ;;  %v17208_v53 = vadd.f32 %v23869_v41, %v16855_v24 }
 0x6c6   : > { %v16148_v45 = vadd.f32 %v23829_v2, %v15795_v36  ;;  %v16853_v26 = vadd.f32 %v16636_v35, %v16500_v1  ;;  %v16505_v20 = vadd.f32 %v23849_v44, %v16152_v19 }
 0x6c7   : > { %v23917_v62 = vpop.f32.mrf.mxu0 }
 0x6c8   : > { %24374 = vst [vmem:[#allocation10_spill] sm:$0xff] %v23917_v62  ;;  %v16501_v57 = vadd.f32 %v23841_v11, %v16148_v45  ;;  %v17206_v12 = vadd.f32 %v16989_v9, %v16853_v26  ;;  %v16856_v11 = vadd.f32 %v23855_v23, %v16503_v10  ;;  %v24386_v26 = vld [vmem:[#allocation41_spill] sm:$0xff]  ;;  %v24389_v10 = vld [vmem:[#allocation3_spill] sm:$0xff] }
 0x6c9   : > { %v23919_v27 = vpop.f32.mrf.mxu1 }
 0x6ca   : > { %24375 = vst [vmem:[#allocation9_spill] sm:$0xff] %v23919_v27  ;;  %v16854_v54 = vadd.f32 %v23853_v50, %v16501_v57  ;;  %v17559_v35 = vadd.f32 %v17342_v61, %v17206_v12  ;;  %v17209_v50 = vadd.f32 %v23867_v58, %v16856_v11  ;;  %v24377_v58 = vld [vmem:[#allocation33_spill] sm:$0xff] }
 0x6cb   : > { %v23927_v49 = vpop.f32.mrf.mxu1  ;;  %v24388_v57 = vld [vmem:[#allocation5_spill] sm:$0xff]  ;;  %v24392_v24 = vld [vmem:[#allocation8_spill] sm:$0xff] }
 0x6cc   : > { %v17207_v44 = vadd.f32 %v23865_v34, %v16854_v54  ;;  %v17562_v34 = vadd.f32 %v23879_v46, %v17209_v50  ;;  %v24391_v54 = vld [vmem:[#allocation7_spill] sm:$0xff] }
 0x6cd   : > { %v23923_v22 = vpop.f32.mrf.mxu0 }
 0x6ce   : > { %24376 = vst [vmem:[#allocation11_spill] sm:$0xff] %v23923_v22  ;;  %v16852_v22 = vadd.f32 %v16634_v7, %v16499_v0  ;;  %v16504_v7 = vadd.f32 %v23847_v3, %v16151_v39  ;;  %v16859_v3 = vadd.f32 %v23863_v8, %v16506_v32  ;;  %v17561_v8 = vadd.f32 %v23881_v31, %v17208_v53  ;;  %v24387_v39 = vld [vmem:[#allocation4_spill] sm:$0xff] }
 0x6cf   : > { %v23932_v62 = vpop.f32.mrf.mxu0  ;;  %v17915_v1 = vadd.f32 %v24382_v63, %v17562_v34  ;;  %v24383_v31 = vld [vmem:[#allocation10_spill] sm:$0xff] }
 0x6d0   : > { %v17205_v43 = vadd.f32 %v16987_v4, %v16852_v22  ;;  %v16857_v14 = vadd.f32 %v23859_v40, %v16504_v7  ;;  %v16858_v4 = vadd.f32 %v23861_v29, %v16505_v20  ;;  %v17212_v40 = vadd.f32 %v23875_v60, %v16859_v3  ;;  %v24390_v20 = vld [vmem:[#allocation6_spill] sm:$0xff] }
 0x6d1   : > { %v23934_v27 = vpop.f32.mrf.mxu1  ;;  %v17560_v29 = vadd.f32 %v23877_v55, %v17207_v44  ;;  %v17914_v55 = vadd.f32 %v24381_v17, %v17561_v8  ;;  %v18268_v12 = vadd.f32 %v24389_v10, %v17915_v1  ;;  %v24394_v44 = vld [vmem:[#allocation14_spill] sm:$0xff] }
 0x6d2   : > { %v17558_v6 = vadd.f32 %v17340_v33, %v17205_v43  ;;  %v17912_v33 = vadd.f32 %v23889_v59, %v17559_v35  ;;  %v17210_v23 = vadd.f32 %v23871_v51, %v16857_v14  ;;  %v17211_v61 = vadd.f32 %v23873_v38, %v16858_v4  ;;  %v24378_v59 = vld [vmem:[#allocation34_spill] sm:$0xff]  ;;  %v24393_v35 = vld [vmem:[#allocation9_spill] sm:$0xff] }
 0x6d3   : > { %v23949_v2 = vpop.f32.mrf.mxu1  ;;  %v17565_v51 = vadd.f32 %v24379_v15, %v17212_v40  ;;  %v18267_v16 = vadd.f32 %v24388_v57, %v17914_v55  ;;  %v24398_v55 = vld [vmem:[#allocation19_spill] sm:$0xff] }
 0x6d4   : > { %v17911_v5 = vadd.f32 %v17693_v56, %v17558_v6  ;;  %v18265_v41 = vadd.f32 %v23903_v28, %v17912_v33  ;;  %v17563_v56 = vadd.f32 %v24377_v58, %v17210_v23  ;;  %v17564_v0 = vadd.f32 %v24378_v59, %v17211_v61 }
 0x6d5   : > { %v17918_v43 = vadd.f32 %v24386_v26, %v17565_v51  ;;  %v18620_v3 = vadd.f32 %v23927_v49, %v18267_v16  ;;  %v24395_v33 = vld [vmem:[#allocation11_spill] sm:$0xff] }
 0x6d6   : > { %v18264_v42 = vadd.f32 %v18046_v18, %v17911_v5  ;;  %v24380_v18 = vld [vmem:[#allocation35_spill] sm:$0xff]  ;;  %v18618_v45 = vadd.f32 %v24383_v31, %v18265_v41  ;;  %v17916_v28 = vadd.f32 %v24384_v21, %v17563_v56 }
 0x6d7   : > { %v17913_v38 = vadd.f32 %v24380_v18, %v17560_v29  ;;  %v18271_v11 = vadd.f32 %v24392_v24, %v17918_v43  ;;  %v24396_v49 = vld [vmem:[#allocation15_spill] sm:$0xff] }
 0x6d8   : > { %v18752_v30 = vpop.f32.mrf.mxu0  ;;  %v18617_v36 = vadd.f32 %v18399_v47, %v18264_v42  ;;  %v24385_v47 = vld [vmem:[#allocation40_spill] sm:$0xff]  ;;  %v18269_v32 = vadd.f32 %v24390_v20, %v17916_v28  ;;  %v18621_v42 = vadd.f32 %v24395_v33, %v18268_v12  ;;  %v24401_v33 = vld [vmem:[#allocation18_spill] sm:$0xff] }
 0x6d9   : > { %v17917_v52 = vadd.f32 %v24385_v47, %v17564_v0  ;;  %v18266_v19 = vadd.f32 %v24387_v39, %v17913_v38  ;;  %v18624_v58 = vadd.f32 %v23949_v2, %v18271_v11  ;;  %v24397_v38 = vld [vmem:[#allocation16_spill] sm:$0xff]  ;;  %v24399_v39 = vld [vmem:[#allocation17_spill] sm:$0xff] }
 0x6da   : > { %v18754_v37 = vpop.f32.mrf.mxu0  ;;  %v18970_v46 = vadd.f32 %v18752_v30, %v18617_v36  ;;  %v18622_v23 = vadd.f32 %v23932_v62, %v18269_v32 }
 0x6db   : > { %v18971_v6 = vadd.f32 %v18754_v37, %v18618_v45  ;;  %v18270_v30 = vadd.f32 %v24391_v54, %v17917_v52  ;;  %v18619_v5 = vadd.f32 %v24393_v35, %v18266_v19 }
 0x6dd   : > { %v18823_v48 = vpop.f32.mrf.mxu1  ;;  %v18623_v61 = vadd.f32 %v23934_v27, %v18270_v30  ;;  %v24400_v30 = vld [vmem:[#allocation20_spill] sm:$0xff] }
 0x6de   : > { %v18972_v40 = vadd.f32 %v18823_v48, %v18619_v5 }
 0x6df   : > { %v18825_v22 = vpop.f32.mrf.mxu1 }
 0x6e0   : > { %v18973_v8 = vadd.f32 %v18825_v22, %v18620_v3 }
 0x6e1   : > { %v18894_v9 = vpop.f32.mrf.mxu0 }
 0x6e2   : > { %v18974_v56 = vadd.f32 %v18894_v9, %v18621_v42 }
 0x6e3   : > { %v18896_v13 = vpop.f32.mrf.mxu0 }
 0x6e4   : > { %v18975_v59 = vadd.f32 %v18896_v13, %v18622_v23 }
 0x6e5   : > { %v18965_v60 = vpop.f32.mrf.mxu1 }
 0x6e6   : > { %v18976_v45 = vadd.f32 %v18965_v60, %v18623_v61  ;;  %v24402_v61 = vld [vmem:[#allocation21_spill] sm:$0xff] }
 0x6e7   : > { %v18967_v14 = vpop.f32.mrf.mxu1 }
 0x6e9   : > { %v19105_v25 = vpop.f32.mrf.mxu0 }
 0x6ea   : > { %v23986_v7 = vadd.f32 %v19105_v25, %v18970_v46  ;;  %v18977_v25 = vadd.f32 %v18967_v14, %v18624_v58 }
 0x6eb   : > { %v19107_v4 = vpop.f32.mrf.mxu0 }
 0x6ec   : > { %v19331_v53 = vmul.f32 %v23986_v7, %v24394_v44  ;;  %v19357_v37 = vmul.f32 %v23986_v7, %v23986_v7  ;;  %v23997_v50 = vadd.f32 %v19107_v4, %v18971_v6 }
 0x6ed   : > { %v19176_v29 = vpop.f32.mrf.mxu1 }
 0x6ee   : > { %v19365_v34 = vmul.f32 %v19357_v37, %v24394_v44  ;;  %v19332_v41 = vmul.f32 %v23997_v50, %v24396_v49  ;;  %v19358_v36 = vmul.f32 %v23997_v50, %v23997_v50  ;;  %v24008_v0 = vadd.f32 %v19176_v29, %v18972_v40 }
 0x6ef   : > { %v19178_v62 = vpop.f32.mrf.mxu1  ;;  %v19339_v27 = vsel %vm247_vm1, %v19331_v53, 0.0 }
 0x6f0   : > { %v19340_v48 = vsel %vm247_vm1, %v19332_v41, 0.0  ;;  %v19366_v22 = vmul.f32 %v19358_v36, %v24396_v49  ;;  %v24013_v15 = vadd.f32 %v19178_v62, %v18973_v8  ;;  %v19373_v51 = vsel %vm247_vm1, %v19365_v34, 0.0 }
 0x6f1   : > { %v19341_v18 = vadd.f32 %v19340_v48, %v19339_v27  ;;  %v19333_v17 = vmul.f32 %v24008_v0, %v24397_v38  ;;  %v19359_v2 = vmul.f32 %v24008_v0, %v24008_v0  ;;  %v19247_v9 = vpop.f32.mrf.mxu0 }
 0x6f2   : > { %v19374_v13 = vsel %vm247_vm1, %v19366_v22, 0.0  ;;  %v19334_v63 = vmul.f32 %v24013_v15, %v24398_v55  ;;  %v19360_v1 = vmul.f32 %v24013_v15, %v24013_v15  ;;  %v24025_v31 = vadd.f32 %v19247_v9, %v18974_v56 }
 0x6f3   : > { %v19375_v46 = vadd.f32 %v19374_v13, %v19373_v51  ;;  %v19342_v21 = vsel %vm247_vm1, %v19333_v17, 0.0  ;;  %v19367_v28 = vmul.f32 %v19359_v2, %v24397_v38  ;;  %v19249_v47 = vpop.f32.mrf.mxu0 }
 0x6f4   : > { %v19343_v52 = vadd.f32 %v19342_v21, %v19341_v18  ;;  %v19344_v26 = vsel %vm247_vm1, %v19334_v63, 0.0  ;;  %v19368_v43 = vmul.f32 %v19360_v1, %v24398_v55  ;;  %v19335_v19 = vmul.f32 %v24025_v31, %v24399_v39 }
 0x6f5   : > { %v19376_v57 = vsel %vm247_vm1, %v19367_v28, 0.0  ;;  %v19361_v60 = vmul.f32 %v24025_v31, %v24025_v31  ;;  %v24036_v16 = vadd.f32 %v19249_v47, %v18975_v59  ;;  %v19318_v10 = vpop.f32.mrf.mxu1 }
 0x6f6   : > { %v19377_v12 = vadd.f32 %v19376_v57, %v19375_v46  ;;  %v19345_v6 = vadd.f32 %v19344_v26, %v19343_v52  ;;  %v19378_v20 = vsel %vm247_vm1, %v19368_v43, 0.0  ;;  %v19346_v32 = vsel %vm247_vm1, %v19335_v19, 0.0 }
 0x6f7   : > { %v19369_v54 = vmul.f32 %v19361_v60, %v24399_v39  ;;  %v19336_v24 = vmul.f32 %v24036_v16, %v24400_v30  ;;  %v19362_v11 = vmul.f32 %v24036_v16, %v24036_v16  ;;  %v19329_v35 = vadd.f32 %v19318_v10, %v18976_v45  ;;  %v19320_v5 = vpop.f32.mrf.mxu1  ;;  %v19412_v60 = vld [vmem:[%s20348_s20 + $0x4] sm:$0xff] }
 0x6f8   : > { %v19379_v14 = vadd.f32 %v19378_v20, %v19377_v12  ;;  %v19347_v4 = vadd.f32 %v19346_v32, %v19345_v6  ;;  %v19330_v3 = vadd.f32 %v19320_v5, %v18977_v25  ;;  %v19414_v6 = vld [vmem:[%s20348_s20 + $0x14] sm:$0xff]  ;;  %v19415_v20 = vld [vmem:[%s20348_s20 + $0x1c] sm:$0xff] }
 0x6f9   : > { %v19380_v44 = vsel %vm247_vm1, %v19369_v54, 0.0  ;;  %v19348_v53 = vsel %vm247_vm1, %v19336_v24, 0.0  ;;  %v19370_v37 = vmul.f32 %v19362_v11, %v24400_v30  ;;  %v19337_v42 = vmul.f32 %v19329_v35, %v24401_v33 }
 0x6fa   : > { %v19363_v23 = vmul.f32 %v19329_v35, %v19329_v35  ;;  %v19338_v40 = vmul.f32 %v19330_v3, %v24402_v61  ;;  %v19364_v29 = vmul.f32 %v19330_v3, %v19330_v3  ;;  %v19349_v8 = vadd.f32 %v19348_v53, %v19347_v4 }
 0x6fb   : > { %v19350_v34 = vsel %vm247_vm1, %v19337_v42, 0.0  ;;  %v19381_v49 = vadd.f32 %v19380_v44, %v19379_v14  ;;  %v19382_v41 = vsel %vm247_vm1, %v19370_v37, 0.0 }
 0x6fc   : > { %v19371_v36 = vmul.f32 %v19363_v23, %v24401_v33  ;;  %v19351_v58 = vadd.f32 %v19350_v34, %v19349_v8  ;;  %v19352_v56 = vsel %vm247_vm1, %v19338_v40, 0.0  ;;  %v19372_v59 = vmul.f32 %v19364_v29, %v24402_v61 }
 0x6fd   : > { %v19383_v62 = vadd.f32 %v19382_v41, %v19381_v49 }
 0x6fe   : > { %v19353_v27 = vadd.f32 %v19352_v56, %v19351_v58  ;;  %v19384_v48 = vsel %vm247_vm1, %v19371_v36, 0.0  ;;  %v19386_v22 = vsel %vm247_vm1, %v19372_v59, 0.0 }
 0x6ff   : > { %v19385_v51 = vadd.f32 %v19384_v48, %v19383_v62 }
 0x700   : > { %19354 = vadd.xlane.f32.xlu0 %v19353_v27 }
 0x701   : > { %v19387_v18 = vadd.f32 %v19386_v22, %v19385_v51 }
 0x703   : > { %19388 = vadd.xlane.f32.xlu1 %v19387_v18 }
 0x789   : > { %v19355_v38 = vpop.xlane.xlu0 %19354 }
 0x78a   : > { %v19356_v17 = vmul.f32 0.001953125, %v19355_v38 }
 0x78c   : > { %v19389_v2 = vpop.xlane.xlu1 %19388  ;;  %v19391_v13 = vmul.f32 %v19356_v17, %v19356_v17  ;;  %v19394_v45 = vsub.f32 %v23986_v7, %v19356_v17  ;;  %v19395_v46 = vsub.f32 %v23997_v50, %v19356_v17  ;;  %v19396_v21 = vsub.f32 %v24008_v0, %v19356_v17  ;;  %v19413_v50 = vld [vmem:[%s20348_s20 + $0xc] sm:$0xff] }
 0x78d   : > { %v19390_v9 = vmul.f32 0.001953125, %v19389_v2  ;;  %v19397_v28 = vsub.f32 %v24013_v15, %v19356_v17  ;;  %v19398_v52 = vsub.f32 %v24025_v31, %v19356_v17  ;;  %v19399_v26 = vsub.f32 %v24036_v16, %v19356_v17 }
 0x78e   : > { %v19400_v43 = vsub.f32 %v19329_v35, %v19356_v17  ;;  %v19401_v39 = vsub.f32 %v19330_v3, %v19356_v17 }
 0x78f   : > { %v19392_v55 = vsub.f32 %v19390_v9, %v19391_v13 }
 0x791   : > { %v19393_v63 = vmax.f32 %v19392_v55, 0.0 }
 0x793   : > { %v19402_v1 = vadd.f32 1e-05, %v19393_v63 }
 0x795   : > { %20268 = vrsqrt.f32 %v19402_v1 }
 0x7a2   : > { %v20269_v47 = vpop.eup %20268 }
 0x7a3   : > { %v19404_v19 = vmul.f32 %v20269_v47, %v19394_v45  ;;  %v19405_v25 = vmul.f32 %v20269_v47, %v19395_v46  ;;  %v19406_v57 = vmul.f32 %v20269_v47, %v19396_v21  ;;  %v19407_v7 = vmul.f32 %v20269_v47, %v19397_v28 }
 0x7a4   : > { %v19408_v10 = vmul.f32 %v20269_v47, %v19398_v52  ;;  %v19409_v0 = vmul.f32 %v20269_v47, %v19399_v26  ;;  %v19410_v12 = vmul.f32 %v20269_v47, %v19400_v43  ;;  %v19411_v15 = vmul.f32 %v20269_v47, %v19401_v39 }
 0x7a5   : > { %v19424_v32 = vcombine.low %v19404_v19, %v19405_v25  ;;  %v19425_v31 = vcombine.low %v19406_v57, %v19407_v7 }
 0x7a6   : > { %v19426_v16 = vcombine.low %v19408_v10, %v19409_v0  ;;  %v19427_v54 = vcombine.low %v19410_v12, %v19411_v15 }
 0x7a7   : > { %v19432_v30 = vadd.f32 %v19424_v32, %v19412_v60  ;;  %v19433_v24 = vadd.f32 %v19425_v31, %v19413_v50 }
 0x7a8   : > { %v19434_v11 = vadd.f32 %v19426_v16, %v19414_v6  ;;  %v19435_v35 = vadd.f32 %v19427_v54, %v19415_v20 }
 0x7a9   : > { %19436 = vst [vmem:[%s197_s28] sm:$0xff] %v19432_v30  ;;  %19437 = vst [vmem:[%s197_s28 + $0x8] sm:$0xff] %v19433_v24 }
 0x7aa   : > { %19438 = vst [vmem:[%s197_s28 + $0x10] sm:$0xff] %v19434_v11  ;;  %19439 = vst [vmem:[%s197_s28 + $0x18] sm:$0xff] %v19435_v35 }
 0x7ab PF: > { %s14_s15 = sadd.s32 1, %s20280_s15  }
 0x7ac   : > { %p11_p4 = scmp.ge.s32.totalorder %s14_s15, 4  }
 0x7ae   :  { %13 = sbr.rel (!%p11_p4) target bundleno = 1 (0x1), region = 118 }

</bundles_post_ra>
